<compile_context>
chip_gen: v5e
topology: v5e:2x2
jax: 0.10.0
libtpu: 0.0.40
codegen_flags: <defaults>
</compile_context>

<pallas_src>
import functools
import math

import jax
import jax.numpy as jnp
from jax.experimental import pallas as pl
from jax.experimental.pallas import tpu as pltpu

C_IN, C_OUT = 2, 6
KH, KW = 2, 2
PAD_H, PAD_W = 2, 0
assert PAD_H == 2 and KH == 2 and KW == 2  # boundary-row structure assumes this

_ROWS_PER_STRIP = 8  # output rows per register-resident accumulation strip


def _conv_add_kernel(w_ref, b_ref, x_ref, other_ref, o_ref, *, cout_groups):
    """Fused Conv2d(2->6, k=2x2, stride=1, pad=(2,0)) + residual add.

    w_ref:     (C_OUT*C_IN*KH*KW,) flat OIHW weights in SMEM
    b_ref:     (C_OUT,) bias in SMEM
    x_ref:     (Nb, C_IN, H, W) input block in VMEM
    other_ref: (Nb, CG, OH, OW) residual block in VMEM (CG = C_OUT // cout_groups)
    o_ref:     (Nb, CG, OH, OW) output block in VMEM (HBM-aliased to `other`)
    """
    Nb = x_ref.shape[0]
    H, W = x_ref.shape[2], x_ref.shape[3]
    CG = o_ref.shape[1]
    OH, OW = o_ref.shape[2], o_ref.shape[3]

    # First output channel of the group handled by this grid step.
    # (Static 0 on the single-group path so SMEM indexing stays static there.)
    co0 = 0 if cout_groups == 1 else pl.program_id(1) * CG

    # Hoist all scalar SMEM reads (weights + biases) out of the row loops.
    w_s = [[[[w_ref[((co0 + cg) * C_IN + ci) * (KH * KW) + kh * KW + kw]
              for kw in range(KW)] for kh in range(KH)]
            for ci in range(C_IN)] for cg in range(CG)]
    b_s = [b_ref[co0 + cg] for cg in range(CG)]

    def conv_rows(b, r0, nr, kh_taps):
        """Output rows [r0, r0+nr) of image b for all CG channels of this group."""
        # Each row-shifted input plane is loaded from VMEM once and reused
        # across all CG output channels; the two kw taps are lane-shifted views.
        planes = {}
        for ci in range(C_IN):
            for kh in kh_taps:
                r_in = r0 - PAD_H + kh
                planes[(ci, kh)] = x_ref[b, ci, r_in:r_in + nr, :]
        for cg in range(CG):
            # Accumulator initialized from residual + bias (fuses the add).
            # (nr<=8, OW) is a couple of vregs, so the whole MAC chain stays
            # register-resident — no VMEM spill traffic.
            acc = other_ref[b, cg, r0:r0 + nr, :] + b_s[cg]
            for ci in range(C_IN):
                for kh in kh_taps:
                    p = planes[(ci, kh)]
                    acc = (acc
                           + p[:, 0:OW] * w_s[cg][ci][kh][0]
                           + p[:, 1:1 + OW] * w_s[cg][ci][kh][1])
            o_ref[b, cg, r0:r0 + nr, :] = acc

    n_interior = H - (KH - 1)  # output rows whose full receptive field is real input

    for b in range(Nb):
        # Rows whose 2x2 receptive field lies entirely in the zero padding:
        # pure residual + bias, no conv MACs and no input loads at all.
        for cg in range(CG):
            o_ref[b, cg, 0:1, :] = other_ref[b, cg, 0:1, :] + b_s[cg]
            o_ref[b, cg, OH - 1:OH, :] = other_ref[b, cg, OH - 1:OH, :] + b_s[cg]
        # Rows with exactly one kh tap inside the real input.
        conv_rows(b, 1, 1, (1,))        # tap kh=1 -> input row 0
        conv_rows(b, OH - 2, 1, (0,))   # tap kh=0 -> input row H-1
        # Interior rows (both taps valid), strip-mined along OH.
        r = PAD_H
        while r < PAD_H + n_interior:
            nr = min(_ROWS_PER_STRIP, PAD_H + n_interior - r)
            conv_rows(b, r, nr, (0, 1))
            r += nr


def _default_cout_groups(batch_grid_steps):
    """2-way output-channel split only where it can win (v7x: 2 TCs/chip)."""
    if batch_grid_steps >= 2:
        return 1  # the batch grid axis already feeds both TensorCores
    try:
        kind = jax.devices()[0].device_kind.lower()
    except Exception:
        return 1
    return 2 if ("v7" in kind or "7x" in kind) else 1


def _largest_divisor_leq(n, cap):
    for d in range(min(n, cap), 0, -1):
        if n % d == 0:
            return d
    return 1


def model_forward(x, weight, bias, other, *, images_per_step=8, cout_groups=None):
    """x: (N, 2, H, W) f32; weight: (6, 2, 2, 2); bias: (6,); other: (N, 6, OH, OW).

    NOTE: `other` is donated (its HBM buffer is reused as the output); callers
    must not reuse `other` after this call.
    """
    N, C, H, W = x.shape
    assert C == C_IN
    OH = H + 2 * PAD_H - KH + 1
    OW = W + 2 * PAD_W - KW + 1
    assert other.shape == (N, C_OUT, OH, OW)

    # Block several images per grid step to amortize the ~0.35 µs step cost;
    # the working set is tiny compared to VMEM on every generation.
    nb = _largest_divisor_leq(N, max(1, images_per_step))
    batch_steps = N // nb

    ng = cout_groups if cout_groups is not None else _default_cout_groups(batch_steps)
    assert C_OUT % ng == 0
    cg = C_OUT // ng

    kernel = functools.partial(_conv_add_kernel, cout_groups=ng)
    w_flat = weight.reshape(-1)   # 48 scalars; live in SMEM inside the kernel

    return pl.pallas_call(
        kernel,
        out_shape=jax.ShapeDtypeStruct((N, C_OUT, OH, OW), jnp.float32),
        grid=(batch_steps, ng),
        in_specs=[
            pl.BlockSpec(memory_space=pltpu.MemorySpace.SMEM),            # weights
            pl.BlockSpec(memory_space=pltpu.MemorySpace.SMEM),            # bias
            pl.BlockSpec((nb, C_IN, H, W), lambda n, g: (n, 0, 0, 0)),    # x
            pl.BlockSpec((nb, cg, OH, OW), lambda n, g: (n, g, 0, 0)),    # other
        ],
        out_specs=pl.BlockSpec((nb, cg, OH, OW), lambda n, g: (n, g, 0, 0)),
        input_output_aliases={3: 0},   # reuse `other`'s HBM buffer as the output
        compiler_params=pltpu.CompilerParams(
            dimension_semantics=("parallel", "parallel")),
    )(w_flat, bias, x, other)


def reference_forward(x, weight, bias, other):
    """Pure-JAX reference (lax conv) for correctness checking."""
    y = jax.lax.conv_general_dilated(
        x, weight, window_strides=(1, 1),
        padding=((PAD_H, PAD_H), (PAD_W, PAD_W)),
        dimension_numbers=("NCHW", "OIHW", "NCHW"))
    return y + bias.reshape(1, C_OUT, 1, 1) + other


def _run_case(key, N, H, W, **fwd_kwargs):
    k_x, k_w, k_b, k_other = jax.random.split(key, 4)
    x = jax.random.normal(k_x, (N, C_IN, H, W), dtype=jnp.float32)

    # Deterministic Conv2d-style parameter init (fan_in-scaled uniform).
    fan_in = C_IN * KH * KW
    bound = 1.0 / math.sqrt(fan_in)
    weight = jax.random.uniform(k_w, (C_OUT, C_IN, KH, KW),
                                minval=-bound, maxval=bound, dtype=jnp.float32)
    bias = jax.random.uniform(k_b, (C_OUT,),
                              minval=-bound, maxval=bound, dtype=jnp.float32)

    OH = H + 2 * PAD_H - KH + 1
    OW = W + 2 * PAD_W - KW + 1
    # In the PyTorch module `other` defaults to torch.randn(v1.shape); here it
    # is drawn deterministically from the JAX PRNG.
    other = jax.random.normal(k_other, (N, C_OUT, OH, OW), dtype=jnp.float32)

    # Reference is computed BEFORE the kernel call: `other` is donated to the
    # kernel via input_output_aliases and must not be reused afterwards.
    ref = jax.block_until_ready(reference_forward(x, weight, bias, other))
    out = jax.block_until_ready(model_forward(x, weight, bias, other, **fwd_kwargs))

    assert out.shape == (N, C_OUT, OH, OW)
    assert jnp.allclose(out, ref, atol=1e-5, rtol=1e-5), \
        f"mismatch: max abs err {jnp.max(jnp.abs(out - ref))}"


if __name__ == "__main__":
    key = jax.random.PRNGKey(0)
    k1, k2, k3 = jax.random.split(key, 3)
    # Shape from the original module spec: x1 = torch.randn(1, 2, 64, 64).
    _run_case(k1, N=1, H=64, W=64)
    # Exercise the 2-way output-channel grid split (v7x second-TC path)
    # regardless of the local chip generation.
    _run_case(k2, N=2, H=16, W=16, cout_groups=2)
    # Exercise multi-image blocking with more than one batch grid step.
    _run_case(k3, N=4, H=12, W=16, images_per_step=2)
    print("KERNEL_OK")
</pallas_src>

<mosaic_0001>
module attributes {stable_mosaic.version = 11 : i64} {
  func.func @_conv_add_kernel(%arg0: i32, %arg1: i32, %arg2: memref<48xf32, #tpu.memory_space<smem>>, %arg3: memref<6xf32, #tpu.memory_space<smem>>, %arg4: memref<1x2x64x64xf32, #tpu.memory_space<vmem>>, %arg5: memref<1x6x67x63xf32, #tpu.memory_space<vmem>>, %arg6: memref<1x6x67x63xf32, #tpu.memory_space<vmem>>) attributes {dimension_semantics = [#tpu.dimension_semantics<parallel>, #tpu.dimension_semantics<parallel>], iteration_bounds = array<i64: 1, 1>, scalar_prefetch = 0 : i64, scratch_operands = 0 : i64, tpu.core_type = #tpu.core_type<tc>, window_params = [{transform_indices = @transform_0, window_bounds = array<i64: 48>}, {transform_indices = @transform_1, window_bounds = array<i64: 6>}, {transform_indices = @transform_2, window_bounds = array<i64: 1, 2, 64, 64>}, {transform_indices = @transform_3, window_bounds = array<i64: 1, 6, 67, 63>}, {transform_indices = @transform_4, window_bounds = array<i64: 1, 6, 67, 63>}]} {
    %c0 = arith.constant 0 : index
    %0 = memref.load %arg2[%c0] : memref<48xf32, #tpu.memory_space<smem>>
    %c1 = arith.constant 1 : index
    %1 = memref.load %arg2[%c1] : memref<48xf32, #tpu.memory_space<smem>>
    %c2 = arith.constant 2 : index
    %2 = memref.load %arg2[%c2] : memref<48xf32, #tpu.memory_space<smem>>
    %c3 = arith.constant 3 : index
    %3 = memref.load %arg2[%c3] : memref<48xf32, #tpu.memory_space<smem>>
    %c4 = arith.constant 4 : index
    %4 = memref.load %arg2[%c4] : memref<48xf32, #tpu.memory_space<smem>>
    %c5 = arith.constant 5 : index
    %5 = memref.load %arg2[%c5] : memref<48xf32, #tpu.memory_space<smem>>
    %c6 = arith.constant 6 : index
    %6 = memref.load %arg2[%c6] : memref<48xf32, #tpu.memory_space<smem>>
    %c7 = arith.constant 7 : index
    %7 = memref.load %arg2[%c7] : memref<48xf32, #tpu.memory_space<smem>>
    %c8 = arith.constant 8 : index
    %8 = memref.load %arg2[%c8] : memref<48xf32, #tpu.memory_space<smem>>
    %c9 = arith.constant 9 : index
    %9 = memref.load %arg2[%c9] : memref<48xf32, #tpu.memory_space<smem>>
    %c10 = arith.constant 10 : index
    %10 = memref.load %arg2[%c10] : memref<48xf32, #tpu.memory_space<smem>>
    %c11 = arith.constant 11 : index
    %11 = memref.load %arg2[%c11] : memref<48xf32, #tpu.memory_space<smem>>
    %c12 = arith.constant 12 : index
    %12 = memref.load %arg2[%c12] : memref<48xf32, #tpu.memory_space<smem>>
    %c13 = arith.constant 13 : index
    %13 = memref.load %arg2[%c13] : memref<48xf32, #tpu.memory_space<smem>>
    %c14 = arith.constant 14 : index
    %14 = memref.load %arg2[%c14] : memref<48xf32, #tpu.memory_space<smem>>
    %c15 = arith.constant 15 : index
    %15 = memref.load %arg2[%c15] : memref<48xf32, #tpu.memory_space<smem>>
    %c16 = arith.constant 16 : index
    %16 = memref.load %arg2[%c16] : memref<48xf32, #tpu.memory_space<smem>>
    %c17 = arith.constant 17 : index
    %17 = memref.load %arg2[%c17] : memref<48xf32, #tpu.memory_space<smem>>
    %c18 = arith.constant 18 : index
    %18 = memref.load %arg2[%c18] : memref<48xf32, #tpu.memory_space<smem>>
    %c19 = arith.constant 19 : index
    %19 = memref.load %arg2[%c19] : memref<48xf32, #tpu.memory_space<smem>>
    %c20 = arith.constant 20 : index
    %20 = memref.load %arg2[%c20] : memref<48xf32, #tpu.memory_space<smem>>
    %c21 = arith.constant 21 : index
    %21 = memref.load %arg2[%c21] : memref<48xf32, #tpu.memory_space<smem>>
    %c22 = arith.constant 22 : index
    %22 = memref.load %arg2[%c22] : memref<48xf32, #tpu.memory_space<smem>>
    %c23 = arith.constant 23 : index
    %23 = memref.load %arg2[%c23] : memref<48xf32, #tpu.memory_space<smem>>
    %c24 = arith.constant 24 : index
    %24 = memref.load %arg2[%c24] : memref<48xf32, #tpu.memory_space<smem>>
    %c25 = arith.constant 25 : index
    %25 = memref.load %arg2[%c25] : memref<48xf32, #tpu.memory_space<smem>>
    %c26 = arith.constant 26 : index
    %26 = memref.load %arg2[%c26] : memref<48xf32, #tpu.memory_space<smem>>
    %c27 = arith.constant 27 : index
    %27 = memref.load %arg2[%c27] : memref<48xf32, #tpu.memory_space<smem>>
    %c28 = arith.constant 28 : index
    %28 = memref.load %arg2[%c28] : memref<48xf32, #tpu.memory_space<smem>>
    %c29 = arith.constant 29 : index
    %29 = memref.load %arg2[%c29] : memref<48xf32, #tpu.memory_space<smem>>
    %c30 = arith.constant 30 : index
    %30 = memref.load %arg2[%c30] : memref<48xf32, #tpu.memory_space<smem>>
    %c31 = arith.constant 31 : index
    %31 = memref.load %arg2[%c31] : memref<48xf32, #tpu.memory_space<smem>>
    %c32 = arith.constant 32 : index
    %32 = memref.load %arg2[%c32] : memref<48xf32, #tpu.memory_space<smem>>
    %c33 = arith.constant 33 : index
    %33 = memref.load %arg2[%c33] : memref<48xf32, #tpu.memory_space<smem>>
    %c34 = arith.constant 34 : index
    %34 = memref.load %arg2[%c34] : memref<48xf32, #tpu.memory_space<smem>>
    %c35 = arith.constant 35 : index
    %35 = memref.load %arg2[%c35] : memref<48xf32, #tpu.memory_space<smem>>
    %c36 = arith.constant 36 : index
    %36 = memref.load %arg2[%c36] : memref<48xf32, #tpu.memory_space<smem>>
    %c37 = arith.constant 37 : index
    %37 = memref.load %arg2[%c37] : memref<48xf32, #tpu.memory_space<smem>>
    %c38 = arith.constant 38 : index
    %38 = memref.load %arg2[%c38] : memref<48xf32, #tpu.memory_space<smem>>
    %c39 = arith.constant 39 : index
    %39 = memref.load %arg2[%c39] : memref<48xf32, #tpu.memory_space<smem>>
    %c40 = arith.constant 40 : index
    %40 = memref.load %arg2[%c40] : memref<48xf32, #tpu.memory_space<smem>>
    %c41 = arith.constant 41 : index
    %41 = memref.load %arg2[%c41] : memref<48xf32, #tpu.memory_space<smem>>
    %c42 = arith.constant 42 : index
    %42 = memref.load %arg2[%c42] : memref<48xf32, #tpu.memory_space<smem>>
    %c43 = arith.constant 43 : index
    %43 = memref.load %arg2[%c43] : memref<48xf32, #tpu.memory_space<smem>>
    %c44 = arith.constant 44 : index
    %44 = memref.load %arg2[%c44] : memref<48xf32, #tpu.memory_space<smem>>
    %c45 = arith.constant 45 : index
    %45 = memref.load %arg2[%c45] : memref<48xf32, #tpu.memory_space<smem>>
    %c46 = arith.constant 46 : index
    %46 = memref.load %arg2[%c46] : memref<48xf32, #tpu.memory_space<smem>>
    %c47 = arith.constant 47 : index
    %47 = memref.load %arg2[%c47] : memref<48xf32, #tpu.memory_space<smem>>
    %c0_0 = arith.constant 0 : index
    %48 = memref.load %arg3[%c0_0] : memref<6xf32, #tpu.memory_space<smem>>
    %c1_1 = arith.constant 1 : index
    %49 = memref.load %arg3[%c1_1] : memref<6xf32, #tpu.memory_space<smem>>
    %c2_2 = arith.constant 2 : index
    %50 = memref.load %arg3[%c2_2] : memref<6xf32, #tpu.memory_space<smem>>
    %c3_3 = arith.constant 3 : index
    %51 = memref.load %arg3[%c3_3] : memref<6xf32, #tpu.memory_space<smem>>
    %c4_4 = arith.constant 4 : index
    %52 = memref.load %arg3[%c4_4] : memref<6xf32, #tpu.memory_space<smem>>
    %c5_5 = arith.constant 5 : index
    %53 = memref.load %arg3[%c5_5] : memref<6xf32, #tpu.memory_space<smem>>
    %c0_6 = arith.constant 0 : index
    %c0_7 = arith.constant 0 : index
    %c0_8 = arith.constant 0 : index
    %c0_9 = arith.constant 0 : index
    %54 = vector.load %arg5[%c0_6, %c0_7, %c0_8, %c0_9] : memref<1x6x67x63xf32, #tpu.memory_space<vmem>>, vector<1x1x1x63xf32>
    %55 = vector.shape_cast %54 : vector<1x1x1x63xf32> to vector<1x63xf32>
    %56 = vector.broadcast %48 : f32 to vector<1x63xf32>
    %57 = arith.addf %55, %56 : vector<1x63xf32>
    %c0_10 = arith.constant 0 : index
    %c0_11 = arith.constant 0 : index
    %c0_12 = arith.constant 0 : index
    %c0_13 = arith.constant 0 : index
    %58 = vector.load %arg6[%c0_10, %c0_11, %c0_12, %c0_13] : memref<1x6x67x63xf32, #tpu.memory_space<vmem>>, vector<1x1x1x63xf32>
    %59 = vector.shape_cast %58 : vector<1x1x1x63xf32> to vector<1x63xf32>
    %60 = vector.shape_cast %57 : vector<1x63xf32> to vector<1x1x1x63xf32>
    tpu.vector_store %arg6[%c0_10, %c0_11, %c0_12, %c0_13], %60 {strides = array<i32>} : memref<1x6x67x63xf32, #tpu.memory_space<vmem>>, vector<1x1x1x63xf32>,
    %c0_14 = arith.constant 0 : index
    %c0_15 = arith.constant 0 : index
    %c66 = arith.constant 66 : index
    %c0_16 = arith.constant 0 : index
    %61 = vector.load %arg5[%c0_14, %c0_15, %c66, %c0_16] : memref<1x6x67x63xf32, #tpu.memory_space<vmem>>, vector<1x1x1x63xf32>
    %62 = vector.shape_cast %61 : vector<1x1x1x63xf32> to vector<1x63xf32>
    %63 = vector.broadcast %48 : f32 to vector<1x63xf32>
    %64 = arith.addf %62, %63 : vector<1x63xf32>
    %c0_17 = arith.constant 0 : index
    %c0_18 = arith.constant 0 : index
    %c66_19 = arith.constant 66 : index
    %c0_20 = arith.constant 0 : index
    %65 = vector.load %arg6[%c0_17, %c0_18, %c66_19, %c0_20] : memref<1x6x67x63xf32, #tpu.memory_space<vmem>>, vector<1x1x1x63xf32>
    %66 = vector.shape_cast %65 : vector<1x1x1x63xf32> to vector<1x63xf32>
    %67 = vector.shape_cast %64 : vector<1x63xf32> to vector<1x1x1x63xf32>
    tpu.vector_store %arg6[%c0_17, %c0_18, %c66_19, %c0_20], %67 {strides = array<i32>} : memref<1x6x67x63xf32, #tpu.memory_space<vmem>>, vector<1x1x1x63xf32>,
    %c0_21 = arith.constant 0 : index
    %c1_22 = arith.constant 1 : index
    %c0_23 = arith.constant 0 : index
    %c0_24 = arith.constant 0 : index
    %68 = vector.load %arg5[%c0_21, %c1_22, %c0_23, %c0_24] : memref<1x6x67x63xf32, #tpu.memory_space<vmem>>, vector<1x1x1x63xf32>
    %69 = vector.shape_cast %68 : vector<1x1x1x63xf32> to vector<1x63xf32>
    %70 = vector.broadcast %49 : f32 to vector<1x63xf32>
    %71 = arith.addf %69, %70 : vector<1x63xf32>
    %c0_25 = arith.constant 0 : index
    %c1_26 = arith.constant 1 : index
    %c0_27 = arith.constant 0 : index
    %c0_28 = arith.constant 0 : index
    %72 = vector.load %arg6[%c0_25, %c1_26, %c0_27, %c0_28] : memref<1x6x67x63xf32, #tpu.memory_space<vmem>>, vector<1x1x1x63xf32>
    %73 = vector.shape_cast %72 : vector<1x1x1x63xf32> to vector<1x63xf32>
    %74 = vector.shape_cast %71 : vector<1x63xf32> to vector<1x1x1x63xf32>
    tpu.vector_store %arg6[%c0_25, %c1_26, %c0_27, %c0_28], %74 {strides = array<i32>} : memref<1x6x67x63xf32, #tpu.memory_space<vmem>>, vector<1x1x1x63xf32>,
    %c0_29 = arith.constant 0 : index
    %c1_30 = arith.constant 1 : index
    %c66_31 = arith.constant 66 : index
    %c0_32 = arith.constant 0 : index
    %75 = vector.load %arg5[%c0_29, %c1_30, %c66_31, %c0_32] : memref<1x6x67x63xf32, #tpu.memory_space<vmem>>, vector<1x1x1x63xf32>
    %76 = vector.shape_cast %75 : vector<1x1x1x63xf32> to vector<1x63xf32>
    %77 = vector.broadcast %49 : f32 to vector<1x63xf32>
    %78 = arith.addf %76, %77 : vector<1x63xf32>
    %c0_33 = arith.constant 0 : index
    %c1_34 = arith.constant 1 : index
    %c66_35 = arith.constant 66 : index
    %c0_36 = arith.constant 0 : index
    %79 = vector.load %arg6[%c0_33, %c1_34, %c66_35, %c0_36] : memref<1x6x67x63xf32, #tpu.memory_space<vmem>>, vector<1x1x1x63xf32>
    %80 = vector.shape_cast %79 : vector<1x1x1x63xf32> to vector<1x63xf32>
    %81 = vector.shape_cast %78 : vector<1x63xf32> to vector<1x1x1x63xf32>
    tpu.vector_store %arg6[%c0_33, %c1_34, %c66_35, %c0_36], %81 {strides = array<i32>} : memref<1x6x67x63xf32, #tpu.memory_space<vmem>>, vector<1x1x1x63xf32>,
    %c0_37 = arith.constant 0 : index
    %c2_38 = arith.constant 2 : index
    %c0_39 = arith.constant 0 : index
    %c0_40 = arith.constant 0 : index
    %82 = vector.load %arg5[%c0_37, %c2_38, %c0_39, %c0_40] : memref<1x6x67x63xf32, #tpu.memory_space<vmem>>, vector<1x1x1x63xf32>
    %83 = vector.shape_cast %82 : vector<1x1x1x63xf32> to vector<1x63xf32>
    %84 = vector.broadcast %50 : f32 to vector<1x63xf32>
    %85 = arith.addf %83, %84 : vector<1x63xf32>
    %c0_41 = arith.constant 0 : index
    %c2_42 = arith.constant 2 : index
    %c0_43 = arith.constant 0 : index
    %c0_44 = arith.constant 0 : index
    %86 = vector.load %arg6[%c0_41, %c2_42, %c0_43, %c0_44] : memref<1x6x67x63xf32, #tpu.memory_space<vmem>>, vector<1x1x1x63xf32>
    %87 = vector.shape_cast %86 : vector<1x1x1x63xf32> to vector<1x63xf32>
    %88 = vector.shape_cast %85 : vector<1x63xf32> to vector<1x1x1x63xf32>
    tpu.vector_store %arg6[%c0_41, %c2_42, %c0_43, %c0_44], %88 {strides = array<i32>} : memref<1x6x67x63xf32, #tpu.memory_space<vmem>>, vector<1x1x1x63xf32>,
    %c0_45 = arith.constant 0 : index
    %c2_46 = arith.constant 2 : index
    %c66_47 = arith.constant 66 : index
    %c0_48 = arith.constant 0 : index
    %89 = vector.load %arg5[%c0_45, %c2_46, %c66_47, %c0_48] : memref<1x6x67x63xf32, #tpu.memory_space<vmem>>, vector<1x1x1x63xf32>
    %90 = vector.shape_cast %89 : vector<1x1x1x63xf32> to vector<1x63xf32>
    %91 = vector.broadcast %50 : f32 to vector<1x63xf32>
    %92 = arith.addf %90, %91 : vector<1x63xf32>
    %c0_49 = arith.constant 0 : index
    %c2_50 = arith.constant 2 : index
    %c66_51 = arith.constant 66 : index
    %c0_52 = arith.constant 0 : index
    %93 = vector.load %arg6[%c0_49, %c2_50, %c66_51, %c0_52] : memref<1x6x67x63xf32, #tpu.memory_space<vmem>>, vector<1x1x1x63xf32>
    %94 = vector.shape_cast %93 : vector<1x1x1x63xf32> to vector<1x63xf32>
    %95 = vector.shape_cast %92 : vector<1x63xf32> to vector<1x1x1x63xf32>
    tpu.vector_store %arg6[%c0_49, %c2_50, %c66_51, %c0_52], %95 {strides = array<i32>} : memref<1x6x67x63xf32, #tpu.memory_space<vmem>>, vector<1x1x1x63xf32>,
    %c0_53 = arith.constant 0 : index
    %c3_54 = arith.constant 3 : index
    %c0_55 = arith.constant 0 : index
    %c0_56 = arith.constant 0 : index
    %96 = vector.load %arg5[%c0_53, %c3_54, %c0_55, %c0_56] : memref<1x6x67x63xf32, #tpu.memory_space<vmem>>, vector<1x1x1x63xf32>
    %97 = vector.shape_cast %96 : vector<1x1x1x63xf32> to vector<1x63xf32>
    %98 = vector.broadcast %51 : f32 to vector<1x63xf32>
    %99 = arith.addf %97, %98 : vector<1x63xf32>
    %c0_57 = arith.constant 0 : index
    %c3_58 = arith.constant 3 : index
    %c0_59 = arith.constant 0 : index
    %c0_60 = arith.constant 0 : index
    %100 = vector.load %arg6[%c0_57, %c3_58, %c0_59, %c0_60] : memref<1x6x67x63xf32, #tpu.memory_space<vmem>>, vector<1x1x1x63xf32>
    %101 = vector.shape_cast %100 : vector<1x1x1x63xf32> to vector<1x63xf32>
    %102 = vector.shape_cast %99 : vector<1x63xf32> to vector<1x1x1x63xf32>
    tpu.vector_store %arg6[%c0_57, %c3_58, %c0_59, %c0_60], %102 {strides = array<i32>} : memref<1x6x67x63xf32, #tpu.memory_space<vmem>>, vector<1x1x1x63xf32>,
    %c0_61 = arith.constant 0 : index
    %c3_62 = arith.constant 3 : index
    %c66_63 = arith.constant 66 : index
    %c0_64 = arith.constant 0 : index
    %103 = vector.load %arg5[%c0_61, %c3_62, %c66_63, %c0_64] : memref<1x6x67x63xf32, #tpu.memory_space<vmem>>, vector<1x1x1x63xf32>
    %104 = vector.shape_cast %103 : vector<1x1x1x63xf32> to vector<1x63xf32>
    %105 = vector.broadcast %51 : f32 to vector<1x63xf32>
    %106 = arith.addf %104, %105 : vector<1x63xf32>
    %c0_65 = arith.constant 0 : index
    %c3_66 = arith.constant 3 : index
    %c66_67 = arith.constant 66 : index
    %c0_68 = arith.constant 0 : index
    %107 = vector.load %arg6[%c0_65, %c3_66, %c66_67, %c0_68] : memref<1x6x67x63xf32, #tpu.memory_space<vmem>>, vector<1x1x1x63xf32>
    %108 = vector.shape_cast %107 : vector<1x1x1x63xf32> to vector<1x63xf32>
    %109 = vector.shape_cast %106 : vector<1x63xf32> to vector<1x1x1x63xf32>
    tpu.vector_store %arg6[%c0_65, %c3_66, %c66_67, %c0_68], %109 {strides = array<i32>} : memref<1x6x67x63xf32, #tpu.memory_space<vmem>>, vector<1x1x1x63xf32>,
    %c0_69 = arith.constant 0 : index
    %c4_70 = arith.constant 4 : index
    %c0_71 = arith.constant 0 : index
    %c0_72 = arith.constant 0 : index
    %110 = vector.load %arg5[%c0_69, %c4_70, %c0_71, %c0_72] : memref<1x6x67x63xf32, #tpu.memory_space<vmem>>, vector<1x1x1x63xf32>
    %111 = vector.shape_cast %110 : vector<1x1x1x63xf32> to vector<1x63xf32>
    %112 = vector.broadcast %52 : f32 to vector<1x63xf32>
    %113 = arith.addf %111, %112 : vector<1x63xf32>
    %c0_73 = arith.constant 0 : index
    %c4_74 = arith.constant 4 : index
    %c0_75 = arith.constant 0 : index
    %c0_76 = arith.constant 0 : index
    %114 = vector.load %arg6[%c0_73, %c4_74, %c0_75, %c0_76] : memref<1x6x67x63xf32, #tpu.memory_space<vmem>>, vector<1x1x1x63xf32>
    %115 = vector.shape_cast %114 : vector<1x1x1x63xf32> to vector<1x63xf32>
    %116 = vector.shape_cast %113 : vector<1x63xf32> to vector<1x1x1x63xf32>
    tpu.vector_store %arg6[%c0_73, %c4_74, %c0_75, %c0_76], %116 {strides = array<i32>} : memref<1x6x67x63xf32, #tpu.memory_space<vmem>>, vector<1x1x1x63xf32>,
    %c0_77 = arith.constant 0 : index
    %c4_78 = arith.constant 4 : index
    %c66_79 = arith.constant 66 : index
    %c0_80 = arith.constant 0 : index
    %117 = vector.load %arg5[%c0_77, %c4_78, %c66_79, %c0_80] : memref<1x6x67x63xf32, #tpu.memory_space<vmem>>, vector<1x1x1x63xf32>
    %118 = vector.shape_cast %117 : vector<1x1x1x63xf32> to vector<1x63xf32>
    %119 = vector.broadcast %52 : f32 to vector<1x63xf32>
    %120 = arith.addf %118, %119 : vector<1x63xf32>
    %c0_81 = arith.constant 0 : index
    %c4_82 = arith.constant 4 : index
    %c66_83 = arith.constant 66 : index
    %c0_84 = arith.constant 0 : index
    %121 = vector.load %arg6[%c0_81, %c4_82, %c66_83, %c0_84] : memref<1x6x67x63xf32, #tpu.memory_space<vmem>>, vector<1x1x1x63xf32>
    %122 = vector.shape_cast %121 : vector<1x1x1x63xf32> to vector<1x63xf32>
    %123 = vector.shape_cast %120 : vector<1x63xf32> to vector<1x1x1x63xf32>
    tpu.vector_store %arg6[%c0_81, %c4_82, %c66_83, %c0_84], %123 {strides = array<i32>} : memref<1x6x67x63xf32, #tpu.memory_space<vmem>>, vector<1x1x1x63xf32>,
    %c0_85 = arith.constant 0 : index
    %c5_86 = arith.constant 5 : index
    %c0_87 = arith.constant 0 : index
    %c0_88 = arith.constant 0 : index
    %124 = vector.load %arg5[%c0_85, %c5_86, %c0_87, %c0_88] : memref<1x6x67x63xf32, #tpu.memory_space<vmem>>, vector<1x1x1x63xf32>
    %125 = vector.shape_cast %124 : vector<1x1x1x63xf32> to vector<1x63xf32>
    %126 = vector.broadcast %53 : f32 to vector<1x63xf32>
    %127 = arith.addf %125, %126 : vector<1x63xf32>
    %c0_89 = arith.constant 0 : index
    %c5_90 = arith.constant 5 : index
    %c0_91 = arith.constant 0 : index
    %c0_92 = arith.constant 0 : index
    %128 = vector.load %arg6[%c0_89, %c5_90, %c0_91, %c0_92] : memref<1x6x67x63xf32, #tpu.memory_space<vmem>>, vector<1x1x1x63xf32>
    %129 = vector.shape_cast %128 : vector<1x1x1x63xf32> to vector<1x63xf32>
    %130 = vector.shape_cast %127 : vector<1x63xf32> to vector<1x1x1x63xf32>
    tpu.vector_store %arg6[%c0_89, %c5_90, %c0_91, %c0_92], %130 {strides = array<i32>} : memref<1x6x67x63xf32, #tpu.memory_space<vmem>>, vector<1x1x1x63xf32>,
    %c0_93 = arith.constant 0 : index
    %c5_94 = arith.constant 5 : index
    %c66_95 = arith.constant 66 : index
    %c0_96 = arith.constant 0 : index
    %131 = vector.load %arg5[%c0_93, %c5_94, %c66_95, %c0_96] : memref<1x6x67x63xf32, #tpu.memory_space<vmem>>, vector<1x1x1x63xf32>
    %132 = vector.shape_cast %131 : vector<1x1x1x63xf32> to vector<1x63xf32>
    %133 = vector.broadcast %53 : f32 to vector<1x63xf32>
    %134 = arith.addf %132, %133 : vector<1x63xf32>
    %c0_97 = arith.constant 0 : index
    %c5_98 = arith.constant 5 : index
    %c66_99 = arith.constant 66 : index
    %c0_100 = arith.constant 0 : index
    %135 = vector.load %arg6[%c0_97, %c5_98, %c66_99, %c0_100] : memref<1x6x67x63xf32, #tpu.memory_space<vmem>>, vector<1x1x1x63xf32>
    %136 = vector.shape_cast %135 : vector<1x1x1x63xf32> to vector<1x63xf32>
    %137 = vector.shape_cast %134 : vector<1x63xf32> to vector<1x1x1x63xf32>
    tpu.vector_store %arg6[%c0_97, %c5_98, %c66_99, %c0_100], %137 {strides = array<i32>} : memref<1x6x67x63xf32, #tpu.memory_space<vmem>>, vector<1x1x1x63xf32>,
    %c0_101 = arith.constant 0 : index
    %c0_102 = arith.constant 0 : index
    %c0_103 = arith.constant 0 : index
    %c0_104 = arith.constant 0 : index
    %138 = vector.load %arg4[%c0_101, %c0_102, %c0_103, %c0_104] : memref<1x2x64x64xf32, #tpu.memory_space<vmem>>, vector<1x1x1x64xf32>
    %139 = vector.shape_cast %138 : vector<1x1x1x64xf32> to vector<1x64xf32>
    %c0_105 = arith.constant 0 : index
    %c1_106 = arith.constant 1 : index
    %c0_107 = arith.constant 0 : index
    %c0_108 = arith.constant 0 : index
    %140 = vector.load %arg4[%c0_105, %c1_106, %c0_107, %c0_108] : memref<1x2x64x64xf32, #tpu.memory_space<vmem>>, vector<1x1x1x64xf32>
    %141 = vector.shape_cast %140 : vector<1x1x1x64xf32> to vector<1x64xf32>
    %c0_109 = arith.constant 0 : index
    %c0_110 = arith.constant 0 : index
    %c1_111 = arith.constant 1 : index
    %c0_112 = arith.constant 0 : index
    %142 = vector.load %arg5[%c0_109, %c0_110, %c1_111, %c0_112] : memref<1x6x67x63xf32, #tpu.memory_space<vmem>>, vector<1x1x1x63xf32>
    %143 = vector.shape_cast %142 : vector<1x1x1x63xf32> to vector<1x63xf32>
    %144 = vector.broadcast %48 : f32 to vector<1x63xf32>
    %145 = arith.addf %143, %144 : vector<1x63xf32>
    %146 = vector.extract_strided_slice %139 {offsets = [0, 0], sizes = [1, 63], strides = [1, 1]} : vector<1x64xf32> to vector<1x63xf32>
    %147 = vector.broadcast %2 : f32 to vector<1x63xf32>
    %148 = arith.mulf %146, %147 : vector<1x63xf32>
    %149 = arith.addf %145, %148 : vector<1x63xf32>
    %150 = vector.extract_strided_slice %139 {offsets = [0, 1], sizes = [1, 63], strides = [1, 1]} : vector<1x64xf32> to vector<1x63xf32>
    %151 = vector.broadcast %3 : f32 to vector<1x63xf32>
    %152 = arith.mulf %150, %151 : vector<1x63xf32>
    %153 = arith.addf %149, %152 : vector<1x63xf32>
    %154 = vector.extract_strided_slice %141 {offsets = [0, 0], sizes = [1, 63], strides = [1, 1]} : vector<1x64xf32> to vector<1x63xf32>
    %155 = vector.broadcast %6 : f32 to vector<1x63xf32>
    %156 = arith.mulf %154, %155 : vector<1x63xf32>
    %157 = arith.addf %153, %156 : vector<1x63xf32>
    %158 = vector.extract_strided_slice %141 {offsets = [0, 1], sizes = [1, 63], strides = [1, 1]} : vector<1x64xf32> to vector<1x63xf32>
    %159 = vector.broadcast %7 : f32 to vector<1x63xf32>
    %160 = arith.mulf %158, %159 : vector<1x63xf32>
    %161 = arith.addf %157, %160 : vector<1x63xf32>
    %c0_113 = arith.constant 0 : index
    %c0_114 = arith.constant 0 : index
    %c1_115 = arith.constant 1 : index
    %c0_116 = arith.constant 0 : index
    %162 = vector.load %arg6[%c0_113, %c0_114, %c1_115, %c0_116] : memref<1x6x67x63xf32, #tpu.memory_space<vmem>>, vector<1x1x1x63xf32>
    %163 = vector.shape_cast %162 : vector<1x1x1x63xf32> to vector<1x63xf32>
    %164 = vector.shape_cast %161 : vector<1x63xf32> to vector<1x1x1x63xf32>
    tpu.vector_store %arg6[%c0_113, %c0_114, %c1_115, %c0_116], %164 {strides = array<i32>} : memref<1x6x67x63xf32, #tpu.memory_space<vmem>>, vector<1x1x1x63xf32>,
    %c0_117 = arith.constant 0 : index
    %c1_118 = arith.constant 1 : index
    %c1_119 = arith.constant 1 : index
    %c0_120 = arith.constant 0 : index
    %165 = vector.load %arg5[%c0_117, %c1_118, %c1_119, %c0_120] : memref<1x6x67x63xf32, #tpu.memory_space<vmem>>, vector<1x1x1x63xf32>
    %166 = vector.shape_cast %165 : vector<1x1x1x63xf32> to vector<1x63xf32>
    %167 = vector.broadcast %49 : f32 to vector<1x63xf32>
    %168 = arith.addf %166, %167 : vector<1x63xf32>
    %169 = vector.extract_strided_slice %139 {offsets = [0, 0], sizes = [1, 63], strides = [1, 1]} : vector<1x64xf32> to vector<1x63xf32>
    %170 = vector.broadcast %10 : f32 to vector<1x63xf32>
    %171 = arith.mulf %169, %170 : vector<1x63xf32>
    %172 = arith.addf %168, %171 : vector<1x63xf32>
    %173 = vector.extract_strided_slice %139 {offsets = [0, 1], sizes = [1, 63], strides = [1, 1]} : vector<1x64xf32> to vector<1x63xf32>
    %174 = vector.broadcast %11 : f32 to vector<1x63xf32>
    %175 = arith.mulf %173, %174 : vector<1x63xf32>
    %176 = arith.addf %172, %175 : vector<1x63xf32>
    %177 = vector.extract_strided_slice %141 {offsets = [0, 0], sizes = [1, 63], strides = [1, 1]} : vector<1x64xf32> to vector<1x63xf32>
    %178 = vector.broadcast %14 : f32 to vector<1x63xf32>
    %179 = arith.mulf %177, %178 : vector<1x63xf32>
    %180 = arith.addf %176, %179 : vector<1x63xf32>
    %181 = vector.extract_strided_slice %141 {offsets = [0, 1], sizes = [1, 63], strides = [1, 1]} : vector<1x64xf32> to vector<1x63xf32>
    %182 = vector.broadcast %15 : f32 to vector<1x63xf32>
    %183 = arith.mulf %181, %182 : vector<1x63xf32>
    %184 = arith.addf %180, %183 : vector<1x63xf32>
    %c0_121 = arith.constant 0 : index
    %c1_122 = arith.constant 1 : index
    %c1_123 = arith.constant 1 : index
    %c0_124 = arith.constant 0 : index
    %185 = vector.load %arg6[%c0_121, %c1_122, %c1_123, %c0_124] : memref<1x6x67x63xf32, #tpu.memory_space<vmem>>, vector<1x1x1x63xf32>
    %186 = vector.shape_cast %185 : vector<1x1x1x63xf32> to vector<1x63xf32>
    %187 = vector.shape_cast %184 : vector<1x63xf32> to vector<1x1x1x63xf32>
    tpu.vector_store %arg6[%c0_121, %c1_122, %c1_123, %c0_124], %187 {strides = array<i32>} : memref<1x6x67x63xf32, #tpu.memory_space<vmem>>, vector<1x1x1x63xf32>,
    %c0_125 = arith.constant 0 : index
    %c2_126 = arith.constant 2 : index
    %c1_127 = arith.constant 1 : index
    %c0_128 = arith.constant 0 : index
    %188 = vector.load %arg5[%c0_125, %c2_126, %c1_127, %c0_128] : memref<1x6x67x63xf32, #tpu.memory_space<vmem>>, vector<1x1x1x63xf32>
    %189 = vector.shape_cast %188 : vector<1x1x1x63xf32> to vector<1x63xf32>
    %190 = vector.broadcast %50 : f32 to vector<1x63xf32>
    %191 = arith.addf %189, %190 : vector<1x63xf32>
    %192 = vector.extract_strided_slice %139 {offsets = [0, 0], sizes = [1, 63], strides = [1, 1]} : vector<1x64xf32> to vector<1x63xf32>
    %193 = vector.broadcast %18 : f32 to vector<1x63xf32>
    %194 = arith.mulf %192, %193 : vector<1x63xf32>
    %195 = arith.addf %191, %194 : vector<1x63xf32>
    %196 = vector.extract_strided_slice %139 {offsets = [0, 1], sizes = [1, 63], strides = [1, 1]} : vector<1x64xf32> to vector<1x63xf32>
    %197 = vector.broadcast %19 : f32 to vector<1x63xf32>
    %198 = arith.mulf %196, %197 : vector<1x63xf32>
    %199 = arith.addf %195, %198 : vector<1x63xf32>
    %200 = vector.extract_strided_slice %141 {offsets = [0, 0], sizes = [1, 63], strides = [1, 1]} : vector<1x64xf32> to vector<1x63xf32>
    %201 = vector.broadcast %22 : f32 to vector<1x63xf32>
    %202 = arith.mulf %200, %201 : vector<1x63xf32>
    %203 = arith.addf %199, %202 : vector<1x63xf32>
    %204 = vector.extract_strided_slice %141 {offsets = [0, 1], sizes = [1, 63], strides = [1, 1]} : vector<1x64xf32> to vector<1x63xf32>
    %205 = vector.broadcast %23 : f32 to vector<1x63xf32>
    %206 = arith.mulf %204, %205 : vector<1x63xf32>
    %207 = arith.addf %203, %206 : vector<1x63xf32>
    %c0_129 = arith.constant 0 : index
    %c2_130 = arith.constant 2 : index
    %c1_131 = arith.constant 1 : index
    %c0_132 = arith.constant 0 : index
    %208 = vector.load %arg6[%c0_129, %c2_130, %c1_131, %c0_132] : memref<1x6x67x63xf32, #tpu.memory_space<vmem>>, vector<1x1x1x63xf32>
    %209 = vector.shape_cast %208 : vector<1x1x1x63xf32> to vector<1x63xf32>
    %210 = vector.shape_cast %207 : vector<1x63xf32> to vector<1x1x1x63xf32>
    tpu.vector_store %arg6[%c0_129, %c2_130, %c1_131, %c0_132], %210 {strides = array<i32>} : memref<1x6x67x63xf32, #tpu.memory_space<vmem>>, vector<1x1x1x63xf32>,
    %c0_133 = arith.constant 0 : index
    %c3_134 = arith.constant 3 : index
    %c1_135 = arith.constant 1 : index
    %c0_136 = arith.constant 0 : index
    %211 = vector.load %arg5[%c0_133, %c3_134, %c1_135, %c0_136] : memref<1x6x67x63xf32, #tpu.memory_space<vmem>>, vector<1x1x1x63xf32>
    %212 = vector.shape_cast %211 : vector<1x1x1x63xf32> to vector<1x63xf32>
    %213 = vector.broadcast %51 : f32 to vector<1x63xf32>
    %214 = arith.addf %212, %213 : vector<1x63xf32>
    %215 = vector.extract_strided_slice %139 {offsets = [0, 0], sizes = [1, 63], strides = [1, 1]} : vector<1x64xf32> to vector<1x63xf32>
    %216 = vector.broadcast %26 : f32 to vector<1x63xf32>
    %217 = arith.mulf %215, %216 : vector<1x63xf32>
    %218 = arith.addf %214, %217 : vector<1x63xf32>
    %219 = vector.extract_strided_slice %139 {offsets = [0, 1], sizes = [1, 63], strides = [1, 1]} : vector<1x64xf32> to vector<1x63xf32>
    %220 = vector.broadcast %27 : f32 to vector<1x63xf32>
    %221 = arith.mulf %219, %220 : vector<1x63xf32>
    %222 = arith.addf %218, %221 : vector<1x63xf32>
    %223 = vector.extract_strided_slice %141 {offsets = [0, 0], sizes = [1, 63], strides = [1, 1]} : vector<1x64xf32> to vector<1x63xf32>
    %224 = vector.broadcast %30 : f32 to vector<1x63xf32>
    %225 = arith.mulf %223, %224 : vector<1x63xf32>
    %226 = arith.addf %222, %225 : vector<1x63xf32>
    %227 = vector.extract_strided_slice %141 {offsets = [0, 1], sizes = [1, 63], strides = [1, 1]} : vector<1x64xf32> to vector<1x63xf32>
    %228 = vector.broadcast %31 : f32 to vector<1x63xf32>
    %229 = arith.mulf %227, %228 : vector<1x63xf32>
    %230 = arith.addf %226, %229 : vector<1x63xf32>
    %c0_137 = arith.constant 0 : index
    %c3_138 = arith.constant 3 : index
    %c1_139 = arith.constant 1 : index
    %c0_140 = arith.constant 0 : index
    %231 = vector.load %arg6[%c0_137, %c3_138, %c1_139, %c0_140] : memref<1x6x67x63xf32, #tpu.memory_space<vmem>>, vector<1x1x1x63xf32>
    %232 = vector.shape_cast %231 : vector<1x1x1x63xf32> to vector<1x63xf32>
    %233 = vector.shape_cast %230 : vector<1x63xf32> to vector<1x1x1x63xf32>
    tpu.vector_store %arg6[%c0_137, %c3_138, %c1_139, %c0_140], %233 {strides = array<i32>} : memref<1x6x67x63xf32, #tpu.memory_space<vmem>>, vector<1x1x1x63xf32>,
    %c0_141 = arith.constant 0 : index
    %c4_142 = arith.constant 4 : index
    %c1_143 = arith.constant 1 : index
    %c0_144 = arith.constant 0 : index
    %234 = vector.load %arg5[%c0_141, %c4_142, %c1_143, %c0_144] : memref<1x6x67x63xf32, #tpu.memory_space<vmem>>, vector<1x1x1x63xf32>
    %235 = vector.shape_cast %234 : vector<1x1x1x63xf32> to vector<1x63xf32>
    %236 = vector.broadcast %52 : f32 to vector<1x63xf32>
    %237 = arith.addf %235, %236 : vector<1x63xf32>
    %238 = vector.extract_strided_slice %139 {offsets = [0, 0], sizes = [1, 63], strides = [1, 1]} : vector<1x64xf32> to vector<1x63xf32>
    %239 = vector.broadcast %34 : f32 to vector<1x63xf32>
    %240 = arith.mulf %238, %239 : vector<1x63xf32>
    %241 = arith.addf %237, %240 : vector<1x63xf32>
    %242 = vector.extract_strided_slice %139 {offsets = [0, 1], sizes = [1, 63], strides = [1, 1]} : vector<1x64xf32> to vector<1x63xf32>
    %243 = vector.broadcast %35 : f32 to vector<1x63xf32>
    %244 = arith.mulf %242, %243 : vector<1x63xf32>
    %245 = arith.addf %241, %244 : vector<1x63xf32>
    %246 = vector.extract_strided_slice %141 {offsets = [0, 0], sizes = [1, 63], strides = [1, 1]} : vector<1x64xf32> to vector<1x63xf32>
    %247 = vector.broadcast %38 : f32 to vector<1x63xf32>
    %248 = arith.mulf %246, %247 : vector<1x63xf32>
    %249 = arith.addf %245, %248 : vector<1x63xf32>
    %250 = vector.extract_strided_slice %141 {offsets = [0, 1], sizes = [1, 63], strides = [1, 1]} : vector<1x64xf32> to vector<1x63xf32>
    %251 = vector.broadcast %39 : f32 to vector<1x63xf32>
    %252 = arith.mulf %250, %251 : vector<1x63xf32>
    %253 = arith.addf %249, %252 : vector<1x63xf32>
    %c0_145 = arith.constant 0 : index
    %c4_146 = arith.constant 4 : index
    %c1_147 = arith.constant 1 : index
    %c0_148 = arith.constant 0 : index
    %254 = vector.load %arg6[%c0_145, %c4_146, %c1_147, %c0_148] : memref<1x6x67x63xf32, #tpu.memory_space<vmem>>, vector<1x1x1x63xf32>
    %255 = vector.shape_cast %254 : vector<1x1x1x63xf32> to vector<1x63xf32>
    %256 = vector.shape_cast %253 : vector<1x63xf32> to vector<1x1x1x63xf32>
    tpu.vector_store %arg6[%c0_145, %c4_146, %c1_147, %c0_148], %256 {strides = array<i32>} : memref<1x6x67x63xf32, #tpu.memory_space<vmem>>, vector<1x1x1x63xf32>,
    %c0_149 = arith.constant 0 : index
    %c5_150 = arith.constant 5 : index
    %c1_151 = arith.constant 1 : index
    %c0_152 = arith.constant 0 : index
    %257 = vector.load %arg5[%c0_149, %c5_150, %c1_151, %c0_152] : memref<1x6x67x63xf32, #tpu.memory_space<vmem>>, vector<1x1x1x63xf32>
    %258 = vector.shape_cast %257 : vector<1x1x1x63xf32> to vector<1x63xf32>
    %259 = vector.broadcast %53 : f32 to vector<1x63xf32>
    %260 = arith.addf %258, %259 : vector<1x63xf32>
    %261 = vector.extract_strided_slice %139 {offsets = [0, 0], sizes = [1, 63], strides = [1, 1]} : vector<1x64xf32> to vector<1x63xf32>
    %262 = vector.broadcast %42 : f32 to vector<1x63xf32>
    %263 = arith.mulf %261, %262 : vector<1x63xf32>
    %264 = arith.addf %260, %263 : vector<1x63xf32>
    %265 = vector.extract_strided_slice %139 {offsets = [0, 1], sizes = [1, 63], strides = [1, 1]} : vector<1x64xf32> to vector<1x63xf32>
    %266 = vector.broadcast %43 : f32 to vector<1x63xf32>
    %267 = arith.mulf %265, %266 : vector<1x63xf32>
    %268 = arith.addf %264, %267 : vector<1x63xf32>
    %269 = vector.extract_strided_slice %141 {offsets = [0, 0], sizes = [1, 63], strides = [1, 1]} : vector<1x64xf32> to vector<1x63xf32>
    %270 = vector.broadcast %46 : f32 to vector<1x63xf32>
    %271 = arith.mulf %269, %270 : vector<1x63xf32>
    %272 = arith.addf %268, %271 : vector<1x63xf32>
    %273 = vector.extract_strided_slice %141 {offsets = [0, 1], sizes = [1, 63], strides = [1, 1]} : vector<1x64xf32> to vector<1x63xf32>
    %274 = vector.broadcast %47 : f32 to vector<1x63xf32>
    %275 = arith.mulf %273, %274 : vector<1x63xf32>
    %276 = arith.addf %272, %275 : vector<1x63xf32>
    %c0_153 = arith.constant 0 : index
    %c5_154 = arith.constant 5 : index
    %c1_155 = arith.constant 1 : index
    %c0_156 = arith.constant 0 : index
    %277 = vector.load %arg6[%c0_153, %c5_154, %c1_155, %c0_156] : memref<1x6x67x63xf32, #tpu.memory_space<vmem>>, vector<1x1x1x63xf32>
    %278 = vector.shape_cast %277 : vector<1x1x1x63xf32> to vector<1x63xf32>
    %279 = vector.shape_cast %276 : vector<1x63xf32> to vector<1x1x1x63xf32>
    tpu.vector_store %arg6[%c0_153, %c5_154, %c1_155, %c0_156], %279 {strides = array<i32>} : memref<1x6x67x63xf32, #tpu.memory_space<vmem>>, vector<1x1x1x63xf32>,
    %c0_157 = arith.constant 0 : index
    %c0_158 = arith.constant 0 : index
    %c63 = arith.constant 63 : index
    %c0_159 = arith.constant 0 : index
    %280 = vector.load %arg4[%c0_157, %c0_158, %c63, %c0_159] : memref<1x2x64x64xf32, #tpu.memory_space<vmem>>, vector<1x1x1x64xf32>
    %281 = vector.shape_cast %280 : vector<1x1x1x64xf32> to vector<1x64xf32>
    %c0_160 = arith.constant 0 : index
    %c1_161 = arith.constant 1 : index
    %c63_162 = arith.constant 63 : index
    %c0_163 = arith.constant 0 : index
    %282 = vector.load %arg4[%c0_160, %c1_161, %c63_162, %c0_163] : memref<1x2x64x64xf32, #tpu.memory_space<vmem>>, vector<1x1x1x64xf32>
    %283 = vector.shape_cast %282 : vector<1x1x1x64xf32> to vector<1x64xf32>
    %c0_164 = arith.constant 0 : index
    %c0_165 = arith.constant 0 : index
    %c65 = arith.constant 65 : index
    %c0_166 = arith.constant 0 : index
    %284 = vector.load %arg5[%c0_164, %c0_165, %c65, %c0_166] : memref<1x6x67x63xf32, #tpu.memory_space<vmem>>, vector<1x1x1x63xf32>
    %285 = vector.shape_cast %284 : vector<1x1x1x63xf32> to vector<1x63xf32>
    %286 = vector.broadcast %48 : f32 to vector<1x63xf32>
    %287 = arith.addf %285, %286 : vector<1x63xf32>
    %288 = vector.extract_strided_slice %281 {offsets = [0, 0], sizes = [1, 63], strides = [1, 1]} : vector<1x64xf32> to vector<1x63xf32>
    %289 = vector.broadcast %0 : f32 to vector<1x63xf32>
    %290 = arith.mulf %288, %289 : vector<1x63xf32>
    %291 = arith.addf %287, %290 : vector<1x63xf32>
    %292 = vector.extract_strided_slice %281 {offsets = [0, 1], sizes = [1, 63], strides = [1, 1]} : vector<1x64xf32> to vector<1x63xf32>
    %293 = vector.broadcast %1 : f32 to vector<1x63xf32>
    %294 = arith.mulf %292, %293 : vector<1x63xf32>
    %295 = arith.addf %291, %294 : vector<1x63xf32>
    %296 = vector.extract_strided_slice %283 {offsets = [0, 0], sizes = [1, 63], strides = [1, 1]} : vector<1x64xf32> to vector<1x63xf32>
    %297 = vector.broadcast %4 : f32 to vector<1x63xf32>
    %298 = arith.mulf %296, %297 : vector<1x63xf32>
    %299 = arith.addf %295, %298 : vector<1x63xf32>
    %300 = vector.extract_strided_slice %283 {offsets = [0, 1], sizes = [1, 63], strides = [1, 1]} : vector<1x64xf32> to vector<1x63xf32>
    %301 = vector.broadcast %5 : f32 to vector<1x63xf32>
    %302 = arith.mulf %300, %301 : vector<1x63xf32>
    %303 = arith.addf %299, %302 : vector<1x63xf32>
    %c0_167 = arith.constant 0 : index
    %c0_168 = arith.constant 0 : index
    %c65_169 = arith.constant 65 : index
    %c0_170 = arith.constant 0 : index
    %304 = vector.load %arg6[%c0_167, %c0_168, %c65_169, %c0_170] : memref<1x6x67x63xf32, #tpu.memory_space<vmem>>, vector<1x1x1x63xf32>
    %305 = vector.shape_cast %304 : vector<1x1x1x63xf32> to vector<1x63xf32>
    %306 = vector.shape_cast %303 : vector<1x63xf32> to vector<1x1x1x63xf32>
    tpu.vector_store %arg6[%c0_167, %c0_168, %c65_169, %c0_170], %306 {strides = array<i32>} : memref<1x6x67x63xf32, #tpu.memory_space<vmem>>, vector<1x1x1x63xf32>,
    %c0_171 = arith.constant 0 : index
    %c1_172 = arith.constant 1 : index
    %c65_173 = arith.constant 65 : index
    %c0_174 = arith.constant 0 : index
    %307 = vector.load %arg5[%c0_171, %c1_172, %c65_173, %c0_174] : memref<1x6x67x63xf32, #tpu.memory_space<vmem>>, vector<1x1x1x63xf32>
    %308 = vector.shape_cast %307 : vector<1x1x1x63xf32> to vector<1x63xf32>
    %309 = vector.broadcast %49 : f32 to vector<1x63xf32>
    %310 = arith.addf %308, %309 : vector<1x63xf32>
    %311 = vector.extract_strided_slice %281 {offsets = [0, 0], sizes = [1, 63], strides = [1, 1]} : vector<1x64xf32> to vector<1x63xf32>
    %312 = vector.broadcast %8 : f32 to vector<1x63xf32>
    %313 = arith.mulf %311, %312 : vector<1x63xf32>
    %314 = arith.addf %310, %313 : vector<1x63xf32>
    %315 = vector.extract_strided_slice %281 {offsets = [0, 1], sizes = [1, 63], strides = [1, 1]} : vector<1x64xf32> to vector<1x63xf32>
    %316 = vector.broadcast %9 : f32 to vector<1x63xf32>
    %317 = arith.mulf %315, %316 : vector<1x63xf32>
    %318 = arith.addf %314, %317 : vector<1x63xf32>
    %319 = vector.extract_strided_slice %283 {offsets = [0, 0], sizes = [1, 63], strides = [1, 1]} : vector<1x64xf32> to vector<1x63xf32>
    %320 = vector.broadcast %12 : f32 to vector<1x63xf32>
    %321 = arith.mulf %319, %320 : vector<1x63xf32>
    %322 = arith.addf %318, %321 : vector<1x63xf32>
    %323 = vector.extract_strided_slice %283 {offsets = [0, 1], sizes = [1, 63], strides = [1, 1]} : vector<1x64xf32> to vector<1x63xf32>
    %324 = vector.broadcast %13 : f32 to vector<1x63xf32>
    %325 = arith.mulf %323, %324 : vector<1x63xf32>
    %326 = arith.addf %322, %325 : vector<1x63xf32>
    %c0_175 = arith.constant 0 : index
    %c1_176 = arith.constant 1 : index
    %c65_177 = arith.constant 65 : index
    %c0_178 = arith.constant 0 : index
    %327 = vector.load %arg6[%c0_175, %c1_176, %c65_177, %c0_178] : memref<1x6x67x63xf32, #tpu.memory_space<vmem>>, vector<1x1x1x63xf32>
    %328 = vector.shape_cast %327 : vector<1x1x1x63xf32> to vector<1x63xf32>
    %329 = vector.shape_cast %326 : vector<1x63xf32> to vector<1x1x1x63xf32>
    tpu.vector_store %arg6[%c0_175, %c1_176, %c65_177, %c0_178], %329 {strides = array<i32>} : memref<1x6x67x63xf32, #tpu.memory_space<vmem>>, vector<1x1x1x63xf32>,
    %c0_179 = arith.constant 0 : index
    %c2_180 = arith.constant 2 : index
    %c65_181 = arith.constant 65 : index
    %c0_182 = arith.constant 0 : index
    %330 = vector.load %arg5[%c0_179, %c2_180, %c65_181, %c0_182] : memref<1x6x67x63xf32, #tpu.memory_space<vmem>>, vector<1x1x1x63xf32>
    %331 = vector.shape_cast %330 : vector<1x1x1x63xf32> to vector<1x63xf32>
    %332 = vector.broadcast %50 : f32 to vector<1x63xf32>
    %333 = arith.addf %331, %332 : vector<1x63xf32>
    %334 = vector.extract_strided_slice %281 {offsets = [0, 0], sizes = [1, 63], strides = [1, 1]} : vector<1x64xf32> to vector<1x63xf32>
    %335 = vector.broadcast %16 : f32 to vector<1x63xf32>
    %336 = arith.mulf %334, %335 : vector<1x63xf32>
    %337 = arith.addf %333, %336 : vector<1x63xf32>
    %338 = vector.extract_strided_slice %281 {offsets = [0, 1], sizes = [1, 63], strides = [1, 1]} : vector<1x64xf32> to vector<1x63xf32>
    %339 = vector.broadcast %17 : f32 to vector<1x63xf32>
    %340 = arith.mulf %338, %339 : vector<1x63xf32>
    %341 = arith.addf %337, %340 : vector<1x63xf32>
    %342 = vector.extract_strided_slice %283 {offsets = [0, 0], sizes = [1, 63], strides = [1, 1]} : vector<1x64xf32> to vector<1x63xf32>
    %343 = vector.broadcast %20 : f32 to vector<1x63xf32>
    %344 = arith.mulf %342, %343 : vector<1x63xf32>
    %345 = arith.addf %341, %344 : vector<1x63xf32>
    %346 = vector.extract_strided_slice %283 {offsets = [0, 1], sizes = [1, 63], strides = [1, 1]} : vector<1x64xf32> to vector<1x63xf32>
    %347 = vector.broadcast %21 : f32 to vector<1x63xf32>
    %348 = arith.mulf %346, %347 : vector<1x63xf32>
    %349 = arith.addf %345, %348 : vector<1x63xf32>
    %c0_183 = arith.constant 0 : index
    %c2_184 = arith.constant 2 : index
    %c65_185 = arith.constant 65 : index
    %c0_186 = arith.constant 0 : index
    %350 = vector.load %arg6[%c0_183, %c2_184, %c65_185, %c0_186] : memref<1x6x67x63xf32, #tpu.memory_space<vmem>>, vector<1x1x1x63xf32>
    %351 = vector.shape_cast %350 : vector<1x1x1x63xf32> to vector<1x63xf32>
    %352 = vector.shape_cast %349 : vector<1x63xf32> to vector<1x1x1x63xf32>
    tpu.vector_store %arg6[%c0_183, %c2_184, %c65_185, %c0_186], %352 {strides = array<i32>} : memref<1x6x67x63xf32, #tpu.memory_space<vmem>>, vector<1x1x1x63xf32>,
    %c0_187 = arith.constant 0 : index
    %c3_188 = arith.constant 3 : index
    %c65_189 = arith.constant 65 : index
    %c0_190 = arith.constant 0 : index
    %353 = vector.load %arg5[%c0_187, %c3_188, %c65_189, %c0_190] : memref<1x6x67x63xf32, #tpu.memory_space<vmem>>, vector<1x1x1x63xf32>
    %354 = vector.shape_cast %353 : vector<1x1x1x63xf32> to vector<1x63xf32>
    %355 = vector.broadcast %51 : f32 to vector<1x63xf32>
    %356 = arith.addf %354, %355 : vector<1x63xf32>
    %357 = vector.extract_strided_slice %281 {offsets = [0, 0], sizes = [1, 63], strides = [1, 1]} : vector<1x64xf32> to vector<1x63xf32>
    %358 = vector.broadcast %24 : f32 to vector<1x63xf32>
    %359 = arith.mulf %357, %358 : vector<1x63xf32>
    %360 = arith.addf %356, %359 : vector<1x63xf32>
    %361 = vector.extract_strided_slice %281 {offsets = [0, 1], sizes = [1, 63], strides = [1, 1]} : vector<1x64xf32> to vector<1x63xf32>
    %362 = vector.broadcast %25 : f32 to vector<1x63xf32>
    %363 = arith.mulf %361, %362 : vector<1x63xf32>
    %364 = arith.addf %360, %363 : vector<1x63xf32>
    %365 = vector.extract_strided_slice %283 {offsets = [0, 0], sizes = [1, 63], strides = [1, 1]} : vector<1x64xf32> to vector<1x63xf32>
    %366 = vector.broadcast %28 : f32 to vector<1x63xf32>
    %367 = arith.mulf %365, %366 : vector<1x63xf32>
    %368 = arith.addf %364, %367 : vector<1x63xf32>
    %369 = vector.extract_strided_slice %283 {offsets = [0, 1], sizes = [1, 63], strides = [1, 1]} : vector<1x64xf32> to vector<1x63xf32>
    %370 = vector.broadcast %29 : f32 to vector<1x63xf32>
    %371 = arith.mulf %369, %370 : vector<1x63xf32>
    %372 = arith.addf %368, %371 : vector<1x63xf32>
    %c0_191 = arith.constant 0 : index
    %c3_192 = arith.constant 3 : index
    %c65_193 = arith.constant 65 : index
    %c0_194 = arith.constant 0 : index
    %373 = vector.load %arg6[%c0_191, %c3_192, %c65_193, %c0_194] : memref<1x6x67x63xf32, #tpu.memory_space<vmem>>, vector<1x1x1x63xf32>
    %374 = vector.shape_cast %373 : vector<1x1x1x63xf32> to vector<1x63xf32>
    %375 = vector.shape_cast %372 : vector<1x63xf32> to vector<1x1x1x63xf32>
    tpu.vector_store %arg6[%c0_191, %c3_192, %c65_193, %c0_194], %375 {strides = array<i32>} : memref<1x6x67x63xf32, #tpu.memory_space<vmem>>, vector<1x1x1x63xf32>,
    %c0_195 = arith.constant 0 : index
    %c4_196 = arith.constant 4 : index
    %c65_197 = arith.constant 65 : index
    %c0_198 = arith.constant 0 : index
    %376 = vector.load %arg5[%c0_195, %c4_196, %c65_197, %c0_198] : memref<1x6x67x63xf32, #tpu.memory_space<vmem>>, vector<1x1x1x63xf32>
    %377 = vector.shape_cast %376 : vector<1x1x1x63xf32> to vector<1x63xf32>
    %378 = vector.broadcast %52 : f32 to vector<1x63xf32>
    %379 = arith.addf %377, %378 : vector<1x63xf32>
    %380 = vector.extract_strided_slice %281 {offsets = [0, 0], sizes = [1, 63], strides = [1, 1]} : vector<1x64xf32> to vector<1x63xf32>
    %381 = vector.broadcast %32 : f32 to vector<1x63xf32>
    %382 = arith.mulf %380, %381 : vector<1x63xf32>
    %383 = arith.addf %379, %382 : vector<1x63xf32>
    %384 = vector.extract_strided_slice %281 {offsets = [0, 1], sizes = [1, 63], strides = [1, 1]} : vector<1x64xf32> to vector<1x63xf32>
    %385 = vector.broadcast %33 : f32 to vector<1x63xf32>
    %386 = arith.mulf %384, %385 : vector<1x63xf32>
    %387 = arith.addf %383, %386 : vector<1x63xf32>
    %388 = vector.extract_strided_slice %283 {offsets = [0, 0], sizes = [1, 63], strides = [1, 1]} : vector<1x64xf32> to vector<1x63xf32>
    %389 = vector.broadcast %36 : f32 to vector<1x63xf32>
    %390 = arith.mulf %388, %389 : vector<1x63xf32>
    %391 = arith.addf %387, %390 : vector<1x63xf32>
    %392 = vector.extract_strided_slice %283 {offsets = [0, 1], sizes = [1, 63], strides = [1, 1]} : vector<1x64xf32> to vector<1x63xf32>
    %393 = vector.broadcast %37 : f32 to vector<1x63xf32>
    %394 = arith.mulf %392, %393 : vector<1x63xf32>
    %395 = arith.addf %391, %394 : vector<1x63xf32>
    %c0_199 = arith.constant 0 : index
    %c4_200 = arith.constant 4 : index
    %c65_201 = arith.constant 65 : index
    %c0_202 = arith.constant 0 : index
    %396 = vector.load %arg6[%c0_199, %c4_200, %c65_201, %c0_202] : memref<1x6x67x63xf32, #tpu.memory_space<vmem>>, vector<1x1x1x63xf32>
    %397 = vector.shape_cast %396 : vector<1x1x1x63xf32> to vector<1x63xf32>
    %398 = vector.shape_cast %395 : vector<1x63xf32> to vector<1x1x1x63xf32>
    tpu.vector_store %arg6[%c0_199, %c4_200, %c65_201, %c0_202], %398 {strides = array<i32>} : memref<1x6x67x63xf32, #tpu.memory_space<vmem>>, vector<1x1x1x63xf32>,
    %c0_203 = arith.constant 0 : index
    %c5_204 = arith.constant 5 : index
    %c65_205 = arith.constant 65 : index
    %c0_206 = arith.constant 0 : index
    %399 = vector.load %arg5[%c0_203, %c5_204, %c65_205, %c0_206] : memref<1x6x67x63xf32, #tpu.memory_space<vmem>>, vector<1x1x1x63xf32>
    %400 = vector.shape_cast %399 : vector<1x1x1x63xf32> to vector<1x63xf32>
    %401 = vector.broadcast %53 : f32 to vector<1x63xf32>
    %402 = arith.addf %400, %401 : vector<1x63xf32>
    %403 = vector.extract_strided_slice %281 {offsets = [0, 0], sizes = [1, 63], strides = [1, 1]} : vector<1x64xf32> to vector<1x63xf32>
    %404 = vector.broadcast %40 : f32 to vector<1x63xf32>
    %405 = arith.mulf %403, %404 : vector<1x63xf32>
    %406 = arith.addf %402, %405 : vector<1x63xf32>
    %407 = vector.extract_strided_slice %281 {offsets = [0, 1], sizes = [1, 63], strides = [1, 1]} : vector<1x64xf32> to vector<1x63xf32>
    %408 = vector.broadcast %41 : f32 to vector<1x63xf32>
    %409 = arith.mulf %407, %408 : vector<1x63xf32>
    %410 = arith.addf %406, %409 : vector<1x63xf32>
    %411 = vector.extract_strided_slice %283 {offsets = [0, 0], sizes = [1, 63], strides = [1, 1]} : vector<1x64xf32> to vector<1x63xf32>
    %412 = vector.broadcast %44 : f32 to vector<1x63xf32>
    %413 = arith.mulf %411, %412 : vector<1x63xf32>
    %414 = arith.addf %410, %413 : vector<1x63xf32>
    %415 = vector.extract_strided_slice %283 {offsets = [0, 1], sizes = [1, 63], strides = [1, 1]} : vector<1x64xf32> to vector<1x63xf32>
    %416 = vector.broadcast %45 : f32 to vector<1x63xf32>
    %417 = arith.mulf %415, %416 : vector<1x63xf32>
    %418 = arith.addf %414, %417 : vector<1x63xf32>
    %c0_207 = arith.constant 0 : index
    %c5_208 = arith.constant 5 : index
    %c65_209 = arith.constant 65 : index
    %c0_210 = arith.constant 0 : index
    %419 = vector.load %arg6[%c0_207, %c5_208, %c65_209, %c0_210] : memref<1x6x67x63xf32, #tpu.memory_space<vmem>>, vector<1x1x1x63xf32>
    %420 = vector.shape_cast %419 : vector<1x1x1x63xf32> to vector<1x63xf32>
    %421 = vector.shape_cast %418 : vector<1x63xf32> to vector<1x1x1x63xf32>
    tpu.vector_store %arg6[%c0_207, %c5_208, %c65_209, %c0_210], %421 {strides = array<i32>} : memref<1x6x67x63xf32, #tpu.memory_space<vmem>>, vector<1x1x1x63xf32>,
    %c0_211 = arith.constant 0 : index
    %c0_212 = arith.constant 0 : index
    %c0_213 = arith.constant 0 : index
    %c0_214 = arith.constant 0 : index
    %422 = vector.load %arg4[%c0_211, %c0_212, %c0_213, %c0_214] : memref<1x2x64x64xf32, #tpu.memory_space<vmem>>, vector<1x1x8x64xf32>
    %423 = vector.shape_cast %422 : vector<1x1x8x64xf32> to vector<8x64xf32>
    %c0_215 = arith.constant 0 : index
    %c0_216 = arith.constant 0 : index
    %c1_217 = arith.constant 1 : index
    %c0_218 = arith.constant 0 : index
    %424 = vector.load %arg4[%c0_215, %c0_216, %c1_217, %c0_218] : memref<1x2x64x64xf32, #tpu.memory_space<vmem>>, vector<1x1x8x64xf32>
    %425 = vector.shape_cast %424 : vector<1x1x8x64xf32> to vector<8x64xf32>
    %c0_219 = arith.constant 0 : index
    %c1_220 = arith.constant 1 : index
    %c0_221 = arith.constant 0 : index
    %c0_222 = arith.constant 0 : index
    %426 = vector.load %arg4[%c0_219, %c1_220, %c0_221, %c0_222] : memref<1x2x64x64xf32, #tpu.memory_space<vmem>>, vector<1x1x8x64xf32>
    %427 = vector.shape_cast %426 : vector<1x1x8x64xf32> to vector<8x64xf32>
    %c0_223 = arith.constant 0 : index
    %c1_224 = arith.constant 1 : index
    %c1_225 = arith.constant 1 : index
    %c0_226 = arith.constant 0 : index
    %428 = vector.load %arg4[%c0_223, %c1_224, %c1_225, %c0_226] : memref<1x2x64x64xf32, #tpu.memory_space<vmem>>, vector<1x1x8x64xf32>
    %429 = vector.shape_cast %428 : vector<1x1x8x64xf32> to vector<8x64xf32>
    %c0_227 = arith.constant 0 : index
    %c0_228 = arith.constant 0 : index
    %c2_229 = arith.constant 2 : index
    %c0_230 = arith.constant 0 : index
    %430 = vector.load %arg5[%c0_227, %c0_228, %c2_229, %c0_230] : memref<1x6x67x63xf32, #tpu.memory_space<vmem>>, vector<1x1x8x63xf32>
    %431 = vector.shape_cast %430 : vector<1x1x8x63xf32> to vector<8x63xf32>
    %432 = vector.broadcast %48 : f32 to vector<8x63xf32>
    %433 = arith.addf %431, %432 : vector<8x63xf32>
    %434 = vector.extract_strided_slice %423 {offsets = [0, 0], sizes = [8, 63], strides = [1, 1]} : vector<8x64xf32> to vector<8x63xf32>
    %435 = vector.broadcast %0 : f32 to vector<8x63xf32>
    %436 = arith.mulf %434, %435 : vector<8x63xf32>
    %437 = arith.addf %433, %436 : vector<8x63xf32>
    %438 = vector.extract_strided_slice %423 {offsets = [0, 1], sizes = [8, 63], strides = [1, 1]} : vector<8x64xf32> to vector<8x63xf32>
    %439 = vector.broadcast %1 : f32 to vector<8x63xf32>
    %440 = arith.mulf %438, %439 : vector<8x63xf32>
    %441 = arith.addf %437, %440 : vector<8x63xf32>
    %442 = vector.extract_strided_slice %425 {offsets = [0, 0], sizes = [8, 63], strides = [1, 1]} : vector<8x64xf32> to vector<8x63xf32>
    %443 = vector.broadcast %2 : f32 to vector<8x63xf32>
    %444 = arith.mulf %442, %443 : vector<8x63xf32>
    %445 = arith.addf %441, %444 : vector<8x63xf32>
    %446 = vector.extract_strided_slice %425 {offsets = [0, 1], sizes = [8, 63], strides = [1, 1]} : vector<8x64xf32> to vector<8x63xf32>
    %447 = vector.broadcast %3 : f32 to vector<8x63xf32>
    %448 = arith.mulf %446, %447 : vector<8x63xf32>
    %449 = arith.addf %445, %448 : vector<8x63xf32>
    %450 = vector.extract_strided_slice %427 {offsets = [0, 0], sizes = [8, 63], strides = [1, 1]} : vector<8x64xf32> to vector<8x63xf32>
    %451 = vector.broadcast %4 : f32 to vector<8x63xf32>
    %452 = arith.mulf %450, %451 : vector<8x63xf32>
    %453 = arith.addf %449, %452 : vector<8x63xf32>
    %454 = vector.extract_strided_slice %427 {offsets = [0, 1], sizes = [8, 63], strides = [1, 1]} : vector<8x64xf32> to vector<8x63xf32>
    %455 = vector.broadcast %5 : f32 to vector<8x63xf32>
    %456 = arith.mulf %454, %455 : vector<8x63xf32>
    %457 = arith.addf %453, %456 : vector<8x63xf32>
    %458 = vector.extract_strided_slice %429 {offsets = [0, 0], sizes = [8, 63], strides = [1, 1]} : vector<8x64xf32> to vector<8x63xf32>
    %459 = vector.broadcast %6 : f32 to vector<8x63xf32>
    %460 = arith.mulf %458, %459 : vector<8x63xf32>
    %461 = arith.addf %457, %460 : vector<8x63xf32>
    %462 = vector.extract_strided_slice %429 {offsets = [0, 1], sizes = [8, 63], strides = [1, 1]} : vector<8x64xf32> to vector<8x63xf32>
    %463 = vector.broadcast %7 : f32 to vector<8x63xf32>
    %464 = arith.mulf %462, %463 : vector<8x63xf32>
    %465 = arith.addf %461, %464 : vector<8x63xf32>
    %c0_231 = arith.constant 0 : index
    %c0_232 = arith.constant 0 : index
    %c2_233 = arith.constant 2 : index
    %c0_234 = arith.constant 0 : index
    %466 = vector.load %arg6[%c0_231, %c0_232, %c2_233, %c0_234] : memref<1x6x67x63xf32, #tpu.memory_space<vmem>>, vector<1x1x8x63xf32>
    %467 = vector.shape_cast %466 : vector<1x1x8x63xf32> to vector<8x63xf32>
    %468 = vector.shape_cast %465 : vector<8x63xf32> to vector<1x1x8x63xf32>
    tpu.vector_store %arg6[%c0_231, %c0_232, %c2_233, %c0_234], %468 {strides = array<i32>} : memref<1x6x67x63xf32, #tpu.memory_space<vmem>>, vector<1x1x8x63xf32>,
    %c0_235 = arith.constant 0 : index
    %c1_236 = arith.constant 1 : index
    %c2_237 = arith.constant 2 : index
    %c0_238 = arith.constant 0 : index
    %469 = vector.load %arg5[%c0_235, %c1_236, %c2_237, %c0_238] : memref<1x6x67x63xf32, #tpu.memory_space<vmem>>, vector<1x1x8x63xf32>
    %470 = vector.shape_cast %469 : vector<1x1x8x63xf32> to vector<8x63xf32>
    %471 = vector.broadcast %49 : f32 to vector<8x63xf32>
    %472 = arith.addf %470, %471 : vector<8x63xf32>
    %473 = vector.extract_strided_slice %423 {offsets = [0, 0], sizes = [8, 63], strides = [1, 1]} : vector<8x64xf32> to vector<8x63xf32>
    %474 = vector.broadcast %8 : f32 to vector<8x63xf32>
    %475 = arith.mulf %473, %474 : vector<8x63xf32>
    %476 = arith.addf %472, %475 : vector<8x63xf32>
    %477 = vector.extract_strided_slice %423 {offsets = [0, 1], sizes = [8, 63], strides = [1, 1]} : vector<8x64xf32> to vector<8x63xf32>
    %478 = vector.broadcast %9 : f32 to vector<8x63xf32>
    %479 = arith.mulf %477, %478 : vector<8x63xf32>
    %480 = arith.addf %476, %479 : vector<8x63xf32>
    %481 = vector.extract_strided_slice %425 {offsets = [0, 0], sizes = [8, 63], strides = [1, 1]} : vector<8x64xf32> to vector<8x63xf32>
    %482 = vector.broadcast %10 : f32 to vector<8x63xf32>
    %483 = arith.mulf %481, %482 : vector<8x63xf32>
    %484 = arith.addf %480, %483 : vector<8x63xf32>
    %485 = vector.extract_strided_slice %425 {offsets = [0, 1], sizes = [8, 63], strides = [1, 1]} : vector<8x64xf32> to vector<8x63xf32>
    %486 = vector.broadcast %11 : f32 to vector<8x63xf32>
    %487 = arith.mulf %485, %486 : vector<8x63xf32>
    %488 = arith.addf %484, %487 : vector<8x63xf32>
    %489 = vector.extract_strided_slice %427 {offsets = [0, 0], sizes = [8, 63], strides = [1, 1]} : vector<8x64xf32> to vector<8x63xf32>
    %490 = vector.broadcast %12 : f32 to vector<8x63xf32>
    %491 = arith.mulf %489, %490 : vector<8x63xf32>
    %492 = arith.addf %488, %491 : vector<8x63xf32>
    %493 = vector.extract_strided_slice %427 {offsets = [0, 1], sizes = [8, 63], strides = [1, 1]} : vector<8x64xf32> to vector<8x63xf32>
    %494 = vector.broadcast %13 : f32 to vector<8x63xf32>
    %495 = arith.mulf %493, %494 : vector<8x63xf32>
    %496 = arith.addf %492, %495 : vector<8x63xf32>
    %497 = vector.extract_strided_slice %429 {offsets = [0, 0], sizes = [8, 63], strides = [1, 1]} : vector<8x64xf32> to vector<8x63xf32>
    %498 = vector.broadcast %14 : f32 to vector<8x63xf32>
    %499 = arith.mulf %497, %498 : vector<8x63xf32>
    %500 = arith.addf %496, %499 : vector<8x63xf32>
    %501 = vector.extract_strided_slice %429 {offsets = [0, 1], sizes = [8, 63], strides = [1, 1]} : vector<8x64xf32> to vector<8x63xf32>
    %502 = vector.broadcast %15 : f32 to vector<8x63xf32>
    %503 = arith.mulf %501, %502 : vector<8x63xf32>
    %504 = arith.addf %500, %503 : vector<8x63xf32>
    %c0_239 = arith.constant 0 : index
    %c1_240 = arith.constant 1 : index
    %c2_241 = arith.constant 2 : index
    %c0_242 = arith.constant 0 : index
    %505 = vector.load %arg6[%c0_239, %c1_240, %c2_241, %c0_242] : memref<1x6x67x63xf32, #tpu.memory_space<vmem>>, vector<1x1x8x63xf32>
    %506 = vector.shape_cast %505 : vector<1x1x8x63xf32> to vector<8x63xf32>
    %507 = vector.shape_cast %504 : vector<8x63xf32> to vector<1x1x8x63xf32>
    tpu.vector_store %arg6[%c0_239, %c1_240, %c2_241, %c0_242], %507 {strides = array<i32>} : memref<1x6x67x63xf32, #tpu.memory_space<vmem>>, vector<1x1x8x63xf32>,
    %c0_243 = arith.constant 0 : index
    %c2_244 = arith.constant 2 : index
    %c2_245 = arith.constant 2 : index
    %c0_246 = arith.constant 0 : index
    %508 = vector.load %arg5[%c0_243, %c2_244, %c2_245, %c0_246] : memref<1x6x67x63xf32, #tpu.memory_space<vmem>>, vector<1x1x8x63xf32>
    %509 = vector.shape_cast %508 : vector<1x1x8x63xf32> to vector<8x63xf32>
    %510 = vector.broadcast %50 : f32 to vector<8x63xf32>
    %511 = arith.addf %509, %510 : vector<8x63xf32>
    %512 = vector.extract_strided_slice %423 {offsets = [0, 0], sizes = [8, 63], strides = [1, 1]} : vector<8x64xf32> to vector<8x63xf32>
    %513 = vector.broadcast %16 : f32 to vector<8x63xf32>
    %514 = arith.mulf %512, %513 : vector<8x63xf32>
    %515 = arith.addf %511, %514 : vector<8x63xf32>
    %516 = vector.extract_strided_slice %423 {offsets = [0, 1], sizes = [8, 63], strides = [1, 1]} : vector<8x64xf32> to vector<8x63xf32>
    %517 = vector.broadcast %17 : f32 to vector<8x63xf32>
    %518 = arith.mulf %516, %517 : vector<8x63xf32>
    %519 = arith.addf %515, %518 : vector<8x63xf32>
    %520 = vector.extract_strided_slice %425 {offsets = [0, 0], sizes = [8, 63], strides = [1, 1]} : vector<8x64xf32> to vector<8x63xf32>
    %521 = vector.broadcast %18 : f32 to vector<8x63xf32>
    %522 = arith.mulf %520, %521 : vector<8x63xf32>
    %523 = arith.addf %519, %522 : vector<8x63xf32>
    %524 = vector.extract_strided_slice %425 {offsets = [0, 1], sizes = [8, 63], strides = [1, 1]} : vector<8x64xf32> to vector<8x63xf32>
    %525 = vector.broadcast %19 : f32 to vector<8x63xf32>
    %526 = arith.mulf %524, %525 : vector<8x63xf32>
    %527 = arith.addf %523, %526 : vector<8x63xf32>
    %528 = vector.extract_strided_slice %427 {offsets = [0, 0], sizes = [8, 63], strides = [1, 1]} : vector<8x64xf32> to vector<8x63xf32>
    %529 = vector.broadcast %20 : f32 to vector<8x63xf32>
    %530 = arith.mulf %528, %529 : vector<8x63xf32>
    %531 = arith.addf %527, %530 : vector<8x63xf32>
    %532 = vector.extract_strided_slice %427 {offsets = [0, 1], sizes = [8, 63], strides = [1, 1]} : vector<8x64xf32> to vector<8x63xf32>
    %533 = vector.broadcast %21 : f32 to vector<8x63xf32>
    %534 = arith.mulf %532, %533 : vector<8x63xf32>
    %535 = arith.addf %531, %534 : vector<8x63xf32>
    %536 = vector.extract_strided_slice %429 {offsets = [0, 0], sizes = [8, 63], strides = [1, 1]} : vector<8x64xf32> to vector<8x63xf32>
    %537 = vector.broadcast %22 : f32 to vector<8x63xf32>
    %538 = arith.mulf %536, %537 : vector<8x63xf32>
    %539 = arith.addf %535, %538 : vector<8x63xf32>
    %540 = vector.extract_strided_slice %429 {offsets = [0, 1], sizes = [8, 63], strides = [1, 1]} : vector<8x64xf32> to vector<8x63xf32>
    %541 = vector.broadcast %23 : f32 to vector<8x63xf32>
    %542 = arith.mulf %540, %541 : vector<8x63xf32>
    %543 = arith.addf %539, %542 : vector<8x63xf32>
    %c0_247 = arith.constant 0 : index
    %c2_248 = arith.constant 2 : index
    %c2_249 = arith.constant 2 : index
    %c0_250 = arith.constant 0 : index
    %544 = vector.load %arg6[%c0_247, %c2_248, %c2_249, %c0_250] : memref<1x6x67x63xf32, #tpu.memory_space<vmem>>, vector<1x1x8x63xf32>
    %545 = vector.shape_cast %544 : vector<1x1x8x63xf32> to vector<8x63xf32>
    %546 = vector.shape_cast %543 : vector<8x63xf32> to vector<1x1x8x63xf32>
    tpu.vector_store %arg6[%c0_247, %c2_248, %c2_249, %c0_250], %546 {strides = array<i32>} : memref<1x6x67x63xf32, #tpu.memory_space<vmem>>, vector<1x1x8x63xf32>,
    %c0_251 = arith.constant 0 : index
    %c3_252 = arith.constant 3 : index
    %c2_253 = arith.constant 2 : index
    %c0_254 = arith.constant 0 : index
    %547 = vector.load %arg5[%c0_251, %c3_252, %c2_253, %c0_254] : memref<1x6x67x63xf32, #tpu.memory_space<vmem>>, vector<1x1x8x63xf32>
    %548 = vector.shape_cast %547 : vector<1x1x8x63xf32> to vector<8x63xf32>
    %549 = vector.broadcast %51 : f32 to vector<8x63xf32>
    %550 = arith.addf %548, %549 : vector<8x63xf32>
    %551 = vector.extract_strided_slice %423 {offsets = [0, 0], sizes = [8, 63], strides = [1, 1]} : vector<8x64xf32> to vector<8x63xf32>
    %552 = vector.broadcast %24 : f32 to vector<8x63xf32>
    %553 = arith.mulf %551, %552 : vector<8x63xf32>
    %554 = arith.addf %550, %553 : vector<8x63xf32>
    %555 = vector.extract_strided_slice %423 {offsets = [0, 1], sizes = [8, 63], strides = [1, 1]} : vector<8x64xf32> to vector<8x63xf32>
    %556 = vector.broadcast %25 : f32 to vector<8x63xf32>
    %557 = arith.mulf %555, %556 : vector<8x63xf32>
    %558 = arith.addf %554, %557 : vector<8x63xf32>
    %559 = vector.extract_strided_slice %425 {offsets = [0, 0], sizes = [8, 63], strides = [1, 1]} : vector<8x64xf32> to vector<8x63xf32>
    %560 = vector.broadcast %26 : f32 to vector<8x63xf32>
    %561 = arith.mulf %559, %560 : vector<8x63xf32>
    %562 = arith.addf %558, %561 : vector<8x63xf32>
    %563 = vector.extract_strided_slice %425 {offsets = [0, 1], sizes = [8, 63], strides = [1, 1]} : vector<8x64xf32> to vector<8x63xf32>
    %564 = vector.broadcast %27 : f32 to vector<8x63xf32>
    %565 = arith.mulf %563, %564 : vector<8x63xf32>
    %566 = arith.addf %562, %565 : vector<8x63xf32>
    %567 = vector.extract_strided_slice %427 {offsets = [0, 0], sizes = [8, 63], strides = [1, 1]} : vector<8x64xf32> to vector<8x63xf32>
    %568 = vector.broadcast %28 : f32 to vector<8x63xf32>
    %569 = arith.mulf %567, %568 : vector<8x63xf32>
    %570 = arith.addf %566, %569 : vector<8x63xf32>
    %571 = vector.extract_strided_slice %427 {offsets = [0, 1], sizes = [8, 63], strides = [1, 1]} : vector<8x64xf32> to vector<8x63xf32>
    %572 = vector.broadcast %29 : f32 to vector<8x63xf32>
    %573 = arith.mulf %571, %572 : vector<8x63xf32>
    %574 = arith.addf %570, %573 : vector<8x63xf32>
    %575 = vector.extract_strided_slice %429 {offsets = [0, 0], sizes = [8, 63], strides = [1, 1]} : vector<8x64xf32> to vector<8x63xf32>
    %576 = vector.broadcast %30 : f32 to vector<8x63xf32>
    %577 = arith.mulf %575, %576 : vector<8x63xf32>
    %578 = arith.addf %574, %577 : vector<8x63xf32>
    %579 = vector.extract_strided_slice %429 {offsets = [0, 1], sizes = [8, 63], strides = [1, 1]} : vector<8x64xf32> to vector<8x63xf32>
    %580 = vector.broadcast %31 : f32 to vector<8x63xf32>
    %581 = arith.mulf %579, %580 : vector<8x63xf32>
    %582 = arith.addf %578, %581 : vector<8x63xf32>
    %c0_255 = arith.constant 0 : index
    %c3_256 = arith.constant 3 : index
    %c2_257 = arith.constant 2 : index
    %c0_258 = arith.constant 0 : index
    %583 = vector.load %arg6[%c0_255, %c3_256, %c2_257, %c0_258] : memref<1x6x67x63xf32, #tpu.memory_space<vmem>>, vector<1x1x8x63xf32>
    %584 = vector.shape_cast %583 : vector<1x1x8x63xf32> to vector<8x63xf32>
    %585 = vector.shape_cast %582 : vector<8x63xf32> to vector<1x1x8x63xf32>
    tpu.vector_store %arg6[%c0_255, %c3_256, %c2_257, %c0_258], %585 {strides = array<i32>} : memref<1x6x67x63xf32, #tpu.memory_space<vmem>>, vector<1x1x8x63xf32>,
    %c0_259 = arith.constant 0 : index
    %c4_260 = arith.constant 4 : index
    %c2_261 = arith.constant 2 : index
    %c0_262 = arith.constant 0 : index
    %586 = vector.load %arg5[%c0_259, %c4_260, %c2_261, %c0_262] : memref<1x6x67x63xf32, #tpu.memory_space<vmem>>, vector<1x1x8x63xf32>
    %587 = vector.shape_cast %586 : vector<1x1x8x63xf32> to vector<8x63xf32>
    %588 = vector.broadcast %52 : f32 to vector<8x63xf32>
    %589 = arith.addf %587, %588 : vector<8x63xf32>
    %590 = vector.extract_strided_slice %423 {offsets = [0, 0], sizes = [8, 63], strides = [1, 1]} : vector<8x64xf32> to vector<8x63xf32>
    %591 = vector.broadcast %32 : f32 to vector<8x63xf32>
    %592 = arith.mulf %590, %591 : vector<8x63xf32>
    %593 = arith.addf %589, %592 : vector<8x63xf32>
    %594 = vector.extract_strided_slice %423 {offsets = [0, 1], sizes = [8, 63], strides = [1, 1]} : vector<8x64xf32> to vector<8x63xf32>
    %595 = vector.broadcast %33 : f32 to vector<8x63xf32>
    %596 = arith.mulf %594, %595 : vector<8x63xf32>
    %597 = arith.addf %593, %596 : vector<8x63xf32>
    %598 = vector.extract_strided_slice %425 {offsets = [0, 0], sizes = [8, 63], strides = [1, 1]} : vector<8x64xf32> to vector<8x63xf32>
    %599 = vector.broadcast %34 : f32 to vector<8x63xf32>
    %600 = arith.mulf %598, %599 : vector<8x63xf32>
    %601 = arith.addf %597, %600 : vector<8x63xf32>
    %602 = vector.extract_strided_slice %425 {offsets = [0, 1], sizes = [8, 63], strides = [1, 1]} : vector<8x64xf32> to vector<8x63xf32>
    %603 = vector.broadcast %35 : f32 to vector<8x63xf32>
    %604 = arith.mulf %602, %603 : vector<8x63xf32>
    %605 = arith.addf %601, %604 : vector<8x63xf32>
    %606 = vector.extract_strided_slice %427 {offsets = [0, 0], sizes = [8, 63], strides = [1, 1]} : vector<8x64xf32> to vector<8x63xf32>
    %607 = vector.broadcast %36 : f32 to vector<8x63xf32>
    %608 = arith.mulf %606, %607 : vector<8x63xf32>
    %609 = arith.addf %605, %608 : vector<8x63xf32>
    %610 = vector.extract_strided_slice %427 {offsets = [0, 1], sizes = [8, 63], strides = [1, 1]} : vector<8x64xf32> to vector<8x63xf32>
    %611 = vector.broadcast %37 : f32 to vector<8x63xf32>
    %612 = arith.mulf %610, %611 : vector<8x63xf32>
    %613 = arith.addf %609, %612 : vector<8x63xf32>
    %614 = vector.extract_strided_slice %429 {offsets = [0, 0], sizes = [8, 63], strides = [1, 1]} : vector<8x64xf32> to vector<8x63xf32>
    %615 = vector.broadcast %38 : f32 to vector<8x63xf32>
    %616 = arith.mulf %614, %615 : vector<8x63xf32>
    %617 = arith.addf %613, %616 : vector<8x63xf32>
    %618 = vector.extract_strided_slice %429 {offsets = [0, 1], sizes = [8, 63], strides = [1, 1]} : vector<8x64xf32> to vector<8x63xf32>
    %619 = vector.broadcast %39 : f32 to vector<8x63xf32>
    %620 = arith.mulf %618, %619 : vector<8x63xf32>
    %621 = arith.addf %617, %620 : vector<8x63xf32>
    %c0_263 = arith.constant 0 : index
    %c4_264 = arith.constant 4 : index
    %c2_265 = arith.constant 2 : index
    %c0_266 = arith.constant 0 : index
    %622 = vector.load %arg6[%c0_263, %c4_264, %c2_265, %c0_266] : memref<1x6x67x63xf32, #tpu.memory_space<vmem>>, vector<1x1x8x63xf32>
    %623 = vector.shape_cast %622 : vector<1x1x8x63xf32> to vector<8x63xf32>
    %624 = vector.shape_cast %621 : vector<8x63xf32> to vector<1x1x8x63xf32>
    tpu.vector_store %arg6[%c0_263, %c4_264, %c2_265, %c0_266], %624 {strides = array<i32>} : memref<1x6x67x63xf32, #tpu.memory_space<vmem>>, vector<1x1x8x63xf32>,
    %c0_267 = arith.constant 0 : index
    %c5_268 = arith.constant 5 : index
    %c2_269 = arith.constant 2 : index
    %c0_270 = arith.constant 0 : index
    %625 = vector.load %arg5[%c0_267, %c5_268, %c2_269, %c0_270] : memref<1x6x67x63xf32, #tpu.memory_space<vmem>>, vector<1x1x8x63xf32>
    %626 = vector.shape_cast %625 : vector<1x1x8x63xf32> to vector<8x63xf32>
    %627 = vector.broadcast %53 : f32 to vector<8x63xf32>
    %628 = arith.addf %626, %627 : vector<8x63xf32>
    %629 = vector.extract_strided_slice %423 {offsets = [0, 0], sizes = [8, 63], strides = [1, 1]} : vector<8x64xf32> to vector<8x63xf32>
    %630 = vector.broadcast %40 : f32 to vector<8x63xf32>
    %631 = arith.mulf %629, %630 : vector<8x63xf32>
    %632 = arith.addf %628, %631 : vector<8x63xf32>
    %633 = vector.extract_strided_slice %423 {offsets = [0, 1], sizes = [8, 63], strides = [1, 1]} : vector<8x64xf32> to vector<8x63xf32>
    %634 = vector.broadcast %41 : f32 to vector<8x63xf32>
    %635 = arith.mulf %633, %634 : vector<8x63xf32>
    %636 = arith.addf %632, %635 : vector<8x63xf32>
    %637 = vector.extract_strided_slice %425 {offsets = [0, 0], sizes = [8, 63], strides = [1, 1]} : vector<8x64xf32> to vector<8x63xf32>
    %638 = vector.broadcast %42 : f32 to vector<8x63xf32>
    %639 = arith.mulf %637, %638 : vector<8x63xf32>
    %640 = arith.addf %636, %639 : vector<8x63xf32>
    %641 = vector.extract_strided_slice %425 {offsets = [0, 1], sizes = [8, 63], strides = [1, 1]} : vector<8x64xf32> to vector<8x63xf32>
    %642 = vector.broadcast %43 : f32 to vector<8x63xf32>
    %643 = arith.mulf %641, %642 : vector<8x63xf32>
    %644 = arith.addf %640, %643 : vector<8x63xf32>
    %645 = vector.extract_strided_slice %427 {offsets = [0, 0], sizes = [8, 63], strides = [1, 1]} : vector<8x64xf32> to vector<8x63xf32>
    %646 = vector.broadcast %44 : f32 to vector<8x63xf32>
    %647 = arith.mulf %645, %646 : vector<8x63xf32>
    %648 = arith.addf %644, %647 : vector<8x63xf32>
    %649 = vector.extract_strided_slice %427 {offsets = [0, 1], sizes = [8, 63], strides = [1, 1]} : vector<8x64xf32> to vector<8x63xf32>
    %650 = vector.broadcast %45 : f32 to vector<8x63xf32>
    %651 = arith.mulf %649, %650 : vector<8x63xf32>
    %652 = arith.addf %648, %651 : vector<8x63xf32>
    %653 = vector.extract_strided_slice %429 {offsets = [0, 0], sizes = [8, 63], strides = [1, 1]} : vector<8x64xf32> to vector<8x63xf32>
    %654 = vector.broadcast %46 : f32 to vector<8x63xf32>
    %655 = arith.mulf %653, %654 : vector<8x63xf32>
    %656 = arith.addf %652, %655 : vector<8x63xf32>
    %657 = vector.extract_strided_slice %429 {offsets = [0, 1], sizes = [8, 63], strides = [1, 1]} : vector<8x64xf32> to vector<8x63xf32>
    %658 = vector.broadcast %47 : f32 to vector<8x63xf32>
    %659 = arith.mulf %657, %658 : vector<8x63xf32>
    %660 = arith.addf %656, %659 : vector<8x63xf32>
    %c0_271 = arith.constant 0 : index
    %c5_272 = arith.constant 5 : index
    %c2_273 = arith.constant 2 : index
    %c0_274 = arith.constant 0 : index
    %661 = vector.load %arg6[%c0_271, %c5_272, %c2_273, %c0_274] : memref<1x6x67x63xf32, #tpu.memory_space<vmem>>, vector<1x1x8x63xf32>
    %662 = vector.shape_cast %661 : vector<1x1x8x63xf32> to vector<8x63xf32>
    %663 = vector.shape_cast %660 : vector<8x63xf32> to vector<1x1x8x63xf32>
    tpu.vector_store %arg6[%c0_271, %c5_272, %c2_273, %c0_274], %663 {strides = array<i32>} : memref<1x6x67x63xf32, #tpu.memory_space<vmem>>, vector<1x1x8x63xf32>,
    %c0_275 = arith.constant 0 : index
    %c0_276 = arith.constant 0 : index
    %c8_277 = arith.constant 8 : index
    %c0_278 = arith.constant 0 : index
    %664 = vector.load %arg4[%c0_275, %c0_276, %c8_277, %c0_278] : memref<1x2x64x64xf32, #tpu.memory_space<vmem>>, vector<1x1x8x64xf32>
    %665 = vector.shape_cast %664 : vector<1x1x8x64xf32> to vector<8x64xf32>
    %c0_279 = arith.constant 0 : index
    %c0_280 = arith.constant 0 : index
    %c9_281 = arith.constant 9 : index
    %c0_282 = arith.constant 0 : index
    %666 = vector.load %arg4[%c0_279, %c0_280, %c9_281, %c0_282] : memref<1x2x64x64xf32, #tpu.memory_space<vmem>>, vector<1x1x8x64xf32>
    %667 = vector.shape_cast %666 : vector<1x1x8x64xf32> to vector<8x64xf32>
    %c0_283 = arith.constant 0 : index
    %c1_284 = arith.constant 1 : index
    %c8_285 = arith.constant 8 : index
    %c0_286 = arith.constant 0 : index
    %668 = vector.load %arg4[%c0_283, %c1_284, %c8_285, %c0_286] : memref<1x2x64x64xf32, #tpu.memory_space<vmem>>, vector<1x1x8x64xf32>
    %669 = vector.shape_cast %668 : vector<1x1x8x64xf32> to vector<8x64xf32>
    %c0_287 = arith.constant 0 : index
    %c1_288 = arith.constant 1 : index
    %c9_289 = arith.constant 9 : index
    %c0_290 = arith.constant 0 : index
    %670 = vector.load %arg4[%c0_287, %c1_288, %c9_289, %c0_290] : memref<1x2x64x64xf32, #tpu.memory_space<vmem>>, vector<1x1x8x64xf32>
    %671 = vector.shape_cast %670 : vector<1x1x8x64xf32> to vector<8x64xf32>
    %c0_291 = arith.constant 0 : index
    %c0_292 = arith.constant 0 : index
    %c10_293 = arith.constant 10 : index
    %c0_294 = arith.constant 0 : index
    %672 = vector.load %arg5[%c0_291, %c0_292, %c10_293, %c0_294] : memref<1x6x67x63xf32, #tpu.memory_space<vmem>>, vector<1x1x8x63xf32>
    %673 = vector.shape_cast %672 : vector<1x1x8x63xf32> to vector<8x63xf32>
    %674 = vector.broadcast %48 : f32 to vector<8x63xf32>
    %675 = arith.addf %673, %674 : vector<8x63xf32>
    %676 = vector.extract_strided_slice %665 {offsets = [0, 0], sizes = [8, 63], strides = [1, 1]} : vector<8x64xf32> to vector<8x63xf32>
    %677 = vector.broadcast %0 : f32 to vector<8x63xf32>
    %678 = arith.mulf %676, %677 : vector<8x63xf32>
    %679 = arith.addf %675, %678 : vector<8x63xf32>
    %680 = vector.extract_strided_slice %665 {offsets = [0, 1], sizes = [8, 63], strides = [1, 1]} : vector<8x64xf32> to vector<8x63xf32>
    %681 = vector.broadcast %1 : f32 to vector<8x63xf32>
    %682 = arith.mulf %680, %681 : vector<8x63xf32>
    %683 = arith.addf %679, %682 : vector<8x63xf32>
    %684 = vector.extract_strided_slice %667 {offsets = [0, 0], sizes = [8, 63], strides = [1, 1]} : vector<8x64xf32> to vector<8x63xf32>
    %685 = vector.broadcast %2 : f32 to vector<8x63xf32>
    %686 = arith.mulf %684, %685 : vector<8x63xf32>
    %687 = arith.addf %683, %686 : vector<8x63xf32>
    %688 = vector.extract_strided_slice %667 {offsets = [0, 1], sizes = [8, 63], strides = [1, 1]} : vector<8x64xf32> to vector<8x63xf32>
    %689 = vector.broadcast %3 : f32 to vector<8x63xf32>
    %690 = arith.mulf %688, %689 : vector<8x63xf32>
    %691 = arith.addf %687, %690 : vector<8x63xf32>
    %692 = vector.extract_strided_slice %669 {offsets = [0, 0], sizes = [8, 63], strides = [1, 1]} : vector<8x64xf32> to vector<8x63xf32>
    %693 = vector.broadcast %4 : f32 to vector<8x63xf32>
    %694 = arith.mulf %692, %693 : vector<8x63xf32>
    %695 = arith.addf %691, %694 : vector<8x63xf32>
    %696 = vector.extract_strided_slice %669 {offsets = [0, 1], sizes = [8, 63], strides = [1, 1]} : vector<8x64xf32> to vector<8x63xf32>
    %697 = vector.broadcast %5 : f32 to vector<8x63xf32>
    %698 = arith.mulf %696, %697 : vector<8x63xf32>
    %699 = arith.addf %695, %698 : vector<8x63xf32>
    %700 = vector.extract_strided_slice %671 {offsets = [0, 0], sizes = [8, 63], strides = [1, 1]} : vector<8x64xf32> to vector<8x63xf32>
    %701 = vector.broadcast %6 : f32 to vector<8x63xf32>
    %702 = arith.mulf %700, %701 : vector<8x63xf32>
    %703 = arith.addf %699, %702 : vector<8x63xf32>
    %704 = vector.extract_strided_slice %671 {offsets = [0, 1], sizes = [8, 63], strides = [1, 1]} : vector<8x64xf32> to vector<8x63xf32>
    %705 = vector.broadcast %7 : f32 to vector<8x63xf32>
    %706 = arith.mulf %704, %705 : vector<8x63xf32>
    %707 = arith.addf %703, %706 : vector<8x63xf32>
    %c0_295 = arith.constant 0 : index
    %c0_296 = arith.constant 0 : index
    %c10_297 = arith.constant 10 : index
    %c0_298 = arith.constant 0 : index
    %708 = vector.load %arg6[%c0_295, %c0_296, %c10_297, %c0_298] : memref<1x6x67x63xf32, #tpu.memory_space<vmem>>, vector<1x1x8x63xf32>
    %709 = vector.shape_cast %708 : vector<1x1x8x63xf32> to vector<8x63xf32>
    %710 = vector.shape_cast %707 : vector<8x63xf32> to vector<1x1x8x63xf32>
    tpu.vector_store %arg6[%c0_295, %c0_296, %c10_297, %c0_298], %710 {strides = array<i32>} : memref<1x6x67x63xf32, #tpu.memory_space<vmem>>, vector<1x1x8x63xf32>,
    %c0_299 = arith.constant 0 : index
    %c1_300 = arith.constant 1 : index
    %c10_301 = arith.constant 10 : index
    %c0_302 = arith.constant 0 : index
    %711 = vector.load %arg5[%c0_299, %c1_300, %c10_301, %c0_302] : memref<1x6x67x63xf32, #tpu.memory_space<vmem>>, vector<1x1x8x63xf32>
    %712 = vector.shape_cast %711 : vector<1x1x8x63xf32> to vector<8x63xf32>
    %713 = vector.broadcast %49 : f32 to vector<8x63xf32>
    %714 = arith.addf %712, %713 : vector<8x63xf32>
    %715 = vector.extract_strided_slice %665 {offsets = [0, 0], sizes = [8, 63], strides = [1, 1]} : vector<8x64xf32> to vector<8x63xf32>
    %716 = vector.broadcast %8 : f32 to vector<8x63xf32>
    %717 = arith.mulf %715, %716 : vector<8x63xf32>
    %718 = arith.addf %714, %717 : vector<8x63xf32>
    %719 = vector.extract_strided_slice %665 {offsets = [0, 1], sizes = [8, 63], strides = [1, 1]} : vector<8x64xf32> to vector<8x63xf32>
    %720 = vector.broadcast %9 : f32 to vector<8x63xf32>
    %721 = arith.mulf %719, %720 : vector<8x63xf32>
    %722 = arith.addf %718, %721 : vector<8x63xf32>
    %723 = vector.extract_strided_slice %667 {offsets = [0, 0], sizes = [8, 63], strides = [1, 1]} : vector<8x64xf32> to vector<8x63xf32>
    %724 = vector.broadcast %10 : f32 to vector<8x63xf32>
    %725 = arith.mulf %723, %724 : vector<8x63xf32>
    %726 = arith.addf %722, %725 : vector<8x63xf32>
    %727 = vector.extract_strided_slice %667 {offsets = [0, 1], sizes = [8, 63], strides = [1, 1]} : vector<8x64xf32> to vector<8x63xf32>
    %728 = vector.broadcast %11 : f32 to vector<8x63xf32>
    %729 = arith.mulf %727, %728 : vector<8x63xf32>
    %730 = arith.addf %726, %729 : vector<8x63xf32>
    %731 = vector.extract_strided_slice %669 {offsets = [0, 0], sizes = [8, 63], strides = [1, 1]} : vector<8x64xf32> to vector<8x63xf32>
    %732 = vector.broadcast %12 : f32 to vector<8x63xf32>
    %733 = arith.mulf %731, %732 : vector<8x63xf32>
    %734 = arith.addf %730, %733 : vector<8x63xf32>
    %735 = vector.extract_strided_slice %669 {offsets = [0, 1], sizes = [8, 63], strides = [1, 1]} : vector<8x64xf32> to vector<8x63xf32>
    %736 = vector.broadcast %13 : f32 to vector<8x63xf32>
    %737 = arith.mulf %735, %736 : vector<8x63xf32>
    %738 = arith.addf %734, %737 : vector<8x63xf32>
    %739 = vector.extract_strided_slice %671 {offsets = [0, 0], sizes = [8, 63], strides = [1, 1]} : vector<8x64xf32> to vector<8x63xf32>
    %740 = vector.broadcast %14 : f32 to vector<8x63xf32>
    %741 = arith.mulf %739, %740 : vector<8x63xf32>
    %742 = arith.addf %738, %741 : vector<8x63xf32>
    %743 = vector.extract_strided_slice %671 {offsets = [0, 1], sizes = [8, 63], strides = [1, 1]} : vector<8x64xf32> to vector<8x63xf32>
    %744 = vector.broadcast %15 : f32 to vector<8x63xf32>
    %745 = arith.mulf %743, %744 : vector<8x63xf32>
    %746 = arith.addf %742, %745 : vector<8x63xf32>
    %c0_303 = arith.constant 0 : index
    %c1_304 = arith.constant 1 : index
    %c10_305 = arith.constant 10 : index
    %c0_306 = arith.constant 0 : index
    %747 = vector.load %arg6[%c0_303, %c1_304, %c10_305, %c0_306] : memref<1x6x67x63xf32, #tpu.memory_space<vmem>>, vector<1x1x8x63xf32>
    %748 = vector.shape_cast %747 : vector<1x1x8x63xf32> to vector<8x63xf32>
    %749 = vector.shape_cast %746 : vector<8x63xf32> to vector<1x1x8x63xf32>
    tpu.vector_store %arg6[%c0_303, %c1_304, %c10_305, %c0_306], %749 {strides = array<i32>} : memref<1x6x67x63xf32, #tpu.memory_space<vmem>>, vector<1x1x8x63xf32>,
    %c0_307 = arith.constant 0 : index
    %c2_308 = arith.constant 2 : index
    %c10_309 = arith.constant 10 : index
    %c0_310 = arith.constant 0 : index
    %750 = vector.load %arg5[%c0_307, %c2_308, %c10_309, %c0_310] : memref<1x6x67x63xf32, #tpu.memory_space<vmem>>, vector<1x1x8x63xf32>
    %751 = vector.shape_cast %750 : vector<1x1x8x63xf32> to vector<8x63xf32>
    %752 = vector.broadcast %50 : f32 to vector<8x63xf32>
    %753 = arith.addf %751, %752 : vector<8x63xf32>
    %754 = vector.extract_strided_slice %665 {offsets = [0, 0], sizes = [8, 63], strides = [1, 1]} : vector<8x64xf32> to vector<8x63xf32>
    %755 = vector.broadcast %16 : f32 to vector<8x63xf32>
    %756 = arith.mulf %754, %755 : vector<8x63xf32>
    %757 = arith.addf %753, %756 : vector<8x63xf32>
    %758 = vector.extract_strided_slice %665 {offsets = [0, 1], sizes = [8, 63], strides = [1, 1]} : vector<8x64xf32> to vector<8x63xf32>
    %759 = vector.broadcast %17 : f32 to vector<8x63xf32>
    %760 = arith.mulf %758, %759 : vector<8x63xf32>
    %761 = arith.addf %757, %760 : vector<8x63xf32>
    %762 = vector.extract_strided_slice %667 {offsets = [0, 0], sizes = [8, 63], strides = [1, 1]} : vector<8x64xf32> to vector<8x63xf32>
    %763 = vector.broadcast %18 : f32 to vector<8x63xf32>
    %764 = arith.mulf %762, %763 : vector<8x63xf32>
    %765 = arith.addf %761, %764 : vector<8x63xf32>
    %766 = vector.extract_strided_slice %667 {offsets = [0, 1], sizes = [8, 63], strides = [1, 1]} : vector<8x64xf32> to vector<8x63xf32>
    %767 = vector.broadcast %19 : f32 to vector<8x63xf32>
    %768 = arith.mulf %766, %767 : vector<8x63xf32>
    %769 = arith.addf %765, %768 : vector<8x63xf32>
    %770 = vector.extract_strided_slice %669 {offsets = [0, 0], sizes = [8, 63], strides = [1, 1]} : vector<8x64xf32> to vector<8x63xf32>
    %771 = vector.broadcast %20 : f32 to vector<8x63xf32>
    %772 = arith.mulf %770, %771 : vector<8x63xf32>
    %773 = arith.addf %769, %772 : vector<8x63xf32>
    %774 = vector.extract_strided_slice %669 {offsets = [0, 1], sizes = [8, 63], strides = [1, 1]} : vector<8x64xf32> to vector<8x63xf32>
    %775 = vector.broadcast %21 : f32 to vector<8x63xf32>
    %776 = arith.mulf %774, %775 : vector<8x63xf32>
    %777 = arith.addf %773, %776 : vector<8x63xf32>
    %778 = vector.extract_strided_slice %671 {offsets = [0, 0], sizes = [8, 63], strides = [1, 1]} : vector<8x64xf32> to vector<8x63xf32>
    %779 = vector.broadcast %22 : f32 to vector<8x63xf32>
    %780 = arith.mulf %778, %779 : vector<8x63xf32>
    %781 = arith.addf %777, %780 : vector<8x63xf32>
    %782 = vector.extract_strided_slice %671 {offsets = [0, 1], sizes = [8, 63], strides = [1, 1]} : vector<8x64xf32> to vector<8x63xf32>
    %783 = vector.broadcast %23 : f32 to vector<8x63xf32>
    %784 = arith.mulf %782, %783 : vector<8x63xf32>
    %785 = arith.addf %781, %784 : vector<8x63xf32>
    %c0_311 = arith.constant 0 : index
    %c2_312 = arith.constant 2 : index
    %c10_313 = arith.constant 10 : index
    %c0_314 = arith.constant 0 : index
    %786 = vector.load %arg6[%c0_311, %c2_312, %c10_313, %c0_314] : memref<1x6x67x63xf32, #tpu.memory_space<vmem>>, vector<1x1x8x63xf32>
    %787 = vector.shape_cast %786 : vector<1x1x8x63xf32> to vector<8x63xf32>
    %788 = vector.shape_cast %785 : vector<8x63xf32> to vector<1x1x8x63xf32>
    tpu.vector_store %arg6[%c0_311, %c2_312, %c10_313, %c0_314], %788 {strides = array<i32>} : memref<1x6x67x63xf32, #tpu.memory_space<vmem>>, vector<1x1x8x63xf32>,
    %c0_315 = arith.constant 0 : index
    %c3_316 = arith.constant 3 : index
    %c10_317 = arith.constant 10 : index
    %c0_318 = arith.constant 0 : index
    %789 = vector.load %arg5[%c0_315, %c3_316, %c10_317, %c0_318] : memref<1x6x67x63xf32, #tpu.memory_space<vmem>>, vector<1x1x8x63xf32>
    %790 = vector.shape_cast %789 : vector<1x1x8x63xf32> to vector<8x63xf32>
    %791 = vector.broadcast %51 : f32 to vector<8x63xf32>
    %792 = arith.addf %790, %791 : vector<8x63xf32>
    %793 = vector.extract_strided_slice %665 {offsets = [0, 0], sizes = [8, 63], strides = [1, 1]} : vector<8x64xf32> to vector<8x63xf32>
    %794 = vector.broadcast %24 : f32 to vector<8x63xf32>
    %795 = arith.mulf %793, %794 : vector<8x63xf32>
    %796 = arith.addf %792, %795 : vector<8x63xf32>
    %797 = vector.extract_strided_slice %665 {offsets = [0, 1], sizes = [8, 63], strides = [1, 1]} : vector<8x64xf32> to vector<8x63xf32>
    %798 = vector.broadcast %25 : f32 to vector<8x63xf32>
    %799 = arith.mulf %797, %798 : vector<8x63xf32>
    %800 = arith.addf %796, %799 : vector<8x63xf32>
    %801 = vector.extract_strided_slice %667 {offsets = [0, 0], sizes = [8, 63], strides = [1, 1]} : vector<8x64xf32> to vector<8x63xf32>
    %802 = vector.broadcast %26 : f32 to vector<8x63xf32>
    %803 = arith.mulf %801, %802 : vector<8x63xf32>
    %804 = arith.addf %800, %803 : vector<8x63xf32>
    %805 = vector.extract_strided_slice %667 {offsets = [0, 1], sizes = [8, 63], strides = [1, 1]} : vector<8x64xf32> to vector<8x63xf32>
    %806 = vector.broadcast %27 : f32 to vector<8x63xf32>
    %807 = arith.mulf %805, %806 : vector<8x63xf32>
    %808 = arith.addf %804, %807 : vector<8x63xf32>
    %809 = vector.extract_strided_slice %669 {offsets = [0, 0], sizes = [8, 63], strides = [1, 1]} : vector<8x64xf32> to vector<8x63xf32>
    %810 = vector.broadcast %28 : f32 to vector<8x63xf32>
    %811 = arith.mulf %809, %810 : vector<8x63xf32>
    %812 = arith.addf %808, %811 : vector<8x63xf32>
    %813 = vector.extract_strided_slice %669 {offsets = [0, 1], sizes = [8, 63], strides = [1, 1]} : vector<8x64xf32> to vector<8x63xf32>
    %814 = vector.broadcast %29 : f32 to vector<8x63xf32>
    %815 = arith.mulf %813, %814 : vector<8x63xf32>
    %816 = arith.addf %812, %815 : vector<8x63xf32>
    %817 = vector.extract_strided_slice %671 {offsets = [0, 0], sizes = [8, 63], strides = [1, 1]} : vector<8x64xf32> to vector<8x63xf32>
    %818 = vector.broadcast %30 : f32 to vector<8x63xf32>
    %819 = arith.mulf %817, %818 : vector<8x63xf32>
    %820 = arith.addf %816, %819 : vector<8x63xf32>
    %821 = vector.extract_strided_slice %671 {offsets = [0, 1], sizes = [8, 63], strides = [1, 1]} : vector<8x64xf32> to vector<8x63xf32>
    %822 = vector.broadcast %31 : f32 to vector<8x63xf32>
    %823 = arith.mulf %821, %822 : vector<8x63xf32>
    %824 = arith.addf %820, %823 : vector<8x63xf32>
    %c0_319 = arith.constant 0 : index
    %c3_320 = arith.constant 3 : index
    %c10_321 = arith.constant 10 : index
    %c0_322 = arith.constant 0 : index
    %825 = vector.load %arg6[%c0_319, %c3_320, %c10_321, %c0_322] : memref<1x6x67x63xf32, #tpu.memory_space<vmem>>, vector<1x1x8x63xf32>
    %826 = vector.shape_cast %825 : vector<1x1x8x63xf32> to vector<8x63xf32>
    %827 = vector.shape_cast %824 : vector<8x63xf32> to vector<1x1x8x63xf32>
    tpu.vector_store %arg6[%c0_319, %c3_320, %c10_321, %c0_322], %827 {strides = array<i32>} : memref<1x6x67x63xf32, #tpu.memory_space<vmem>>, vector<1x1x8x63xf32>,
    %c0_323 = arith.constant 0 : index
    %c4_324 = arith.constant 4 : index
    %c10_325 = arith.constant 10 : index
    %c0_326 = arith.constant 0 : index
    %828 = vector.load %arg5[%c0_323, %c4_324, %c10_325, %c0_326] : memref<1x6x67x63xf32, #tpu.memory_space<vmem>>, vector<1x1x8x63xf32>
    %829 = vector.shape_cast %828 : vector<1x1x8x63xf32> to vector<8x63xf32>
    %830 = vector.broadcast %52 : f32 to vector<8x63xf32>
    %831 = arith.addf %829, %830 : vector<8x63xf32>
    %832 = vector.extract_strided_slice %665 {offsets = [0, 0], sizes = [8, 63], strides = [1, 1]} : vector<8x64xf32> to vector<8x63xf32>
    %833 = vector.broadcast %32 : f32 to vector<8x63xf32>
    %834 = arith.mulf %832, %833 : vector<8x63xf32>
    %835 = arith.addf %831, %834 : vector<8x63xf32>
    %836 = vector.extract_strided_slice %665 {offsets = [0, 1], sizes = [8, 63], strides = [1, 1]} : vector<8x64xf32> to vector<8x63xf32>
    %837 = vector.broadcast %33 : f32 to vector<8x63xf32>
    %838 = arith.mulf %836, %837 : vector<8x63xf32>
    %839 = arith.addf %835, %838 : vector<8x63xf32>
    %840 = vector.extract_strided_slice %667 {offsets = [0, 0], sizes = [8, 63], strides = [1, 1]} : vector<8x64xf32> to vector<8x63xf32>
    %841 = vector.broadcast %34 : f32 to vector<8x63xf32>
    %842 = arith.mulf %840, %841 : vector<8x63xf32>
    %843 = arith.addf %839, %842 : vector<8x63xf32>
    %844 = vector.extract_strided_slice %667 {offsets = [0, 1], sizes = [8, 63], strides = [1, 1]} : vector<8x64xf32> to vector<8x63xf32>
    %845 = vector.broadcast %35 : f32 to vector<8x63xf32>
    %846 = arith.mulf %844, %845 : vector<8x63xf32>
    %847 = arith.addf %843, %846 : vector<8x63xf32>
    %848 = vector.extract_strided_slice %669 {offsets = [0, 0], sizes = [8, 63], strides = [1, 1]} : vector<8x64xf32> to vector<8x63xf32>
    %849 = vector.broadcast %36 : f32 to vector<8x63xf32>
    %850 = arith.mulf %848, %849 : vector<8x63xf32>
    %851 = arith.addf %847, %850 : vector<8x63xf32>
    %852 = vector.extract_strided_slice %669 {offsets = [0, 1], sizes = [8, 63], strides = [1, 1]} : vector<8x64xf32> to vector<8x63xf32>
    %853 = vector.broadcast %37 : f32 to vector<8x63xf32>
    %854 = arith.mulf %852, %853 : vector<8x63xf32>
    %855 = arith.addf %851, %854 : vector<8x63xf32>
    %856 = vector.extract_strided_slice %671 {offsets = [0, 0], sizes = [8, 63], strides = [1, 1]} : vector<8x64xf32> to vector<8x63xf32>
    %857 = vector.broadcast %38 : f32 to vector<8x63xf32>
    %858 = arith.mulf %856, %857 : vector<8x63xf32>
    %859 = arith.addf %855, %858 : vector<8x63xf32>
    %860 = vector.extract_strided_slice %671 {offsets = [0, 1], sizes = [8, 63], strides = [1, 1]} : vector<8x64xf32> to vector<8x63xf32>
    %861 = vector.broadcast %39 : f32 to vector<8x63xf32>
    %862 = arith.mulf %860, %861 : vector<8x63xf32>
    %863 = arith.addf %859, %862 : vector<8x63xf32>
    %c0_327 = arith.constant 0 : index
    %c4_328 = arith.constant 4 : index
    %c10_329 = arith.constant 10 : index
    %c0_330 = arith.constant 0 : index
    %864 = vector.load %arg6[%c0_327, %c4_328, %c10_329, %c0_330] : memref<1x6x67x63xf32, #tpu.memory_space<vmem>>, vector<1x1x8x63xf32>
    %865 = vector.shape_cast %864 : vector<1x1x8x63xf32> to vector<8x63xf32>
    %866 = vector.shape_cast %863 : vector<8x63xf32> to vector<1x1x8x63xf32>
    tpu.vector_store %arg6[%c0_327, %c4_328, %c10_329, %c0_330], %866 {strides = array<i32>} : memref<1x6x67x63xf32, #tpu.memory_space<vmem>>, vector<1x1x8x63xf32>,
    %c0_331 = arith.constant 0 : index
    %c5_332 = arith.constant 5 : index
    %c10_333 = arith.constant 10 : index
    %c0_334 = arith.constant 0 : index
    %867 = vector.load %arg5[%c0_331, %c5_332, %c10_333, %c0_334] : memref<1x6x67x63xf32, #tpu.memory_space<vmem>>, vector<1x1x8x63xf32>
    %868 = vector.shape_cast %867 : vector<1x1x8x63xf32> to vector<8x63xf32>
    %869 = vector.broadcast %53 : f32 to vector<8x63xf32>
    %870 = arith.addf %868, %869 : vector<8x63xf32>
    %871 = vector.extract_strided_slice %665 {offsets = [0, 0], sizes = [8, 63], strides = [1, 1]} : vector<8x64xf32> to vector<8x63xf32>
    %872 = vector.broadcast %40 : f32 to vector<8x63xf32>
    %873 = arith.mulf %871, %872 : vector<8x63xf32>
    %874 = arith.addf %870, %873 : vector<8x63xf32>
    %875 = vector.extract_strided_slice %665 {offsets = [0, 1], sizes = [8, 63], strides = [1, 1]} : vector<8x64xf32> to vector<8x63xf32>
    %876 = vector.broadcast %41 : f32 to vector<8x63xf32>
    %877 = arith.mulf %875, %876 : vector<8x63xf32>
    %878 = arith.addf %874, %877 : vector<8x63xf32>
    %879 = vector.extract_strided_slice %667 {offsets = [0, 0], sizes = [8, 63], strides = [1, 1]} : vector<8x64xf32> to vector<8x63xf32>
    %880 = vector.broadcast %42 : f32 to vector<8x63xf32>
    %881 = arith.mulf %879, %880 : vector<8x63xf32>
    %882 = arith.addf %878, %881 : vector<8x63xf32>
    %883 = vector.extract_strided_slice %667 {offsets = [0, 1], sizes = [8, 63], strides = [1, 1]} : vector<8x64xf32> to vector<8x63xf32>
    %884 = vector.broadcast %43 : f32 to vector<8x63xf32>
    %885 = arith.mulf %883, %884 : vector<8x63xf32>
    %886 = arith.addf %882, %885 : vector<8x63xf32>
    %887 = vector.extract_strided_slice %669 {offsets = [0, 0], sizes = [8, 63], strides = [1, 1]} : vector<8x64xf32> to vector<8x63xf32>
    %888 = vector.broadcast %44 : f32 to vector<8x63xf32>
    %889 = arith.mulf %887, %888 : vector<8x63xf32>
    %890 = arith.addf %886, %889 : vector<8x63xf32>
    %891 = vector.extract_strided_slice %669 {offsets = [0, 1], sizes = [8, 63], strides = [1, 1]} : vector<8x64xf32> to vector<8x63xf32>
    %892 = vector.broadcast %45 : f32 to vector<8x63xf32>
    %893 = arith.mulf %891, %892 : vector<8x63xf32>
    %894 = arith.addf %890, %893 : vector<8x63xf32>
    %895 = vector.extract_strided_slice %671 {offsets = [0, 0], sizes = [8, 63], strides = [1, 1]} : vector<8x64xf32> to vector<8x63xf32>
    %896 = vector.broadcast %46 : f32 to vector<8x63xf32>
    %897 = arith.mulf %895, %896 : vector<8x63xf32>
    %898 = arith.addf %894, %897 : vector<8x63xf32>
    %899 = vector.extract_strided_slice %671 {offsets = [0, 1], sizes = [8, 63], strides = [1, 1]} : vector<8x64xf32> to vector<8x63xf32>
    %900 = vector.broadcast %47 : f32 to vector<8x63xf32>
    %901 = arith.mulf %899, %900 : vector<8x63xf32>
    %902 = arith.addf %898, %901 : vector<8x63xf32>
    %c0_335 = arith.constant 0 : index
    %c5_336 = arith.constant 5 : index
    %c10_337 = arith.constant 10 : index
    %c0_338 = arith.constant 0 : index
    %903 = vector.load %arg6[%c0_335, %c5_336, %c10_337, %c0_338] : memref<1x6x67x63xf32, #tpu.memory_space<vmem>>, vector<1x1x8x63xf32>
    %904 = vector.shape_cast %903 : vector<1x1x8x63xf32> to vector<8x63xf32>
    %905 = vector.shape_cast %902 : vector<8x63xf32> to vector<1x1x8x63xf32>
    tpu.vector_store %arg6[%c0_335, %c5_336, %c10_337, %c0_338], %905 {strides = array<i32>} : memref<1x6x67x63xf32, #tpu.memory_space<vmem>>, vector<1x1x8x63xf32>,
    %c0_339 = arith.constant 0 : index
    %c0_340 = arith.constant 0 : index
    %c16_341 = arith.constant 16 : index
    %c0_342 = arith.constant 0 : index
    %906 = vector.load %arg4[%c0_339, %c0_340, %c16_341, %c0_342] : memref<1x2x64x64xf32, #tpu.memory_space<vmem>>, vector<1x1x8x64xf32>
    %907 = vector.shape_cast %906 : vector<1x1x8x64xf32> to vector<8x64xf32>
    %c0_343 = arith.constant 0 : index
    %c0_344 = arith.constant 0 : index
    %c17_345 = arith.constant 17 : index
    %c0_346 = arith.constant 0 : index
    %908 = vector.load %arg4[%c0_343, %c0_344, %c17_345, %c0_346] : memref<1x2x64x64xf32, #tpu.memory_space<vmem>>, vector<1x1x8x64xf32>
    %909 = vector.shape_cast %908 : vector<1x1x8x64xf32> to vector<8x64xf32>
    %c0_347 = arith.constant 0 : index
    %c1_348 = arith.constant 1 : index
    %c16_349 = arith.constant 16 : index
    %c0_350 = arith.constant 0 : index
    %910 = vector.load %arg4[%c0_347, %c1_348, %c16_349, %c0_350] : memref<1x2x64x64xf32, #tpu.memory_space<vmem>>, vector<1x1x8x64xf32>
    %911 = vector.shape_cast %910 : vector<1x1x8x64xf32> to vector<8x64xf32>
    %c0_351 = arith.constant 0 : index
    %c1_352 = arith.constant 1 : index
    %c17_353 = arith.constant 17 : index
    %c0_354 = arith.constant 0 : index
    %912 = vector.load %arg4[%c0_351, %c1_352, %c17_353, %c0_354] : memref<1x2x64x64xf32, #tpu.memory_space<vmem>>, vector<1x1x8x64xf32>
    %913 = vector.shape_cast %912 : vector<1x1x8x64xf32> to vector<8x64xf32>
    %c0_355 = arith.constant 0 : index
    %c0_356 = arith.constant 0 : index
    %c18_357 = arith.constant 18 : index
    %c0_358 = arith.constant 0 : index
    %914 = vector.load %arg5[%c0_355, %c0_356, %c18_357, %c0_358] : memref<1x6x67x63xf32, #tpu.memory_space<vmem>>, vector<1x1x8x63xf32>
    %915 = vector.shape_cast %914 : vector<1x1x8x63xf32> to vector<8x63xf32>
    %916 = vector.broadcast %48 : f32 to vector<8x63xf32>
    %917 = arith.addf %915, %916 : vector<8x63xf32>
    %918 = vector.extract_strided_slice %907 {offsets = [0, 0], sizes = [8, 63], strides = [1, 1]} : vector<8x64xf32> to vector<8x63xf32>
    %919 = vector.broadcast %0 : f32 to vector<8x63xf32>
    %920 = arith.mulf %918, %919 : vector<8x63xf32>
    %921 = arith.addf %917, %920 : vector<8x63xf32>
    %922 = vector.extract_strided_slice %907 {offsets = [0, 1], sizes = [8, 63], strides = [1, 1]} : vector<8x64xf32> to vector<8x63xf32>
    %923 = vector.broadcast %1 : f32 to vector<8x63xf32>
    %924 = arith.mulf %922, %923 : vector<8x63xf32>
    %925 = arith.addf %921, %924 : vector<8x63xf32>
    %926 = vector.extract_strided_slice %909 {offsets = [0, 0], sizes = [8, 63], strides = [1, 1]} : vector<8x64xf32> to vector<8x63xf32>
    %927 = vector.broadcast %2 : f32 to vector<8x63xf32>
    %928 = arith.mulf %926, %927 : vector<8x63xf32>
    %929 = arith.addf %925, %928 : vector<8x63xf32>
    %930 = vector.extract_strided_slice %909 {offsets = [0, 1], sizes = [8, 63], strides = [1, 1]} : vector<8x64xf32> to vector<8x63xf32>
    %931 = vector.broadcast %3 : f32 to vector<8x63xf32>
    %932 = arith.mulf %930, %931 : vector<8x63xf32>
    %933 = arith.addf %929, %932 : vector<8x63xf32>
    %934 = vector.extract_strided_slice %911 {offsets = [0, 0], sizes = [8, 63], strides = [1, 1]} : vector<8x64xf32> to vector<8x63xf32>
    %935 = vector.broadcast %4 : f32 to vector<8x63xf32>
    %936 = arith.mulf %934, %935 : vector<8x63xf32>
    %937 = arith.addf %933, %936 : vector<8x63xf32>
    %938 = vector.extract_strided_slice %911 {offsets = [0, 1], sizes = [8, 63], strides = [1, 1]} : vector<8x64xf32> to vector<8x63xf32>
    %939 = vector.broadcast %5 : f32 to vector<8x63xf32>
    %940 = arith.mulf %938, %939 : vector<8x63xf32>
    %941 = arith.addf %937, %940 : vector<8x63xf32>
    %942 = vector.extract_strided_slice %913 {offsets = [0, 0], sizes = [8, 63], strides = [1, 1]} : vector<8x64xf32> to vector<8x63xf32>
    %943 = vector.broadcast %6 : f32 to vector<8x63xf32>
    %944 = arith.mulf %942, %943 : vector<8x63xf32>
    %945 = arith.addf %941, %944 : vector<8x63xf32>
    %946 = vector.extract_strided_slice %913 {offsets = [0, 1], sizes = [8, 63], strides = [1, 1]} : vector<8x64xf32> to vector<8x63xf32>
    %947 = vector.broadcast %7 : f32 to vector<8x63xf32>
    %948 = arith.mulf %946, %947 : vector<8x63xf32>
    %949 = arith.addf %945, %948 : vector<8x63xf32>
    %c0_359 = arith.constant 0 : index
    %c0_360 = arith.constant 0 : index
    %c18_361 = arith.constant 18 : index
    %c0_362 = arith.constant 0 : index
    %950 = vector.load %arg6[%c0_359, %c0_360, %c18_361, %c0_362] : memref<1x6x67x63xf32, #tpu.memory_space<vmem>>, vector<1x1x8x63xf32>
    %951 = vector.shape_cast %950 : vector<1x1x8x63xf32> to vector<8x63xf32>
    %952 = vector.shape_cast %949 : vector<8x63xf32> to vector<1x1x8x63xf32>
    tpu.vector_store %arg6[%c0_359, %c0_360, %c18_361, %c0_362], %952 {strides = array<i32>} : memref<1x6x67x63xf32, #tpu.memory_space<vmem>>, vector<1x1x8x63xf32>,
    %c0_363 = arith.constant 0 : index
    %c1_364 = arith.constant 1 : index
    %c18_365 = arith.constant 18 : index
    %c0_366 = arith.constant 0 : index
    %953 = vector.load %arg5[%c0_363, %c1_364, %c18_365, %c0_366] : memref<1x6x67x63xf32, #tpu.memory_space<vmem>>, vector<1x1x8x63xf32>
    %954 = vector.shape_cast %953 : vector<1x1x8x63xf32> to vector<8x63xf32>
    %955 = vector.broadcast %49 : f32 to vector<8x63xf32>
    %956 = arith.addf %954, %955 : vector<8x63xf32>
    %957 = vector.extract_strided_slice %907 {offsets = [0, 0], sizes = [8, 63], strides = [1, 1]} : vector<8x64xf32> to vector<8x63xf32>
    %958 = vector.broadcast %8 : f32 to vector<8x63xf32>
    %959 = arith.mulf %957, %958 : vector<8x63xf32>
    %960 = arith.addf %956, %959 : vector<8x63xf32>
    %961 = vector.extract_strided_slice %907 {offsets = [0, 1], sizes = [8, 63], strides = [1, 1]} : vector<8x64xf32> to vector<8x63xf32>
    %962 = vector.broadcast %9 : f32 to vector<8x63xf32>
    %963 = arith.mulf %961, %962 : vector<8x63xf32>
    %964 = arith.addf %960, %963 : vector<8x63xf32>
    %965 = vector.extract_strided_slice %909 {offsets = [0, 0], sizes = [8, 63], strides = [1, 1]} : vector<8x64xf32> to vector<8x63xf32>
    %966 = vector.broadcast %10 : f32 to vector<8x63xf32>
    %967 = arith.mulf %965, %966 : vector<8x63xf32>
    %968 = arith.addf %964, %967 : vector<8x63xf32>
    %969 = vector.extract_strided_slice %909 {offsets = [0, 1], sizes = [8, 63], strides = [1, 1]} : vector<8x64xf32> to vector<8x63xf32>
    %970 = vector.broadcast %11 : f32 to vector<8x63xf32>
    %971 = arith.mulf %969, %970 : vector<8x63xf32>
    %972 = arith.addf %968, %971 : vector<8x63xf32>
    %973 = vector.extract_strided_slice %911 {offsets = [0, 0], sizes = [8, 63], strides = [1, 1]} : vector<8x64xf32> to vector<8x63xf32>
    %974 = vector.broadcast %12 : f32 to vector<8x63xf32>
    %975 = arith.mulf %973, %974 : vector<8x63xf32>
    %976 = arith.addf %972, %975 : vector<8x63xf32>
    %977 = vector.extract_strided_slice %911 {offsets = [0, 1], sizes = [8, 63], strides = [1, 1]} : vector<8x64xf32> to vector<8x63xf32>
    %978 = vector.broadcast %13 : f32 to vector<8x63xf32>
    %979 = arith.mulf %977, %978 : vector<8x63xf32>
    %980 = arith.addf %976, %979 : vector<8x63xf32>
    %981 = vector.extract_strided_slice %913 {offsets = [0, 0], sizes = [8, 63], strides = [1, 1]} : vector<8x64xf32> to vector<8x63xf32>
    %982 = vector.broadcast %14 : f32 to vector<8x63xf32>
    %983 = arith.mulf %981, %982 : vector<8x63xf32>
    %984 = arith.addf %980, %983 : vector<8x63xf32>
    %985 = vector.extract_strided_slice %913 {offsets = [0, 1], sizes = [8, 63], strides = [1, 1]} : vector<8x64xf32> to vector<8x63xf32>
    %986 = vector.broadcast %15 : f32 to vector<8x63xf32>
    %987 = arith.mulf %985, %986 : vector<8x63xf32>
    %988 = arith.addf %984, %987 : vector<8x63xf32>
    %c0_367 = arith.constant 0 : index
    %c1_368 = arith.constant 1 : index
    %c18_369 = arith.constant 18 : index
    %c0_370 = arith.constant 0 : index
    %989 = vector.load %arg6[%c0_367, %c1_368, %c18_369, %c0_370] : memref<1x6x67x63xf32, #tpu.memory_space<vmem>>, vector<1x1x8x63xf32>
    %990 = vector.shape_cast %989 : vector<1x1x8x63xf32> to vector<8x63xf32>
    %991 = vector.shape_cast %988 : vector<8x63xf32> to vector<1x1x8x63xf32>
    tpu.vector_store %arg6[%c0_367, %c1_368, %c18_369, %c0_370], %991 {strides = array<i32>} : memref<1x6x67x63xf32, #tpu.memory_space<vmem>>, vector<1x1x8x63xf32>,
    %c0_371 = arith.constant 0 : index
    %c2_372 = arith.constant 2 : index
    %c18_373 = arith.constant 18 : index
    %c0_374 = arith.constant 0 : index
    %992 = vector.load %arg5[%c0_371, %c2_372, %c18_373, %c0_374] : memref<1x6x67x63xf32, #tpu.memory_space<vmem>>, vector<1x1x8x63xf32>
    %993 = vector.shape_cast %992 : vector<1x1x8x63xf32> to vector<8x63xf32>
    %994 = vector.broadcast %50 : f32 to vector<8x63xf32>
    %995 = arith.addf %993, %994 : vector<8x63xf32>
    %996 = vector.extract_strided_slice %907 {offsets = [0, 0], sizes = [8, 63], strides = [1, 1]} : vector<8x64xf32> to vector<8x63xf32>
    %997 = vector.broadcast %16 : f32 to vector<8x63xf32>
    %998 = arith.mulf %996, %997 : vector<8x63xf32>
    %999 = arith.addf %995, %998 : vector<8x63xf32>
    %1000 = vector.extract_strided_slice %907 {offsets = [0, 1], sizes = [8, 63], strides = [1, 1]} : vector<8x64xf32> to vector<8x63xf32>
    %1001 = vector.broadcast %17 : f32 to vector<8x63xf32>
    %1002 = arith.mulf %1000, %1001 : vector<8x63xf32>
    %1003 = arith.addf %999, %1002 : vector<8x63xf32>
    %1004 = vector.extract_strided_slice %909 {offsets = [0, 0], sizes = [8, 63], strides = [1, 1]} : vector<8x64xf32> to vector<8x63xf32>
    %1005 = vector.broadcast %18 : f32 to vector<8x63xf32>
    %1006 = arith.mulf %1004, %1005 : vector<8x63xf32>
    %1007 = arith.addf %1003, %1006 : vector<8x63xf32>
    %1008 = vector.extract_strided_slice %909 {offsets = [0, 1], sizes = [8, 63], strides = [1, 1]} : vector<8x64xf32> to vector<8x63xf32>
    %1009 = vector.broadcast %19 : f32 to vector<8x63xf32>
    %1010 = arith.mulf %1008, %1009 : vector<8x63xf32>
    %1011 = arith.addf %1007, %1010 : vector<8x63xf32>
    %1012 = vector.extract_strided_slice %911 {offsets = [0, 0], sizes = [8, 63], strides = [1, 1]} : vector<8x64xf32> to vector<8x63xf32>
    %1013 = vector.broadcast %20 : f32 to vector<8x63xf32>
    %1014 = arith.mulf %1012, %1013 : vector<8x63xf32>
    %1015 = arith.addf %1011, %1014 : vector<8x63xf32>
    %1016 = vector.extract_strided_slice %911 {offsets = [0, 1], sizes = [8, 63], strides = [1, 1]} : vector<8x64xf32> to vector<8x63xf32>
    %1017 = vector.broadcast %21 : f32 to vector<8x63xf32>
    %1018 = arith.mulf %1016, %1017 : vector<8x63xf32>
    %1019 = arith.addf %1015, %1018 : vector<8x63xf32>
    %1020 = vector.extract_strided_slice %913 {offsets = [0, 0], sizes = [8, 63], strides = [1, 1]} : vector<8x64xf32> to vector<8x63xf32>
    %1021 = vector.broadcast %22 : f32 to vector<8x63xf32>
    %1022 = arith.mulf %1020, %1021 : vector<8x63xf32>
    %1023 = arith.addf %1019, %1022 : vector<8x63xf32>
    %1024 = vector.extract_strided_slice %913 {offsets = [0, 1], sizes = [8, 63], strides = [1, 1]} : vector<8x64xf32> to vector<8x63xf32>
    %1025 = vector.broadcast %23 : f32 to vector<8x63xf32>
    %1026 = arith.mulf %1024, %1025 : vector<8x63xf32>
    %1027 = arith.addf %1023, %1026 : vector<8x63xf32>
    %c0_375 = arith.constant 0 : index
    %c2_376 = arith.constant 2 : index
    %c18_377 = arith.constant 18 : index
    %c0_378 = arith.constant 0 : index
    %1028 = vector.load %arg6[%c0_375, %c2_376, %c18_377, %c0_378] : memref<1x6x67x63xf32, #tpu.memory_space<vmem>>, vector<1x1x8x63xf32>
    %1029 = vector.shape_cast %1028 : vector<1x1x8x63xf32> to vector<8x63xf32>
    %1030 = vector.shape_cast %1027 : vector<8x63xf32> to vector<1x1x8x63xf32>
    tpu.vector_store %arg6[%c0_375, %c2_376, %c18_377, %c0_378], %1030 {strides = array<i32>} : memref<1x6x67x63xf32, #tpu.memory_space<vmem>>, vector<1x1x8x63xf32>,
    %c0_379 = arith.constant 0 : index
    %c3_380 = arith.constant 3 : index
    %c18_381 = arith.constant 18 : index
    %c0_382 = arith.constant 0 : index
    %1031 = vector.load %arg5[%c0_379, %c3_380, %c18_381, %c0_382] : memref<1x6x67x63xf32, #tpu.memory_space<vmem>>, vector<1x1x8x63xf32>
    %1032 = vector.shape_cast %1031 : vector<1x1x8x63xf32> to vector<8x63xf32>
    %1033 = vector.broadcast %51 : f32 to vector<8x63xf32>
    %1034 = arith.addf %1032, %1033 : vector<8x63xf32>
    %1035 = vector.extract_strided_slice %907 {offsets = [0, 0], sizes = [8, 63], strides = [1, 1]} : vector<8x64xf32> to vector<8x63xf32>
    %1036 = vector.broadcast %24 : f32 to vector<8x63xf32>
    %1037 = arith.mulf %1035, %1036 : vector<8x63xf32>
    %1038 = arith.addf %1034, %1037 : vector<8x63xf32>
    %1039 = vector.extract_strided_slice %907 {offsets = [0, 1], sizes = [8, 63], strides = [1, 1]} : vector<8x64xf32> to vector<8x63xf32>
    %1040 = vector.broadcast %25 : f32 to vector<8x63xf32>
    %1041 = arith.mulf %1039, %1040 : vector<8x63xf32>
    %1042 = arith.addf %1038, %1041 : vector<8x63xf32>
    %1043 = vector.extract_strided_slice %909 {offsets = [0, 0], sizes = [8, 63], strides = [1, 1]} : vector<8x64xf32> to vector<8x63xf32>
    %1044 = vector.broadcast %26 : f32 to vector<8x63xf32>
    %1045 = arith.mulf %1043, %1044 : vector<8x63xf32>
    %1046 = arith.addf %1042, %1045 : vector<8x63xf32>
    %1047 = vector.extract_strided_slice %909 {offsets = [0, 1], sizes = [8, 63], strides = [1, 1]} : vector<8x64xf32> to vector<8x63xf32>
    %1048 = vector.broadcast %27 : f32 to vector<8x63xf32>
    %1049 = arith.mulf %1047, %1048 : vector<8x63xf32>
    %1050 = arith.addf %1046, %1049 : vector<8x63xf32>
    %1051 = vector.extract_strided_slice %911 {offsets = [0, 0], sizes = [8, 63], strides = [1, 1]} : vector<8x64xf32> to vector<8x63xf32>
    %1052 = vector.broadcast %28 : f32 to vector<8x63xf32>
    %1053 = arith.mulf %1051, %1052 : vector<8x63xf32>
    %1054 = arith.addf %1050, %1053 : vector<8x63xf32>
    %1055 = vector.extract_strided_slice %911 {offsets = [0, 1], sizes = [8, 63], strides = [1, 1]} : vector<8x64xf32> to vector<8x63xf32>
    %1056 = vector.broadcast %29 : f32 to vector<8x63xf32>
    %1057 = arith.mulf %1055, %1056 : vector<8x63xf32>
    %1058 = arith.addf %1054, %1057 : vector<8x63xf32>
    %1059 = vector.extract_strided_slice %913 {offsets = [0, 0], sizes = [8, 63], strides = [1, 1]} : vector<8x64xf32> to vector<8x63xf32>
    %1060 = vector.broadcast %30 : f32 to vector<8x63xf32>
    %1061 = arith.mulf %1059, %1060 : vector<8x63xf32>
    %1062 = arith.addf %1058, %1061 : vector<8x63xf32>
    %1063 = vector.extract_strided_slice %913 {offsets = [0, 1], sizes = [8, 63], strides = [1, 1]} : vector<8x64xf32> to vector<8x63xf32>
    %1064 = vector.broadcast %31 : f32 to vector<8x63xf32>
    %1065 = arith.mulf %1063, %1064 : vector<8x63xf32>
    %1066 = arith.addf %1062, %1065 : vector<8x63xf32>
    %c0_383 = arith.constant 0 : index
    %c3_384 = arith.constant 3 : index
    %c18_385 = arith.constant 18 : index
    %c0_386 = arith.constant 0 : index
    %1067 = vector.load %arg6[%c0_383, %c3_384, %c18_385, %c0_386] : memref<1x6x67x63xf32, #tpu.memory_space<vmem>>, vector<1x1x8x63xf32>
    %1068 = vector.shape_cast %1067 : vector<1x1x8x63xf32> to vector<8x63xf32>
    %1069 = vector.shape_cast %1066 : vector<8x63xf32> to vector<1x1x8x63xf32>
    tpu.vector_store %arg6[%c0_383, %c3_384, %c18_385, %c0_386], %1069 {strides = array<i32>} : memref<1x6x67x63xf32, #tpu.memory_space<vmem>>, vector<1x1x8x63xf32>,
    %c0_387 = arith.constant 0 : index
    %c4_388 = arith.constant 4 : index
    %c18_389 = arith.constant 18 : index
    %c0_390 = arith.constant 0 : index
    %1070 = vector.load %arg5[%c0_387, %c4_388, %c18_389, %c0_390] : memref<1x6x67x63xf32, #tpu.memory_space<vmem>>, vector<1x1x8x63xf32>
    %1071 = vector.shape_cast %1070 : vector<1x1x8x63xf32> to vector<8x63xf32>
    %1072 = vector.broadcast %52 : f32 to vector<8x63xf32>
    %1073 = arith.addf %1071, %1072 : vector<8x63xf32>
    %1074 = vector.extract_strided_slice %907 {offsets = [0, 0], sizes = [8, 63], strides = [1, 1]} : vector<8x64xf32> to vector<8x63xf32>
    %1075 = vector.broadcast %32 : f32 to vector<8x63xf32>
    %1076 = arith.mulf %1074, %1075 : vector<8x63xf32>
    %1077 = arith.addf %1073, %1076 : vector<8x63xf32>
    %1078 = vector.extract_strided_slice %907 {offsets = [0, 1], sizes = [8, 63], strides = [1, 1]} : vector<8x64xf32> to vector<8x63xf32>
    %1079 = vector.broadcast %33 : f32 to vector<8x63xf32>
    %1080 = arith.mulf %1078, %1079 : vector<8x63xf32>
    %1081 = arith.addf %1077, %1080 : vector<8x63xf32>
    %1082 = vector.extract_strided_slice %909 {offsets = [0, 0], sizes = [8, 63], strides = [1, 1]} : vector<8x64xf32> to vector<8x63xf32>
    %1083 = vector.broadcast %34 : f32 to vector<8x63xf32>
    %1084 = arith.mulf %1082, %1083 : vector<8x63xf32>
    %1085 = arith.addf %1081, %1084 : vector<8x63xf32>
    %1086 = vector.extract_strided_slice %909 {offsets = [0, 1], sizes = [8, 63], strides = [1, 1]} : vector<8x64xf32> to vector<8x63xf32>
    %1087 = vector.broadcast %35 : f32 to vector<8x63xf32>
    %1088 = arith.mulf %1086, %1087 : vector<8x63xf32>
    %1089 = arith.addf %1085, %1088 : vector<8x63xf32>
    %1090 = vector.extract_strided_slice %911 {offsets = [0, 0], sizes = [8, 63], strides = [1, 1]} : vector<8x64xf32> to vector<8x63xf32>
    %1091 = vector.broadcast %36 : f32 to vector<8x63xf32>
    %1092 = arith.mulf %1090, %1091 : vector<8x63xf32>
    %1093 = arith.addf %1089, %1092 : vector<8x63xf32>
    %1094 = vector.extract_strided_slice %911 {offsets = [0, 1], sizes = [8, 63], strides = [1, 1]} : vector<8x64xf32> to vector<8x63xf32>
    %1095 = vector.broadcast %37 : f32 to vector<8x63xf32>
    %1096 = arith.mulf %1094, %1095 : vector<8x63xf32>
    %1097 = arith.addf %1093, %1096 : vector<8x63xf32>
    %1098 = vector.extract_strided_slice %913 {offsets = [0, 0], sizes = [8, 63], strides = [1, 1]} : vector<8x64xf32> to vector<8x63xf32>
    %1099 = vector.broadcast %38 : f32 to vector<8x63xf32>
    %1100 = arith.mulf %1098, %1099 : vector<8x63xf32>
    %1101 = arith.addf %1097, %1100 : vector<8x63xf32>
    %1102 = vector.extract_strided_slice %913 {offsets = [0, 1], sizes = [8, 63], strides = [1, 1]} : vector<8x64xf32> to vector<8x63xf32>
    %1103 = vector.broadcast %39 : f32 to vector<8x63xf32>
    %1104 = arith.mulf %1102, %1103 : vector<8x63xf32>
    %1105 = arith.addf %1101, %1104 : vector<8x63xf32>
    %c0_391 = arith.constant 0 : index
    %c4_392 = arith.constant 4 : index
    %c18_393 = arith.constant 18 : index
    %c0_394 = arith.constant 0 : index
    %1106 = vector.load %arg6[%c0_391, %c4_392, %c18_393, %c0_394] : memref<1x6x67x63xf32, #tpu.memory_space<vmem>>, vector<1x1x8x63xf32>
    %1107 = vector.shape_cast %1106 : vector<1x1x8x63xf32> to vector<8x63xf32>
    %1108 = vector.shape_cast %1105 : vector<8x63xf32> to vector<1x1x8x63xf32>
    tpu.vector_store %arg6[%c0_391, %c4_392, %c18_393, %c0_394], %1108 {strides = array<i32>} : memref<1x6x67x63xf32, #tpu.memory_space<vmem>>, vector<1x1x8x63xf32>,
    %c0_395 = arith.constant 0 : index
    %c5_396 = arith.constant 5 : index
    %c18_397 = arith.constant 18 : index
    %c0_398 = arith.constant 0 : index
    %1109 = vector.load %arg5[%c0_395, %c5_396, %c18_397, %c0_398] : memref<1x6x67x63xf32, #tpu.memory_space<vmem>>, vector<1x1x8x63xf32>
    %1110 = vector.shape_cast %1109 : vector<1x1x8x63xf32> to vector<8x63xf32>
    %1111 = vector.broadcast %53 : f32 to vector<8x63xf32>
    %1112 = arith.addf %1110, %1111 : vector<8x63xf32>
    %1113 = vector.extract_strided_slice %907 {offsets = [0, 0], sizes = [8, 63], strides = [1, 1]} : vector<8x64xf32> to vector<8x63xf32>
    %1114 = vector.broadcast %40 : f32 to vector<8x63xf32>
    %1115 = arith.mulf %1113, %1114 : vector<8x63xf32>
    %1116 = arith.addf %1112, %1115 : vector<8x63xf32>
    %1117 = vector.extract_strided_slice %907 {offsets = [0, 1], sizes = [8, 63], strides = [1, 1]} : vector<8x64xf32> to vector<8x63xf32>
    %1118 = vector.broadcast %41 : f32 to vector<8x63xf32>
    %1119 = arith.mulf %1117, %1118 : vector<8x63xf32>
    %1120 = arith.addf %1116, %1119 : vector<8x63xf32>
    %1121 = vector.extract_strided_slice %909 {offsets = [0, 0], sizes = [8, 63], strides = [1, 1]} : vector<8x64xf32> to vector<8x63xf32>
    %1122 = vector.broadcast %42 : f32 to vector<8x63xf32>
    %1123 = arith.mulf %1121, %1122 : vector<8x63xf32>
    %1124 = arith.addf %1120, %1123 : vector<8x63xf32>
    %1125 = vector.extract_strided_slice %909 {offsets = [0, 1], sizes = [8, 63], strides = [1, 1]} : vector<8x64xf32> to vector<8x63xf32>
    %1126 = vector.broadcast %43 : f32 to vector<8x63xf32>
    %1127 = arith.mulf %1125, %1126 : vector<8x63xf32>
    %1128 = arith.addf %1124, %1127 : vector<8x63xf32>
    %1129 = vector.extract_strided_slice %911 {offsets = [0, 0], sizes = [8, 63], strides = [1, 1]} : vector<8x64xf32> to vector<8x63xf32>
    %1130 = vector.broadcast %44 : f32 to vector<8x63xf32>
    %1131 = arith.mulf %1129, %1130 : vector<8x63xf32>
    %1132 = arith.addf %1128, %1131 : vector<8x63xf32>
    %1133 = vector.extract_strided_slice %911 {offsets = [0, 1], sizes = [8, 63], strides = [1, 1]} : vector<8x64xf32> to vector<8x63xf32>
    %1134 = vector.broadcast %45 : f32 to vector<8x63xf32>
    %1135 = arith.mulf %1133, %1134 : vector<8x63xf32>
    %1136 = arith.addf %1132, %1135 : vector<8x63xf32>
    %1137 = vector.extract_strided_slice %913 {offsets = [0, 0], sizes = [8, 63], strides = [1, 1]} : vector<8x64xf32> to vector<8x63xf32>
    %1138 = vector.broadcast %46 : f32 to vector<8x63xf32>
    %1139 = arith.mulf %1137, %1138 : vector<8x63xf32>
    %1140 = arith.addf %1136, %1139 : vector<8x63xf32>
    %1141 = vector.extract_strided_slice %913 {offsets = [0, 1], sizes = [8, 63], strides = [1, 1]} : vector<8x64xf32> to vector<8x63xf32>
    %1142 = vector.broadcast %47 : f32 to vector<8x63xf32>
    %1143 = arith.mulf %1141, %1142 : vector<8x63xf32>
    %1144 = arith.addf %1140, %1143 : vector<8x63xf32>
    %c0_399 = arith.constant 0 : index
    %c5_400 = arith.constant 5 : index
    %c18_401 = arith.constant 18 : index
    %c0_402 = arith.constant 0 : index
    %1145 = vector.load %arg6[%c0_399, %c5_400, %c18_401, %c0_402] : memref<1x6x67x63xf32, #tpu.memory_space<vmem>>, vector<1x1x8x63xf32>
    %1146 = vector.shape_cast %1145 : vector<1x1x8x63xf32> to vector<8x63xf32>
    %1147 = vector.shape_cast %1144 : vector<8x63xf32> to vector<1x1x8x63xf32>
    tpu.vector_store %arg6[%c0_399, %c5_400, %c18_401, %c0_402], %1147 {strides = array<i32>} : memref<1x6x67x63xf32, #tpu.memory_space<vmem>>, vector<1x1x8x63xf32>,
    %c0_403 = arith.constant 0 : index
    %c0_404 = arith.constant 0 : index
    %c24_405 = arith.constant 24 : index
    %c0_406 = arith.constant 0 : index
    %1148 = vector.load %arg4[%c0_403, %c0_404, %c24_405, %c0_406] : memref<1x2x64x64xf32, #tpu.memory_space<vmem>>, vector<1x1x8x64xf32>
    %1149 = vector.shape_cast %1148 : vector<1x1x8x64xf32> to vector<8x64xf32>
    %c0_407 = arith.constant 0 : index
    %c0_408 = arith.constant 0 : index
    %c25_409 = arith.constant 25 : index
    %c0_410 = arith.constant 0 : index
    %1150 = vector.load %arg4[%c0_407, %c0_408, %c25_409, %c0_410] : memref<1x2x64x64xf32, #tpu.memory_space<vmem>>, vector<1x1x8x64xf32>
    %1151 = vector.shape_cast %1150 : vector<1x1x8x64xf32> to vector<8x64xf32>
    %c0_411 = arith.constant 0 : index
    %c1_412 = arith.constant 1 : index
    %c24_413 = arith.constant 24 : index
    %c0_414 = arith.constant 0 : index
    %1152 = vector.load %arg4[%c0_411, %c1_412, %c24_413, %c0_414] : memref<1x2x64x64xf32, #tpu.memory_space<vmem>>, vector<1x1x8x64xf32>
    %1153 = vector.shape_cast %1152 : vector<1x1x8x64xf32> to vector<8x64xf32>
    %c0_415 = arith.constant 0 : index
    %c1_416 = arith.constant 1 : index
    %c25_417 = arith.constant 25 : index
    %c0_418 = arith.constant 0 : index
    %1154 = vector.load %arg4[%c0_415, %c1_416, %c25_417, %c0_418] : memref<1x2x64x64xf32, #tpu.memory_space<vmem>>, vector<1x1x8x64xf32>
    %1155 = vector.shape_cast %1154 : vector<1x1x8x64xf32> to vector<8x64xf32>
    %c0_419 = arith.constant 0 : index
    %c0_420 = arith.constant 0 : index
    %c26_421 = arith.constant 26 : index
    %c0_422 = arith.constant 0 : index
    %1156 = vector.load %arg5[%c0_419, %c0_420, %c26_421, %c0_422] : memref<1x6x67x63xf32, #tpu.memory_space<vmem>>, vector<1x1x8x63xf32>
    %1157 = vector.shape_cast %1156 : vector<1x1x8x63xf32> to vector<8x63xf32>
    %1158 = vector.broadcast %48 : f32 to vector<8x63xf32>
    %1159 = arith.addf %1157, %1158 : vector<8x63xf32>
    %1160 = vector.extract_strided_slice %1149 {offsets = [0, 0], sizes = [8, 63], strides = [1, 1]} : vector<8x64xf32> to vector<8x63xf32>
    %1161 = vector.broadcast %0 : f32 to vector<8x63xf32>
    %1162 = arith.mulf %1160, %1161 : vector<8x63xf32>
    %1163 = arith.addf %1159, %1162 : vector<8x63xf32>
    %1164 = vector.extract_strided_slice %1149 {offsets = [0, 1], sizes = [8, 63], strides = [1, 1]} : vector<8x64xf32> to vector<8x63xf32>
    %1165 = vector.broadcast %1 : f32 to vector<8x63xf32>
    %1166 = arith.mulf %1164, %1165 : vector<8x63xf32>
    %1167 = arith.addf %1163, %1166 : vector<8x63xf32>
    %1168 = vector.extract_strided_slice %1151 {offsets = [0, 0], sizes = [8, 63], strides = [1, 1]} : vector<8x64xf32> to vector<8x63xf32>
    %1169 = vector.broadcast %2 : f32 to vector<8x63xf32>
    %1170 = arith.mulf %1168, %1169 : vector<8x63xf32>
    %1171 = arith.addf %1167, %1170 : vector<8x63xf32>
    %1172 = vector.extract_strided_slice %1151 {offsets = [0, 1], sizes = [8, 63], strides = [1, 1]} : vector<8x64xf32> to vector<8x63xf32>
    %1173 = vector.broadcast %3 : f32 to vector<8x63xf32>
    %1174 = arith.mulf %1172, %1173 : vector<8x63xf32>
    %1175 = arith.addf %1171, %1174 : vector<8x63xf32>
    %1176 = vector.extract_strided_slice %1153 {offsets = [0, 0], sizes = [8, 63], strides = [1, 1]} : vector<8x64xf32> to vector<8x63xf32>
    %1177 = vector.broadcast %4 : f32 to vector<8x63xf32>
    %1178 = arith.mulf %1176, %1177 : vector<8x63xf32>
    %1179 = arith.addf %1175, %1178 : vector<8x63xf32>
    %1180 = vector.extract_strided_slice %1153 {offsets = [0, 1], sizes = [8, 63], strides = [1, 1]} : vector<8x64xf32> to vector<8x63xf32>
    %1181 = vector.broadcast %5 : f32 to vector<8x63xf32>
    %1182 = arith.mulf %1180, %1181 : vector<8x63xf32>
    %1183 = arith.addf %1179, %1182 : vector<8x63xf32>
    %1184 = vector.extract_strided_slice %1155 {offsets = [0, 0], sizes = [8, 63], strides = [1, 1]} : vector<8x64xf32> to vector<8x63xf32>
    %1185 = vector.broadcast %6 : f32 to vector<8x63xf32>
    %1186 = arith.mulf %1184, %1185 : vector<8x63xf32>
    %1187 = arith.addf %1183, %1186 : vector<8x63xf32>
    %1188 = vector.extract_strided_slice %1155 {offsets = [0, 1], sizes = [8, 63], strides = [1, 1]} : vector<8x64xf32> to vector<8x63xf32>
    %1189 = vector.broadcast %7 : f32 to vector<8x63xf32>
    %1190 = arith.mulf %1188, %1189 : vector<8x63xf32>
    %1191 = arith.addf %1187, %1190 : vector<8x63xf32>
    %c0_423 = arith.constant 0 : index
    %c0_424 = arith.constant 0 : index
    %c26_425 = arith.constant 26 : index
    %c0_426 = arith.constant 0 : index
    %1192 = vector.load %arg6[%c0_423, %c0_424, %c26_425, %c0_426] : memref<1x6x67x63xf32, #tpu.memory_space<vmem>>, vector<1x1x8x63xf32>
    %1193 = vector.shape_cast %1192 : vector<1x1x8x63xf32> to vector<8x63xf32>
    %1194 = vector.shape_cast %1191 : vector<8x63xf32> to vector<1x1x8x63xf32>
    tpu.vector_store %arg6[%c0_423, %c0_424, %c26_425, %c0_426], %1194 {strides = array<i32>} : memref<1x6x67x63xf32, #tpu.memory_space<vmem>>, vector<1x1x8x63xf32>,
    %c0_427 = arith.constant 0 : index
    %c1_428 = arith.constant 1 : index
    %c26_429 = arith.constant 26 : index
    %c0_430 = arith.constant 0 : index
    %1195 = vector.load %arg5[%c0_427, %c1_428, %c26_429, %c0_430] : memref<1x6x67x63xf32, #tpu.memory_space<vmem>>, vector<1x1x8x63xf32>
    %1196 = vector.shape_cast %1195 : vector<1x1x8x63xf32> to vector<8x63xf32>
    %1197 = vector.broadcast %49 : f32 to vector<8x63xf32>
    %1198 = arith.addf %1196, %1197 : vector<8x63xf32>
    %1199 = vector.extract_strided_slice %1149 {offsets = [0, 0], sizes = [8, 63], strides = [1, 1]} : vector<8x64xf32> to vector<8x63xf32>
    %1200 = vector.broadcast %8 : f32 to vector<8x63xf32>
    %1201 = arith.mulf %1199, %1200 : vector<8x63xf32>
    %1202 = arith.addf %1198, %1201 : vector<8x63xf32>
    %1203 = vector.extract_strided_slice %1149 {offsets = [0, 1], sizes = [8, 63], strides = [1, 1]} : vector<8x64xf32> to vector<8x63xf32>
    %1204 = vector.broadcast %9 : f32 to vector<8x63xf32>
    %1205 = arith.mulf %1203, %1204 : vector<8x63xf32>
    %1206 = arith.addf %1202, %1205 : vector<8x63xf32>
    %1207 = vector.extract_strided_slice %1151 {offsets = [0, 0], sizes = [8, 63], strides = [1, 1]} : vector<8x64xf32> to vector<8x63xf32>
    %1208 = vector.broadcast %10 : f32 to vector<8x63xf32>
    %1209 = arith.mulf %1207, %1208 : vector<8x63xf32>
    %1210 = arith.addf %1206, %1209 : vector<8x63xf32>
    %1211 = vector.extract_strided_slice %1151 {offsets = [0, 1], sizes = [8, 63], strides = [1, 1]} : vector<8x64xf32> to vector<8x63xf32>
    %1212 = vector.broadcast %11 : f32 to vector<8x63xf32>
    %1213 = arith.mulf %1211, %1212 : vector<8x63xf32>
    %1214 = arith.addf %1210, %1213 : vector<8x63xf32>
    %1215 = vector.extract_strided_slice %1153 {offsets = [0, 0], sizes = [8, 63], strides = [1, 1]} : vector<8x64xf32> to vector<8x63xf32>
    %1216 = vector.broadcast %12 : f32 to vector<8x63xf32>
    %1217 = arith.mulf %1215, %1216 : vector<8x63xf32>
    %1218 = arith.addf %1214, %1217 : vector<8x63xf32>
    %1219 = vector.extract_strided_slice %1153 {offsets = [0, 1], sizes = [8, 63], strides = [1, 1]} : vector<8x64xf32> to vector<8x63xf32>
    %1220 = vector.broadcast %13 : f32 to vector<8x63xf32>
    %1221 = arith.mulf %1219, %1220 : vector<8x63xf32>
    %1222 = arith.addf %1218, %1221 : vector<8x63xf32>
    %1223 = vector.extract_strided_slice %1155 {offsets = [0, 0], sizes = [8, 63], strides = [1, 1]} : vector<8x64xf32> to vector<8x63xf32>
    %1224 = vector.broadcast %14 : f32 to vector<8x63xf32>
    %1225 = arith.mulf %1223, %1224 : vector<8x63xf32>
    %1226 = arith.addf %1222, %1225 : vector<8x63xf32>
    %1227 = vector.extract_strided_slice %1155 {offsets = [0, 1], sizes = [8, 63], strides = [1, 1]} : vector<8x64xf32> to vector<8x63xf32>
    %1228 = vector.broadcast %15 : f32 to vector<8x63xf32>
    %1229 = arith.mulf %1227, %1228 : vector<8x63xf32>
    %1230 = arith.addf %1226, %1229 : vector<8x63xf32>
    %c0_431 = arith.constant 0 : index
    %c1_432 = arith.constant 1 : index
    %c26_433 = arith.constant 26 : index
    %c0_434 = arith.constant 0 : index
    %1231 = vector.load %arg6[%c0_431, %c1_432, %c26_433, %c0_434] : memref<1x6x67x63xf32, #tpu.memory_space<vmem>>, vector<1x1x8x63xf32>
    %1232 = vector.shape_cast %1231 : vector<1x1x8x63xf32> to vector<8x63xf32>
    %1233 = vector.shape_cast %1230 : vector<8x63xf32> to vector<1x1x8x63xf32>
    tpu.vector_store %arg6[%c0_431, %c1_432, %c26_433, %c0_434], %1233 {strides = array<i32>} : memref<1x6x67x63xf32, #tpu.memory_space<vmem>>, vector<1x1x8x63xf32>,
    %c0_435 = arith.constant 0 : index
    %c2_436 = arith.constant 2 : index
    %c26_437 = arith.constant 26 : index
    %c0_438 = arith.constant 0 : index
    %1234 = vector.load %arg5[%c0_435, %c2_436, %c26_437, %c0_438] : memref<1x6x67x63xf32, #tpu.memory_space<vmem>>, vector<1x1x8x63xf32>
    %1235 = vector.shape_cast %1234 : vector<1x1x8x63xf32> to vector<8x63xf32>
    %1236 = vector.broadcast %50 : f32 to vector<8x63xf32>
    %1237 = arith.addf %1235, %1236 : vector<8x63xf32>
    %1238 = vector.extract_strided_slice %1149 {offsets = [0, 0], sizes = [8, 63], strides = [1, 1]} : vector<8x64xf32> to vector<8x63xf32>
    %1239 = vector.broadcast %16 : f32 to vector<8x63xf32>
    %1240 = arith.mulf %1238, %1239 : vector<8x63xf32>
    %1241 = arith.addf %1237, %1240 : vector<8x63xf32>
    %1242 = vector.extract_strided_slice %1149 {offsets = [0, 1], sizes = [8, 63], strides = [1, 1]} : vector<8x64xf32> to vector<8x63xf32>
    %1243 = vector.broadcast %17 : f32 to vector<8x63xf32>
    %1244 = arith.mulf %1242, %1243 : vector<8x63xf32>
    %1245 = arith.addf %1241, %1244 : vector<8x63xf32>
    %1246 = vector.extract_strided_slice %1151 {offsets = [0, 0], sizes = [8, 63], strides = [1, 1]} : vector<8x64xf32> to vector<8x63xf32>
    %1247 = vector.broadcast %18 : f32 to vector<8x63xf32>
    %1248 = arith.mulf %1246, %1247 : vector<8x63xf32>
    %1249 = arith.addf %1245, %1248 : vector<8x63xf32>
    %1250 = vector.extract_strided_slice %1151 {offsets = [0, 1], sizes = [8, 63], strides = [1, 1]} : vector<8x64xf32> to vector<8x63xf32>
    %1251 = vector.broadcast %19 : f32 to vector<8x63xf32>
    %1252 = arith.mulf %1250, %1251 : vector<8x63xf32>
    %1253 = arith.addf %1249, %1252 : vector<8x63xf32>
    %1254 = vector.extract_strided_slice %1153 {offsets = [0, 0], sizes = [8, 63], strides = [1, 1]} : vector<8x64xf32> to vector<8x63xf32>
    %1255 = vector.broadcast %20 : f32 to vector<8x63xf32>
    %1256 = arith.mulf %1254, %1255 : vector<8x63xf32>
    %1257 = arith.addf %1253, %1256 : vector<8x63xf32>
    %1258 = vector.extract_strided_slice %1153 {offsets = [0, 1], sizes = [8, 63], strides = [1, 1]} : vector<8x64xf32> to vector<8x63xf32>
    %1259 = vector.broadcast %21 : f32 to vector<8x63xf32>
    %1260 = arith.mulf %1258, %1259 : vector<8x63xf32>
    %1261 = arith.addf %1257, %1260 : vector<8x63xf32>
    %1262 = vector.extract_strided_slice %1155 {offsets = [0, 0], sizes = [8, 63], strides = [1, 1]} : vector<8x64xf32> to vector<8x63xf32>
    %1263 = vector.broadcast %22 : f32 to vector<8x63xf32>
    %1264 = arith.mulf %1262, %1263 : vector<8x63xf32>
    %1265 = arith.addf %1261, %1264 : vector<8x63xf32>
    %1266 = vector.extract_strided_slice %1155 {offsets = [0, 1], sizes = [8, 63], strides = [1, 1]} : vector<8x64xf32> to vector<8x63xf32>
    %1267 = vector.broadcast %23 : f32 to vector<8x63xf32>
    %1268 = arith.mulf %1266, %1267 : vector<8x63xf32>
    %1269 = arith.addf %1265, %1268 : vector<8x63xf32>
    %c0_439 = arith.constant 0 : index
    %c2_440 = arith.constant 2 : index
    %c26_441 = arith.constant 26 : index
    %c0_442 = arith.constant 0 : index
    %1270 = vector.load %arg6[%c0_439, %c2_440, %c26_441, %c0_442] : memref<1x6x67x63xf32, #tpu.memory_space<vmem>>, vector<1x1x8x63xf32>
    %1271 = vector.shape_cast %1270 : vector<1x1x8x63xf32> to vector<8x63xf32>
    %1272 = vector.shape_cast %1269 : vector<8x63xf32> to vector<1x1x8x63xf32>
    tpu.vector_store %arg6[%c0_439, %c2_440, %c26_441, %c0_442], %1272 {strides = array<i32>} : memref<1x6x67x63xf32, #tpu.memory_space<vmem>>, vector<1x1x8x63xf32>,
    %c0_443 = arith.constant 0 : index
    %c3_444 = arith.constant 3 : index
    %c26_445 = arith.constant 26 : index
    %c0_446 = arith.constant 0 : index
    %1273 = vector.load %arg5[%c0_443, %c3_444, %c26_445, %c0_446] : memref<1x6x67x63xf32, #tpu.memory_space<vmem>>, vector<1x1x8x63xf32>
    %1274 = vector.shape_cast %1273 : vector<1x1x8x63xf32> to vector<8x63xf32>
    %1275 = vector.broadcast %51 : f32 to vector<8x63xf32>
    %1276 = arith.addf %1274, %1275 : vector<8x63xf32>
    %1277 = vector.extract_strided_slice %1149 {offsets = [0, 0], sizes = [8, 63], strides = [1, 1]} : vector<8x64xf32> to vector<8x63xf32>
    %1278 = vector.broadcast %24 : f32 to vector<8x63xf32>
    %1279 = arith.mulf %1277, %1278 : vector<8x63xf32>
    %1280 = arith.addf %1276, %1279 : vector<8x63xf32>
    %1281 = vector.extract_strided_slice %1149 {offsets = [0, 1], sizes = [8, 63], strides = [1, 1]} : vector<8x64xf32> to vector<8x63xf32>
    %1282 = vector.broadcast %25 : f32 to vector<8x63xf32>
    %1283 = arith.mulf %1281, %1282 : vector<8x63xf32>
    %1284 = arith.addf %1280, %1283 : vector<8x63xf32>
    %1285 = vector.extract_strided_slice %1151 {offsets = [0, 0], sizes = [8, 63], strides = [1, 1]} : vector<8x64xf32> to vector<8x63xf32>
    %1286 = vector.broadcast %26 : f32 to vector<8x63xf32>
    %1287 = arith.mulf %1285, %1286 : vector<8x63xf32>
    %1288 = arith.addf %1284, %1287 : vector<8x63xf32>
    %1289 = vector.extract_strided_slice %1151 {offsets = [0, 1], sizes = [8, 63], strides = [1, 1]} : vector<8x64xf32> to vector<8x63xf32>
    %1290 = vector.broadcast %27 : f32 to vector<8x63xf32>
    %1291 = arith.mulf %1289, %1290 : vector<8x63xf32>
    %1292 = arith.addf %1288, %1291 : vector<8x63xf32>
    %1293 = vector.extract_strided_slice %1153 {offsets = [0, 0], sizes = [8, 63], strides = [1, 1]} : vector<8x64xf32> to vector<8x63xf32>
    %1294 = vector.broadcast %28 : f32 to vector<8x63xf32>
    %1295 = arith.mulf %1293, %1294 : vector<8x63xf32>
    %1296 = arith.addf %1292, %1295 : vector<8x63xf32>
    %1297 = vector.extract_strided_slice %1153 {offsets = [0, 1], sizes = [8, 63], strides = [1, 1]} : vector<8x64xf32> to vector<8x63xf32>
    %1298 = vector.broadcast %29 : f32 to vector<8x63xf32>
    %1299 = arith.mulf %1297, %1298 : vector<8x63xf32>
    %1300 = arith.addf %1296, %1299 : vector<8x63xf32>
    %1301 = vector.extract_strided_slice %1155 {offsets = [0, 0], sizes = [8, 63], strides = [1, 1]} : vector<8x64xf32> to vector<8x63xf32>
    %1302 = vector.broadcast %30 : f32 to vector<8x63xf32>
    %1303 = arith.mulf %1301, %1302 : vector<8x63xf32>
    %1304 = arith.addf %1300, %1303 : vector<8x63xf32>
    %1305 = vector.extract_strided_slice %1155 {offsets = [0, 1], sizes = [8, 63], strides = [1, 1]} : vector<8x64xf32> to vector<8x63xf32>
    %1306 = vector.broadcast %31 : f32 to vector<8x63xf32>
    %1307 = arith.mulf %1305, %1306 : vector<8x63xf32>
    %1308 = arith.addf %1304, %1307 : vector<8x63xf32>
    %c0_447 = arith.constant 0 : index
    %c3_448 = arith.constant 3 : index
    %c26_449 = arith.constant 26 : index
    %c0_450 = arith.constant 0 : index
    %1309 = vector.load %arg6[%c0_447, %c3_448, %c26_449, %c0_450] : memref<1x6x67x63xf32, #tpu.memory_space<vmem>>, vector<1x1x8x63xf32>
    %1310 = vector.shape_cast %1309 : vector<1x1x8x63xf32> to vector<8x63xf32>
    %1311 = vector.shape_cast %1308 : vector<8x63xf32> to vector<1x1x8x63xf32>
    tpu.vector_store %arg6[%c0_447, %c3_448, %c26_449, %c0_450], %1311 {strides = array<i32>} : memref<1x6x67x63xf32, #tpu.memory_space<vmem>>, vector<1x1x8x63xf32>,
    %c0_451 = arith.constant 0 : index
    %c4_452 = arith.constant 4 : index
    %c26_453 = arith.constant 26 : index
    %c0_454 = arith.constant 0 : index
    %1312 = vector.load %arg5[%c0_451, %c4_452, %c26_453, %c0_454] : memref<1x6x67x63xf32, #tpu.memory_space<vmem>>, vector<1x1x8x63xf32>
    %1313 = vector.shape_cast %1312 : vector<1x1x8x63xf32> to vector<8x63xf32>
    %1314 = vector.broadcast %52 : f32 to vector<8x63xf32>
    %1315 = arith.addf %1313, %1314 : vector<8x63xf32>
    %1316 = vector.extract_strided_slice %1149 {offsets = [0, 0], sizes = [8, 63], strides = [1, 1]} : vector<8x64xf32> to vector<8x63xf32>
    %1317 = vector.broadcast %32 : f32 to vector<8x63xf32>
    %1318 = arith.mulf %1316, %1317 : vector<8x63xf32>
    %1319 = arith.addf %1315, %1318 : vector<8x63xf32>
    %1320 = vector.extract_strided_slice %1149 {offsets = [0, 1], sizes = [8, 63], strides = [1, 1]} : vector<8x64xf32> to vector<8x63xf32>
    %1321 = vector.broadcast %33 : f32 to vector<8x63xf32>
    %1322 = arith.mulf %1320, %1321 : vector<8x63xf32>
    %1323 = arith.addf %1319, %1322 : vector<8x63xf32>
    %1324 = vector.extract_strided_slice %1151 {offsets = [0, 0], sizes = [8, 63], strides = [1, 1]} : vector<8x64xf32> to vector<8x63xf32>
    %1325 = vector.broadcast %34 : f32 to vector<8x63xf32>
    %1326 = arith.mulf %1324, %1325 : vector<8x63xf32>
    %1327 = arith.addf %1323, %1326 : vector<8x63xf32>
    %1328 = vector.extract_strided_slice %1151 {offsets = [0, 1], sizes = [8, 63], strides = [1, 1]} : vector<8x64xf32> to vector<8x63xf32>
    %1329 = vector.broadcast %35 : f32 to vector<8x63xf32>
    %1330 = arith.mulf %1328, %1329 : vector<8x63xf32>
    %1331 = arith.addf %1327, %1330 : vector<8x63xf32>
    %1332 = vector.extract_strided_slice %1153 {offsets = [0, 0], sizes = [8, 63], strides = [1, 1]} : vector<8x64xf32> to vector<8x63xf32>
    %1333 = vector.broadcast %36 : f32 to vector<8x63xf32>
    %1334 = arith.mulf %1332, %1333 : vector<8x63xf32>
    %1335 = arith.addf %1331, %1334 : vector<8x63xf32>
    %1336 = vector.extract_strided_slice %1153 {offsets = [0, 1], sizes = [8, 63], strides = [1, 1]} : vector<8x64xf32> to vector<8x63xf32>
    %1337 = vector.broadcast %37 : f32 to vector<8x63xf32>
    %1338 = arith.mulf %1336, %1337 : vector<8x63xf32>
    %1339 = arith.addf %1335, %1338 : vector<8x63xf32>
    %1340 = vector.extract_strided_slice %1155 {offsets = [0, 0], sizes = [8, 63], strides = [1, 1]} : vector<8x64xf32> to vector<8x63xf32>
    %1341 = vector.broadcast %38 : f32 to vector<8x63xf32>
    %1342 = arith.mulf %1340, %1341 : vector<8x63xf32>
    %1343 = arith.addf %1339, %1342 : vector<8x63xf32>
    %1344 = vector.extract_strided_slice %1155 {offsets = [0, 1], sizes = [8, 63], strides = [1, 1]} : vector<8x64xf32> to vector<8x63xf32>
    %1345 = vector.broadcast %39 : f32 to vector<8x63xf32>
    %1346 = arith.mulf %1344, %1345 : vector<8x63xf32>
    %1347 = arith.addf %1343, %1346 : vector<8x63xf32>
    %c0_455 = arith.constant 0 : index
    %c4_456 = arith.constant 4 : index
    %c26_457 = arith.constant 26 : index
    %c0_458 = arith.constant 0 : index
    %1348 = vector.load %arg6[%c0_455, %c4_456, %c26_457, %c0_458] : memref<1x6x67x63xf32, #tpu.memory_space<vmem>>, vector<1x1x8x63xf32>
    %1349 = vector.shape_cast %1348 : vector<1x1x8x63xf32> to vector<8x63xf32>
    %1350 = vector.shape_cast %1347 : vector<8x63xf32> to vector<1x1x8x63xf32>
    tpu.vector_store %arg6[%c0_455, %c4_456, %c26_457, %c0_458], %1350 {strides = array<i32>} : memref<1x6x67x63xf32, #tpu.memory_space<vmem>>, vector<1x1x8x63xf32>,
    %c0_459 = arith.constant 0 : index
    %c5_460 = arith.constant 5 : index
    %c26_461 = arith.constant 26 : index
    %c0_462 = arith.constant 0 : index
    %1351 = vector.load %arg5[%c0_459, %c5_460, %c26_461, %c0_462] : memref<1x6x67x63xf32, #tpu.memory_space<vmem>>, vector<1x1x8x63xf32>
    %1352 = vector.shape_cast %1351 : vector<1x1x8x63xf32> to vector<8x63xf32>
    %1353 = vector.broadcast %53 : f32 to vector<8x63xf32>
    %1354 = arith.addf %1352, %1353 : vector<8x63xf32>
    %1355 = vector.extract_strided_slice %1149 {offsets = [0, 0], sizes = [8, 63], strides = [1, 1]} : vector<8x64xf32> to vector<8x63xf32>
    %1356 = vector.broadcast %40 : f32 to vector<8x63xf32>
    %1357 = arith.mulf %1355, %1356 : vector<8x63xf32>
    %1358 = arith.addf %1354, %1357 : vector<8x63xf32>
    %1359 = vector.extract_strided_slice %1149 {offsets = [0, 1], sizes = [8, 63], strides = [1, 1]} : vector<8x64xf32> to vector<8x63xf32>
    %1360 = vector.broadcast %41 : f32 to vector<8x63xf32>
    %1361 = arith.mulf %1359, %1360 : vector<8x63xf32>
    %1362 = arith.addf %1358, %1361 : vector<8x63xf32>
    %1363 = vector.extract_strided_slice %1151 {offsets = [0, 0], sizes = [8, 63], strides = [1, 1]} : vector<8x64xf32> to vector<8x63xf32>
    %1364 = vector.broadcast %42 : f32 to vector<8x63xf32>
    %1365 = arith.mulf %1363, %1364 : vector<8x63xf32>
    %1366 = arith.addf %1362, %1365 : vector<8x63xf32>
    %1367 = vector.extract_strided_slice %1151 {offsets = [0, 1], sizes = [8, 63], strides = [1, 1]} : vector<8x64xf32> to vector<8x63xf32>
    %1368 = vector.broadcast %43 : f32 to vector<8x63xf32>
    %1369 = arith.mulf %1367, %1368 : vector<8x63xf32>
    %1370 = arith.addf %1366, %1369 : vector<8x63xf32>
    %1371 = vector.extract_strided_slice %1153 {offsets = [0, 0], sizes = [8, 63], strides = [1, 1]} : vector<8x64xf32> to vector<8x63xf32>
    %1372 = vector.broadcast %44 : f32 to vector<8x63xf32>
    %1373 = arith.mulf %1371, %1372 : vector<8x63xf32>
    %1374 = arith.addf %1370, %1373 : vector<8x63xf32>
    %1375 = vector.extract_strided_slice %1153 {offsets = [0, 1], sizes = [8, 63], strides = [1, 1]} : vector<8x64xf32> to vector<8x63xf32>
    %1376 = vector.broadcast %45 : f32 to vector<8x63xf32>
    %1377 = arith.mulf %1375, %1376 : vector<8x63xf32>
    %1378 = arith.addf %1374, %1377 : vector<8x63xf32>
    %1379 = vector.extract_strided_slice %1155 {offsets = [0, 0], sizes = [8, 63], strides = [1, 1]} : vector<8x64xf32> to vector<8x63xf32>
    %1380 = vector.broadcast %46 : f32 to vector<8x63xf32>
    %1381 = arith.mulf %1379, %1380 : vector<8x63xf32>
    %1382 = arith.addf %1378, %1381 : vector<8x63xf32>
    %1383 = vector.extract_strided_slice %1155 {offsets = [0, 1], sizes = [8, 63], strides = [1, 1]} : vector<8x64xf32> to vector<8x63xf32>
    %1384 = vector.broadcast %47 : f32 to vector<8x63xf32>
    %1385 = arith.mulf %1383, %1384 : vector<8x63xf32>
    %1386 = arith.addf %1382, %1385 : vector<8x63xf32>
    %c0_463 = arith.constant 0 : index
    %c5_464 = arith.constant 5 : index
    %c26_465 = arith.constant 26 : index
    %c0_466 = arith.constant 0 : index
    %1387 = vector.load %arg6[%c0_463, %c5_464, %c26_465, %c0_466] : memref<1x6x67x63xf32, #tpu.memory_space<vmem>>, vector<1x1x8x63xf32>
    %1388 = vector.shape_cast %1387 : vector<1x1x8x63xf32> to vector<8x63xf32>
    %1389 = vector.shape_cast %1386 : vector<8x63xf32> to vector<1x1x8x63xf32>
    tpu.vector_store %arg6[%c0_463, %c5_464, %c26_465, %c0_466], %1389 {strides = array<i32>} : memref<1x6x67x63xf32, #tpu.memory_space<vmem>>, vector<1x1x8x63xf32>,
    %c0_467 = arith.constant 0 : index
    %c0_468 = arith.constant 0 : index
    %c32_469 = arith.constant 32 : index
    %c0_470 = arith.constant 0 : index
    %1390 = vector.load %arg4[%c0_467, %c0_468, %c32_469, %c0_470] : memref<1x2x64x64xf32, #tpu.memory_space<vmem>>, vector<1x1x8x64xf32>
    %1391 = vector.shape_cast %1390 : vector<1x1x8x64xf32> to vector<8x64xf32>
    %c0_471 = arith.constant 0 : index
    %c0_472 = arith.constant 0 : index
    %c33_473 = arith.constant 33 : index
    %c0_474 = arith.constant 0 : index
    %1392 = vector.load %arg4[%c0_471, %c0_472, %c33_473, %c0_474] : memref<1x2x64x64xf32, #tpu.memory_space<vmem>>, vector<1x1x8x64xf32>
    %1393 = vector.shape_cast %1392 : vector<1x1x8x64xf32> to vector<8x64xf32>
    %c0_475 = arith.constant 0 : index
    %c1_476 = arith.constant 1 : index
    %c32_477 = arith.constant 32 : index
    %c0_478 = arith.constant 0 : index
    %1394 = vector.load %arg4[%c0_475, %c1_476, %c32_477, %c0_478] : memref<1x2x64x64xf32, #tpu.memory_space<vmem>>, vector<1x1x8x64xf32>
    %1395 = vector.shape_cast %1394 : vector<1x1x8x64xf32> to vector<8x64xf32>
    %c0_479 = arith.constant 0 : index
    %c1_480 = arith.constant 1 : index
    %c33_481 = arith.constant 33 : index
    %c0_482 = arith.constant 0 : index
    %1396 = vector.load %arg4[%c0_479, %c1_480, %c33_481, %c0_482] : memref<1x2x64x64xf32, #tpu.memory_space<vmem>>, vector<1x1x8x64xf32>
    %1397 = vector.shape_cast %1396 : vector<1x1x8x64xf32> to vector<8x64xf32>
    %c0_483 = arith.constant 0 : index
    %c0_484 = arith.constant 0 : index
    %c34_485 = arith.constant 34 : index
    %c0_486 = arith.constant 0 : index
    %1398 = vector.load %arg5[%c0_483, %c0_484, %c34_485, %c0_486] : memref<1x6x67x63xf32, #tpu.memory_space<vmem>>, vector<1x1x8x63xf32>
    %1399 = vector.shape_cast %1398 : vector<1x1x8x63xf32> to vector<8x63xf32>
    %1400 = vector.broadcast %48 : f32 to vector<8x63xf32>
    %1401 = arith.addf %1399, %1400 : vector<8x63xf32>
    %1402 = vector.extract_strided_slice %1391 {offsets = [0, 0], sizes = [8, 63], strides = [1, 1]} : vector<8x64xf32> to vector<8x63xf32>
    %1403 = vector.broadcast %0 : f32 to vector<8x63xf32>
    %1404 = arith.mulf %1402, %1403 : vector<8x63xf32>
    %1405 = arith.addf %1401, %1404 : vector<8x63xf32>
    %1406 = vector.extract_strided_slice %1391 {offsets = [0, 1], sizes = [8, 63], strides = [1, 1]} : vector<8x64xf32> to vector<8x63xf32>
    %1407 = vector.broadcast %1 : f32 to vector<8x63xf32>
    %1408 = arith.mulf %1406, %1407 : vector<8x63xf32>
    %1409 = arith.addf %1405, %1408 : vector<8x63xf32>
    %1410 = vector.extract_strided_slice %1393 {offsets = [0, 0], sizes = [8, 63], strides = [1, 1]} : vector<8x64xf32> to vector<8x63xf32>
    %1411 = vector.broadcast %2 : f32 to vector<8x63xf32>
    %1412 = arith.mulf %1410, %1411 : vector<8x63xf32>
    %1413 = arith.addf %1409, %1412 : vector<8x63xf32>
    %1414 = vector.extract_strided_slice %1393 {offsets = [0, 1], sizes = [8, 63], strides = [1, 1]} : vector<8x64xf32> to vector<8x63xf32>
    %1415 = vector.broadcast %3 : f32 to vector<8x63xf32>
    %1416 = arith.mulf %1414, %1415 : vector<8x63xf32>
    %1417 = arith.addf %1413, %1416 : vector<8x63xf32>
    %1418 = vector.extract_strided_slice %1395 {offsets = [0, 0], sizes = [8, 63], strides = [1, 1]} : vector<8x64xf32> to vector<8x63xf32>
    %1419 = vector.broadcast %4 : f32 to vector<8x63xf32>
    %1420 = arith.mulf %1418, %1419 : vector<8x63xf32>
    %1421 = arith.addf %1417, %1420 : vector<8x63xf32>
    %1422 = vector.extract_strided_slice %1395 {offsets = [0, 1], sizes = [8, 63], strides = [1, 1]} : vector<8x64xf32> to vector<8x63xf32>
    %1423 = vector.broadcast %5 : f32 to vector<8x63xf32>
    %1424 = arith.mulf %1422, %1423 : vector<8x63xf32>
    %1425 = arith.addf %1421, %1424 : vector<8x63xf32>
    %1426 = vector.extract_strided_slice %1397 {offsets = [0, 0], sizes = [8, 63], strides = [1, 1]} : vector<8x64xf32> to vector<8x63xf32>
    %1427 = vector.broadcast %6 : f32 to vector<8x63xf32>
    %1428 = arith.mulf %1426, %1427 : vector<8x63xf32>
    %1429 = arith.addf %1425, %1428 : vector<8x63xf32>
    %1430 = vector.extract_strided_slice %1397 {offsets = [0, 1], sizes = [8, 63], strides = [1, 1]} : vector<8x64xf32> to vector<8x63xf32>
    %1431 = vector.broadcast %7 : f32 to vector<8x63xf32>
    %1432 = arith.mulf %1430, %1431 : vector<8x63xf32>
    %1433 = arith.addf %1429, %1432 : vector<8x63xf32>
    %c0_487 = arith.constant 0 : index
    %c0_488 = arith.constant 0 : index
    %c34_489 = arith.constant 34 : index
    %c0_490 = arith.constant 0 : index
    %1434 = vector.load %arg6[%c0_487, %c0_488, %c34_489, %c0_490] : memref<1x6x67x63xf32, #tpu.memory_space<vmem>>, vector<1x1x8x63xf32>
    %1435 = vector.shape_cast %1434 : vector<1x1x8x63xf32> to vector<8x63xf32>
    %1436 = vector.shape_cast %1433 : vector<8x63xf32> to vector<1x1x8x63xf32>
    tpu.vector_store %arg6[%c0_487, %c0_488, %c34_489, %c0_490], %1436 {strides = array<i32>} : memref<1x6x67x63xf32, #tpu.memory_space<vmem>>, vector<1x1x8x63xf32>,
    %c0_491 = arith.constant 0 : index
    %c1_492 = arith.constant 1 : index
    %c34_493 = arith.constant 34 : index
    %c0_494 = arith.constant 0 : index
    %1437 = vector.load %arg5[%c0_491, %c1_492, %c34_493, %c0_494] : memref<1x6x67x63xf32, #tpu.memory_space<vmem>>, vector<1x1x8x63xf32>
    %1438 = vector.shape_cast %1437 : vector<1x1x8x63xf32> to vector<8x63xf32>
    %1439 = vector.broadcast %49 : f32 to vector<8x63xf32>
    %1440 = arith.addf %1438, %1439 : vector<8x63xf32>
    %1441 = vector.extract_strided_slice %1391 {offsets = [0, 0], sizes = [8, 63], strides = [1, 1]} : vector<8x64xf32> to vector<8x63xf32>
    %1442 = vector.broadcast %8 : f32 to vector<8x63xf32>
    %1443 = arith.mulf %1441, %1442 : vector<8x63xf32>
    %1444 = arith.addf %1440, %1443 : vector<8x63xf32>
    %1445 = vector.extract_strided_slice %1391 {offsets = [0, 1], sizes = [8, 63], strides = [1, 1]} : vector<8x64xf32> to vector<8x63xf32>
    %1446 = vector.broadcast %9 : f32 to vector<8x63xf32>
    %1447 = arith.mulf %1445, %1446 : vector<8x63xf32>
    %1448 = arith.addf %1444, %1447 : vector<8x63xf32>
    %1449 = vector.extract_strided_slice %1393 {offsets = [0, 0], sizes = [8, 63], strides = [1, 1]} : vector<8x64xf32> to vector<8x63xf32>
    %1450 = vector.broadcast %10 : f32 to vector<8x63xf32>
    %1451 = arith.mulf %1449, %1450 : vector<8x63xf32>
    %1452 = arith.addf %1448, %1451 : vector<8x63xf32>
    %1453 = vector.extract_strided_slice %1393 {offsets = [0, 1], sizes = [8, 63], strides = [1, 1]} : vector<8x64xf32> to vector<8x63xf32>
    %1454 = vector.broadcast %11 : f32 to vector<8x63xf32>
    %1455 = arith.mulf %1453, %1454 : vector<8x63xf32>
    %1456 = arith.addf %1452, %1455 : vector<8x63xf32>
    %1457 = vector.extract_strided_slice %1395 {offsets = [0, 0], sizes = [8, 63], strides = [1, 1]} : vector<8x64xf32> to vector<8x63xf32>
    %1458 = vector.broadcast %12 : f32 to vector<8x63xf32>
    %1459 = arith.mulf %1457, %1458 : vector<8x63xf32>
    %1460 = arith.addf %1456, %1459 : vector<8x63xf32>
    %1461 = vector.extract_strided_slice %1395 {offsets = [0, 1], sizes = [8, 63], strides = [1, 1]} : vector<8x64xf32> to vector<8x63xf32>
    %1462 = vector.broadcast %13 : f32 to vector<8x63xf32>
    %1463 = arith.mulf %1461, %1462 : vector<8x63xf32>
    %1464 = arith.addf %1460, %1463 : vector<8x63xf32>
    %1465 = vector.extract_strided_slice %1397 {offsets = [0, 0], sizes = [8, 63], strides = [1, 1]} : vector<8x64xf32> to vector<8x63xf32>
    %1466 = vector.broadcast %14 : f32 to vector<8x63xf32>
    %1467 = arith.mulf %1465, %1466 : vector<8x63xf32>
    %1468 = arith.addf %1464, %1467 : vector<8x63xf32>
    %1469 = vector.extract_strided_slice %1397 {offsets = [0, 1], sizes = [8, 63], strides = [1, 1]} : vector<8x64xf32> to vector<8x63xf32>
    %1470 = vector.broadcast %15 : f32 to vector<8x63xf32>
    %1471 = arith.mulf %1469, %1470 : vector<8x63xf32>
    %1472 = arith.addf %1468, %1471 : vector<8x63xf32>
    %c0_495 = arith.constant 0 : index
    %c1_496 = arith.constant 1 : index
    %c34_497 = arith.constant 34 : index
    %c0_498 = arith.constant 0 : index
    %1473 = vector.load %arg6[%c0_495, %c1_496, %c34_497, %c0_498] : memref<1x6x67x63xf32, #tpu.memory_space<vmem>>, vector<1x1x8x63xf32>
    %1474 = vector.shape_cast %1473 : vector<1x1x8x63xf32> to vector<8x63xf32>
    %1475 = vector.shape_cast %1472 : vector<8x63xf32> to vector<1x1x8x63xf32>
    tpu.vector_store %arg6[%c0_495, %c1_496, %c34_497, %c0_498], %1475 {strides = array<i32>} : memref<1x6x67x63xf32, #tpu.memory_space<vmem>>, vector<1x1x8x63xf32>,
    %c0_499 = arith.constant 0 : index
    %c2_500 = arith.constant 2 : index
    %c34_501 = arith.constant 34 : index
    %c0_502 = arith.constant 0 : index
    %1476 = vector.load %arg5[%c0_499, %c2_500, %c34_501, %c0_502] : memref<1x6x67x63xf32, #tpu.memory_space<vmem>>, vector<1x1x8x63xf32>
    %1477 = vector.shape_cast %1476 : vector<1x1x8x63xf32> to vector<8x63xf32>
    %1478 = vector.broadcast %50 : f32 to vector<8x63xf32>
    %1479 = arith.addf %1477, %1478 : vector<8x63xf32>
    %1480 = vector.extract_strided_slice %1391 {offsets = [0, 0], sizes = [8, 63], strides = [1, 1]} : vector<8x64xf32> to vector<8x63xf32>
    %1481 = vector.broadcast %16 : f32 to vector<8x63xf32>
    %1482 = arith.mulf %1480, %1481 : vector<8x63xf32>
    %1483 = arith.addf %1479, %1482 : vector<8x63xf32>
    %1484 = vector.extract_strided_slice %1391 {offsets = [0, 1], sizes = [8, 63], strides = [1, 1]} : vector<8x64xf32> to vector<8x63xf32>
    %1485 = vector.broadcast %17 : f32 to vector<8x63xf32>
    %1486 = arith.mulf %1484, %1485 : vector<8x63xf32>
    %1487 = arith.addf %1483, %1486 : vector<8x63xf32>
    %1488 = vector.extract_strided_slice %1393 {offsets = [0, 0], sizes = [8, 63], strides = [1, 1]} : vector<8x64xf32> to vector<8x63xf32>
    %1489 = vector.broadcast %18 : f32 to vector<8x63xf32>
    %1490 = arith.mulf %1488, %1489 : vector<8x63xf32>
    %1491 = arith.addf %1487, %1490 : vector<8x63xf32>
    %1492 = vector.extract_strided_slice %1393 {offsets = [0, 1], sizes = [8, 63], strides = [1, 1]} : vector<8x64xf32> to vector<8x63xf32>
    %1493 = vector.broadcast %19 : f32 to vector<8x63xf32>
    %1494 = arith.mulf %1492, %1493 : vector<8x63xf32>
    %1495 = arith.addf %1491, %1494 : vector<8x63xf32>
    %1496 = vector.extract_strided_slice %1395 {offsets = [0, 0], sizes = [8, 63], strides = [1, 1]} : vector<8x64xf32> to vector<8x63xf32>
    %1497 = vector.broadcast %20 : f32 to vector<8x63xf32>
    %1498 = arith.mulf %1496, %1497 : vector<8x63xf32>
    %1499 = arith.addf %1495, %1498 : vector<8x63xf32>
    %1500 = vector.extract_strided_slice %1395 {offsets = [0, 1], sizes = [8, 63], strides = [1, 1]} : vector<8x64xf32> to vector<8x63xf32>
    %1501 = vector.broadcast %21 : f32 to vector<8x63xf32>
    %1502 = arith.mulf %1500, %1501 : vector<8x63xf32>
    %1503 = arith.addf %1499, %1502 : vector<8x63xf32>
    %1504 = vector.extract_strided_slice %1397 {offsets = [0, 0], sizes = [8, 63], strides = [1, 1]} : vector<8x64xf32> to vector<8x63xf32>
    %1505 = vector.broadcast %22 : f32 to vector<8x63xf32>
    %1506 = arith.mulf %1504, %1505 : vector<8x63xf32>
    %1507 = arith.addf %1503, %1506 : vector<8x63xf32>
    %1508 = vector.extract_strided_slice %1397 {offsets = [0, 1], sizes = [8, 63], strides = [1, 1]} : vector<8x64xf32> to vector<8x63xf32>
    %1509 = vector.broadcast %23 : f32 to vector<8x63xf32>
    %1510 = arith.mulf %1508, %1509 : vector<8x63xf32>
    %1511 = arith.addf %1507, %1510 : vector<8x63xf32>
    %c0_503 = arith.constant 0 : index
    %c2_504 = arith.constant 2 : index
    %c34_505 = arith.constant 34 : index
    %c0_506 = arith.constant 0 : index
    %1512 = vector.load %arg6[%c0_503, %c2_504, %c34_505, %c0_506] : memref<1x6x67x63xf32, #tpu.memory_space<vmem>>, vector<1x1x8x63xf32>
    %1513 = vector.shape_cast %1512 : vector<1x1x8x63xf32> to vector<8x63xf32>
    %1514 = vector.shape_cast %1511 : vector<8x63xf32> to vector<1x1x8x63xf32>
    tpu.vector_store %arg6[%c0_503, %c2_504, %c34_505, %c0_506], %1514 {strides = array<i32>} : memref<1x6x67x63xf32, #tpu.memory_space<vmem>>, vector<1x1x8x63xf32>,
    %c0_507 = arith.constant 0 : index
    %c3_508 = arith.constant 3 : index
    %c34_509 = arith.constant 34 : index
    %c0_510 = arith.constant 0 : index
    %1515 = vector.load %arg5[%c0_507, %c3_508, %c34_509, %c0_510] : memref<1x6x67x63xf32, #tpu.memory_space<vmem>>, vector<1x1x8x63xf32>
    %1516 = vector.shape_cast %1515 : vector<1x1x8x63xf32> to vector<8x63xf32>
    %1517 = vector.broadcast %51 : f32 to vector<8x63xf32>
    %1518 = arith.addf %1516, %1517 : vector<8x63xf32>
    %1519 = vector.extract_strided_slice %1391 {offsets = [0, 0], sizes = [8, 63], strides = [1, 1]} : vector<8x64xf32> to vector<8x63xf32>
    %1520 = vector.broadcast %24 : f32 to vector<8x63xf32>
    %1521 = arith.mulf %1519, %1520 : vector<8x63xf32>
    %1522 = arith.addf %1518, %1521 : vector<8x63xf32>
    %1523 = vector.extract_strided_slice %1391 {offsets = [0, 1], sizes = [8, 63], strides = [1, 1]} : vector<8x64xf32> to vector<8x63xf32>
    %1524 = vector.broadcast %25 : f32 to vector<8x63xf32>
    %1525 = arith.mulf %1523, %1524 : vector<8x63xf32>
    %1526 = arith.addf %1522, %1525 : vector<8x63xf32>
    %1527 = vector.extract_strided_slice %1393 {offsets = [0, 0], sizes = [8, 63], strides = [1, 1]} : vector<8x64xf32> to vector<8x63xf32>
    %1528 = vector.broadcast %26 : f32 to vector<8x63xf32>
    %1529 = arith.mulf %1527, %1528 : vector<8x63xf32>
    %1530 = arith.addf %1526, %1529 : vector<8x63xf32>
    %1531 = vector.extract_strided_slice %1393 {offsets = [0, 1], sizes = [8, 63], strides = [1, 1]} : vector<8x64xf32> to vector<8x63xf32>
    %1532 = vector.broadcast %27 : f32 to vector<8x63xf32>
    %1533 = arith.mulf %1531, %1532 : vector<8x63xf32>
    %1534 = arith.addf %1530, %1533 : vector<8x63xf32>
    %1535 = vector.extract_strided_slice %1395 {offsets = [0, 0], sizes = [8, 63], strides = [1, 1]} : vector<8x64xf32> to vector<8x63xf32>
    %1536 = vector.broadcast %28 : f32 to vector<8x63xf32>
    %1537 = arith.mulf %1535, %1536 : vector<8x63xf32>
    %1538 = arith.addf %1534, %1537 : vector<8x63xf32>
    %1539 = vector.extract_strided_slice %1395 {offsets = [0, 1], sizes = [8, 63], strides = [1, 1]} : vector<8x64xf32> to vector<8x63xf32>
    %1540 = vector.broadcast %29 : f32 to vector<8x63xf32>
    %1541 = arith.mulf %1539, %1540 : vector<8x63xf32>
    %1542 = arith.addf %1538, %1541 : vector<8x63xf32>
    %1543 = vector.extract_strided_slice %1397 {offsets = [0, 0], sizes = [8, 63], strides = [1, 1]} : vector<8x64xf32> to vector<8x63xf32>
    %1544 = vector.broadcast %30 : f32 to vector<8x63xf32>
    %1545 = arith.mulf %1543, %1544 : vector<8x63xf32>
    %1546 = arith.addf %1542, %1545 : vector<8x63xf32>
    %1547 = vector.extract_strided_slice %1397 {offsets = [0, 1], sizes = [8, 63], strides = [1, 1]} : vector<8x64xf32> to vector<8x63xf32>
    %1548 = vector.broadcast %31 : f32 to vector<8x63xf32>
    %1549 = arith.mulf %1547, %1548 : vector<8x63xf32>
    %1550 = arith.addf %1546, %1549 : vector<8x63xf32>
    %c0_511 = arith.constant 0 : index
    %c3_512 = arith.constant 3 : index
    %c34_513 = arith.constant 34 : index
    %c0_514 = arith.constant 0 : index
    %1551 = vector.load %arg6[%c0_511, %c3_512, %c34_513, %c0_514] : memref<1x6x67x63xf32, #tpu.memory_space<vmem>>, vector<1x1x8x63xf32>
    %1552 = vector.shape_cast %1551 : vector<1x1x8x63xf32> to vector<8x63xf32>
    %1553 = vector.shape_cast %1550 : vector<8x63xf32> to vector<1x1x8x63xf32>
    tpu.vector_store %arg6[%c0_511, %c3_512, %c34_513, %c0_514], %1553 {strides = array<i32>} : memref<1x6x67x63xf32, #tpu.memory_space<vmem>>, vector<1x1x8x63xf32>,
    %c0_515 = arith.constant 0 : index
    %c4_516 = arith.constant 4 : index
    %c34_517 = arith.constant 34 : index
    %c0_518 = arith.constant 0 : index
    %1554 = vector.load %arg5[%c0_515, %c4_516, %c34_517, %c0_518] : memref<1x6x67x63xf32, #tpu.memory_space<vmem>>, vector<1x1x8x63xf32>
    %1555 = vector.shape_cast %1554 : vector<1x1x8x63xf32> to vector<8x63xf32>
    %1556 = vector.broadcast %52 : f32 to vector<8x63xf32>
    %1557 = arith.addf %1555, %1556 : vector<8x63xf32>
    %1558 = vector.extract_strided_slice %1391 {offsets = [0, 0], sizes = [8, 63], strides = [1, 1]} : vector<8x64xf32> to vector<8x63xf32>
    %1559 = vector.broadcast %32 : f32 to vector<8x63xf32>
    %1560 = arith.mulf %1558, %1559 : vector<8x63xf32>
    %1561 = arith.addf %1557, %1560 : vector<8x63xf32>
    %1562 = vector.extract_strided_slice %1391 {offsets = [0, 1], sizes = [8, 63], strides = [1, 1]} : vector<8x64xf32> to vector<8x63xf32>
    %1563 = vector.broadcast %33 : f32 to vector<8x63xf32>
    %1564 = arith.mulf %1562, %1563 : vector<8x63xf32>
    %1565 = arith.addf %1561, %1564 : vector<8x63xf32>
    %1566 = vector.extract_strided_slice %1393 {offsets = [0, 0], sizes = [8, 63], strides = [1, 1]} : vector<8x64xf32> to vector<8x63xf32>
    %1567 = vector.broadcast %34 : f32 to vector<8x63xf32>
    %1568 = arith.mulf %1566, %1567 : vector<8x63xf32>
    %1569 = arith.addf %1565, %1568 : vector<8x63xf32>
    %1570 = vector.extract_strided_slice %1393 {offsets = [0, 1], sizes = [8, 63], strides = [1, 1]} : vector<8x64xf32> to vector<8x63xf32>
    %1571 = vector.broadcast %35 : f32 to vector<8x63xf32>
    %1572 = arith.mulf %1570, %1571 : vector<8x63xf32>
    %1573 = arith.addf %1569, %1572 : vector<8x63xf32>
    %1574 = vector.extract_strided_slice %1395 {offsets = [0, 0], sizes = [8, 63], strides = [1, 1]} : vector<8x64xf32> to vector<8x63xf32>
    %1575 = vector.broadcast %36 : f32 to vector<8x63xf32>
    %1576 = arith.mulf %1574, %1575 : vector<8x63xf32>
    %1577 = arith.addf %1573, %1576 : vector<8x63xf32>
    %1578 = vector.extract_strided_slice %1395 {offsets = [0, 1], sizes = [8, 63], strides = [1, 1]} : vector<8x64xf32> to vector<8x63xf32>
    %1579 = vector.broadcast %37 : f32 to vector<8x63xf32>
    %1580 = arith.mulf %1578, %1579 : vector<8x63xf32>
    %1581 = arith.addf %1577, %1580 : vector<8x63xf32>
    %1582 = vector.extract_strided_slice %1397 {offsets = [0, 0], sizes = [8, 63], strides = [1, 1]} : vector<8x64xf32> to vector<8x63xf32>
    %1583 = vector.broadcast %38 : f32 to vector<8x63xf32>
    %1584 = arith.mulf %1582, %1583 : vector<8x63xf32>
    %1585 = arith.addf %1581, %1584 : vector<8x63xf32>
    %1586 = vector.extract_strided_slice %1397 {offsets = [0, 1], sizes = [8, 63], strides = [1, 1]} : vector<8x64xf32> to vector<8x63xf32>
    %1587 = vector.broadcast %39 : f32 to vector<8x63xf32>
    %1588 = arith.mulf %1586, %1587 : vector<8x63xf32>
    %1589 = arith.addf %1585, %1588 : vector<8x63xf32>
    %c0_519 = arith.constant 0 : index
    %c4_520 = arith.constant 4 : index
    %c34_521 = arith.constant 34 : index
    %c0_522 = arith.constant 0 : index
    %1590 = vector.load %arg6[%c0_519, %c4_520, %c34_521, %c0_522] : memref<1x6x67x63xf32, #tpu.memory_space<vmem>>, vector<1x1x8x63xf32>
    %1591 = vector.shape_cast %1590 : vector<1x1x8x63xf32> to vector<8x63xf32>
    %1592 = vector.shape_cast %1589 : vector<8x63xf32> to vector<1x1x8x63xf32>
    tpu.vector_store %arg6[%c0_519, %c4_520, %c34_521, %c0_522], %1592 {strides = array<i32>} : memref<1x6x67x63xf32, #tpu.memory_space<vmem>>, vector<1x1x8x63xf32>,
    %c0_523 = arith.constant 0 : index
    %c5_524 = arith.constant 5 : index
    %c34_525 = arith.constant 34 : index
    %c0_526 = arith.constant 0 : index
    %1593 = vector.load %arg5[%c0_523, %c5_524, %c34_525, %c0_526] : memref<1x6x67x63xf32, #tpu.memory_space<vmem>>, vector<1x1x8x63xf32>
    %1594 = vector.shape_cast %1593 : vector<1x1x8x63xf32> to vector<8x63xf32>
    %1595 = vector.broadcast %53 : f32 to vector<8x63xf32>
    %1596 = arith.addf %1594, %1595 : vector<8x63xf32>
    %1597 = vector.extract_strided_slice %1391 {offsets = [0, 0], sizes = [8, 63], strides = [1, 1]} : vector<8x64xf32> to vector<8x63xf32>
    %1598 = vector.broadcast %40 : f32 to vector<8x63xf32>
    %1599 = arith.mulf %1597, %1598 : vector<8x63xf32>
    %1600 = arith.addf %1596, %1599 : vector<8x63xf32>
    %1601 = vector.extract_strided_slice %1391 {offsets = [0, 1], sizes = [8, 63], strides = [1, 1]} : vector<8x64xf32> to vector<8x63xf32>
    %1602 = vector.broadcast %41 : f32 to vector<8x63xf32>
    %1603 = arith.mulf %1601, %1602 : vector<8x63xf32>
    %1604 = arith.addf %1600, %1603 : vector<8x63xf32>
    %1605 = vector.extract_strided_slice %1393 {offsets = [0, 0], sizes = [8, 63], strides = [1, 1]} : vector<8x64xf32> to vector<8x63xf32>
    %1606 = vector.broadcast %42 : f32 to vector<8x63xf32>
    %1607 = arith.mulf %1605, %1606 : vector<8x63xf32>
    %1608 = arith.addf %1604, %1607 : vector<8x63xf32>
    %1609 = vector.extract_strided_slice %1393 {offsets = [0, 1], sizes = [8, 63], strides = [1, 1]} : vector<8x64xf32> to vector<8x63xf32>
    %1610 = vector.broadcast %43 : f32 to vector<8x63xf32>
    %1611 = arith.mulf %1609, %1610 : vector<8x63xf32>
    %1612 = arith.addf %1608, %1611 : vector<8x63xf32>
    %1613 = vector.extract_strided_slice %1395 {offsets = [0, 0], sizes = [8, 63], strides = [1, 1]} : vector<8x64xf32> to vector<8x63xf32>
    %1614 = vector.broadcast %44 : f32 to vector<8x63xf32>
    %1615 = arith.mulf %1613, %1614 : vector<8x63xf32>
    %1616 = arith.addf %1612, %1615 : vector<8x63xf32>
    %1617 = vector.extract_strided_slice %1395 {offsets = [0, 1], sizes = [8, 63], strides = [1, 1]} : vector<8x64xf32> to vector<8x63xf32>
    %1618 = vector.broadcast %45 : f32 to vector<8x63xf32>
    %1619 = arith.mulf %1617, %1618 : vector<8x63xf32>
    %1620 = arith.addf %1616, %1619 : vector<8x63xf32>
    %1621 = vector.extract_strided_slice %1397 {offsets = [0, 0], sizes = [8, 63], strides = [1, 1]} : vector<8x64xf32> to vector<8x63xf32>
    %1622 = vector.broadcast %46 : f32 to vector<8x63xf32>
    %1623 = arith.mulf %1621, %1622 : vector<8x63xf32>
    %1624 = arith.addf %1620, %1623 : vector<8x63xf32>
    %1625 = vector.extract_strided_slice %1397 {offsets = [0, 1], sizes = [8, 63], strides = [1, 1]} : vector<8x64xf32> to vector<8x63xf32>
    %1626 = vector.broadcast %47 : f32 to vector<8x63xf32>
    %1627 = arith.mulf %1625, %1626 : vector<8x63xf32>
    %1628 = arith.addf %1624, %1627 : vector<8x63xf32>
    %c0_527 = arith.constant 0 : index
    %c5_528 = arith.constant 5 : index
    %c34_529 = arith.constant 34 : index
    %c0_530 = arith.constant 0 : index
    %1629 = vector.load %arg6[%c0_527, %c5_528, %c34_529, %c0_530] : memref<1x6x67x63xf32, #tpu.memory_space<vmem>>, vector<1x1x8x63xf32>
    %1630 = vector.shape_cast %1629 : vector<1x1x8x63xf32> to vector<8x63xf32>
    %1631 = vector.shape_cast %1628 : vector<8x63xf32> to vector<1x1x8x63xf32>
    tpu.vector_store %arg6[%c0_527, %c5_528, %c34_529, %c0_530], %1631 {strides = array<i32>} : memref<1x6x67x63xf32, #tpu.memory_space<vmem>>, vector<1x1x8x63xf32>,
    %c0_531 = arith.constant 0 : index
    %c0_532 = arith.constant 0 : index
    %c40_533 = arith.constant 40 : index
    %c0_534 = arith.constant 0 : index
    %1632 = vector.load %arg4[%c0_531, %c0_532, %c40_533, %c0_534] : memref<1x2x64x64xf32, #tpu.memory_space<vmem>>, vector<1x1x8x64xf32>
    %1633 = vector.shape_cast %1632 : vector<1x1x8x64xf32> to vector<8x64xf32>
    %c0_535 = arith.constant 0 : index
    %c0_536 = arith.constant 0 : index
    %c41_537 = arith.constant 41 : index
    %c0_538 = arith.constant 0 : index
    %1634 = vector.load %arg4[%c0_535, %c0_536, %c41_537, %c0_538] : memref<1x2x64x64xf32, #tpu.memory_space<vmem>>, vector<1x1x8x64xf32>
    %1635 = vector.shape_cast %1634 : vector<1x1x8x64xf32> to vector<8x64xf32>
    %c0_539 = arith.constant 0 : index
    %c1_540 = arith.constant 1 : index
    %c40_541 = arith.constant 40 : index
    %c0_542 = arith.constant 0 : index
    %1636 = vector.load %arg4[%c0_539, %c1_540, %c40_541, %c0_542] : memref<1x2x64x64xf32, #tpu.memory_space<vmem>>, vector<1x1x8x64xf32>
    %1637 = vector.shape_cast %1636 : vector<1x1x8x64xf32> to vector<8x64xf32>
    %c0_543 = arith.constant 0 : index
    %c1_544 = arith.constant 1 : index
    %c41_545 = arith.constant 41 : index
    %c0_546 = arith.constant 0 : index
    %1638 = vector.load %arg4[%c0_543, %c1_544, %c41_545, %c0_546] : memref<1x2x64x64xf32, #tpu.memory_space<vmem>>, vector<1x1x8x64xf32>
    %1639 = vector.shape_cast %1638 : vector<1x1x8x64xf32> to vector<8x64xf32>
    %c0_547 = arith.constant 0 : index
    %c0_548 = arith.constant 0 : index
    %c42_549 = arith.constant 42 : index
    %c0_550 = arith.constant 0 : index
    %1640 = vector.load %arg5[%c0_547, %c0_548, %c42_549, %c0_550] : memref<1x6x67x63xf32, #tpu.memory_space<vmem>>, vector<1x1x8x63xf32>
    %1641 = vector.shape_cast %1640 : vector<1x1x8x63xf32> to vector<8x63xf32>
    %1642 = vector.broadcast %48 : f32 to vector<8x63xf32>
    %1643 = arith.addf %1641, %1642 : vector<8x63xf32>
    %1644 = vector.extract_strided_slice %1633 {offsets = [0, 0], sizes = [8, 63], strides = [1, 1]} : vector<8x64xf32> to vector<8x63xf32>
    %1645 = vector.broadcast %0 : f32 to vector<8x63xf32>
    %1646 = arith.mulf %1644, %1645 : vector<8x63xf32>
    %1647 = arith.addf %1643, %1646 : vector<8x63xf32>
    %1648 = vector.extract_strided_slice %1633 {offsets = [0, 1], sizes = [8, 63], strides = [1, 1]} : vector<8x64xf32> to vector<8x63xf32>
    %1649 = vector.broadcast %1 : f32 to vector<8x63xf32>
    %1650 = arith.mulf %1648, %1649 : vector<8x63xf32>
    %1651 = arith.addf %1647, %1650 : vector<8x63xf32>
    %1652 = vector.extract_strided_slice %1635 {offsets = [0, 0], sizes = [8, 63], strides = [1, 1]} : vector<8x64xf32> to vector<8x63xf32>
    %1653 = vector.broadcast %2 : f32 to vector<8x63xf32>
    %1654 = arith.mulf %1652, %1653 : vector<8x63xf32>
    %1655 = arith.addf %1651, %1654 : vector<8x63xf32>
    %1656 = vector.extract_strided_slice %1635 {offsets = [0, 1], sizes = [8, 63], strides = [1, 1]} : vector<8x64xf32> to vector<8x63xf32>
    %1657 = vector.broadcast %3 : f32 to vector<8x63xf32>
    %1658 = arith.mulf %1656, %1657 : vector<8x63xf32>
    %1659 = arith.addf %1655, %1658 : vector<8x63xf32>
    %1660 = vector.extract_strided_slice %1637 {offsets = [0, 0], sizes = [8, 63], strides = [1, 1]} : vector<8x64xf32> to vector<8x63xf32>
    %1661 = vector.broadcast %4 : f32 to vector<8x63xf32>
    %1662 = arith.mulf %1660, %1661 : vector<8x63xf32>
    %1663 = arith.addf %1659, %1662 : vector<8x63xf32>
    %1664 = vector.extract_strided_slice %1637 {offsets = [0, 1], sizes = [8, 63], strides = [1, 1]} : vector<8x64xf32> to vector<8x63xf32>
    %1665 = vector.broadcast %5 : f32 to vector<8x63xf32>
    %1666 = arith.mulf %1664, %1665 : vector<8x63xf32>
    %1667 = arith.addf %1663, %1666 : vector<8x63xf32>
    %1668 = vector.extract_strided_slice %1639 {offsets = [0, 0], sizes = [8, 63], strides = [1, 1]} : vector<8x64xf32> to vector<8x63xf32>
    %1669 = vector.broadcast %6 : f32 to vector<8x63xf32>
    %1670 = arith.mulf %1668, %1669 : vector<8x63xf32>
    %1671 = arith.addf %1667, %1670 : vector<8x63xf32>
    %1672 = vector.extract_strided_slice %1639 {offsets = [0, 1], sizes = [8, 63], strides = [1, 1]} : vector<8x64xf32> to vector<8x63xf32>
    %1673 = vector.broadcast %7 : f32 to vector<8x63xf32>
    %1674 = arith.mulf %1672, %1673 : vector<8x63xf32>
    %1675 = arith.addf %1671, %1674 : vector<8x63xf32>
    %c0_551 = arith.constant 0 : index
    %c0_552 = arith.constant 0 : index
    %c42_553 = arith.constant 42 : index
    %c0_554 = arith.constant 0 : index
    %1676 = vector.load %arg6[%c0_551, %c0_552, %c42_553, %c0_554] : memref<1x6x67x63xf32, #tpu.memory_space<vmem>>, vector<1x1x8x63xf32>
    %1677 = vector.shape_cast %1676 : vector<1x1x8x63xf32> to vector<8x63xf32>
    %1678 = vector.shape_cast %1675 : vector<8x63xf32> to vector<1x1x8x63xf32>
    tpu.vector_store %arg6[%c0_551, %c0_552, %c42_553, %c0_554], %1678 {strides = array<i32>} : memref<1x6x67x63xf32, #tpu.memory_space<vmem>>, vector<1x1x8x63xf32>,
    %c0_555 = arith.constant 0 : index
    %c1_556 = arith.constant 1 : index
    %c42_557 = arith.constant 42 : index
    %c0_558 = arith.constant 0 : index
    %1679 = vector.load %arg5[%c0_555, %c1_556, %c42_557, %c0_558] : memref<1x6x67x63xf32, #tpu.memory_space<vmem>>, vector<1x1x8x63xf32>
    %1680 = vector.shape_cast %1679 : vector<1x1x8x63xf32> to vector<8x63xf32>
    %1681 = vector.broadcast %49 : f32 to vector<8x63xf32>
    %1682 = arith.addf %1680, %1681 : vector<8x63xf32>
    %1683 = vector.extract_strided_slice %1633 {offsets = [0, 0], sizes = [8, 63], strides = [1, 1]} : vector<8x64xf32> to vector<8x63xf32>
    %1684 = vector.broadcast %8 : f32 to vector<8x63xf32>
    %1685 = arith.mulf %1683, %1684 : vector<8x63xf32>
    %1686 = arith.addf %1682, %1685 : vector<8x63xf32>
    %1687 = vector.extract_strided_slice %1633 {offsets = [0, 1], sizes = [8, 63], strides = [1, 1]} : vector<8x64xf32> to vector<8x63xf32>
    %1688 = vector.broadcast %9 : f32 to vector<8x63xf32>
    %1689 = arith.mulf %1687, %1688 : vector<8x63xf32>
    %1690 = arith.addf %1686, %1689 : vector<8x63xf32>
    %1691 = vector.extract_strided_slice %1635 {offsets = [0, 0], sizes = [8, 63], strides = [1, 1]} : vector<8x64xf32> to vector<8x63xf32>
    %1692 = vector.broadcast %10 : f32 to vector<8x63xf32>
    %1693 = arith.mulf %1691, %1692 : vector<8x63xf32>
    %1694 = arith.addf %1690, %1693 : vector<8x63xf32>
    %1695 = vector.extract_strided_slice %1635 {offsets = [0, 1], sizes = [8, 63], strides = [1, 1]} : vector<8x64xf32> to vector<8x63xf32>
    %1696 = vector.broadcast %11 : f32 to vector<8x63xf32>
    %1697 = arith.mulf %1695, %1696 : vector<8x63xf32>
    %1698 = arith.addf %1694, %1697 : vector<8x63xf32>
    %1699 = vector.extract_strided_slice %1637 {offsets = [0, 0], sizes = [8, 63], strides = [1, 1]} : vector<8x64xf32> to vector<8x63xf32>
    %1700 = vector.broadcast %12 : f32 to vector<8x63xf32>
    %1701 = arith.mulf %1699, %1700 : vector<8x63xf32>
    %1702 = arith.addf %1698, %1701 : vector<8x63xf32>
    %1703 = vector.extract_strided_slice %1637 {offsets = [0, 1], sizes = [8, 63], strides = [1, 1]} : vector<8x64xf32> to vector<8x63xf32>
    %1704 = vector.broadcast %13 : f32 to vector<8x63xf32>
    %1705 = arith.mulf %1703, %1704 : vector<8x63xf32>
    %1706 = arith.addf %1702, %1705 : vector<8x63xf32>
    %1707 = vector.extract_strided_slice %1639 {offsets = [0, 0], sizes = [8, 63], strides = [1, 1]} : vector<8x64xf32> to vector<8x63xf32>
    %1708 = vector.broadcast %14 : f32 to vector<8x63xf32>
    %1709 = arith.mulf %1707, %1708 : vector<8x63xf32>
    %1710 = arith.addf %1706, %1709 : vector<8x63xf32>
    %1711 = vector.extract_strided_slice %1639 {offsets = [0, 1], sizes = [8, 63], strides = [1, 1]} : vector<8x64xf32> to vector<8x63xf32>
    %1712 = vector.broadcast %15 : f32 to vector<8x63xf32>
    %1713 = arith.mulf %1711, %1712 : vector<8x63xf32>
    %1714 = arith.addf %1710, %1713 : vector<8x63xf32>
    %c0_559 = arith.constant 0 : index
    %c1_560 = arith.constant 1 : index
    %c42_561 = arith.constant 42 : index
    %c0_562 = arith.constant 0 : index
    %1715 = vector.load %arg6[%c0_559, %c1_560, %c42_561, %c0_562] : memref<1x6x67x63xf32, #tpu.memory_space<vmem>>, vector<1x1x8x63xf32>
    %1716 = vector.shape_cast %1715 : vector<1x1x8x63xf32> to vector<8x63xf32>
    %1717 = vector.shape_cast %1714 : vector<8x63xf32> to vector<1x1x8x63xf32>
    tpu.vector_store %arg6[%c0_559, %c1_560, %c42_561, %c0_562], %1717 {strides = array<i32>} : memref<1x6x67x63xf32, #tpu.memory_space<vmem>>, vector<1x1x8x63xf32>,
    %c0_563 = arith.constant 0 : index
    %c2_564 = arith.constant 2 : index
    %c42_565 = arith.constant 42 : index
    %c0_566 = arith.constant 0 : index
    %1718 = vector.load %arg5[%c0_563, %c2_564, %c42_565, %c0_566] : memref<1x6x67x63xf32, #tpu.memory_space<vmem>>, vector<1x1x8x63xf32>
    %1719 = vector.shape_cast %1718 : vector<1x1x8x63xf32> to vector<8x63xf32>
    %1720 = vector.broadcast %50 : f32 to vector<8x63xf32>
    %1721 = arith.addf %1719, %1720 : vector<8x63xf32>
    %1722 = vector.extract_strided_slice %1633 {offsets = [0, 0], sizes = [8, 63], strides = [1, 1]} : vector<8x64xf32> to vector<8x63xf32>
    %1723 = vector.broadcast %16 : f32 to vector<8x63xf32>
    %1724 = arith.mulf %1722, %1723 : vector<8x63xf32>
    %1725 = arith.addf %1721, %1724 : vector<8x63xf32>
    %1726 = vector.extract_strided_slice %1633 {offsets = [0, 1], sizes = [8, 63], strides = [1, 1]} : vector<8x64xf32> to vector<8x63xf32>
    %1727 = vector.broadcast %17 : f32 to vector<8x63xf32>
    %1728 = arith.mulf %1726, %1727 : vector<8x63xf32>
    %1729 = arith.addf %1725, %1728 : vector<8x63xf32>
    %1730 = vector.extract_strided_slice %1635 {offsets = [0, 0], sizes = [8, 63], strides = [1, 1]} : vector<8x64xf32> to vector<8x63xf32>
    %1731 = vector.broadcast %18 : f32 to vector<8x63xf32>
    %1732 = arith.mulf %1730, %1731 : vector<8x63xf32>
    %1733 = arith.addf %1729, %1732 : vector<8x63xf32>
    %1734 = vector.extract_strided_slice %1635 {offsets = [0, 1], sizes = [8, 63], strides = [1, 1]} : vector<8x64xf32> to vector<8x63xf32>
    %1735 = vector.broadcast %19 : f32 to vector<8x63xf32>
    %1736 = arith.mulf %1734, %1735 : vector<8x63xf32>
    %1737 = arith.addf %1733, %1736 : vector<8x63xf32>
    %1738 = vector.extract_strided_slice %1637 {offsets = [0, 0], sizes = [8, 63], strides = [1, 1]} : vector<8x64xf32> to vector<8x63xf32>
    %1739 = vector.broadcast %20 : f32 to vector<8x63xf32>
    %1740 = arith.mulf %1738, %1739 : vector<8x63xf32>
    %1741 = arith.addf %1737, %1740 : vector<8x63xf32>
    %1742 = vector.extract_strided_slice %1637 {offsets = [0, 1], sizes = [8, 63], strides = [1, 1]} : vector<8x64xf32> to vector<8x63xf32>
    %1743 = vector.broadcast %21 : f32 to vector<8x63xf32>
    %1744 = arith.mulf %1742, %1743 : vector<8x63xf32>
    %1745 = arith.addf %1741, %1744 : vector<8x63xf32>
    %1746 = vector.extract_strided_slice %1639 {offsets = [0, 0], sizes = [8, 63], strides = [1, 1]} : vector<8x64xf32> to vector<8x63xf32>
    %1747 = vector.broadcast %22 : f32 to vector<8x63xf32>
    %1748 = arith.mulf %1746, %1747 : vector<8x63xf32>
    %1749 = arith.addf %1745, %1748 : vector<8x63xf32>
    %1750 = vector.extract_strided_slice %1639 {offsets = [0, 1], sizes = [8, 63], strides = [1, 1]} : vector<8x64xf32> to vector<8x63xf32>
    %1751 = vector.broadcast %23 : f32 to vector<8x63xf32>
    %1752 = arith.mulf %1750, %1751 : vector<8x63xf32>
    %1753 = arith.addf %1749, %1752 : vector<8x63xf32>
    %c0_567 = arith.constant 0 : index
    %c2_568 = arith.constant 2 : index
    %c42_569 = arith.constant 42 : index
    %c0_570 = arith.constant 0 : index
    %1754 = vector.load %arg6[%c0_567, %c2_568, %c42_569, %c0_570] : memref<1x6x67x63xf32, #tpu.memory_space<vmem>>, vector<1x1x8x63xf32>
    %1755 = vector.shape_cast %1754 : vector<1x1x8x63xf32> to vector<8x63xf32>
    %1756 = vector.shape_cast %1753 : vector<8x63xf32> to vector<1x1x8x63xf32>
    tpu.vector_store %arg6[%c0_567, %c2_568, %c42_569, %c0_570], %1756 {strides = array<i32>} : memref<1x6x67x63xf32, #tpu.memory_space<vmem>>, vector<1x1x8x63xf32>,
    %c0_571 = arith.constant 0 : index
    %c3_572 = arith.constant 3 : index
    %c42_573 = arith.constant 42 : index
    %c0_574 = arith.constant 0 : index
    %1757 = vector.load %arg5[%c0_571, %c3_572, %c42_573, %c0_574] : memref<1x6x67x63xf32, #tpu.memory_space<vmem>>, vector<1x1x8x63xf32>
    %1758 = vector.shape_cast %1757 : vector<1x1x8x63xf32> to vector<8x63xf32>
    %1759 = vector.broadcast %51 : f32 to vector<8x63xf32>
    %1760 = arith.addf %1758, %1759 : vector<8x63xf32>
    %1761 = vector.extract_strided_slice %1633 {offsets = [0, 0], sizes = [8, 63], strides = [1, 1]} : vector<8x64xf32> to vector<8x63xf32>
    %1762 = vector.broadcast %24 : f32 to vector<8x63xf32>
    %1763 = arith.mulf %1761, %1762 : vector<8x63xf32>
    %1764 = arith.addf %1760, %1763 : vector<8x63xf32>
    %1765 = vector.extract_strided_slice %1633 {offsets = [0, 1], sizes = [8, 63], strides = [1, 1]} : vector<8x64xf32> to vector<8x63xf32>
    %1766 = vector.broadcast %25 : f32 to vector<8x63xf32>
    %1767 = arith.mulf %1765, %1766 : vector<8x63xf32>
    %1768 = arith.addf %1764, %1767 : vector<8x63xf32>
    %1769 = vector.extract_strided_slice %1635 {offsets = [0, 0], sizes = [8, 63], strides = [1, 1]} : vector<8x64xf32> to vector<8x63xf32>
    %1770 = vector.broadcast %26 : f32 to vector<8x63xf32>
    %1771 = arith.mulf %1769, %1770 : vector<8x63xf32>
    %1772 = arith.addf %1768, %1771 : vector<8x63xf32>
    %1773 = vector.extract_strided_slice %1635 {offsets = [0, 1], sizes = [8, 63], strides = [1, 1]} : vector<8x64xf32> to vector<8x63xf32>
    %1774 = vector.broadcast %27 : f32 to vector<8x63xf32>
    %1775 = arith.mulf %1773, %1774 : vector<8x63xf32>
    %1776 = arith.addf %1772, %1775 : vector<8x63xf32>
    %1777 = vector.extract_strided_slice %1637 {offsets = [0, 0], sizes = [8, 63], strides = [1, 1]} : vector<8x64xf32> to vector<8x63xf32>
    %1778 = vector.broadcast %28 : f32 to vector<8x63xf32>
    %1779 = arith.mulf %1777, %1778 : vector<8x63xf32>
    %1780 = arith.addf %1776, %1779 : vector<8x63xf32>
    %1781 = vector.extract_strided_slice %1637 {offsets = [0, 1], sizes = [8, 63], strides = [1, 1]} : vector<8x64xf32> to vector<8x63xf32>
    %1782 = vector.broadcast %29 : f32 to vector<8x63xf32>
    %1783 = arith.mulf %1781, %1782 : vector<8x63xf32>
    %1784 = arith.addf %1780, %1783 : vector<8x63xf32>
    %1785 = vector.extract_strided_slice %1639 {offsets = [0, 0], sizes = [8, 63], strides = [1, 1]} : vector<8x64xf32> to vector<8x63xf32>
    %1786 = vector.broadcast %30 : f32 to vector<8x63xf32>
    %1787 = arith.mulf %1785, %1786 : vector<8x63xf32>
    %1788 = arith.addf %1784, %1787 : vector<8x63xf32>
    %1789 = vector.extract_strided_slice %1639 {offsets = [0, 1], sizes = [8, 63], strides = [1, 1]} : vector<8x64xf32> to vector<8x63xf32>
    %1790 = vector.broadcast %31 : f32 to vector<8x63xf32>
    %1791 = arith.mulf %1789, %1790 : vector<8x63xf32>
    %1792 = arith.addf %1788, %1791 : vector<8x63xf32>
    %c0_575 = arith.constant 0 : index
    %c3_576 = arith.constant 3 : index
    %c42_577 = arith.constant 42 : index
    %c0_578 = arith.constant 0 : index
    %1793 = vector.load %arg6[%c0_575, %c3_576, %c42_577, %c0_578] : memref<1x6x67x63xf32, #tpu.memory_space<vmem>>, vector<1x1x8x63xf32>
    %1794 = vector.shape_cast %1793 : vector<1x1x8x63xf32> to vector<8x63xf32>
    %1795 = vector.shape_cast %1792 : vector<8x63xf32> to vector<1x1x8x63xf32>
    tpu.vector_store %arg6[%c0_575, %c3_576, %c42_577, %c0_578], %1795 {strides = array<i32>} : memref<1x6x67x63xf32, #tpu.memory_space<vmem>>, vector<1x1x8x63xf32>,
    %c0_579 = arith.constant 0 : index
    %c4_580 = arith.constant 4 : index
    %c42_581 = arith.constant 42 : index
    %c0_582 = arith.constant 0 : index
    %1796 = vector.load %arg5[%c0_579, %c4_580, %c42_581, %c0_582] : memref<1x6x67x63xf32, #tpu.memory_space<vmem>>, vector<1x1x8x63xf32>
    %1797 = vector.shape_cast %1796 : vector<1x1x8x63xf32> to vector<8x63xf32>
    %1798 = vector.broadcast %52 : f32 to vector<8x63xf32>
    %1799 = arith.addf %1797, %1798 : vector<8x63xf32>
    %1800 = vector.extract_strided_slice %1633 {offsets = [0, 0], sizes = [8, 63], strides = [1, 1]} : vector<8x64xf32> to vector<8x63xf32>
    %1801 = vector.broadcast %32 : f32 to vector<8x63xf32>
    %1802 = arith.mulf %1800, %1801 : vector<8x63xf32>
    %1803 = arith.addf %1799, %1802 : vector<8x63xf32>
    %1804 = vector.extract_strided_slice %1633 {offsets = [0, 1], sizes = [8, 63], strides = [1, 1]} : vector<8x64xf32> to vector<8x63xf32>
    %1805 = vector.broadcast %33 : f32 to vector<8x63xf32>
    %1806 = arith.mulf %1804, %1805 : vector<8x63xf32>
    %1807 = arith.addf %1803, %1806 : vector<8x63xf32>
    %1808 = vector.extract_strided_slice %1635 {offsets = [0, 0], sizes = [8, 63], strides = [1, 1]} : vector<8x64xf32> to vector<8x63xf32>
    %1809 = vector.broadcast %34 : f32 to vector<8x63xf32>
    %1810 = arith.mulf %1808, %1809 : vector<8x63xf32>
    %1811 = arith.addf %1807, %1810 : vector<8x63xf32>
    %1812 = vector.extract_strided_slice %1635 {offsets = [0, 1], sizes = [8, 63], strides = [1, 1]} : vector<8x64xf32> to vector<8x63xf32>
    %1813 = vector.broadcast %35 : f32 to vector<8x63xf32>
    %1814 = arith.mulf %1812, %1813 : vector<8x63xf32>
    %1815 = arith.addf %1811, %1814 : vector<8x63xf32>
    %1816 = vector.extract_strided_slice %1637 {offsets = [0, 0], sizes = [8, 63], strides = [1, 1]} : vector<8x64xf32> to vector<8x63xf32>
    %1817 = vector.broadcast %36 : f32 to vector<8x63xf32>
    %1818 = arith.mulf %1816, %1817 : vector<8x63xf32>
    %1819 = arith.addf %1815, %1818 : vector<8x63xf32>
    %1820 = vector.extract_strided_slice %1637 {offsets = [0, 1], sizes = [8, 63], strides = [1, 1]} : vector<8x64xf32> to vector<8x63xf32>
    %1821 = vector.broadcast %37 : f32 to vector<8x63xf32>
    %1822 = arith.mulf %1820, %1821 : vector<8x63xf32>
    %1823 = arith.addf %1819, %1822 : vector<8x63xf32>
    %1824 = vector.extract_strided_slice %1639 {offsets = [0, 0], sizes = [8, 63], strides = [1, 1]} : vector<8x64xf32> to vector<8x63xf32>
    %1825 = vector.broadcast %38 : f32 to vector<8x63xf32>
    %1826 = arith.mulf %1824, %1825 : vector<8x63xf32>
    %1827 = arith.addf %1823, %1826 : vector<8x63xf32>
    %1828 = vector.extract_strided_slice %1639 {offsets = [0, 1], sizes = [8, 63], strides = [1, 1]} : vector<8x64xf32> to vector<8x63xf32>
    %1829 = vector.broadcast %39 : f32 to vector<8x63xf32>
    %1830 = arith.mulf %1828, %1829 : vector<8x63xf32>
    %1831 = arith.addf %1827, %1830 : vector<8x63xf32>
    %c0_583 = arith.constant 0 : index
    %c4_584 = arith.constant 4 : index
    %c42_585 = arith.constant 42 : index
    %c0_586 = arith.constant 0 : index
    %1832 = vector.load %arg6[%c0_583, %c4_584, %c42_585, %c0_586] : memref<1x6x67x63xf32, #tpu.memory_space<vmem>>, vector<1x1x8x63xf32>
    %1833 = vector.shape_cast %1832 : vector<1x1x8x63xf32> to vector<8x63xf32>
    %1834 = vector.shape_cast %1831 : vector<8x63xf32> to vector<1x1x8x63xf32>
    tpu.vector_store %arg6[%c0_583, %c4_584, %c42_585, %c0_586], %1834 {strides = array<i32>} : memref<1x6x67x63xf32, #tpu.memory_space<vmem>>, vector<1x1x8x63xf32>,
    %c0_587 = arith.constant 0 : index
    %c5_588 = arith.constant 5 : index
    %c42_589 = arith.constant 42 : index
    %c0_590 = arith.constant 0 : index
    %1835 = vector.load %arg5[%c0_587, %c5_588, %c42_589, %c0_590] : memref<1x6x67x63xf32, #tpu.memory_space<vmem>>, vector<1x1x8x63xf32>
    %1836 = vector.shape_cast %1835 : vector<1x1x8x63xf32> to vector<8x63xf32>
    %1837 = vector.broadcast %53 : f32 to vector<8x63xf32>
    %1838 = arith.addf %1836, %1837 : vector<8x63xf32>
    %1839 = vector.extract_strided_slice %1633 {offsets = [0, 0], sizes = [8, 63], strides = [1, 1]} : vector<8x64xf32> to vector<8x63xf32>
    %1840 = vector.broadcast %40 : f32 to vector<8x63xf32>
    %1841 = arith.mulf %1839, %1840 : vector<8x63xf32>
    %1842 = arith.addf %1838, %1841 : vector<8x63xf32>
    %1843 = vector.extract_strided_slice %1633 {offsets = [0, 1], sizes = [8, 63], strides = [1, 1]} : vector<8x64xf32> to vector<8x63xf32>
    %1844 = vector.broadcast %41 : f32 to vector<8x63xf32>
    %1845 = arith.mulf %1843, %1844 : vector<8x63xf32>
    %1846 = arith.addf %1842, %1845 : vector<8x63xf32>
    %1847 = vector.extract_strided_slice %1635 {offsets = [0, 0], sizes = [8, 63], strides = [1, 1]} : vector<8x64xf32> to vector<8x63xf32>
    %1848 = vector.broadcast %42 : f32 to vector<8x63xf32>
    %1849 = arith.mulf %1847, %1848 : vector<8x63xf32>
    %1850 = arith.addf %1846, %1849 : vector<8x63xf32>
    %1851 = vector.extract_strided_slice %1635 {offsets = [0, 1], sizes = [8, 63], strides = [1, 1]} : vector<8x64xf32> to vector<8x63xf32>
    %1852 = vector.broadcast %43 : f32 to vector<8x63xf32>
    %1853 = arith.mulf %1851, %1852 : vector<8x63xf32>
    %1854 = arith.addf %1850, %1853 : vector<8x63xf32>
    %1855 = vector.extract_strided_slice %1637 {offsets = [0, 0], sizes = [8, 63], strides = [1, 1]} : vector<8x64xf32> to vector<8x63xf32>
    %1856 = vector.broadcast %44 : f32 to vector<8x63xf32>
    %1857 = arith.mulf %1855, %1856 : vector<8x63xf32>
    %1858 = arith.addf %1854, %1857 : vector<8x63xf32>
    %1859 = vector.extract_strided_slice %1637 {offsets = [0, 1], sizes = [8, 63], strides = [1, 1]} : vector<8x64xf32> to vector<8x63xf32>
    %1860 = vector.broadcast %45 : f32 to vector<8x63xf32>
    %1861 = arith.mulf %1859, %1860 : vector<8x63xf32>
    %1862 = arith.addf %1858, %1861 : vector<8x63xf32>
    %1863 = vector.extract_strided_slice %1639 {offsets = [0, 0], sizes = [8, 63], strides = [1, 1]} : vector<8x64xf32> to vector<8x63xf32>
    %1864 = vector.broadcast %46 : f32 to vector<8x63xf32>
    %1865 = arith.mulf %1863, %1864 : vector<8x63xf32>
    %1866 = arith.addf %1862, %1865 : vector<8x63xf32>
    %1867 = vector.extract_strided_slice %1639 {offsets = [0, 1], sizes = [8, 63], strides = [1, 1]} : vector<8x64xf32> to vector<8x63xf32>
    %1868 = vector.broadcast %47 : f32 to vector<8x63xf32>
    %1869 = arith.mulf %1867, %1868 : vector<8x63xf32>
    %1870 = arith.addf %1866, %1869 : vector<8x63xf32>
    %c0_591 = arith.constant 0 : index
    %c5_592 = arith.constant 5 : index
    %c42_593 = arith.constant 42 : index
    %c0_594 = arith.constant 0 : index
    %1871 = vector.load %arg6[%c0_591, %c5_592, %c42_593, %c0_594] : memref<1x6x67x63xf32, #tpu.memory_space<vmem>>, vector<1x1x8x63xf32>
    %1872 = vector.shape_cast %1871 : vector<1x1x8x63xf32> to vector<8x63xf32>
    %1873 = vector.shape_cast %1870 : vector<8x63xf32> to vector<1x1x8x63xf32>
    tpu.vector_store %arg6[%c0_591, %c5_592, %c42_593, %c0_594], %1873 {strides = array<i32>} : memref<1x6x67x63xf32, #tpu.memory_space<vmem>>, vector<1x1x8x63xf32>,
    %c0_595 = arith.constant 0 : index
    %c0_596 = arith.constant 0 : index
    %c48 = arith.constant 48 : index
    %c0_597 = arith.constant 0 : index
    %1874 = vector.load %arg4[%c0_595, %c0_596, %c48, %c0_597] : memref<1x2x64x64xf32, #tpu.memory_space<vmem>>, vector<1x1x8x64xf32>
    %1875 = vector.shape_cast %1874 : vector<1x1x8x64xf32> to vector<8x64xf32>
    %c0_598 = arith.constant 0 : index
    %c0_599 = arith.constant 0 : index
    %c49 = arith.constant 49 : index
    %c0_600 = arith.constant 0 : index
    %1876 = vector.load %arg4[%c0_598, %c0_599, %c49, %c0_600] : memref<1x2x64x64xf32, #tpu.memory_space<vmem>>, vector<1x1x8x64xf32>
    %1877 = vector.shape_cast %1876 : vector<1x1x8x64xf32> to vector<8x64xf32>
    %c0_601 = arith.constant 0 : index
    %c1_602 = arith.constant 1 : index
    %c48_603 = arith.constant 48 : index
    %c0_604 = arith.constant 0 : index
    %1878 = vector.load %arg4[%c0_601, %c1_602, %c48_603, %c0_604] : memref<1x2x64x64xf32, #tpu.memory_space<vmem>>, vector<1x1x8x64xf32>
    %1879 = vector.shape_cast %1878 : vector<1x1x8x64xf32> to vector<8x64xf32>
    %c0_605 = arith.constant 0 : index
    %c1_606 = arith.constant 1 : index
    %c49_607 = arith.constant 49 : index
    %c0_608 = arith.constant 0 : index
    %1880 = vector.load %arg4[%c0_605, %c1_606, %c49_607, %c0_608] : memref<1x2x64x64xf32, #tpu.memory_space<vmem>>, vector<1x1x8x64xf32>
    %1881 = vector.shape_cast %1880 : vector<1x1x8x64xf32> to vector<8x64xf32>
    %c0_609 = arith.constant 0 : index
    %c0_610 = arith.constant 0 : index
    %c50 = arith.constant 50 : index
    %c0_611 = arith.constant 0 : index
    %1882 = vector.load %arg5[%c0_609, %c0_610, %c50, %c0_611] : memref<1x6x67x63xf32, #tpu.memory_space<vmem>>, vector<1x1x8x63xf32>
    %1883 = vector.shape_cast %1882 : vector<1x1x8x63xf32> to vector<8x63xf32>
    %1884 = vector.broadcast %48 : f32 to vector<8x63xf32>
    %1885 = arith.addf %1883, %1884 : vector<8x63xf32>
    %1886 = vector.extract_strided_slice %1875 {offsets = [0, 0], sizes = [8, 63], strides = [1, 1]} : vector<8x64xf32> to vector<8x63xf32>
    %1887 = vector.broadcast %0 : f32 to vector<8x63xf32>
    %1888 = arith.mulf %1886, %1887 : vector<8x63xf32>
    %1889 = arith.addf %1885, %1888 : vector<8x63xf32>
    %1890 = vector.extract_strided_slice %1875 {offsets = [0, 1], sizes = [8, 63], strides = [1, 1]} : vector<8x64xf32> to vector<8x63xf32>
    %1891 = vector.broadcast %1 : f32 to vector<8x63xf32>
    %1892 = arith.mulf %1890, %1891 : vector<8x63xf32>
    %1893 = arith.addf %1889, %1892 : vector<8x63xf32>
    %1894 = vector.extract_strided_slice %1877 {offsets = [0, 0], sizes = [8, 63], strides = [1, 1]} : vector<8x64xf32> to vector<8x63xf32>
    %1895 = vector.broadcast %2 : f32 to vector<8x63xf32>
    %1896 = arith.mulf %1894, %1895 : vector<8x63xf32>
    %1897 = arith.addf %1893, %1896 : vector<8x63xf32>
    %1898 = vector.extract_strided_slice %1877 {offsets = [0, 1], sizes = [8, 63], strides = [1, 1]} : vector<8x64xf32> to vector<8x63xf32>
    %1899 = vector.broadcast %3 : f32 to vector<8x63xf32>
    %1900 = arith.mulf %1898, %1899 : vector<8x63xf32>
    %1901 = arith.addf %1897, %1900 : vector<8x63xf32>
    %1902 = vector.extract_strided_slice %1879 {offsets = [0, 0], sizes = [8, 63], strides = [1, 1]} : vector<8x64xf32> to vector<8x63xf32>
    %1903 = vector.broadcast %4 : f32 to vector<8x63xf32>
    %1904 = arith.mulf %1902, %1903 : vector<8x63xf32>
    %1905 = arith.addf %1901, %1904 : vector<8x63xf32>
    %1906 = vector.extract_strided_slice %1879 {offsets = [0, 1], sizes = [8, 63], strides = [1, 1]} : vector<8x64xf32> to vector<8x63xf32>
    %1907 = vector.broadcast %5 : f32 to vector<8x63xf32>
    %1908 = arith.mulf %1906, %1907 : vector<8x63xf32>
    %1909 = arith.addf %1905, %1908 : vector<8x63xf32>
    %1910 = vector.extract_strided_slice %1881 {offsets = [0, 0], sizes = [8, 63], strides = [1, 1]} : vector<8x64xf32> to vector<8x63xf32>
    %1911 = vector.broadcast %6 : f32 to vector<8x63xf32>
    %1912 = arith.mulf %1910, %1911 : vector<8x63xf32>
    %1913 = arith.addf %1909, %1912 : vector<8x63xf32>
    %1914 = vector.extract_strided_slice %1881 {offsets = [0, 1], sizes = [8, 63], strides = [1, 1]} : vector<8x64xf32> to vector<8x63xf32>
    %1915 = vector.broadcast %7 : f32 to vector<8x63xf32>
    %1916 = arith.mulf %1914, %1915 : vector<8x63xf32>
    %1917 = arith.addf %1913, %1916 : vector<8x63xf32>
    %c0_612 = arith.constant 0 : index
    %c0_613 = arith.constant 0 : index
    %c50_614 = arith.constant 50 : index
    %c0_615 = arith.constant 0 : index
    %1918 = vector.load %arg6[%c0_612, %c0_613, %c50_614, %c0_615] : memref<1x6x67x63xf32, #tpu.memory_space<vmem>>, vector<1x1x8x63xf32>
    %1919 = vector.shape_cast %1918 : vector<1x1x8x63xf32> to vector<8x63xf32>
    %1920 = vector.shape_cast %1917 : vector<8x63xf32> to vector<1x1x8x63xf32>
    tpu.vector_store %arg6[%c0_612, %c0_613, %c50_614, %c0_615], %1920 {strides = array<i32>} : memref<1x6x67x63xf32, #tpu.memory_space<vmem>>, vector<1x1x8x63xf32>,
    %c0_616 = arith.constant 0 : index
    %c1_617 = arith.constant 1 : index
    %c50_618 = arith.constant 50 : index
    %c0_619 = arith.constant 0 : index
    %1921 = vector.load %arg5[%c0_616, %c1_617, %c50_618, %c0_619] : memref<1x6x67x63xf32, #tpu.memory_space<vmem>>, vector<1x1x8x63xf32>
    %1922 = vector.shape_cast %1921 : vector<1x1x8x63xf32> to vector<8x63xf32>
    %1923 = vector.broadcast %49 : f32 to vector<8x63xf32>
    %1924 = arith.addf %1922, %1923 : vector<8x63xf32>
    %1925 = vector.extract_strided_slice %1875 {offsets = [0, 0], sizes = [8, 63], strides = [1, 1]} : vector<8x64xf32> to vector<8x63xf32>
    %1926 = vector.broadcast %8 : f32 to vector<8x63xf32>
    %1927 = arith.mulf %1925, %1926 : vector<8x63xf32>
    %1928 = arith.addf %1924, %1927 : vector<8x63xf32>
    %1929 = vector.extract_strided_slice %1875 {offsets = [0, 1], sizes = [8, 63], strides = [1, 1]} : vector<8x64xf32> to vector<8x63xf32>
    %1930 = vector.broadcast %9 : f32 to vector<8x63xf32>
    %1931 = arith.mulf %1929, %1930 : vector<8x63xf32>
    %1932 = arith.addf %1928, %1931 : vector<8x63xf32>
    %1933 = vector.extract_strided_slice %1877 {offsets = [0, 0], sizes = [8, 63], strides = [1, 1]} : vector<8x64xf32> to vector<8x63xf32>
    %1934 = vector.broadcast %10 : f32 to vector<8x63xf32>
    %1935 = arith.mulf %1933, %1934 : vector<8x63xf32>
    %1936 = arith.addf %1932, %1935 : vector<8x63xf32>
    %1937 = vector.extract_strided_slice %1877 {offsets = [0, 1], sizes = [8, 63], strides = [1, 1]} : vector<8x64xf32> to vector<8x63xf32>
    %1938 = vector.broadcast %11 : f32 to vector<8x63xf32>
    %1939 = arith.mulf %1937, %1938 : vector<8x63xf32>
    %1940 = arith.addf %1936, %1939 : vector<8x63xf32>
    %1941 = vector.extract_strided_slice %1879 {offsets = [0, 0], sizes = [8, 63], strides = [1, 1]} : vector<8x64xf32> to vector<8x63xf32>
    %1942 = vector.broadcast %12 : f32 to vector<8x63xf32>
    %1943 = arith.mulf %1941, %1942 : vector<8x63xf32>
    %1944 = arith.addf %1940, %1943 : vector<8x63xf32>
    %1945 = vector.extract_strided_slice %1879 {offsets = [0, 1], sizes = [8, 63], strides = [1, 1]} : vector<8x64xf32> to vector<8x63xf32>
    %1946 = vector.broadcast %13 : f32 to vector<8x63xf32>
    %1947 = arith.mulf %1945, %1946 : vector<8x63xf32>
    %1948 = arith.addf %1944, %1947 : vector<8x63xf32>
    %1949 = vector.extract_strided_slice %1881 {offsets = [0, 0], sizes = [8, 63], strides = [1, 1]} : vector<8x64xf32> to vector<8x63xf32>
    %1950 = vector.broadcast %14 : f32 to vector<8x63xf32>
    %1951 = arith.mulf %1949, %1950 : vector<8x63xf32>
    %1952 = arith.addf %1948, %1951 : vector<8x63xf32>
    %1953 = vector.extract_strided_slice %1881 {offsets = [0, 1], sizes = [8, 63], strides = [1, 1]} : vector<8x64xf32> to vector<8x63xf32>
    %1954 = vector.broadcast %15 : f32 to vector<8x63xf32>
    %1955 = arith.mulf %1953, %1954 : vector<8x63xf32>
    %1956 = arith.addf %1952, %1955 : vector<8x63xf32>
    %c0_620 = arith.constant 0 : index
    %c1_621 = arith.constant 1 : index
    %c50_622 = arith.constant 50 : index
    %c0_623 = arith.constant 0 : index
    %1957 = vector.load %arg6[%c0_620, %c1_621, %c50_622, %c0_623] : memref<1x6x67x63xf32, #tpu.memory_space<vmem>>, vector<1x1x8x63xf32>
    %1958 = vector.shape_cast %1957 : vector<1x1x8x63xf32> to vector<8x63xf32>
    %1959 = vector.shape_cast %1956 : vector<8x63xf32> to vector<1x1x8x63xf32>
    tpu.vector_store %arg6[%c0_620, %c1_621, %c50_622, %c0_623], %1959 {strides = array<i32>} : memref<1x6x67x63xf32, #tpu.memory_space<vmem>>, vector<1x1x8x63xf32>,
    %c0_624 = arith.constant 0 : index
    %c2_625 = arith.constant 2 : index
    %c50_626 = arith.constant 50 : index
    %c0_627 = arith.constant 0 : index
    %1960 = vector.load %arg5[%c0_624, %c2_625, %c50_626, %c0_627] : memref<1x6x67x63xf32, #tpu.memory_space<vmem>>, vector<1x1x8x63xf32>
    %1961 = vector.shape_cast %1960 : vector<1x1x8x63xf32> to vector<8x63xf32>
    %1962 = vector.broadcast %50 : f32 to vector<8x63xf32>
    %1963 = arith.addf %1961, %1962 : vector<8x63xf32>
    %1964 = vector.extract_strided_slice %1875 {offsets = [0, 0], sizes = [8, 63], strides = [1, 1]} : vector<8x64xf32> to vector<8x63xf32>
    %1965 = vector.broadcast %16 : f32 to vector<8x63xf32>
    %1966 = arith.mulf %1964, %1965 : vector<8x63xf32>
    %1967 = arith.addf %1963, %1966 : vector<8x63xf32>
    %1968 = vector.extract_strided_slice %1875 {offsets = [0, 1], sizes = [8, 63], strides = [1, 1]} : vector<8x64xf32> to vector<8x63xf32>
    %1969 = vector.broadcast %17 : f32 to vector<8x63xf32>
    %1970 = arith.mulf %1968, %1969 : vector<8x63xf32>
    %1971 = arith.addf %1967, %1970 : vector<8x63xf32>
    %1972 = vector.extract_strided_slice %1877 {offsets = [0, 0], sizes = [8, 63], strides = [1, 1]} : vector<8x64xf32> to vector<8x63xf32>
    %1973 = vector.broadcast %18 : f32 to vector<8x63xf32>
    %1974 = arith.mulf %1972, %1973 : vector<8x63xf32>
    %1975 = arith.addf %1971, %1974 : vector<8x63xf32>
    %1976 = vector.extract_strided_slice %1877 {offsets = [0, 1], sizes = [8, 63], strides = [1, 1]} : vector<8x64xf32> to vector<8x63xf32>
    %1977 = vector.broadcast %19 : f32 to vector<8x63xf32>
    %1978 = arith.mulf %1976, %1977 : vector<8x63xf32>
    %1979 = arith.addf %1975, %1978 : vector<8x63xf32>
    %1980 = vector.extract_strided_slice %1879 {offsets = [0, 0], sizes = [8, 63], strides = [1, 1]} : vector<8x64xf32> to vector<8x63xf32>
    %1981 = vector.broadcast %20 : f32 to vector<8x63xf32>
    %1982 = arith.mulf %1980, %1981 : vector<8x63xf32>
    %1983 = arith.addf %1979, %1982 : vector<8x63xf32>
    %1984 = vector.extract_strided_slice %1879 {offsets = [0, 1], sizes = [8, 63], strides = [1, 1]} : vector<8x64xf32> to vector<8x63xf32>
    %1985 = vector.broadcast %21 : f32 to vector<8x63xf32>
    %1986 = arith.mulf %1984, %1985 : vector<8x63xf32>
    %1987 = arith.addf %1983, %1986 : vector<8x63xf32>
    %1988 = vector.extract_strided_slice %1881 {offsets = [0, 0], sizes = [8, 63], strides = [1, 1]} : vector<8x64xf32> to vector<8x63xf32>
    %1989 = vector.broadcast %22 : f32 to vector<8x63xf32>
    %1990 = arith.mulf %1988, %1989 : vector<8x63xf32>
    %1991 = arith.addf %1987, %1990 : vector<8x63xf32>
    %1992 = vector.extract_strided_slice %1881 {offsets = [0, 1], sizes = [8, 63], strides = [1, 1]} : vector<8x64xf32> to vector<8x63xf32>
    %1993 = vector.broadcast %23 : f32 to vector<8x63xf32>
    %1994 = arith.mulf %1992, %1993 : vector<8x63xf32>
    %1995 = arith.addf %1991, %1994 : vector<8x63xf32>
    %c0_628 = arith.constant 0 : index
    %c2_629 = arith.constant 2 : index
    %c50_630 = arith.constant 50 : index
    %c0_631 = arith.constant 0 : index
    %1996 = vector.load %arg6[%c0_628, %c2_629, %c50_630, %c0_631] : memref<1x6x67x63xf32, #tpu.memory_space<vmem>>, vector<1x1x8x63xf32>
    %1997 = vector.shape_cast %1996 : vector<1x1x8x63xf32> to vector<8x63xf32>
    %1998 = vector.shape_cast %1995 : vector<8x63xf32> to vector<1x1x8x63xf32>
    tpu.vector_store %arg6[%c0_628, %c2_629, %c50_630, %c0_631], %1998 {strides = array<i32>} : memref<1x6x67x63xf32, #tpu.memory_space<vmem>>, vector<1x1x8x63xf32>,
    %c0_632 = arith.constant 0 : index
    %c3_633 = arith.constant 3 : index
    %c50_634 = arith.constant 50 : index
    %c0_635 = arith.constant 0 : index
    %1999 = vector.load %arg5[%c0_632, %c3_633, %c50_634, %c0_635] : memref<1x6x67x63xf32, #tpu.memory_space<vmem>>, vector<1x1x8x63xf32>
    %2000 = vector.shape_cast %1999 : vector<1x1x8x63xf32> to vector<8x63xf32>
    %2001 = vector.broadcast %51 : f32 to vector<8x63xf32>
    %2002 = arith.addf %2000, %2001 : vector<8x63xf32>
    %2003 = vector.extract_strided_slice %1875 {offsets = [0, 0], sizes = [8, 63], strides = [1, 1]} : vector<8x64xf32> to vector<8x63xf32>
    %2004 = vector.broadcast %24 : f32 to vector<8x63xf32>
    %2005 = arith.mulf %2003, %2004 : vector<8x63xf32>
    %2006 = arith.addf %2002, %2005 : vector<8x63xf32>
    %2007 = vector.extract_strided_slice %1875 {offsets = [0, 1], sizes = [8, 63], strides = [1, 1]} : vector<8x64xf32> to vector<8x63xf32>
    %2008 = vector.broadcast %25 : f32 to vector<8x63xf32>
    %2009 = arith.mulf %2007, %2008 : vector<8x63xf32>
    %2010 = arith.addf %2006, %2009 : vector<8x63xf32>
    %2011 = vector.extract_strided_slice %1877 {offsets = [0, 0], sizes = [8, 63], strides = [1, 1]} : vector<8x64xf32> to vector<8x63xf32>
    %2012 = vector.broadcast %26 : f32 to vector<8x63xf32>
    %2013 = arith.mulf %2011, %2012 : vector<8x63xf32>
    %2014 = arith.addf %2010, %2013 : vector<8x63xf32>
    %2015 = vector.extract_strided_slice %1877 {offsets = [0, 1], sizes = [8, 63], strides = [1, 1]} : vector<8x64xf32> to vector<8x63xf32>
    %2016 = vector.broadcast %27 : f32 to vector<8x63xf32>
    %2017 = arith.mulf %2015, %2016 : vector<8x63xf32>
    %2018 = arith.addf %2014, %2017 : vector<8x63xf32>
    %2019 = vector.extract_strided_slice %1879 {offsets = [0, 0], sizes = [8, 63], strides = [1, 1]} : vector<8x64xf32> to vector<8x63xf32>
    %2020 = vector.broadcast %28 : f32 to vector<8x63xf32>
    %2021 = arith.mulf %2019, %2020 : vector<8x63xf32>
    %2022 = arith.addf %2018, %2021 : vector<8x63xf32>
    %2023 = vector.extract_strided_slice %1879 {offsets = [0, 1], sizes = [8, 63], strides = [1, 1]} : vector<8x64xf32> to vector<8x63xf32>
    %2024 = vector.broadcast %29 : f32 to vector<8x63xf32>
    %2025 = arith.mulf %2023, %2024 : vector<8x63xf32>
    %2026 = arith.addf %2022, %2025 : vector<8x63xf32>
    %2027 = vector.extract_strided_slice %1881 {offsets = [0, 0], sizes = [8, 63], strides = [1, 1]} : vector<8x64xf32> to vector<8x63xf32>
    %2028 = vector.broadcast %30 : f32 to vector<8x63xf32>
    %2029 = arith.mulf %2027, %2028 : vector<8x63xf32>
    %2030 = arith.addf %2026, %2029 : vector<8x63xf32>
    %2031 = vector.extract_strided_slice %1881 {offsets = [0, 1], sizes = [8, 63], strides = [1, 1]} : vector<8x64xf32> to vector<8x63xf32>
    %2032 = vector.broadcast %31 : f32 to vector<8x63xf32>
    %2033 = arith.mulf %2031, %2032 : vector<8x63xf32>
    %2034 = arith.addf %2030, %2033 : vector<8x63xf32>
    %c0_636 = arith.constant 0 : index
    %c3_637 = arith.constant 3 : index
    %c50_638 = arith.constant 50 : index
    %c0_639 = arith.constant 0 : index
    %2035 = vector.load %arg6[%c0_636, %c3_637, %c50_638, %c0_639] : memref<1x6x67x63xf32, #tpu.memory_space<vmem>>, vector<1x1x8x63xf32>
    %2036 = vector.shape_cast %2035 : vector<1x1x8x63xf32> to vector<8x63xf32>
    %2037 = vector.shape_cast %2034 : vector<8x63xf32> to vector<1x1x8x63xf32>
    tpu.vector_store %arg6[%c0_636, %c3_637, %c50_638, %c0_639], %2037 {strides = array<i32>} : memref<1x6x67x63xf32, #tpu.memory_space<vmem>>, vector<1x1x8x63xf32>,
    %c0_640 = arith.constant 0 : index
    %c4_641 = arith.constant 4 : index
    %c50_642 = arith.constant 50 : index
    %c0_643 = arith.constant 0 : index
    %2038 = vector.load %arg5[%c0_640, %c4_641, %c50_642, %c0_643] : memref<1x6x67x63xf32, #tpu.memory_space<vmem>>, vector<1x1x8x63xf32>
    %2039 = vector.shape_cast %2038 : vector<1x1x8x63xf32> to vector<8x63xf32>
    %2040 = vector.broadcast %52 : f32 to vector<8x63xf32>
    %2041 = arith.addf %2039, %2040 : vector<8x63xf32>
    %2042 = vector.extract_strided_slice %1875 {offsets = [0, 0], sizes = [8, 63], strides = [1, 1]} : vector<8x64xf32> to vector<8x63xf32>
    %2043 = vector.broadcast %32 : f32 to vector<8x63xf32>
    %2044 = arith.mulf %2042, %2043 : vector<8x63xf32>
    %2045 = arith.addf %2041, %2044 : vector<8x63xf32>
    %2046 = vector.extract_strided_slice %1875 {offsets = [0, 1], sizes = [8, 63], strides = [1, 1]} : vector<8x64xf32> to vector<8x63xf32>
    %2047 = vector.broadcast %33 : f32 to vector<8x63xf32>
    %2048 = arith.mulf %2046, %2047 : vector<8x63xf32>
    %2049 = arith.addf %2045, %2048 : vector<8x63xf32>
    %2050 = vector.extract_strided_slice %1877 {offsets = [0, 0], sizes = [8, 63], strides = [1, 1]} : vector<8x64xf32> to vector<8x63xf32>
    %2051 = vector.broadcast %34 : f32 to vector<8x63xf32>
    %2052 = arith.mulf %2050, %2051 : vector<8x63xf32>
    %2053 = arith.addf %2049, %2052 : vector<8x63xf32>
    %2054 = vector.extract_strided_slice %1877 {offsets = [0, 1], sizes = [8, 63], strides = [1, 1]} : vector<8x64xf32> to vector<8x63xf32>
    %2055 = vector.broadcast %35 : f32 to vector<8x63xf32>
    %2056 = arith.mulf %2054, %2055 : vector<8x63xf32>
    %2057 = arith.addf %2053, %2056 : vector<8x63xf32>
    %2058 = vector.extract_strided_slice %1879 {offsets = [0, 0], sizes = [8, 63], strides = [1, 1]} : vector<8x64xf32> to vector<8x63xf32>
    %2059 = vector.broadcast %36 : f32 to vector<8x63xf32>
    %2060 = arith.mulf %2058, %2059 : vector<8x63xf32>
    %2061 = arith.addf %2057, %2060 : vector<8x63xf32>
    %2062 = vector.extract_strided_slice %1879 {offsets = [0, 1], sizes = [8, 63], strides = [1, 1]} : vector<8x64xf32> to vector<8x63xf32>
    %2063 = vector.broadcast %37 : f32 to vector<8x63xf32>
    %2064 = arith.mulf %2062, %2063 : vector<8x63xf32>
    %2065 = arith.addf %2061, %2064 : vector<8x63xf32>
    %2066 = vector.extract_strided_slice %1881 {offsets = [0, 0], sizes = [8, 63], strides = [1, 1]} : vector<8x64xf32> to vector<8x63xf32>
    %2067 = vector.broadcast %38 : f32 to vector<8x63xf32>
    %2068 = arith.mulf %2066, %2067 : vector<8x63xf32>
    %2069 = arith.addf %2065, %2068 : vector<8x63xf32>
    %2070 = vector.extract_strided_slice %1881 {offsets = [0, 1], sizes = [8, 63], strides = [1, 1]} : vector<8x64xf32> to vector<8x63xf32>
    %2071 = vector.broadcast %39 : f32 to vector<8x63xf32>
    %2072 = arith.mulf %2070, %2071 : vector<8x63xf32>
    %2073 = arith.addf %2069, %2072 : vector<8x63xf32>
    %c0_644 = arith.constant 0 : index
    %c4_645 = arith.constant 4 : index
    %c50_646 = arith.constant 50 : index
    %c0_647 = arith.constant 0 : index
    %2074 = vector.load %arg6[%c0_644, %c4_645, %c50_646, %c0_647] : memref<1x6x67x63xf32, #tpu.memory_space<vmem>>, vector<1x1x8x63xf32>
    %2075 = vector.shape_cast %2074 : vector<1x1x8x63xf32> to vector<8x63xf32>
    %2076 = vector.shape_cast %2073 : vector<8x63xf32> to vector<1x1x8x63xf32>
    tpu.vector_store %arg6[%c0_644, %c4_645, %c50_646, %c0_647], %2076 {strides = array<i32>} : memref<1x6x67x63xf32, #tpu.memory_space<vmem>>, vector<1x1x8x63xf32>,
    %c0_648 = arith.constant 0 : index
    %c5_649 = arith.constant 5 : index
    %c50_650 = arith.constant 50 : index
    %c0_651 = arith.constant 0 : index
    %2077 = vector.load %arg5[%c0_648, %c5_649, %c50_650, %c0_651] : memref<1x6x67x63xf32, #tpu.memory_space<vmem>>, vector<1x1x8x63xf32>
    %2078 = vector.shape_cast %2077 : vector<1x1x8x63xf32> to vector<8x63xf32>
    %2079 = vector.broadcast %53 : f32 to vector<8x63xf32>
    %2080 = arith.addf %2078, %2079 : vector<8x63xf32>
    %2081 = vector.extract_strided_slice %1875 {offsets = [0, 0], sizes = [8, 63], strides = [1, 1]} : vector<8x64xf32> to vector<8x63xf32>
    %2082 = vector.broadcast %40 : f32 to vector<8x63xf32>
    %2083 = arith.mulf %2081, %2082 : vector<8x63xf32>
    %2084 = arith.addf %2080, %2083 : vector<8x63xf32>
    %2085 = vector.extract_strided_slice %1875 {offsets = [0, 1], sizes = [8, 63], strides = [1, 1]} : vector<8x64xf32> to vector<8x63xf32>
    %2086 = vector.broadcast %41 : f32 to vector<8x63xf32>
    %2087 = arith.mulf %2085, %2086 : vector<8x63xf32>
    %2088 = arith.addf %2084, %2087 : vector<8x63xf32>
    %2089 = vector.extract_strided_slice %1877 {offsets = [0, 0], sizes = [8, 63], strides = [1, 1]} : vector<8x64xf32> to vector<8x63xf32>
    %2090 = vector.broadcast %42 : f32 to vector<8x63xf32>
    %2091 = arith.mulf %2089, %2090 : vector<8x63xf32>
    %2092 = arith.addf %2088, %2091 : vector<8x63xf32>
    %2093 = vector.extract_strided_slice %1877 {offsets = [0, 1], sizes = [8, 63], strides = [1, 1]} : vector<8x64xf32> to vector<8x63xf32>
    %2094 = vector.broadcast %43 : f32 to vector<8x63xf32>
    %2095 = arith.mulf %2093, %2094 : vector<8x63xf32>
    %2096 = arith.addf %2092, %2095 : vector<8x63xf32>
    %2097 = vector.extract_strided_slice %1879 {offsets = [0, 0], sizes = [8, 63], strides = [1, 1]} : vector<8x64xf32> to vector<8x63xf32>
    %2098 = vector.broadcast %44 : f32 to vector<8x63xf32>
    %2099 = arith.mulf %2097, %2098 : vector<8x63xf32>
    %2100 = arith.addf %2096, %2099 : vector<8x63xf32>
    %2101 = vector.extract_strided_slice %1879 {offsets = [0, 1], sizes = [8, 63], strides = [1, 1]} : vector<8x64xf32> to vector<8x63xf32>
    %2102 = vector.broadcast %45 : f32 to vector<8x63xf32>
    %2103 = arith.mulf %2101, %2102 : vector<8x63xf32>
    %2104 = arith.addf %2100, %2103 : vector<8x63xf32>
    %2105 = vector.extract_strided_slice %1881 {offsets = [0, 0], sizes = [8, 63], strides = [1, 1]} : vector<8x64xf32> to vector<8x63xf32>
    %2106 = vector.broadcast %46 : f32 to vector<8x63xf32>
    %2107 = arith.mulf %2105, %2106 : vector<8x63xf32>
    %2108 = arith.addf %2104, %2107 : vector<8x63xf32>
    %2109 = vector.extract_strided_slice %1881 {offsets = [0, 1], sizes = [8, 63], strides = [1, 1]} : vector<8x64xf32> to vector<8x63xf32>
    %2110 = vector.broadcast %47 : f32 to vector<8x63xf32>
    %2111 = arith.mulf %2109, %2110 : vector<8x63xf32>
    %2112 = arith.addf %2108, %2111 : vector<8x63xf32>
    %c0_652 = arith.constant 0 : index
    %c5_653 = arith.constant 5 : index
    %c50_654 = arith.constant 50 : index
    %c0_655 = arith.constant 0 : index
    %2113 = vector.load %arg6[%c0_652, %c5_653, %c50_654, %c0_655] : memref<1x6x67x63xf32, #tpu.memory_space<vmem>>, vector<1x1x8x63xf32>
    %2114 = vector.shape_cast %2113 : vector<1x1x8x63xf32> to vector<8x63xf32>
    %2115 = vector.shape_cast %2112 : vector<8x63xf32> to vector<1x1x8x63xf32>
    tpu.vector_store %arg6[%c0_652, %c5_653, %c50_654, %c0_655], %2115 {strides = array<i32>} : memref<1x6x67x63xf32, #tpu.memory_space<vmem>>, vector<1x1x8x63xf32>,
    %c0_656 = arith.constant 0 : index
    %c0_657 = arith.constant 0 : index
    %c56 = arith.constant 56 : index
    %c0_658 = arith.constant 0 : index
    %2116 = vector.load %arg4[%c0_656, %c0_657, %c56, %c0_658] : memref<1x2x64x64xf32, #tpu.memory_space<vmem>>, vector<1x1x7x64xf32>
    %2117 = vector.shape_cast %2116 : vector<1x1x7x64xf32> to vector<7x64xf32>
    %c0_659 = arith.constant 0 : index
    %c0_660 = arith.constant 0 : index
    %c57 = arith.constant 57 : index
    %c0_661 = arith.constant 0 : index
    %2118 = vector.load %arg4[%c0_659, %c0_660, %c57, %c0_661] : memref<1x2x64x64xf32, #tpu.memory_space<vmem>>, vector<1x1x7x64xf32>
    %2119 = vector.shape_cast %2118 : vector<1x1x7x64xf32> to vector<7x64xf32>
    %c0_662 = arith.constant 0 : index
    %c1_663 = arith.constant 1 : index
    %c56_664 = arith.constant 56 : index
    %c0_665 = arith.constant 0 : index
    %2120 = vector.load %arg4[%c0_662, %c1_663, %c56_664, %c0_665] : memref<1x2x64x64xf32, #tpu.memory_space<vmem>>, vector<1x1x7x64xf32>
    %2121 = vector.shape_cast %2120 : vector<1x1x7x64xf32> to vector<7x64xf32>
    %c0_666 = arith.constant 0 : index
    %c1_667 = arith.constant 1 : index
    %c57_668 = arith.constant 57 : index
    %c0_669 = arith.constant 0 : index
    %2122 = vector.load %arg4[%c0_666, %c1_667, %c57_668, %c0_669] : memref<1x2x64x64xf32, #tpu.memory_space<vmem>>, vector<1x1x7x64xf32>
    %2123 = vector.shape_cast %2122 : vector<1x1x7x64xf32> to vector<7x64xf32>
    %c0_670 = arith.constant 0 : index
    %c0_671 = arith.constant 0 : index
    %c58 = arith.constant 58 : index
    %c0_672 = arith.constant 0 : index
    %2124 = vector.load %arg5[%c0_670, %c0_671, %c58, %c0_672] : memref<1x6x67x63xf32, #tpu.memory_space<vmem>>, vector<1x1x7x63xf32>
    %2125 = vector.shape_cast %2124 : vector<1x1x7x63xf32> to vector<7x63xf32>
    %2126 = vector.broadcast %48 : f32 to vector<7x63xf32>
    %2127 = arith.addf %2125, %2126 : vector<7x63xf32>
    %2128 = vector.extract_strided_slice %2117 {offsets = [0, 0], sizes = [7, 63], strides = [1, 1]} : vector<7x64xf32> to vector<7x63xf32>
    %2129 = vector.broadcast %0 : f32 to vector<7x63xf32>
    %2130 = arith.mulf %2128, %2129 : vector<7x63xf32>
    %2131 = arith.addf %2127, %2130 : vector<7x63xf32>
    %2132 = vector.extract_strided_slice %2117 {offsets = [0, 1], sizes = [7, 63], strides = [1, 1]} : vector<7x64xf32> to vector<7x63xf32>
    %2133 = vector.broadcast %1 : f32 to vector<7x63xf32>
    %2134 = arith.mulf %2132, %2133 : vector<7x63xf32>
    %2135 = arith.addf %2131, %2134 : vector<7x63xf32>
    %2136 = vector.extract_strided_slice %2119 {offsets = [0, 0], sizes = [7, 63], strides = [1, 1]} : vector<7x64xf32> to vector<7x63xf32>
    %2137 = vector.broadcast %2 : f32 to vector<7x63xf32>
    %2138 = arith.mulf %2136, %2137 : vector<7x63xf32>
    %2139 = arith.addf %2135, %2138 : vector<7x63xf32>
    %2140 = vector.extract_strided_slice %2119 {offsets = [0, 1], sizes = [7, 63], strides = [1, 1]} : vector<7x64xf32> to vector<7x63xf32>
    %2141 = vector.broadcast %3 : f32 to vector<7x63xf32>
    %2142 = arith.mulf %2140, %2141 : vector<7x63xf32>
    %2143 = arith.addf %2139, %2142 : vector<7x63xf32>
    %2144 = vector.extract_strided_slice %2121 {offsets = [0, 0], sizes = [7, 63], strides = [1, 1]} : vector<7x64xf32> to vector<7x63xf32>
    %2145 = vector.broadcast %4 : f32 to vector<7x63xf32>
    %2146 = arith.mulf %2144, %2145 : vector<7x63xf32>
    %2147 = arith.addf %2143, %2146 : vector<7x63xf32>
    %2148 = vector.extract_strided_slice %2121 {offsets = [0, 1], sizes = [7, 63], strides = [1, 1]} : vector<7x64xf32> to vector<7x63xf32>
    %2149 = vector.broadcast %5 : f32 to vector<7x63xf32>
    %2150 = arith.mulf %2148, %2149 : vector<7x63xf32>
    %2151 = arith.addf %2147, %2150 : vector<7x63xf32>
    %2152 = vector.extract_strided_slice %2123 {offsets = [0, 0], sizes = [7, 63], strides = [1, 1]} : vector<7x64xf32> to vector<7x63xf32>
    %2153 = vector.broadcast %6 : f32 to vector<7x63xf32>
    %2154 = arith.mulf %2152, %2153 : vector<7x63xf32>
    %2155 = arith.addf %2151, %2154 : vector<7x63xf32>
    %2156 = vector.extract_strided_slice %2123 {offsets = [0, 1], sizes = [7, 63], strides = [1, 1]} : vector<7x64xf32> to vector<7x63xf32>
    %2157 = vector.broadcast %7 : f32 to vector<7x63xf32>
    %2158 = arith.mulf %2156, %2157 : vector<7x63xf32>
    %2159 = arith.addf %2155, %2158 : vector<7x63xf32>
    %c0_673 = arith.constant 0 : index
    %c0_674 = arith.constant 0 : index
    %c58_675 = arith.constant 58 : index
    %c0_676 = arith.constant 0 : index
    %2160 = vector.load %arg6[%c0_673, %c0_674, %c58_675, %c0_676] : memref<1x6x67x63xf32, #tpu.memory_space<vmem>>, vector<1x1x7x63xf32>
    %2161 = vector.shape_cast %2160 : vector<1x1x7x63xf32> to vector<7x63xf32>
    %2162 = vector.shape_cast %2159 : vector<7x63xf32> to vector<1x1x7x63xf32>
    tpu.vector_store %arg6[%c0_673, %c0_674, %c58_675, %c0_676], %2162 {strides = array<i32>} : memref<1x6x67x63xf32, #tpu.memory_space<vmem>>, vector<1x1x7x63xf32>,
    %c0_677 = arith.constant 0 : index
    %c1_678 = arith.constant 1 : index
    %c58_679 = arith.constant 58 : index
    %c0_680 = arith.constant 0 : index
    %2163 = vector.load %arg5[%c0_677, %c1_678, %c58_679, %c0_680] : memref<1x6x67x63xf32, #tpu.memory_space<vmem>>, vector<1x1x7x63xf32>
    %2164 = vector.shape_cast %2163 : vector<1x1x7x63xf32> to vector<7x63xf32>
    %2165 = vector.broadcast %49 : f32 to vector<7x63xf32>
    %2166 = arith.addf %2164, %2165 : vector<7x63xf32>
    %2167 = vector.extract_strided_slice %2117 {offsets = [0, 0], sizes = [7, 63], strides = [1, 1]} : vector<7x64xf32> to vector<7x63xf32>
    %2168 = vector.broadcast %8 : f32 to vector<7x63xf32>
    %2169 = arith.mulf %2167, %2168 : vector<7x63xf32>
    %2170 = arith.addf %2166, %2169 : vector<7x63xf32>
    %2171 = vector.extract_strided_slice %2117 {offsets = [0, 1], sizes = [7, 63], strides = [1, 1]} : vector<7x64xf32> to vector<7x63xf32>
    %2172 = vector.broadcast %9 : f32 to vector<7x63xf32>
    %2173 = arith.mulf %2171, %2172 : vector<7x63xf32>
    %2174 = arith.addf %2170, %2173 : vector<7x63xf32>
    %2175 = vector.extract_strided_slice %2119 {offsets = [0, 0], sizes = [7, 63], strides = [1, 1]} : vector<7x64xf32> to vector<7x63xf32>
    %2176 = vector.broadcast %10 : f32 to vector<7x63xf32>
    %2177 = arith.mulf %2175, %2176 : vector<7x63xf32>
    %2178 = arith.addf %2174, %2177 : vector<7x63xf32>
    %2179 = vector.extract_strided_slice %2119 {offsets = [0, 1], sizes = [7, 63], strides = [1, 1]} : vector<7x64xf32> to vector<7x63xf32>
    %2180 = vector.broadcast %11 : f32 to vector<7x63xf32>
    %2181 = arith.mulf %2179, %2180 : vector<7x63xf32>
    %2182 = arith.addf %2178, %2181 : vector<7x63xf32>
    %2183 = vector.extract_strided_slice %2121 {offsets = [0, 0], sizes = [7, 63], strides = [1, 1]} : vector<7x64xf32> to vector<7x63xf32>
    %2184 = vector.broadcast %12 : f32 to vector<7x63xf32>
    %2185 = arith.mulf %2183, %2184 : vector<7x63xf32>
    %2186 = arith.addf %2182, %2185 : vector<7x63xf32>
    %2187 = vector.extract_strided_slice %2121 {offsets = [0, 1], sizes = [7, 63], strides = [1, 1]} : vector<7x64xf32> to vector<7x63xf32>
    %2188 = vector.broadcast %13 : f32 to vector<7x63xf32>
    %2189 = arith.mulf %2187, %2188 : vector<7x63xf32>
    %2190 = arith.addf %2186, %2189 : vector<7x63xf32>
    %2191 = vector.extract_strided_slice %2123 {offsets = [0, 0], sizes = [7, 63], strides = [1, 1]} : vector<7x64xf32> to vector<7x63xf32>
    %2192 = vector.broadcast %14 : f32 to vector<7x63xf32>
    %2193 = arith.mulf %2191, %2192 : vector<7x63xf32>
    %2194 = arith.addf %2190, %2193 : vector<7x63xf32>
    %2195 = vector.extract_strided_slice %2123 {offsets = [0, 1], sizes = [7, 63], strides = [1, 1]} : vector<7x64xf32> to vector<7x63xf32>
    %2196 = vector.broadcast %15 : f32 to vector<7x63xf32>
    %2197 = arith.mulf %2195, %2196 : vector<7x63xf32>
    %2198 = arith.addf %2194, %2197 : vector<7x63xf32>
    %c0_681 = arith.constant 0 : index
    %c1_682 = arith.constant 1 : index
    %c58_683 = arith.constant 58 : index
    %c0_684 = arith.constant 0 : index
    %2199 = vector.load %arg6[%c0_681, %c1_682, %c58_683, %c0_684] : memref<1x6x67x63xf32, #tpu.memory_space<vmem>>, vector<1x1x7x63xf32>
    %2200 = vector.shape_cast %2199 : vector<1x1x7x63xf32> to vector<7x63xf32>
    %2201 = vector.shape_cast %2198 : vector<7x63xf32> to vector<1x1x7x63xf32>
    tpu.vector_store %arg6[%c0_681, %c1_682, %c58_683, %c0_684], %2201 {strides = array<i32>} : memref<1x6x67x63xf32, #tpu.memory_space<vmem>>, vector<1x1x7x63xf32>,
    %c0_685 = arith.constant 0 : index
    %c2_686 = arith.constant 2 : index
    %c58_687 = arith.constant 58 : index
    %c0_688 = arith.constant 0 : index
    %2202 = vector.load %arg5[%c0_685, %c2_686, %c58_687, %c0_688] : memref<1x6x67x63xf32, #tpu.memory_space<vmem>>, vector<1x1x7x63xf32>
    %2203 = vector.shape_cast %2202 : vector<1x1x7x63xf32> to vector<7x63xf32>
    %2204 = vector.broadcast %50 : f32 to vector<7x63xf32>
    %2205 = arith.addf %2203, %2204 : vector<7x63xf32>
    %2206 = vector.extract_strided_slice %2117 {offsets = [0, 0], sizes = [7, 63], strides = [1, 1]} : vector<7x64xf32> to vector<7x63xf32>
    %2207 = vector.broadcast %16 : f32 to vector<7x63xf32>
    %2208 = arith.mulf %2206, %2207 : vector<7x63xf32>
    %2209 = arith.addf %2205, %2208 : vector<7x63xf32>
    %2210 = vector.extract_strided_slice %2117 {offsets = [0, 1], sizes = [7, 63], strides = [1, 1]} : vector<7x64xf32> to vector<7x63xf32>
    %2211 = vector.broadcast %17 : f32 to vector<7x63xf32>
    %2212 = arith.mulf %2210, %2211 : vector<7x63xf32>
    %2213 = arith.addf %2209, %2212 : vector<7x63xf32>
    %2214 = vector.extract_strided_slice %2119 {offsets = [0, 0], sizes = [7, 63], strides = [1, 1]} : vector<7x64xf32> to vector<7x63xf32>
    %2215 = vector.broadcast %18 : f32 to vector<7x63xf32>
    %2216 = arith.mulf %2214, %2215 : vector<7x63xf32>
    %2217 = arith.addf %2213, %2216 : vector<7x63xf32>
    %2218 = vector.extract_strided_slice %2119 {offsets = [0, 1], sizes = [7, 63], strides = [1, 1]} : vector<7x64xf32> to vector<7x63xf32>
    %2219 = vector.broadcast %19 : f32 to vector<7x63xf32>
    %2220 = arith.mulf %2218, %2219 : vector<7x63xf32>
    %2221 = arith.addf %2217, %2220 : vector<7x63xf32>
    %2222 = vector.extract_strided_slice %2121 {offsets = [0, 0], sizes = [7, 63], strides = [1, 1]} : vector<7x64xf32> to vector<7x63xf32>
    %2223 = vector.broadcast %20 : f32 to vector<7x63xf32>
    %2224 = arith.mulf %2222, %2223 : vector<7x63xf32>
    %2225 = arith.addf %2221, %2224 : vector<7x63xf32>
    %2226 = vector.extract_strided_slice %2121 {offsets = [0, 1], sizes = [7, 63], strides = [1, 1]} : vector<7x64xf32> to vector<7x63xf32>
    %2227 = vector.broadcast %21 : f32 to vector<7x63xf32>
    %2228 = arith.mulf %2226, %2227 : vector<7x63xf32>
    %2229 = arith.addf %2225, %2228 : vector<7x63xf32>
    %2230 = vector.extract_strided_slice %2123 {offsets = [0, 0], sizes = [7, 63], strides = [1, 1]} : vector<7x64xf32> to vector<7x63xf32>
    %2231 = vector.broadcast %22 : f32 to vector<7x63xf32>
    %2232 = arith.mulf %2230, %2231 : vector<7x63xf32>
    %2233 = arith.addf %2229, %2232 : vector<7x63xf32>
    %2234 = vector.extract_strided_slice %2123 {offsets = [0, 1], sizes = [7, 63], strides = [1, 1]} : vector<7x64xf32> to vector<7x63xf32>
    %2235 = vector.broadcast %23 : f32 to vector<7x63xf32>
    %2236 = arith.mulf %2234, %2235 : vector<7x63xf32>
    %2237 = arith.addf %2233, %2236 : vector<7x63xf32>
    %c0_689 = arith.constant 0 : index
    %c2_690 = arith.constant 2 : index
    %c58_691 = arith.constant 58 : index
    %c0_692 = arith.constant 0 : index
    %2238 = vector.load %arg6[%c0_689, %c2_690, %c58_691, %c0_692] : memref<1x6x67x63xf32, #tpu.memory_space<vmem>>, vector<1x1x7x63xf32>
    %2239 = vector.shape_cast %2238 : vector<1x1x7x63xf32> to vector<7x63xf32>
    %2240 = vector.shape_cast %2237 : vector<7x63xf32> to vector<1x1x7x63xf32>
    tpu.vector_store %arg6[%c0_689, %c2_690, %c58_691, %c0_692], %2240 {strides = array<i32>} : memref<1x6x67x63xf32, #tpu.memory_space<vmem>>, vector<1x1x7x63xf32>,
    %c0_693 = arith.constant 0 : index
    %c3_694 = arith.constant 3 : index
    %c58_695 = arith.constant 58 : index
    %c0_696 = arith.constant 0 : index
    %2241 = vector.load %arg5[%c0_693, %c3_694, %c58_695, %c0_696] : memref<1x6x67x63xf32, #tpu.memory_space<vmem>>, vector<1x1x7x63xf32>
    %2242 = vector.shape_cast %2241 : vector<1x1x7x63xf32> to vector<7x63xf32>
    %2243 = vector.broadcast %51 : f32 to vector<7x63xf32>
    %2244 = arith.addf %2242, %2243 : vector<7x63xf32>
    %2245 = vector.extract_strided_slice %2117 {offsets = [0, 0], sizes = [7, 63], strides = [1, 1]} : vector<7x64xf32> to vector<7x63xf32>
    %2246 = vector.broadcast %24 : f32 to vector<7x63xf32>
    %2247 = arith.mulf %2245, %2246 : vector<7x63xf32>
    %2248 = arith.addf %2244, %2247 : vector<7x63xf32>
    %2249 = vector.extract_strided_slice %2117 {offsets = [0, 1], sizes = [7, 63], strides = [1, 1]} : vector<7x64xf32> to vector<7x63xf32>
    %2250 = vector.broadcast %25 : f32 to vector<7x63xf32>
    %2251 = arith.mulf %2249, %2250 : vector<7x63xf32>
    %2252 = arith.addf %2248, %2251 : vector<7x63xf32>
    %2253 = vector.extract_strided_slice %2119 {offsets = [0, 0], sizes = [7, 63], strides = [1, 1]} : vector<7x64xf32> to vector<7x63xf32>
    %2254 = vector.broadcast %26 : f32 to vector<7x63xf32>
    %2255 = arith.mulf %2253, %2254 : vector<7x63xf32>
    %2256 = arith.addf %2252, %2255 : vector<7x63xf32>
    %2257 = vector.extract_strided_slice %2119 {offsets = [0, 1], sizes = [7, 63], strides = [1, 1]} : vector<7x64xf32> to vector<7x63xf32>
    %2258 = vector.broadcast %27 : f32 to vector<7x63xf32>
    %2259 = arith.mulf %2257, %2258 : vector<7x63xf32>
    %2260 = arith.addf %2256, %2259 : vector<7x63xf32>
    %2261 = vector.extract_strided_slice %2121 {offsets = [0, 0], sizes = [7, 63], strides = [1, 1]} : vector<7x64xf32> to vector<7x63xf32>
    %2262 = vector.broadcast %28 : f32 to vector<7x63xf32>
    %2263 = arith.mulf %2261, %2262 : vector<7x63xf32>
    %2264 = arith.addf %2260, %2263 : vector<7x63xf32>
    %2265 = vector.extract_strided_slice %2121 {offsets = [0, 1], sizes = [7, 63], strides = [1, 1]} : vector<7x64xf32> to vector<7x63xf32>
    %2266 = vector.broadcast %29 : f32 to vector<7x63xf32>
    %2267 = arith.mulf %2265, %2266 : vector<7x63xf32>
    %2268 = arith.addf %2264, %2267 : vector<7x63xf32>
    %2269 = vector.extract_strided_slice %2123 {offsets = [0, 0], sizes = [7, 63], strides = [1, 1]} : vector<7x64xf32> to vector<7x63xf32>
    %2270 = vector.broadcast %30 : f32 to vector<7x63xf32>
    %2271 = arith.mulf %2269, %2270 : vector<7x63xf32>
    %2272 = arith.addf %2268, %2271 : vector<7x63xf32>
    %2273 = vector.extract_strided_slice %2123 {offsets = [0, 1], sizes = [7, 63], strides = [1, 1]} : vector<7x64xf32> to vector<7x63xf32>
    %2274 = vector.broadcast %31 : f32 to vector<7x63xf32>
    %2275 = arith.mulf %2273, %2274 : vector<7x63xf32>
    %2276 = arith.addf %2272, %2275 : vector<7x63xf32>
    %c0_697 = arith.constant 0 : index
    %c3_698 = arith.constant 3 : index
    %c58_699 = arith.constant 58 : index
    %c0_700 = arith.constant 0 : index
    %2277 = vector.load %arg6[%c0_697, %c3_698, %c58_699, %c0_700] : memref<1x6x67x63xf32, #tpu.memory_space<vmem>>, vector<1x1x7x63xf32>
    %2278 = vector.shape_cast %2277 : vector<1x1x7x63xf32> to vector<7x63xf32>
    %2279 = vector.shape_cast %2276 : vector<7x63xf32> to vector<1x1x7x63xf32>
    tpu.vector_store %arg6[%c0_697, %c3_698, %c58_699, %c0_700], %2279 {strides = array<i32>} : memref<1x6x67x63xf32, #tpu.memory_space<vmem>>, vector<1x1x7x63xf32>,
    %c0_701 = arith.constant 0 : index
    %c4_702 = arith.constant 4 : index
    %c58_703 = arith.constant 58 : index
    %c0_704 = arith.constant 0 : index
    %2280 = vector.load %arg5[%c0_701, %c4_702, %c58_703, %c0_704] : memref<1x6x67x63xf32, #tpu.memory_space<vmem>>, vector<1x1x7x63xf32>
    %2281 = vector.shape_cast %2280 : vector<1x1x7x63xf32> to vector<7x63xf32>
    %2282 = vector.broadcast %52 : f32 to vector<7x63xf32>
    %2283 = arith.addf %2281, %2282 : vector<7x63xf32>
    %2284 = vector.extract_strided_slice %2117 {offsets = [0, 0], sizes = [7, 63], strides = [1, 1]} : vector<7x64xf32> to vector<7x63xf32>
    %2285 = vector.broadcast %32 : f32 to vector<7x63xf32>
    %2286 = arith.mulf %2284, %2285 : vector<7x63xf32>
    %2287 = arith.addf %2283, %2286 : vector<7x63xf32>
    %2288 = vector.extract_strided_slice %2117 {offsets = [0, 1], sizes = [7, 63], strides = [1, 1]} : vector<7x64xf32> to vector<7x63xf32>
    %2289 = vector.broadcast %33 : f32 to vector<7x63xf32>
    %2290 = arith.mulf %2288, %2289 : vector<7x63xf32>
    %2291 = arith.addf %2287, %2290 : vector<7x63xf32>
    %2292 = vector.extract_strided_slice %2119 {offsets = [0, 0], sizes = [7, 63], strides = [1, 1]} : vector<7x64xf32> to vector<7x63xf32>
    %2293 = vector.broadcast %34 : f32 to vector<7x63xf32>
    %2294 = arith.mulf %2292, %2293 : vector<7x63xf32>
    %2295 = arith.addf %2291, %2294 : vector<7x63xf32>
    %2296 = vector.extract_strided_slice %2119 {offsets = [0, 1], sizes = [7, 63], strides = [1, 1]} : vector<7x64xf32> to vector<7x63xf32>
    %2297 = vector.broadcast %35 : f32 to vector<7x63xf32>
    %2298 = arith.mulf %2296, %2297 : vector<7x63xf32>
    %2299 = arith.addf %2295, %2298 : vector<7x63xf32>
    %2300 = vector.extract_strided_slice %2121 {offsets = [0, 0], sizes = [7, 63], strides = [1, 1]} : vector<7x64xf32> to vector<7x63xf32>
    %2301 = vector.broadcast %36 : f32 to vector<7x63xf32>
    %2302 = arith.mulf %2300, %2301 : vector<7x63xf32>
    %2303 = arith.addf %2299, %2302 : vector<7x63xf32>
    %2304 = vector.extract_strided_slice %2121 {offsets = [0, 1], sizes = [7, 63], strides = [1, 1]} : vector<7x64xf32> to vector<7x63xf32>
    %2305 = vector.broadcast %37 : f32 to vector<7x63xf32>
    %2306 = arith.mulf %2304, %2305 : vector<7x63xf32>
    %2307 = arith.addf %2303, %2306 : vector<7x63xf32>
    %2308 = vector.extract_strided_slice %2123 {offsets = [0, 0], sizes = [7, 63], strides = [1, 1]} : vector<7x64xf32> to vector<7x63xf32>
    %2309 = vector.broadcast %38 : f32 to vector<7x63xf32>
    %2310 = arith.mulf %2308, %2309 : vector<7x63xf32>
    %2311 = arith.addf %2307, %2310 : vector<7x63xf32>
    %2312 = vector.extract_strided_slice %2123 {offsets = [0, 1], sizes = [7, 63], strides = [1, 1]} : vector<7x64xf32> to vector<7x63xf32>
    %2313 = vector.broadcast %39 : f32 to vector<7x63xf32>
    %2314 = arith.mulf %2312, %2313 : vector<7x63xf32>
    %2315 = arith.addf %2311, %2314 : vector<7x63xf32>
    %c0_705 = arith.constant 0 : index
    %c4_706 = arith.constant 4 : index
    %c58_707 = arith.constant 58 : index
    %c0_708 = arith.constant 0 : index
    %2316 = vector.load %arg6[%c0_705, %c4_706, %c58_707, %c0_708] : memref<1x6x67x63xf32, #tpu.memory_space<vmem>>, vector<1x1x7x63xf32>
    %2317 = vector.shape_cast %2316 : vector<1x1x7x63xf32> to vector<7x63xf32>
    %2318 = vector.shape_cast %2315 : vector<7x63xf32> to vector<1x1x7x63xf32>
    tpu.vector_store %arg6[%c0_705, %c4_706, %c58_707, %c0_708], %2318 {strides = array<i32>} : memref<1x6x67x63xf32, #tpu.memory_space<vmem>>, vector<1x1x7x63xf32>,
    %c0_709 = arith.constant 0 : index
    %c5_710 = arith.constant 5 : index
    %c58_711 = arith.constant 58 : index
    %c0_712 = arith.constant 0 : index
    %2319 = vector.load %arg5[%c0_709, %c5_710, %c58_711, %c0_712] : memref<1x6x67x63xf32, #tpu.memory_space<vmem>>, vector<1x1x7x63xf32>
    %2320 = vector.shape_cast %2319 : vector<1x1x7x63xf32> to vector<7x63xf32>
    %2321 = vector.broadcast %53 : f32 to vector<7x63xf32>
    %2322 = arith.addf %2320, %2321 : vector<7x63xf32>
    %2323 = vector.extract_strided_slice %2117 {offsets = [0, 0], sizes = [7, 63], strides = [1, 1]} : vector<7x64xf32> to vector<7x63xf32>
    %2324 = vector.broadcast %40 : f32 to vector<7x63xf32>
    %2325 = arith.mulf %2323, %2324 : vector<7x63xf32>
    %2326 = arith.addf %2322, %2325 : vector<7x63xf32>
    %2327 = vector.extract_strided_slice %2117 {offsets = [0, 1], sizes = [7, 63], strides = [1, 1]} : vector<7x64xf32> to vector<7x63xf32>
    %2328 = vector.broadcast %41 : f32 to vector<7x63xf32>
    %2329 = arith.mulf %2327, %2328 : vector<7x63xf32>
    %2330 = arith.addf %2326, %2329 : vector<7x63xf32>
    %2331 = vector.extract_strided_slice %2119 {offsets = [0, 0], sizes = [7, 63], strides = [1, 1]} : vector<7x64xf32> to vector<7x63xf32>
    %2332 = vector.broadcast %42 : f32 to vector<7x63xf32>
    %2333 = arith.mulf %2331, %2332 : vector<7x63xf32>
    %2334 = arith.addf %2330, %2333 : vector<7x63xf32>
    %2335 = vector.extract_strided_slice %2119 {offsets = [0, 1], sizes = [7, 63], strides = [1, 1]} : vector<7x64xf32> to vector<7x63xf32>
    %2336 = vector.broadcast %43 : f32 to vector<7x63xf32>
    %2337 = arith.mulf %2335, %2336 : vector<7x63xf32>
    %2338 = arith.addf %2334, %2337 : vector<7x63xf32>
    %2339 = vector.extract_strided_slice %2121 {offsets = [0, 0], sizes = [7, 63], strides = [1, 1]} : vector<7x64xf32> to vector<7x63xf32>
    %2340 = vector.broadcast %44 : f32 to vector<7x63xf32>
    %2341 = arith.mulf %2339, %2340 : vector<7x63xf32>
    %2342 = arith.addf %2338, %2341 : vector<7x63xf32>
    %2343 = vector.extract_strided_slice %2121 {offsets = [0, 1], sizes = [7, 63], strides = [1, 1]} : vector<7x64xf32> to vector<7x63xf32>
    %2344 = vector.broadcast %45 : f32 to vector<7x63xf32>
    %2345 = arith.mulf %2343, %2344 : vector<7x63xf32>
    %2346 = arith.addf %2342, %2345 : vector<7x63xf32>
    %2347 = vector.extract_strided_slice %2123 {offsets = [0, 0], sizes = [7, 63], strides = [1, 1]} : vector<7x64xf32> to vector<7x63xf32>
    %2348 = vector.broadcast %46 : f32 to vector<7x63xf32>
    %2349 = arith.mulf %2347, %2348 : vector<7x63xf32>
    %2350 = arith.addf %2346, %2349 : vector<7x63xf32>
    %2351 = vector.extract_strided_slice %2123 {offsets = [0, 1], sizes = [7, 63], strides = [1, 1]} : vector<7x64xf32> to vector<7x63xf32>
    %2352 = vector.broadcast %47 : f32 to vector<7x63xf32>
    %2353 = arith.mulf %2351, %2352 : vector<7x63xf32>
    %2354 = arith.addf %2350, %2353 : vector<7x63xf32>
    %c0_713 = arith.constant 0 : index
    %c5_714 = arith.constant 5 : index
    %c58_715 = arith.constant 58 : index
    %c0_716 = arith.constant 0 : index
    %2355 = vector.load %arg6[%c0_713, %c5_714, %c58_715, %c0_716] : memref<1x6x67x63xf32, #tpu.memory_space<vmem>>, vector<1x1x7x63xf32>
    %2356 = vector.shape_cast %2355 : vector<1x1x7x63xf32> to vector<7x63xf32>
    %2357 = vector.shape_cast %2354 : vector<7x63xf32> to vector<1x1x7x63xf32>
    tpu.vector_store %arg6[%c0_713, %c5_714, %c58_715, %c0_716], %2357 {strides = array<i32>} : memref<1x6x67x63xf32, #tpu.memory_space<vmem>>, vector<1x1x7x63xf32>,
    return
  }
  func.func @transform_0(%arg0: i32, %arg1: i32) -> i32 {
    %c0_i32 = arith.constant 0 : i32
    %c0_i32_0 = arith.constant 0 : i32
    return %c0_i32 : i32
  }
  func.func @transform_1(%arg0: i32, %arg1: i32) -> i32 {
    %c0_i32 = arith.constant 0 : i32
    %c0_i32_0 = arith.constant 0 : i32
    return %c0_i32 : i32
  }
  func.func @transform_2(%arg0: i32, %arg1: i32) -> (i32, i32, i32, i32) {
    %c0_i32 = arith.constant 0 : i32
    %c0_i32_0 = arith.constant 0 : i32
    %c0_i32_1 = arith.constant 0 : i32
    %c0_i32_2 = arith.constant 0 : i32
    return %arg0, %c0_i32, %c0_i32_0, %c0_i32_1 : i32, i32, i32, i32
  }
  func.func @transform_3(%arg0: i32, %arg1: i32) -> (i32, i32, i32, i32) {
    %c0_i32 = arith.constant 0 : i32
    %c0_i32_0 = arith.constant 0 : i32
    %c0_i32_1 = arith.constant 0 : i32
    return %arg0, %arg1, %c0_i32, %c0_i32_0 : i32, i32, i32, i32
  }
  func.func @transform_4(%arg0: i32, %arg1: i32) -> (i32, i32, i32, i32) {
    %c0_i32 = arith.constant 0 : i32
    %c0_i32_0 = arith.constant 0 : i32
    %c0_i32_1 = arith.constant 0 : i32
    return %arg0, %arg1, %c0_i32, %c0_i32_0 : i32, i32, i32, i32
  }
}

</mosaic_0001>

<bundles_post_ra>
// kernel: tpu_custom_call.1
= control target key start
LH: loop header
LB: loop body
LE: loop exit
PB: predicated region body
PF: predicated region fallthrough
CT: control target
= control target key end

     0   :  { %9 = vsyncpa [#allocation3], 0  ;;  %s4454_s0 = inlined_call_operand.vmem [shape: f32[48], index: 0, kind: input, shape index: {}]   ;;  %s4455_s1 = inlined_call_operand.vmem [shape: f32[6], index: 1, kind: input, shape index: {}]   ;;  %s4456_s2 = inlined_call_operand.vmem [shape: f32[1,2,64,64], index: 2, kind: input, shape index: {}]   ;;  %s4457_s3 = inlined_call_operand.vmem [shape: f32[1,6,67,63], index: 3, kind: input, shape index: {}, may-alias: {3,4}]   ;;  %s4458_s4 = inlined_call_operand.vmem [shape: f32[1,6,67,63], index: 4, kind: output, shape index: {}, may-alias: {3,4}]  }
   0x1   :  { %s16_s17 = sshll.u32 %s4454_s0, 4  ;;  %s17_s17 = int_to_ptr.vmem [resolvable:$true] %s16_s17 }
   0x2   :  { %10 = vsyncpa [#allocation5], 0  ;;  %s25_s20 = sshll.u32 %s4455_s1, 4  ;;  %s2371_s21 = smov [#allocation2]   ;;  %s26_s20 = int_to_ptr.vmem [resolvable:$true] %s25_s20 }
   0x3   :  { %19 = dma.vmem_to_smem %s17_s17, 16, %s2371_s21, [#allocation3]  }
   0x4   :  { %s2372_s22 = smov [#allocation4]  }
   0x5   :  { %28 = dma.vmem_to_smem %s26_s20, 16, %s2372_s22, [#allocation5]  }
   0x6   :  { %2367 = dma.done.wait [#allocation3], 16  }
   0x7   :  { %2368 = vsyncadd [#allocation3], 4294967280 }
   0x8   :  { %2369 = dma.done.wait [#allocation5], 16  }
   0x9   :  { %2370 = vsyncadd [#allocation5], 4294967280 }
   0xa   :  { %41 = sfence }
   0xb   :  { %s2160_s23 = sld [smem:[#allocation2 + $0xb]]  ;;  %v2408_v0 = vld [vmem:[%s4456_s2] sm:$0x1]  ;;  %s2373_s28 = smov 127   ;;  %v2475_v25 = vld [vmem:[%s4456_s2 + $0x7f] sm:$0x1] }
   0xc   :  { %s2152_s24 = sld [smem:[#allocation2 + $0x3]]  ;;  %v2423_v5 = vld [vmem:[%s4456_s2 + $0x40] sm:$0x1]  ;;  %v2482_v27 = vld [vmem:[%s4456_s2 + $0x3f] sm:$0x1]  ;;  %v2545_v51 = vld [vmem:[%s4456_s2 + $0x1] sm:$0xff] }
   0xd   :  { %s2164_s25 = sld [smem:[#allocation2 + $0xf]]  ;;  %v2550_v52 = vld [vmem:[%s4456_s2] sm:$0xff]  ;;  %v2206_v61 = vld [vmem:[%s4457_s3 + $0x90] sm:$0x1]  ;;  %v2208_v63 = vld [vmem:[%s4457_s3 + $0xd2] sm:$0x1] }
   0xe   :  { %s2156_s0 = sld [smem:[#allocation2 + $0x7]]  ;;  %v2564_v56 = vld [vmem:[%s4456_s2 + $0x40] sm:$0xff]  ;;  %vm99_vm0 = vcmask 507904   ;;  %vm468_vm1 = vcmask 515072   ;;  %vm1967_vm2 = vcmask 514048  }
   0xf   :  { %s2168_s1 = sld [smem:[#allocation2 + $0x13]]  ;;  %v2569_v57 = vld [vmem:[%s4456_s2 + $0x41] sm:$0xff] }
  0x10   :  { %s2172_s29 = sld [smem:[#allocation2 + $0x17]] }
  0x11   :  { %v2410_v1 = vstv %s2160_s23  ;;  %s2180_s6 = sld [smem:[#allocation2 + $0x1f]] }
  0x12   :  { %4555 = vst [vmem:[#allocation8_spill] sm:$0xff] %v2410_v1  ;;  %v181_v2 = vmul.f32 %v2410_v1, %v2408_v0  ;;  %v2414_v3 = vstv %s2152_s24  ;;  %s2176_s7 = sld [smem:[#allocation2 + $0x1b]] }
  0x13   :  { %v158_v4 = vmul.f32 %v2414_v3, %v2408_v0  ;;  %v2425_v6 = vstv %s2164_s25  ;;  %s2184_s8 = sld [smem:[#allocation2 + $0x23]]  ;;  %v446_v54 = vmul.f32 %v2545_v51, %v2414_v3 }
  0x14   :  { %183 = vrot.lane.b32.xlu1 %v181_v2, %s2373_s28  ;;  %4556 = vst [vmem:[#allocation9_spill] sm:$0xff] %v2425_v6  ;;  %v2427_v7 = vstv %s2156_s0  ;;  %v191_v9 = vmul.f32 %v2423_v5, %v2425_v6  ;;  %s2192_s9 = sld [smem:[#allocation2 + $0x2b]]  ;;  %v482_v2 = vmul.f32 %v2545_v51, %v2410_v1 }
  0x15   :  { %160 = vrot.lane.b32.xlu0 %v158_v4, %s2373_s28  ;;  %4557 = vst [vmem:[#allocation10_spill] sm:$0xff] %v2427_v7  ;;  %v2429_v8 = vstv %s2168_s1  ;;  %v168_v11 = vmul.f32 %v2423_v5, %v2427_v7  ;;  %s2188_s10 = sld [smem:[#allocation2 + $0x27]]  ;;  %v462_v60 = vmul.f32 %v2569_v57, %v2427_v7 }
  0x16   :  { %4558 = vst [vmem:[#allocation11_spill] sm:$0xff] %v2429_v8  ;;  %v204_v10 = vmul.f32 %v2429_v8, %v2408_v0  ;;  %v2438_v12 = vstv %s2172_s29  ;;  %s2196_s11 = sld [smem:[#allocation2 + $0x2f]] }
  0x17   :  { %4559 = vst [vmem:[#allocation12_spill] sm:$0xff] %v2438_v12  ;;  %v2442_v13 = vstv %s2180_s6  ;;  %v214_v15 = vmul.f32 %v2423_v5, %v2438_v12  ;;  %s2154_s12 = sld [smem:[#allocation2 + $0x5]] }
  0x18   :  { %206 = vrot.lane.b32.xlu2 %v204_v10, %s2373_s28  ;;  %4560 = vst [vmem:[#allocation13_spill] sm:$0xff] %v2442_v13  ;;  %v2444_v14 = vstv %s2176_s7  ;;  %v237_v16 = vmul.f32 %v2423_v5, %v2442_v13  ;;  %s2150_s13 = sld [smem:[#allocation2 + $0x1]]  ;;  %v498_v10 = vmul.f32 %v2569_v57, %v2425_v6 }
  0x19   :  { %4561 = vst [vmem:[#allocation14_spill] sm:$0xff] %v2444_v14  ;;  %v227_v17 = vmul.f32 %v2444_v14, %v2408_v0  ;;  %v2453_v18 = vstv %s2184_s8  ;;  %s2158_s14 = sld [smem:[#allocation2 + $0x9]] }
  0x1a   :  { %v2457_v19 = vstv %s2192_s9  ;;  %v250_v21 = vmul.f32 %v2453_v18, %v2408_v0  ;;  %s2166_s17 = sld [smem:[#allocation2 + $0x11]] }
  0x1b   :  { %v2459_v20 = vstv %s2188_s10  ;;  %v273_v22 = vmul.f32 %v2457_v19, %v2408_v0  ;;  %s2162_s20 = sld [smem:[#allocation2 + $0xd]] }
  0x1c   :  { %193 = vrot.lane.b32.xlu1 %v191_v9, %s2373_s28  ;;  %v260_v23 = vmul.f32 %v2423_v5, %v2459_v20  ;;  %v2468_v24 = vstv %s2196_s11  ;;  %s2170_s21 = sld [smem:[#allocation2 + $0x15]] }
  0x1d   :  { %170 = vrot.lane.b32.xlu0 %v168_v11, %s2373_s28  ;;  %4562 = vst [vmem:[#allocation15_spill] sm:$0xff] %v2468_v24  ;;  %v2477_v26 = vstv %s2154_s12  ;;  %v283_v29 = vmul.f32 %v2423_v5, %v2468_v24  ;;  %s2178_s22 = sld [smem:[#allocation2 + $0x1d]] }
  0x1e   :  { %4563 = vst [vmem:[#allocation16_spill] sm:$0xff] %v2477_v26  ;;  %v2484_v28 = vstv %s2150_s13  ;;  %v308_v30 = vmul.f32 %v2475_v25, %v2477_v26  ;;  %s2174_s23 = sld [smem:[#allocation2 + $0x19]]  ;;  %v454_v58 = vmul.f32 %v2564_v56, %v2477_v26 }
  0x1f   :  { %v298_v31 = vmul.f32 %v2484_v28, %v2482_v27  ;;  %v2493_v32 = vstv %s2158_s14  ;;  %s2182_s24 = sld [smem:[#allocation2 + $0x21]]  ;;  %v438_v55 = vmul.f32 %v2550_v52, %v2484_v28 }
  0x20   :  { %216 = vrot.lane.b32.xlu2 %v214_v15, %s2373_s28  ;;  %4564 = vst [vmem:[#allocation17_spill] sm:$0xff] %v2493_v32  ;;  %v2497_v33 = vstv %s2166_s17  ;;  %v321_v35 = vmul.f32 %v2493_v32, %v2482_v27  ;;  %s2190_s25 = sld [smem:[#allocation2 + $0x29]]  ;;  %v474_v59 = vmul.f32 %v2550_v52, %v2493_v32 }
  0x21   :  { %4565 = vst [vmem:[#allocation18_spill] sm:$0xff] %v2497_v33  ;;  %v2499_v34 = vstv %s2162_s20  ;;  %v344_v36 = vmul.f32 %v2497_v33, %v2482_v27  ;;  %s2186_s0 = sld [smem:[#allocation2 + $0x25]] }
  0x22   :  { %4566 = vst [vmem:[#allocation19_spill] sm:$0xff] %v2499_v34  ;;  %v331_v37 = vmul.f32 %v2475_v25, %v2499_v34  ;;  %v2508_v38 = vstv %s2170_s21  ;;  %s2194_s26 = sld [smem:[#allocation2 + $0x2d]]  ;;  %v490_v11 = vmul.f32 %v2564_v56, %v2499_v34 }
  0x23   :  { %4567 = vst [vmem:[#allocation20_spill] sm:$0xff] %v2508_v38  ;;  %v2512_v39 = vstv %s2178_s22  ;;  %v354_v41 = vmul.f32 %v2475_v25, %v2508_v38  ;;  %s2198_s7 = sld [smem:[#allocation4 + $0x2]] }
  0x24   :  { %239 = vrot.lane.b32.xlu1 %v237_v16, %s2373_s28  ;;  %4568 = vst [vmem:[#allocation21_spill] sm:$0xff] %v2512_v39  ;;  %v2514_v40 = vstv %s2174_s23  ;;  %v377_v42 = vmul.f32 %v2475_v25, %v2512_v39  ;;  %s2197_s14 = sld [smem:[#allocation4 + $0x1]] }
  0x25   :  { %229 = vrot.lane.b32.xlu0 %v227_v17, %s2373_s28  ;;  %4569 = vst [vmem:[#allocation22_spill] sm:$0xff] %v2514_v40  ;;  %v367_v43 = vmul.f32 %v2514_v40, %v2482_v27  ;;  %v2523_v44 = vstv %s2182_s24  ;;  %s90_s15 = sld [smem:[#allocation4]] }
  0x26   :  { %v2527_v45 = vstv %s2190_s25  ;;  %v390_v47 = vmul.f32 %v2523_v44, %v2482_v27  ;;  %s2167_s20 = sld [smem:[#allocation2 + $0x12]] }
  0x27   :  { %v2529_v46 = vstv %s2186_s0  ;;  %v413_v48 = vmul.f32 %v2527_v45, %v2482_v27  ;;  %s2171_s6 = sld [smem:[#allocation2 + $0x16]] }
  0x28   :  { %252 = vrot.lane.b32.xlu2 %v250_v21, %s2373_s28  ;;  %4570 = vst [vmem:[#allocation23_spill] sm:$0xff] %v2529_v46  ;;  %v400_v49 = vmul.f32 %v2475_v25, %v2529_v46  ;;  %v2538_v50 = vstv %s2194_s26  ;;  %v509_v21 = vmul.f32 %v2550_v52, %v2497_v33  ;;  %s2200_s11 = sld [smem:[#allocation4 + $0x4]] }
  0x29   :  { %v423_v53 = vmul.f32 %v2475_v25, %v2538_v50  ;;  %v2583_v62 = vstv %s2198_s7  ;;  %s2159_s19 = sld [smem:[#allocation2 + $0xa]] }
  0x2a   :  { %4571 = vst [vmem:[#allocation24_spill] sm:$0xff] %v2583_v62  ;;  %v116_v4 = vadd.f32 %v2206_v61, %v2583_v62  ;;  %v120_v9 = vadd.f32 %v2208_v63, %v2583_v62  ;;  %v2610_v16 = vstv %s2197_s14  ;;  %s2199_s14 = sld [smem:[#allocation4 + $0x3]] }
  0x2b   :  { %s2201_s22 = sld [smem:[#allocation4 + $0x5]] }
  0x2c   :  { %275 = vrot.lane.b32.xlu1 %v273_v22, %s2373_s28  ;;  %2207 = vst.msk [vmem:[%s4458_s4 + $0x90] sm:$0x1] %vm99_vm0, %v116_v4  ;;  %s2151_s1 = sld [smem:[#allocation2 + $0x2]] }
  0x2d   :  { %262 = vrot.lane.b32.xlu0 %v260_v23, %s2373_s28  ;;  %2209 = vst.msk [vmem:[%s4458_s4 + $0xd2] sm:$0x1] %vm99_vm0, %v120_v9  ;;  %s2163_s9 = sld [smem:[#allocation2 + $0xe]] }
  0x2e   :  { %s2155_s18 = sld [smem:[#allocation2 + $0x6]] }
  0x2f   :  { %s2175_s23 = sld [smem:[#allocation2 + $0x1a]] }
  0x30   :  { %285 = vrot.lane.b32.xlu2 %v283_v29, %s2373_s28  ;;  %s2183_s24 = sld [smem:[#allocation2 + $0x22]] }
  0x31   :  { %s2179_s25 = sld [smem:[#allocation2 + $0x1e]] }
  0x32   :  { %s2785_s0 = sld [smem:[#allocation2 + $0x2a]] }
  0x33   :  { %s2187_s8 = sld [smem:[#allocation2 + $0x26]] }
  0x34   :  { %310 = vrot.lane.b32.xlu1 %v308_v30, %s2373_s28  ;;  %v2202_v15 = vld [vmem:[%s4457_s3 + $0x48] sm:$0x1]  ;;  %v2204_v17 = vld [vmem:[%s4457_s3 + $0x8a] sm:$0x1]  ;;  %v96_v29 = vld [vmem:[%s4457_s3] sm:$0x1] }
  0x35   :  { %300 = vrot.lane.b32.xlu0 %v298_v31, %s2373_s28  ;;  %v107_v22 = vadd.f32 %v2202_v15, %v2610_v16  ;;  %v111_v23 = vadd.f32 %v2204_v17, %v2610_v16  ;;  %v2622_v30 = vstv %s90_s15  ;;  %v101_v31 = vld [vmem:[%s4457_s3 + $0x42] sm:$0x1]  ;;  %v2696_v17 = vstv %s2199_s14  ;;  %s2195_s13 = sld [smem:[#allocation2 + $0x2e]] }
  0x36   :  { %4574 = vst [vmem:[#allocation27_spill] sm:$0xff] %v2696_v17  ;;  %s2157_s21 = sld [smem:[#allocation2 + $0x8]] }
  0x37   :  { %2203 = vst.msk [vmem:[%s4458_s4 + $0x48] sm:$0x1] %vm99_vm0, %v107_v22  ;;  %s2161_s29 = sld [smem:[#allocation2 + $0xc]] }
  0x38   :  { %323 = vrot.lane.b32.xlu2 %v321_v35, %s2373_s28  ;;  %v525_v35 = vmul.f32 %v2564_v56, %v2508_v38  ;;  %2205 = vst.msk [vmem:[%s4458_s4 + $0x8a] sm:$0x1] %vm99_vm0, %v111_v23  ;;  %s2181_s12 = sld [smem:[#allocation2 + $0x20]] }
  0x39   :  { %s2948_s14 = sld [smem:[#allocation2 + $0x28]] }
  0x3c   :  { %346 = vrot.lane.b32.xlu1 %v344_v36, %s2373_s28  ;;  %v98_v36 = vadd.f32 %v2622_v30, %v96_v29  ;;  %v579_v29 = vmul.f32 %v2550_v52, %v2523_v44 }
  0x3d   :  { %333 = vrot.lane.b32.xlu0 %v331_v37, %s2373_s28  ;;  %v102_v37 = vadd.f32 %v101_v31, %v2622_v30  ;;  %v568_v31 = vmul.f32 %v2569_v57, %v2442_v13 }
  0x40   :  { %356 = vrot.lane.b32.xlu2 %v354_v41, %s2373_s28  ;;  %v517_v41 = vmul.f32 %v2545_v51, %v2429_v8 }
  0x44   :  { %379 = vrot.lane.b32.xlu1 %v377_v42, %s2373_s28  ;;  %v2225_v42 = vld [vmem:[%s4457_s3 + $0x91] sm:$0x1] }
  0x45   :  { %369 = vrot.lane.b32.xlu0 %v367_v43, %s2373_s28  ;;  %v2645_v43 = vstv %s2167_s20  ;;  %100 = vst.msk [vmem:[%s4458_s4] sm:$0x1] %vm99_vm0, %v98_v36 }
  0x46   :  { %4572 = vst [vmem:[#allocation25_spill] sm:$0xff] %v2645_v43 }
  0x47   :  { %103 = vst.msk [vmem:[%s4458_s4 + $0x42] sm:$0x1] %vm99_vm0, %v102_v37 }
  0x48   :  { %392 = vrot.lane.b32.xlu2 %v390_v47, %s2373_s28  ;;  %v199_v47 = vadd.f32 %v2225_v42, %v2583_v62  ;;  %v2721_v42 = vstv %s2159_s19 }
  0x49   :  { %4575 = vst [vmem:[#allocation28_spill] sm:$0xff] %v2721_v42 }
  0x4c   :  { %415 = vrot.lane.b32.xlu1 %v413_v48, %s2373_s28  ;;  %v201_v48 = vmul.f32 %v2645_v43, %v2408_v0 }
  0x4d   :  { %402 = vrot.lane.b32.xlu0 %v400_v49, %s2373_s28  ;;  %v533_v49 = vmul.f32 %v2569_v57, %v2438_v12 }
  0x4e   :  { %v2216_v61 = vld [vmem:[%s4457_s3 + $0x162] sm:$0x1] }
  0x50   :  { %425 = vrot.lane.b32.xlu2 %v423_v53, %s2373_s28  ;;  %v552_v53 = vmul.f32 %v2545_v51, %v2444_v14 }
  0x54   :  { %448 = vrot.lane.b32.xlu1 %v446_v54, %s2373_s28  ;;  %v544_v54 = vmul.f32 %v2550_v52, %v2514_v40 }
  0x55   :  { %440 = vrot.lane.b32.xlu0 %v438_v55, %s2373_s28  ;;  %v202_v55 = vadd.f32 %v201_v48, %v199_v47  ;;  %v587_v47 = vmul.f32 %v2545_v51, %v2453_v18 }
  0x58   :  { %456 = vrot.lane.b32.xlu2 %v454_v58, %s2373_s28  ;;  %v2666_v58 = vstv %s2171_s6  ;;  %s2169_s6 = sld [smem:[#allocation2 + $0x14]] }
  0x59   :  { %4573 = vst [vmem:[#allocation26_spill] sm:$0xff] %v2666_v58 }
  0x5c   :  { %476 = vrot.lane.b32.xlu1 %v474_v59, %s2373_s28  ;;  %v2214_v59 = vld [vmem:[%s4457_s3 + $0x120] sm:$0x1] }
  0x5d   :  { %464 = vrot.lane.b32.xlu0 %v462_v60, %s2373_s28  ;;  %v2672_v60 = vstv %s2200_s11  ;;  %s2173_s11 = sld [smem:[#allocation2 + $0x18]] }
  0x5e   :  { %v134_v63 = vadd.f32 %v2214_v59, %v2672_v60 }
  0x60   :  { %484 = vrot.lane.b32.xlu2 %v482_v2, %s2373_s28  ;;  %v138_v2 = vadd.f32 %v2216_v61, %v2672_v60  ;;  %2215 = vst.msk [vmem:[%s4458_s4 + $0x120] sm:$0x1] %vm99_vm0, %v134_v63  ;;  %v603_v63 = vmul.f32 %v2569_v57, %v2459_v20 }
  0x62   :  { %2217 = vst.msk [vmem:[%s4458_s4 + $0x162] sm:$0x1] %vm99_vm0, %v138_v2  ;;  %v595_v2 = vmul.f32 %v2564_v56, %v2529_v46 }
  0x64   :  { %500 = vrot.lane.b32.xlu1 %v498_v10, %s2373_s28  ;;  %v211_v10 = vmul.f32 %v2423_v5, %v2666_v58  ;;  %v2858_v58 = vstv %s2187_s8 }
  0x65   :  { %492 = vrot.lane.b32.xlu0 %v490_v11, %s2373_s28  ;;  %v560_v11 = vmul.f32 %v2564_v56, %v2512_v39  ;;  %4582 = vst [vmem:[#allocation35_spill] sm:$0xff] %v2858_v58 }
  0x68   :  { %511 = vrot.lane.b32.xlu2 %v509_v21, %s2373_s28 }
  0x69   :  { %v2210_v15 = vld [vmem:[%s4457_s3 + $0xd8] sm:$0x1]  ;;  %v2212_v21 = vld [vmem:[%s4457_s3 + $0x11a] sm:$0x1] }
  0x6a   :  { %v125_v22 = vadd.f32 %v2210_v15, %v2696_v17  ;;  %v129_v23 = vadd.f32 %v2212_v21, %v2696_v17 }
  0x6c   :  { %527 = vrot.lane.b32.xlu1 %v525_v35, %s2373_s28  ;;  %2211 = vst.msk [vmem:[%s4458_s4 + $0xd8] sm:$0x1] %vm99_vm0, %v125_v22 }
  0x6d   :  { %519 = vrot.lane.b32.xlu0 %v517_v41, %s2373_s28  ;;  %2213 = vst.msk [vmem:[%s4458_s4 + $0x11a] sm:$0x1] %vm99_vm0, %v129_v23 }
  0x70   :  { %535 = vrot.lane.b32.xlu2 %v533_v49, %s2373_s28  ;;  %v2728_v49 = vstv %s2201_s22  ;;  %s2153_s22 = sld [smem:[#allocation2 + $0x4]] }
  0x72   :  { %v207_v4 = vpop.permute.xlu2 %206 }
  0x73   :  { %v209_v9 = vadd.f32 %v207_v4, %v202_v55  ;;  %v2736_v55 = vstv %s2151_s1 }
  0x74   :  { %554 = vrot.lane.b32.xlu1 %v552_v53, %s2373_s28  ;;  %v2223_v37 = vld [vmem:[%s4457_s3 + $0x49] sm:$0x1]  ;;  %v2218_v48 = vld [vmem:[%s4457_s3 + $0x168] sm:$0x1]  ;;  %v2220_v53 = vld [vmem:[%s4457_s3 + $0x1aa] sm:$0x1] }
  0x75   :  { %546 = vrot.lane.b32.xlu0 %v544_v54, %s2373_s28  ;;  %v212_v35 = vadd.f32 %v211_v10, %v209_v9  ;;  %v152_v54 = vld [vmem:[%s4457_s3 + $0x1] sm:$0x1]  ;;  %v143_v59 = vadd.f32 %v2218_v48, %v2728_v49  ;;  %v147_v61 = vadd.f32 %v2220_v53, %v2728_v49  ;;  %v176_v4 = vadd.f32 %v2223_v37, %v2610_v16 }
  0x76   :  { %v178_v9 = vmul.f32 %v2721_v42, %v2408_v0  ;;  %v153_v10 = vadd.f32 %v152_v54, %v2622_v30  ;;  %v630_v37 = vmul.f32 %v2564_v56, %v2538_v50 }
  0x77   :  { %2219 = vst.msk [vmem:[%s4458_s4 + $0x168] sm:$0x1] %vm99_vm0, %v143_v59 }
  0x78   :  { %562 = vrot.lane.b32.xlu2 %v560_v11, %s2373_s28  ;;  %v155_v11 = vmul.f32 %v2736_v55, %v2408_v0  ;;  %2221 = vst.msk [vmem:[%s4458_s4 + $0x1aa] sm:$0x1] %vm99_vm0, %v147_v61  ;;  %v179_v21 = vadd.f32 %v178_v9, %v176_v4  ;;  %v2796_v4 = vstv %s2175_s23  ;;  %s2873_s23 = sld [smem:[#allocation2 + $0x10]] }
  0x79   :  { %4578 = vst [vmem:[#allocation31_spill] sm:$0xff] %v2796_v4 }
  0x7a   :  { %v217_v36 = vpop.permute.xlu2 %216  ;;  %v156_v23 = vadd.f32 %v155_v11, %v153_v10  ;;  %v2801_v11 = vld [vmem:[%s4456_s2 + $0x8] sm:$0xff] }
  0x7b   :  { %v219_v41 = vadd.f32 %v217_v36, %v212_v35  ;;  %v2771_v36 = vstv %s2155_s18  ;;  %s42_s18 = sld [smem:[#allocation2]] }
  0x7c   :  { %581 = vrot.lane.b32.xlu1 %v579_v29, %s2373_s28  ;;  %v2767_v29 = vstv %s2163_s9  ;;  %4577 = vst [vmem:[#allocation30_spill] sm:$0xff] %v2771_v36  ;;  %v165_v54 = vmul.f32 %v2423_v5, %v2771_v36 }
  0x7d   :  { %570 = vrot.lane.b32.xlu0 %v568_v31, %s2373_s28  ;;  %2226 = vst.msk [vmem:[%s4458_s4 + $0x91] sm:$0x1] %vm99_vm0, %v219_v41  ;;  %v614_v31 = vmul.f32 %v2550_v52, %v2527_v45  ;;  %v188_v48 = vmul.f32 %v2423_v5, %v2767_v29 }
  0x7e   :  { %4576 = vst [vmem:[#allocation29_spill] sm:$0xff] %v2767_v29 }
  0x80   :  { %589 = vrot.lane.b32.xlu2 %v587_v47, %s2373_s28  ;;  %v622_v47 = vmul.f32 %v2545_v51, %v2457_v19 }
  0x82   :  { %v2764_v15 = vpop.permute.xlu2 %252 }
  0x84   :  { %605 = vrot.lane.b32.xlu1 %v603_v63, %s2373_s28  ;;  %v2791_v63 = vld [vmem:[%s4456_s2 + $0x9] sm:$0xff] }
  0x85   :  { %597 = vrot.lane.b32.xlu0 %v595_v2, %s2373_s28  ;;  %v2227_v2 = vld [vmem:[%s4457_s3 + $0xd9] sm:$0x1] }
  0x86   :  { %v184_v22 = vpop.permute.xlu1 %183 }
  0x87   :  { %v161_v35 = vpop.permute.xlu0 %160  ;;  %v186_v41 = vadd.f32 %v184_v22, %v179_v21  ;;  %v638_v21 = vmul.f32 %v2569_v57, %v2468_v24 }
  0x88   :  { %v163_v53 = vadd.f32 %v161_v35, %v156_v23  ;;  %616 = vrot.lane.b32.xlu2 %v614_v31, %s2373_s28  ;;  %v2229_v31 = vld [vmem:[%s4457_s3 + $0x121] sm:$0x1]  ;;  %v2808_v35 = vstv %s2183_s24  ;;  %s2193_s24 = sld [smem:[#allocation2 + $0x2c]] }
  0x89   :  { %v189_v61 = vadd.f32 %v188_v48, %v186_v41  ;;  %4579 = vst [vmem:[#allocation32_spill] sm:$0xff] %v2808_v35  ;;  %v661_v41 = vmul.f32 %v2791_v63, %v2414_v3  ;;  %v224_v48 = vmul.f32 %v2796_v4, %v2408_v0 }
  0x8a   :  { %v2783_v59 = vpop.permute.xlu2 %285  ;;  %v166_v10 = vadd.f32 %v165_v54, %v163_v53  ;;  %v653_v53 = vmul.f32 %v2801_v11, %v2484_v28  ;;  %v245_v54 = vadd.f32 %v2229_v31, %v2672_v60  ;;  %v2844_v31 = vld [vmem:[%s4456_s2 + $0x48] sm:$0xff] }
  0x8c   :  { %632 = vrot.lane.b32.xlu1 %v630_v37, %s2373_s28 }
  0x8d   :  { %624 = vrot.lane.b32.xlu0 %v622_v47, %s2373_s28  ;;  %v222_v47 = vadd.f32 %v2227_v2, %v2696_v17  ;;  %v2829_v2 = vstv %s2179_s25 }
  0x8e   :  { %v194_v9 = vpop.permute.xlu1 %193  ;;  %4580 = vst [vmem:[#allocation33_spill] sm:$0xff] %v2829_v2 }
  0x8f   :  { %v196_v22 = vadd.f32 %v194_v9, %v189_v61  ;;  %v171_v23 = vpop.permute.xlu0 %170  ;;  %v247_v61 = vmul.f32 %v2808_v35, %v2408_v0  ;;  %v225_v9 = vadd.f32 %v224_v48, %v222_v47  ;;  %v2851_v47 = vld [vmem:[%s4456_s2 + $0x49] sm:$0xff]  ;;  %v669_v48 = vmul.f32 %v2844_v31, %v2477_v26 }
  0x90   :  { %v173_v37 = vadd.f32 %v171_v23, %v166_v10  ;;  %640 = vrot.lane.b32.xlu2 %v638_v21, %s2373_s28  ;;  %v2865_v26 = vstv %s2195_s13  ;;  %s2177_s13 = sld [smem:[#allocation2 + $0x1c]] }
  0x91   :  { %2224 = vst.msk [vmem:[%s4458_s4 + $0x49] sm:$0x1] %vm99_vm0, %v196_v22  ;;  %v2836_v22 = vstv %s2785_s0  ;;  %v248_v21 = vadd.f32 %v247_v61, %v245_v54  ;;  %v688_v61 = vmul.f32 %v2801_v11, %v2493_v32 }
  0x92   :  { %174 = vst.msk [vmem:[%s4458_s4 + $0x1] sm:$0x1] %vm99_vm0, %v173_v37  ;;  %v2838_v23 = vpop.permute.xlu2 %323  ;;  %v270_v4 = vmul.f32 %v2836_v22, %v2408_v0 }
  0x93   :  { %4581 = vst [vmem:[#allocation34_spill] sm:$0xff] %v2836_v22  ;;  %v255_v43 = vadd.f32 %v2764_v15, %v248_v21  ;;  %v280_v15 = vmul.f32 %v2423_v5, %v2865_v26 }
  0x94   :  { %663 = vrot.lane.b32.xlu1 %v661_v41, %s2373_s28  ;;  %v234_v41 = vmul.f32 %v2423_v5, %v2829_v2  ;;  %v677_v2 = vmul.f32 %v2851_v47, %v2427_v7  ;;  %4583 = vst [vmem:[#allocation36_spill] sm:$0xff] %v2865_v26  ;;  %v2933_v26 = vstv %s2161_s29 }
  0x95   :  { %655 = vrot.lane.b32.xlu0 %v653_v53, %s2373_s28  ;;  %4586 = vst [vmem:[#allocation39_spill] sm:$0xff] %v2933_v26 }
  0x96   :  { %v240_v37 = vpop.permute.xlu1 %239 }
  0x97   :  { %v230_v53 = vpop.permute.xlu0 %229 }
  0x98   :  { %v232_v54 = vadd.f32 %v230_v53, %v225_v9  ;;  %671 = vrot.lane.b32.xlu2 %v669_v48, %s2373_s28  ;;  %v2892_v48 = vstv %s2157_s21  ;;  %s2185_s21 = sld [smem:[#allocation2 + $0x24]] }
  0x99   :  { %v2231_v10 = vld [vmem:[%s4457_s3 + $0x169] sm:$0x1]  ;;  %v292_v21 = vld [vmem:[%s4457_s3 + $0x41] sm:$0x1] }
  0x9a   :  { %v268_v35 = vadd.f32 %v2231_v10, %v2728_v49  ;;  %v235_v29 = vadd.f32 %v234_v41, %v232_v54  ;;  %v257_v10 = vmul.f32 %v2423_v5, %v2858_v58  ;;  %v2871_v9 = vpop.permute.xlu2 %356  ;;  %v2881_v41 = vstv %s42_s18 }
  0x9b   :  { %v712_v54 = vmul.f32 %v2851_v47, %v2425_v6 }
  0x9c   :  { %v271_v0 = vadd.f32 %v270_v4, %v268_v35  ;;  %v242_v22 = vadd.f32 %v240_v37, %v235_v29  ;;  %690 = vrot.lane.b32.xlu1 %v688_v61, %s2373_s28  ;;  %v258_v4 = vadd.f32 %v257_v10, %v255_v43  ;;  %v696_v35 = vmul.f32 %v2791_v63, %v2410_v1 }
  0x9d   :  { %679 = vrot.lane.b32.xlu0 %v677_v2, %s2373_s28  ;;  %v295_v43 = vmul.f32 %v2881_v41, %v2482_v27  ;;  %v704_v10 = vmul.f32 %v2844_v31, %v2499_v34 }
  0x9e   :  { %2228 = vst.msk [vmem:[%s4458_s4 + $0xd9] sm:$0x1] %vm99_vm0, %v242_v22  ;;  %v276_v29 = vpop.permute.xlu1 %275  ;;  %v293_v22 = vadd.f32 %v292_v21, %v2622_v30 }
  0x9f   :  { %v278_v2 = vadd.f32 %v276_v29, %v271_v0  ;;  %v263_v37 = vpop.permute.xlu0 %262  ;;  %v318_v29 = vmul.f32 %v2892_v48, %v2482_v27 }
  0xa0   :  { %v265_v53 = vadd.f32 %v263_v37, %v258_v4  ;;  %698 = vrot.lane.b32.xlu2 %v696_v35, %s2373_s28  ;;  %v2910_v4 = vstv %s2153_s22  ;;  %v2917_v37 = vstv %s2873_s23 }
  0xa1   :  { %v281_v61 = vadd.f32 %v280_v15, %v278_v2  ;;  %4584 = vst [vmem:[#allocation37_spill] sm:$0xff] %v2910_v4  ;;  %v296_v15 = vadd.f32 %v295_v43, %v293_v22 }
  0xa2   :  { %4585 = vst [vmem:[#allocation38_spill] sm:$0xff] %v2917_v37 }
  0xa3   :  { %v288_v21 = vadd.f32 %v2783_v59, %v281_v61  ;;  %v341_v61 = vmul.f32 %v2917_v37, %v2482_v27 }
  0xa4   :  { %714 = vrot.lane.b32.xlu1 %v712_v54, %s2373_s28  ;;  %v723_v54 = vmul.f32 %v2801_v11, %v2497_v33  ;;  %v2940_v33 = vstv %s2169_s6 }
  0xa5   :  { %v2234_v5 = vld [vmem:[%s4457_s3 + $0x89] sm:$0x1]  ;;  %706 = vrot.lane.b32.xlu0 %v704_v10, %s2373_s28  ;;  %v739_v10 = vmul.f32 %v2844_v31, %v2508_v38  ;;  %4587 = vst [vmem:[#allocation40_spill] sm:$0xff] %v2940_v33 }
  0xa6   :  { %2230 = vst.msk [vmem:[%s4458_s4 + $0x121] sm:$0x1] %vm99_vm0, %v265_v53  ;;  %v316_v0 = vadd.f32 %v2234_v5, %v2610_v16  ;;  %v2919_v5 = vpop.permute.xlu2 %392  ;;  %v311_v35 = vpop.permute.xlu1 %310  ;;  %v305_v53 = vmul.f32 %v2475_v25, %v2910_v4 }
  0xa7   :  { %v301_v22 = vpop.permute.xlu0 %300 }
  0xa8   :  { %v319_v59 = vadd.f32 %v318_v29, %v316_v0  ;;  %v731_v0 = vmul.f32 %v2791_v63, %v2429_v8  ;;  %725 = vrot.lane.b32.xlu2 %v723_v54, %s2373_s28  ;;  %v747_v54 = vmul.f32 %v2851_v47, %v2438_v12 }
  0xaa   :  { %v326_v29 = vadd.f32 %v2838_v23, %v319_v59  ;;  %v351_v23 = vmul.f32 %v2475_v25, %v2940_v33 }
  0xac   :  { %741 = vrot.lane.b32.xlu1 %v739_v10, %s2373_s28 }
  0xad   :  { %v2236_v2 = vld [vmem:[%s4457_s3 + $0xd1] sm:$0x1]  ;;  %733 = vrot.lane.b32.xlu0 %v731_v0, %s2373_s28  ;;  %v766_v0 = vmul.f32 %v2791_v63, %v2444_v14  ;;  %v3008_v14 = vstv %s2185_s21 }
  0xae   :  { %2232 = vst.msk [vmem:[%s4458_s4 + $0x169] sm:$0x1] %vm99_vm0, %v288_v21  ;;  %v339_v43 = vadd.f32 %v2236_v2, %v2583_v62  ;;  %v303_v21 = vadd.f32 %v301_v22, %v296_v15  ;;  %v328_v2 = vmul.f32 %v2475_v25, %v2933_v26  ;;  %v2946_v15 = vpop.permute.xlu2 %425 }
  0xb0   :  { %v306_v58 = vadd.f32 %v305_v53, %v303_v21  ;;  %v342_v34 = vadd.f32 %v341_v61, %v339_v43  ;;  %v2956_v53 = vstv %s2173_s11  ;;  %v334_v43 = vpop.permute.xlu0 %333  ;;  %v2967_v21 = vstv %s2181_s12  ;;  %749 = vrot.lane.b32.xlu2 %v747_v54, %s2373_s28 }
  0xb1   :  { %4588 = vst [vmem:[#allocation41_spill] sm:$0xff] %v2956_v53 }
  0xb2   :  { %v313_v6 = vadd.f32 %v311_v35, %v306_v58  ;;  %v347_v58 = vpop.permute.xlu1 %346  ;;  %v329_v35 = vadd.f32 %v328_v2, %v326_v29  ;;  %4589 = vst [vmem:[#allocation42_spill] sm:$0xff] %v2967_v21  ;;  %v364_v29 = vmul.f32 %v2956_v53, %v2482_v27 }
  0xb3   :  { %v349_v22 = vadd.f32 %v347_v58, %v342_v34  ;;  %v758_v34 = vmul.f32 %v2801_v11, %v2514_v40 }
  0xb4   :  { %v336_v10 = vadd.f32 %v334_v43, %v329_v35  ;;  %v387_v35 = vmul.f32 %v2967_v21, %v2482_v27  ;;  %v2985_v43 = vstv %s2177_s13  ;;  %768 = vrot.lane.b32.xlu1 %v766_v0, %s2373_s28 }
  0xb5   :  { %v2238_v59 = vld [vmem:[%s4457_s3 + $0x119] sm:$0x1]  ;;  %v352_v2 = vadd.f32 %v351_v23, %v349_v22  ;;  %4590 = vst [vmem:[#allocation43_spill] sm:$0xff] %v2985_v43  ;;  %760 = vrot.lane.b32.xlu0 %v758_v34, %s2373_s28  ;;  %v374_v0 = vmul.f32 %v2475_v25, %v2985_v43  ;;  %v793_v34 = vmul.f32 %v2801_v11, %v2523_v44  ;;  %v3015_v43 = vstv %s2193_s24 }
  0xb6   :  { %314 = vst.msk [vmem:[%s4458_s4 + $0x41] sm:$0x1] %vm99_vm0, %v313_v6  ;;  %v362_v6 = vadd.f32 %v2238_v59, %v2696_v17 }
  0xb7   :  { %v359_v59 = vadd.f32 %v2871_v9, %v352_v2 }
  0xb8   :  { %v365_v23 = vadd.f32 %v364_v29, %v362_v6  ;;  %v774_v6 = vmul.f32 %v2844_v31, %v2512_v39  ;;  %v370_v29 = vpop.permute.xlu0 %369 }
  0xba   :  { %v380_v54 = vpop.permute.xlu1 %379  ;;  %v372_v12 = vadd.f32 %v370_v29, %v365_v23  ;;  %776 = vrot.lane.b32.xlu2 %v774_v6, %s2373_s28  ;;  %v420_v29 = vmul.f32 %v2475_v25, %v3015_v43 }
  0xbc   :  { %795 = vrot.lane.b32.xlu1 %v793_v34, %s2373_s28  ;;  %v436_v34 = vmul.f32 %v2550_v52, %v2881_v41 }
  0xbd   :  { %v2240_v61 = vld [vmem:[%s4457_s3 + $0x161] sm:$0x1] }
  0xbe   :  { %2235 = vst.msk [vmem:[%s4458_s4 + $0x89] sm:$0x1] %vm99_vm0, %v336_v10  ;;  %v385_v58 = vadd.f32 %v2240_v61, %v2672_v60  ;;  %v2992_v10 = vstv %s2948_s14  ;;  %v2994_v61 = vpop.permute.xlu2 %456 }
  0xbf   :  { %v410_v40 = vmul.f32 %v2992_v10, %v2482_v27 }
  0xc0   :  { %v388_v9 = vadd.f32 %v387_v35, %v385_v58  ;;  %v782_v58 = vmul.f32 %v2851_v47, %v2442_v13 }
  0xc2   :  { %v395_v35 = vadd.f32 %v2919_v5, %v388_v9  ;;  %784 = vrot.lane.b32.xlu0 %v782_v58, %s2373_s28  ;;  %v416_v5 = vpop.permute.xlu1 %415  ;;  %v801_v9 = vmul.f32 %v2791_v63, %v2453_v18 }
  0xc4   :  { %803 = vrot.lane.b32.xlu2 %v801_v9, %s2373_s28  ;;  %v472_v9 = vmul.f32 %v2550_v52, %v2892_v48 }
  0xc5   :  { %v2242_v22 = vld [vmem:[%s4457_s3 + $0x1a9] sm:$0x1] }
  0xc6   :  { %2237 = vst.msk [vmem:[%s4458_s4 + $0xd1] sm:$0x1] %vm99_vm0, %v359_v59  ;;  %v408_v2 = vadd.f32 %v2242_v22, %v2728_v49  ;;  %v375_v59 = vadd.f32 %v374_v0, %v372_v12  ;;  %v397_v22 = vmul.f32 %v2475_v25, %v3008_v14  ;;  %v485_v23 = vpop.permute.xlu2 %484  ;;  %v403_v0 = vpop.permute.xlu0 %402  ;;  %v817_v25 = vmul.f32 %v2851_v47, %v2459_v20 }
  0xc8   :  { %v411_v27 = vadd.f32 %v410_v40, %v408_v2  ;;  %v382_v39 = vadd.f32 %v380_v54, %v375_v59  ;;  %v398_v40 = vadd.f32 %v397_v22, %v395_v35  ;;  %819 = vrot.lane.b32.xlu1 %v817_v25, %s2373_s28 }
  0xca   :  { %v418_v54 = vadd.f32 %v416_v5, %v411_v27  ;;  %v405_v6 = vadd.f32 %v403_v0, %v398_v40  ;;  %v844_v0 = vmul.f32 %v2844_v31, %v2538_v50 }
  0xcc   :  { %v421_v58 = vadd.f32 %v420_v29, %v418_v54  ;;  %v449_v29 = vpop.permute.xlu1 %448 }
  0xcd   :  { %v434_v12 = vld [vmem:[%s4457_s3 + $0x2] sm:$0xff] }
  0xce   :  { %2239 = vst.msk [vmem:[%s4458_s4 + $0x119] sm:$0x1] %vm99_vm0, %v382_v39  ;;  %v435_v2 = vadd.f32 %v434_v12, %v2622_v30  ;;  %v809_v39 = vmul.f32 %v2844_v31, %v2529_v46  ;;  %v428_v35 = vadd.f32 %v2946_v15, %v421_v58  ;;  %v512_v27 = vpop.permute.xlu2 %511  ;;  %v444_v12 = vmul.f32 %v2545_v51, %v2736_v55  ;;  %v441_v5 = vpop.permute.xlu0 %440 }
  0xcf   :  { %2241 = vst.msk [vmem:[%s4458_s4 + $0x161] sm:$0x1] %vm99_vm0, %v405_v6  ;;  %v828_v15 = vmul.f32 %v2801_v11, %v2527_v45  ;;  %v836_v6 = vmul.f32 %v2791_v63, %v2457_v19 }
  0xd0   :  { %v437_v59 = vadd.f32 %v436_v34, %v435_v2  ;;  %811 = vrot.lane.b32.xlu0 %v809_v39, %s2373_s28  ;;  %v452_v2 = vmul.f32 %v2564_v56, %v2910_v4  ;;  %846 = vrot.lane.b32.xlu1 %v844_v0, %s2373_s28 }
  0xd1   :  { %830 = vrot.lane.b32.xlu2 %v828_v15, %s2373_s28 }
  0xd2   :  { %v443_v54 = vadd.f32 %v441_v5, %v437_v59  ;;  %v3078_v59 = vld [vmem:[%s4456_s2 + $0x11] sm:$0xff]  ;;  %v852_v5 = vmul.f32 %v2851_v47, %v2468_v24 }
  0xd4   :  { %v445_v25 = vadd.f32 %v444_v12, %v443_v54  ;;  %v460_v12 = vmul.f32 %v2569_v57, %v2771_v36 }
  0xd6   :  { %v2246_v22 = vld [vmem:[%s4457_s3 + $0x4a] sm:$0xff]  ;;  %v451_v58 = vadd.f32 %v449_v29, %v445_v25  ;;  %v3070_v39 = vpop.permute.xlu2 %535 }
  0xd7   :  { %2243 = vst.msk [vmem:[%s4458_s4 + $0x1a9] sm:$0x1] %vm99_vm0, %v428_v35  ;;  %v471_v40 = vadd.f32 %v2246_v22, %v2610_v16  ;;  %v480_v35 = vmul.f32 %v2545_v51, %v2721_v42  ;;  %v477_v22 = vpop.permute.xlu1 %476  ;;  %v3085_v29 = vld [vmem:[%s4456_s2 + $0x10] sm:$0xff] }
  0xd8   :  { %838 = vrot.lane.b32.xlu0 %v836_v6, %s2373_s28  ;;  %v453_v15 = vadd.f32 %v452_v2, %v451_v58  ;;  %v875_v6 = vmul.f32 %v3078_v59, %v2414_v3  ;;  %v867_v2 = vmul.f32 %v3085_v29, %v2484_v28  ;;  %v488_v58 = vmul.f32 %v2564_v56, %v2933_v26 }
  0xd9   :  { %v473_v34 = vadd.f32 %v472_v9, %v471_v40  ;;  %v465_v9 = vpop.permute.xlu0 %464  ;;  %854 = vrot.lane.b32.xlu2 %v852_v5, %s2373_s28 }
  0xda   :  { %v459_v0 = vadd.f32 %v2994_v61, %v453_v15  ;;  %877 = vrot.lane.b32.xlu1 %v875_v6, %s2373_s28 }
  0xdb   :  { %v479_v40 = vadd.f32 %v477_v22, %v473_v34  ;;  %v507_v22 = vmul.f32 %v2550_v52, %v2917_v37 }
  0xdc   :  { %v461_v36 = vadd.f32 %v460_v12, %v459_v0  ;;  %v3110_v12 = vld [vmem:[%s4456_s2 + $0x50] sm:$0xff]  ;;  %v4593_v0 = vld [vmem:[#allocation16_spill] sm:$0xff] }
  0xdd   :  { %v481_v25 = vadd.f32 %v480_v35, %v479_v40  ;;  %v883_v6 = vmul.f32 %v3110_v12, %v4593_v0 }
  0xde   :  { %v2248_v54 = vld [vmem:[%s4457_s3 + $0x92] sm:$0xff]  ;;  %v467_v15 = vadd.f32 %v465_v9, %v461_v36  ;;  %v3104_v35 = vpop.permute.xlu2 %562  ;;  %v4591_v36 = vld [vmem:[#allocation29_spill] sm:$0xff] }
  0xdf   :  { %v506_v34 = vadd.f32 %v2248_v54, %v2583_v62  ;;  %v487_v61 = vadd.f32 %v485_v23, %v481_v25  ;;  %v501_v23 = vpop.permute.xlu1 %500  ;;  %v496_v9 = vmul.f32 %v2569_v57, %v4591_v36  ;;  %v3121_v54 = vld [vmem:[%s4456_s2 + $0x51] sm:$0xff] }
  0xe0   :  { %869 = vrot.lane.b32.xlu0 %v867_v2, %s2373_s28  ;;  %469 = vst.msk [vmem:[%s4458_s4 + $0x2] sm:$0xff] %vm468_vm1, %v467_v15  ;;  %v4594_v15 = vld [vmem:[#allocation25_spill] sm:$0xff] }
  0xe1   :  { %v489_v40 = vadd.f32 %v488_v58, %v487_v61  ;;  %v508_v5 = vadd.f32 %v507_v22, %v506_v34  ;;  %4592 = vst [vmem:[#allocation44_spill] sm:$0xff] %v3121_v54  ;;  %v493_v25 = vpop.permute.xlu0 %492  ;;  %v902_v58 = vmul.f32 %v3085_v29, %v2493_v32  ;;  %v891_v34 = vmul.f32 %v3121_v54, %v2427_v7 }
  0xe2   :  { %v515_v36 = vmul.f32 %v2545_v51, %v4594_v15  ;;  %885 = vrot.lane.b32.xlu2 %v883_v6, %s2373_s28  ;;  %v4596_v15 = vld [vmem:[#allocation19_spill] sm:$0xff] }
  0xe3   :  { %v495_v2 = vadd.f32 %v493_v25, %v489_v40  ;;  %v514_v22 = vadd.f32 %v512_v27, %v508_v5  ;;  %904 = vrot.lane.b32.xlu1 %v902_v58, %s2373_s28 }
  0xe5   :  { %v497_v61 = vadd.f32 %v496_v9, %v495_v2  ;;  %v516_v5 = vadd.f32 %v515_v36, %v514_v22  ;;  %v523_v9 = vmul.f32 %v2564_v56, %v2940_v33  ;;  %v4595_v2 = vld [vmem:[#allocation9_spill] sm:$0xff]  ;;  %v4597_v36 = vld [vmem:[#allocation26_spill] sm:$0xff] }
  0xe6   :  { %v590_v62 = vpop.permute.xlu2 %589  ;;  %v926_v58 = vmul.f32 %v3121_v54, %v4595_v2  ;;  %v531_v22 = vmul.f32 %v2569_v57, %v4597_v36  ;;  %v4599_v36 = vld [vmem:[#allocation18_spill] sm:$0xff] }
  0xe7   :  { %v503_v37 = vadd.f32 %v501_v23, %v497_v61  ;;  %v2250_v40 = vld [vmem:[%s4457_s3 + $0xda] sm:$0xff]  ;;  %v528_v27 = vpop.permute.xlu1 %527  ;;  %v910_v23 = vmul.f32 %v3078_v59, %v2410_v1  ;;  %v542_v61 = vmul.f32 %v2550_v52, %v2956_v53 }
  0xe8   :  { %893 = vrot.lane.b32.xlu0 %v891_v34, %s2373_s28  ;;  %v541_v34 = vadd.f32 %v2250_v40, %v2696_v17 }
  0xe9   :  { %2247 = vst.msk [vmem:[%s4458_s4 + $0x4a] sm:$0xff] %vm468_vm1, %v503_v37  ;;  %v520_v6 = vpop.permute.xlu0 %519  ;;  %v918_v37 = vmul.f32 %v3110_v12, %v4596_v15  ;;  %v4598_v15 = vld [vmem:[#allocation31_spill] sm:$0xff] }
  0xea   :  { %v522_v25 = vadd.f32 %v520_v6, %v516_v5  ;;  %912 = vrot.lane.b32.xlu2 %v910_v23, %s2373_s28  ;;  %v543_v5 = vadd.f32 %v542_v61, %v541_v34  ;;  %v550_v2 = vmul.f32 %v2545_v51, %v4598_v15  ;;  %v953_v34 = vmul.f32 %v3110_v12, %v2508_v38 }
  0xeb   :  { %928 = vrot.lane.b32.xlu1 %v926_v58, %s2373_s28 }
  0xec   :  { %v524_v33 = vadd.f32 %v523_v9, %v522_v25  ;;  %v937_v9 = vmul.f32 %v3085_v29, %v4599_v36 }
  0xee   :  { %v530_v1 = vadd.f32 %v528_v27, %v524_v33  ;;  %v617_v6 = vpop.permute.xlu2 %616  ;;  %v577_v27 = vmul.f32 %v2550_v52, %v2967_v21 }
  0xef   :  { %v555_v17 = vpop.permute.xlu1 %554 }
  0xf0   :  { %v2252_v40 = vld [vmem:[%s4457_s3 + $0x122] sm:$0xff]  ;;  %920 = vrot.lane.b32.xlu0 %v918_v37, %s2373_s28  ;;  %v532_v53 = vadd.f32 %v531_v22, %v530_v1  ;;  %v945_v1 = vmul.f32 %v3078_v59, %v2429_v8  ;;  %v4600_v37 = vld [vmem:[#allocation43_spill] sm:$0xff] }
  0xf1   :  { %v547_v23 = vpop.permute.xlu0 %546  ;;  %v576_v33 = vadd.f32 %v2252_v40, %v2672_v60  ;;  %v558_v22 = vmul.f32 %v2564_v56, %v4600_v37 }
  0xf2   :  { %v538_v25 = vadd.f32 %v3070_v39, %v532_v53  ;;  %v549_v58 = vadd.f32 %v547_v23, %v543_v5  ;;  %939 = vrot.lane.b32.xlu2 %v937_v9, %s2373_s28  ;;  %v4601_v5 = vld [vmem:[#allocation32_spill] sm:$0xff] }
  0xf3   :  { %v578_v40 = vadd.f32 %v577_v27, %v576_v33  ;;  %955 = vrot.lane.b32.xlu1 %v953_v34, %s2373_s28  ;;  %v585_v23 = vmul.f32 %v2545_v51, %v4601_v5  ;;  %v4604_v34 = vld [vmem:[#allocation14_spill] sm:$0xff] }
  0xf4   :  { %2249 = vst.msk [vmem:[%s4458_s4 + $0x92] sm:$0xff] %vm468_vm1, %v538_v25  ;;  %v551_v61 = vadd.f32 %v550_v2, %v549_v58  ;;  %v4602_v25 = vld [vmem:[#allocation33_spill] sm:$0xff]  ;;  %v4603_v58 = vld [vmem:[#allocation12_spill] sm:$0xff]  ;;  %v4605_v5 = vld [vmem:[#allocation22_spill] sm:$0xff] }
  0xf5   :  { %v566_v2 = vmul.f32 %v2569_v57, %v4602_v25  ;;  %v961_v37 = vmul.f32 %v3121_v54, %v4603_v58 }
  0xf6   :  { %v557_v53 = vadd.f32 %v555_v17, %v551_v61  ;;  %v3180_v39 = vpop.permute.xlu2 %640 }
  0xf7   :  { %v582_v8 = vpop.permute.xlu1 %581 }
  0xf8   :  { %947 = vrot.lane.b32.xlu0 %v945_v1, %s2373_s28  ;;  %v559_v38 = vadd.f32 %v558_v22, %v557_v53  ;;  %v584_v9 = vadd.f32 %v582_v8, %v578_v40  ;;  %v980_v1 = vmul.f32 %v3078_v59, %v4604_v34  ;;  %v972_v22 = vmul.f32 %v3085_v29, %v4605_v5 }
  0xf9   :  { %v571_v33 = vpop.permute.xlu0 %570  ;;  %v593_v53 = vmul.f32 %v2564_v56, %v3008_v14  ;;  %v612_v40 = vmul.f32 %v2550_v52, %v2992_v10 }
  0xfa   :  { %v565_v27 = vadd.f32 %v3104_v35, %v559_v38  ;;  %v586_v61 = vadd.f32 %v585_v23, %v584_v9  ;;  %963 = vrot.lane.b32.xlu2 %v961_v37, %s2373_s28  ;;  %v4607_v37 = vld [vmem:[#allocation21_spill] sm:$0xff] }
  0xfb   :  { %v2254_v17 = vld [vmem:[%s4457_s3 + $0x16a] sm:$0xff]  ;;  %982 = vrot.lane.b32.xlu1 %v980_v1, %s2373_s28 }
  0xfc   :  { %v567_v25 = vadd.f32 %v566_v2, %v565_v27  ;;  %v611_v8 = vadd.f32 %v2254_v17, %v2728_v49  ;;  %v592_v58 = vadd.f32 %v590_v62, %v586_v61  ;;  %v4606_v17 = vld [vmem:[#allocation35_spill] sm:$0xff]  ;;  %v988_v62 = vmul.f32 %v3110_v12, %v4607_v37 }
  0xfd   :  { %v601_v52 = vmul.f32 %v2569_v57, %v4606_v17  ;;  %v1007_v27 = vmul.f32 %v3085_v29, %v2523_v44 }
  0xfe   :  { %v573_v38 = vadd.f32 %v571_v33, %v567_v25  ;;  %v3204_v35 = vpop.permute.xlu2 %671  ;;  %v594_v23 = vadd.f32 %v593_v53, %v592_v58  ;;  %v613_v2 = vadd.f32 %v612_v40, %v611_v8  ;;  %v996_v58 = vmul.f32 %v3121_v54, %v2442_v13 }
  0xff   :  { %v606_v9 = vpop.permute.xlu1 %605 }
 0x100   :  { %974 = vrot.lane.b32.xlu0 %v972_v22, %s2373_s28  ;;  %2251 = vst.msk [vmem:[%s4458_s4 + $0xda] sm:$0xff] %vm468_vm1, %v573_v38  ;;  %v619_v1 = vadd.f32 %v617_v6, %v613_v2  ;;  %v4608_v22 = vld [vmem:[#allocation34_spill] sm:$0xff]  ;;  %v1015_v2 = vmul.f32 %v3078_v59, %v2453_v18 }
 0x101   :  { %v598_v25 = vpop.permute.xlu0 %597  ;;  %v620_v53 = vmul.f32 %v2545_v51, %v4608_v22  ;;  %v628_v51 = vmul.f32 %v2564_v56, %v3015_v43 }
 0x102   :  { %v600_v33 = vadd.f32 %v598_v25, %v594_v23  ;;  %990 = vrot.lane.b32.xlu2 %v988_v62, %s2373_s28  ;;  %v1031_v62 = vmul.f32 %v3121_v54, %v2459_v20 }
 0x103   :  { %1009 = vrot.lane.b32.xlu1 %v1007_v27, %s2373_s28  ;;  %v621_v23 = vadd.f32 %v620_v53, %v619_v1  ;;  %v1023_v27 = vmul.f32 %v3110_v12, %v2529_v46  ;;  %v659_v46 = vmul.f32 %v2791_v63, %v2736_v55 }
 0x104   :  { %v602_v61 = vadd.f32 %v601_v52, %v600_v33  ;;  %v651_v33 = vmul.f32 %v2801_v11, %v2881_v41 }
 0x106   :  { %v608_v8 = vadd.f32 %v606_v9, %v602_v61  ;;  %v699_v40 = vpop.permute.xlu2 %698 }
 0x107   :  { %v649_v38 = vld [vmem:[%s4457_s3 + $0xa] sm:$0xff]  ;;  %v633_v6 = vpop.permute.xlu1 %632 }
 0x108   :  { %998 = vrot.lane.b32.xlu0 %v996_v58, %s2373_s28  ;;  %2253 = vst.msk [vmem:[%s4458_s4 + $0x122] sm:$0xff] %vm468_vm1, %v608_v8  ;;  %v650_v25 = vadd.f32 %v649_v38, %v2622_v30  ;;  %v4609_v58 = vld [vmem:[#allocation36_spill] sm:$0xff] }
 0x109   :  { %v625_v9 = vpop.permute.xlu0 %624  ;;  %v636_v1 = vmul.f32 %v2569_v57, %v4609_v58  ;;  %v1042_v57 = vmul.f32 %v3085_v29, %v2527_v45 }
 0x10a   :  { %v627_v52 = vadd.f32 %v625_v9, %v621_v23  ;;  %1017 = vrot.lane.b32.xlu2 %v1015_v2, %s2373_s28  ;;  %v652_v53 = vadd.f32 %v651_v33, %v650_v25  ;;  %v686_v2 = vmul.f32 %v2801_v11, %v2892_v48  ;;  %v1058_v25 = vmul.f32 %v3110_v12, %v2538_v50 }
 0x10b   :  { %1033 = vrot.lane.b32.xlu1 %v1031_v62, %s2373_s28  ;;  %v1050_v33 = vmul.f32 %v3078_v59, %v2457_v19 }
 0x10c   :  { %v629_v56 = vadd.f32 %v628_v51, %v627_v52 }
 0x10e   :  { %v635_v61 = vadd.f32 %v633_v6, %v629_v56  ;;  %v726_v38 = vpop.permute.xlu2 %725 }
 0x10f   :  { %v2258_v8 = vld [vmem:[%s4457_s3 + $0x52] sm:$0xff]  ;;  %v664_v9 = vpop.permute.xlu1 %663 }
 0x110   :  { %1025 = vrot.lane.b32.xlu0 %v1023_v27, %s2373_s28  ;;  %v637_v23 = vadd.f32 %v636_v1, %v635_v61  ;;  %v685_v6 = vadd.f32 %v2258_v8, %v2610_v16  ;;  %v667_v1 = vmul.f32 %v2844_v31, %v2910_v4 }
 0x111   :  { %v656_v51 = vpop.permute.xlu0 %655 }
 0x112   :  { %v643_v52 = vadd.f32 %v3180_v39, %v637_v23  ;;  %v658_v62 = vadd.f32 %v656_v51, %v652_v53  ;;  %1044 = vrot.lane.b32.xlu2 %v1042_v57, %s2373_s28  ;;  %v687_v56 = vadd.f32 %v686_v2, %v685_v6  ;;  %v694_v53 = vmul.f32 %v2791_v63, %v2721_v42  ;;  %v4610_v23 = vld [vmem:[#allocation30_spill] sm:$0xff] }
 0x113   :  { %1060 = vrot.lane.b32.xlu1 %v1058_v25, %s2373_s28  ;;  %v675_v57 = vmul.f32 %v2851_v47, %v4610_v23  ;;  %v1066_v6 = vmul.f32 %v3121_v54, %v2468_v24  ;;  %v4611_v24 = vld [vmem:[#allocation24_spill] sm:$0xff] }
 0x114   :  { %2255 = vst.msk [vmem:[%s4458_s4 + $0x16a] sm:$0xff] %vm468_vm1, %v643_v52  ;;  %v660_v27 = vadd.f32 %v659_v46, %v658_v62  ;;  %v3278_v46 = vld [vmem:[%s4456_s2 + $0x19] sm:$0xff] }
 0x116   :  { %v666_v39 = vadd.f32 %v664_v9, %v660_v27  ;;  %v3270_v61 = vpop.permute.xlu2 %749  ;;  %v3285_v9 = vld [vmem:[%s4456_s2 + $0x18] sm:$0xff] }
 0x117   :  { %v691_v8 = vpop.permute.xlu1 %690 }
 0x118   :  { %1052 = vrot.lane.b32.xlu0 %v1050_v33, %s2373_s28  ;;  %v668_v51 = vadd.f32 %v667_v1, %v666_v39  ;;  %v693_v2 = vadd.f32 %v691_v8, %v687_v56  ;;  %v1089_v33 = vmul.f32 %v3278_v46, %v2414_v3  ;;  %v1081_v1 = vmul.f32 %v3285_v9, %v2484_v28  ;;  %v4612_v8 = vld [vmem:[#allocation38_spill] sm:$0xff] }
 0x119   :  { %v680_v52 = vpop.permute.xlu0 %679  ;;  %v702_v39 = vmul.f32 %v2844_v31, %v2933_v26  ;;  %v721_v54 = vmul.f32 %v2801_v11, %v4612_v8  ;;  %v4621_v8 = vld [vmem:[#allocation19_spill] sm:$0xff] }
 0x11a   :  { %v674_v25 = vadd.f32 %v3204_v35, %v668_v51  ;;  %v695_v27 = vadd.f32 %v694_v53, %v693_v2  ;;  %1068 = vrot.lane.b32.xlu2 %v1066_v6, %s2373_s28 }
 0x11b   :  { %v2260_v62 = vld [vmem:[%s4457_s3 + $0x9a] sm:$0xff]  ;;  %1091 = vrot.lane.b32.xlu1 %v1089_v33, %s2373_s28  ;;  %v1116_v33 = vmul.f32 %v3285_v9, %v2493_v32  ;;  %v4620_v32 = vld [vmem:[#allocation41_spill] sm:$0xff] }
 0x11c   :  { %v676_v23 = vadd.f32 %v675_v57, %v674_v25  ;;  %v720_v56 = vadd.f32 %v2260_v62, %v4611_v24  ;;  %v701_v42 = vadd.f32 %v699_v40, %v695_v27  ;;  %v3310_v57 = vld [vmem:[%s4456_s2 + $0x58] sm:$0xff] }
 0x11e   :  { %v682_v35 = vadd.f32 %v680_v52, %v676_v23  ;;  %v3304_v51 = vpop.permute.xlu2 %776  ;;  %v703_v53 = vadd.f32 %v702_v39, %v701_v42  ;;  %v722_v6 = vadd.f32 %v721_v54, %v720_v56  ;;  %v4613_v23 = vld [vmem:[#allocation29_spill] sm:$0xff]  ;;  %v3321_v52 = vld [vmem:[%s4456_s2 + $0x59] sm:$0xff]  ;;  %v1097_v42 = vmul.f32 %v3310_v57, %v4593_v0 }
 0x11f   :  { %v715_v40 = vpop.permute.xlu1 %714  ;;  %v710_v2 = vmul.f32 %v2851_v47, %v4613_v23  ;;  %4614 = vst [vmem:[#allocation14_spill] sm:$0xff] %v3321_v52  ;;  %v1105_v54 = vmul.f32 %v3321_v52, %v2427_v7  ;;  %v4615_v39 = vld [vmem:[#allocation25_spill] sm:$0xff]  ;;  %v756_v0 = vmul.f32 %v2801_v11, %v4620_v32 }
 0x120   :  { %1083 = vrot.lane.b32.xlu0 %v1081_v1, %s2373_s28  ;;  %683 = vst.msk [vmem:[%s4458_s4 + $0xa] sm:$0xff] %vm468_vm1, %v682_v35  ;;  %v728_v27 = vadd.f32 %v726_v38, %v722_v6  ;;  %v729_v56 = vmul.f32 %v2791_v63, %v4615_v39  ;;  %v4619_v39 = vld [vmem:[#allocation27_spill] sm:$0xff] }
 0x121   :  { %v707_v62 = vpop.permute.xlu0 %706 }
 0x122   :  { %v709_v25 = vadd.f32 %v707_v62, %v703_v53  ;;  %1099 = vrot.lane.b32.xlu2 %v1097_v42, %s2373_s28  ;;  %v730_v6 = vadd.f32 %v729_v56, %v728_v27  ;;  %v4622_v27 = vld [vmem:[#allocation26_spill] sm:$0xff] }
 0x123   :  { %1118 = vrot.lane.b32.xlu1 %v1116_v33, %s2373_s28  ;;  %v745_v56 = vmul.f32 %v2851_v47, %v4622_v27 }
 0x124   :  { %v711_v1 = vadd.f32 %v710_v2, %v709_v25  ;;  %v4616_v2 = vld [vmem:[#allocation40_spill] sm:$0xff] }
 0x125   :  { %v737_v42 = vmul.f32 %v2844_v31, %v4616_v2 }
 0x126   :  { %v717_v35 = vadd.f32 %v715_v40, %v711_v1  ;;  %v804_v23 = vpop.permute.xlu2 %803  ;;  %v4617_v40 = vld [vmem:[#allocation8_spill] sm:$0xff] }
 0x127   :  { %v2262_v53 = vld [vmem:[%s4457_s3 + $0xe2] sm:$0xff]  ;;  %v742_v38 = vpop.permute.xlu1 %741  ;;  %v1124_v62 = vmul.f32 %v3278_v46, %v4617_v40 }
 0x128   :  { %1107 = vrot.lane.b32.xlu0 %v1105_v54, %s2373_s28  ;;  %2259 = vst.msk [vmem:[%s4458_s4 + $0x52] sm:$0xff] %vm468_vm1, %v717_v35  ;;  %v4618_v54 = vld [vmem:[#allocation9_spill] sm:$0xff]  ;;  %v755_v7 = vadd.f32 %v2262_v53, %v4619_v39  ;;  %v1132_v35 = vmul.f32 %v3310_v57, %v4621_v8  ;;  %v764_v8 = vmul.f32 %v2791_v63, %v4598_v15 }
 0x129   :  { %v734_v25 = vpop.permute.xlu0 %733  ;;  %v1140_v1 = vmul.f32 %v3321_v52, %v4618_v54 }
 0x12a   :  { %v736_v33 = vadd.f32 %v734_v25, %v730_v6  ;;  %1126 = vrot.lane.b32.xlu2 %v1124_v62, %s2373_s28  ;;  %v757_v6 = vadd.f32 %v756_v0, %v755_v7  ;;  %v791_v7 = vmul.f32 %v2801_v11, %v2967_v21 }
 0x12b   :  { %1142 = vrot.lane.b32.xlu1 %v1140_v1, %s2373_s28 }
 0x12c   :  { %v738_v2 = vadd.f32 %v737_v42, %v736_v33  ;;  %v1151_v42 = vmul.f32 %v3285_v9, %v4599_v36  ;;  %v4623_v33 = vld [vmem:[#allocation20_spill] sm:$0xff]  ;;  %v4625_v36 = vld [vmem:[#allocation43_spill] sm:$0xff] }
 0x12d   :  { %v1167_v1 = vmul.f32 %v3310_v57, %v4623_v33 }
 0x12e   :  { %v744_v40 = vadd.f32 %v742_v38, %v738_v2  ;;  %v831_v25 = vpop.permute.xlu2 %830 }
 0x12f   :  { %v2264_v53 = vld [vmem:[%s4457_s3 + $0x12a] sm:$0xff]  ;;  %v769_v39 = vpop.permute.xlu1 %768 }
 0x130   :  { %1134 = vrot.lane.b32.xlu0 %v1132_v35, %s2373_s28  ;;  %v746_v32 = vadd.f32 %v745_v56, %v744_v40  ;;  %v790_v38 = vadd.f32 %v2264_v53, %v2672_v60  ;;  %v4624_v40 = vld [vmem:[#allocation11_spill] sm:$0xff]  ;;  %v772_v53 = vmul.f32 %v2844_v31, %v4625_v36 }
 0x131   :  { %v761_v62 = vpop.permute.xlu0 %760  ;;  %v1159_v35 = vmul.f32 %v3278_v46, %v4624_v40 }
 0x132   :  { %v752_v0 = vadd.f32 %v3270_v61, %v746_v32  ;;  %v763_v2 = vadd.f32 %v761_v62, %v757_v6  ;;  %1153 = vrot.lane.b32.xlu2 %v1151_v42, %s2373_s28  ;;  %v792_v21 = vadd.f32 %v791_v7, %v790_v38  ;;  %v4626_v6 = vld [vmem:[#allocation32_spill] sm:$0xff] }
 0x133   :  { %1169 = vrot.lane.b32.xlu1 %v1167_v1, %s2373_s28  ;;  %v799_v62 = vmul.f32 %v2791_v63, %v4626_v6  ;;  %v1194_v1 = vmul.f32 %v3278_v46, %v4604_v34 }
 0x134   :  { %2261 = vst.msk [vmem:[%s4458_s4 + $0x9a] sm:$0xff] %vm468_vm1, %v752_v0  ;;  %v765_v56 = vadd.f32 %v764_v8, %v763_v2  ;;  %v4627_v0 = vld [vmem:[#allocation33_spill] sm:$0xff]  ;;  %v4628_v2 = vld [vmem:[#allocation12_spill] sm:$0xff] }
 0x135   :  { %v780_v8 = vmul.f32 %v2851_v47, %v4627_v0  ;;  %v1175_v36 = vmul.f32 %v3321_v52, %v4628_v2 }
 0x136   :  { %v771_v32 = vadd.f32 %v769_v39, %v765_v56  ;;  %v3380_v61 = vpop.permute.xlu2 %854  ;;  %v1186_v56 = vmul.f32 %v3285_v9, %v4605_v5 }
 0x137   :  { %v796_v40 = vpop.permute.xlu1 %795 }
 0x138   :  { %1161 = vrot.lane.b32.xlu0 %v1159_v35, %s2373_s28  ;;  %v773_v33 = vadd.f32 %v772_v53, %v771_v32  ;;  %v798_v42 = vadd.f32 %v796_v40, %v792_v21  ;;  %v807_v53 = vmul.f32 %v2844_v31, %v3008_v14  ;;  %v826_v40 = vmul.f32 %v2801_v11, %v2992_v10 }
 0x139   :  { %v785_v38 = vpop.permute.xlu0 %784  ;;  %v815_v11 = vmul.f32 %v2851_v47, %v4606_v17 }
 0x13a   :  { %v779_v7 = vadd.f32 %v3304_v51, %v773_v33  ;;  %v800_v35 = vadd.f32 %v799_v62, %v798_v42  ;;  %1177 = vrot.lane.b32.xlu2 %v1175_v36, %s2373_s28  ;;  %v1202_v36 = vmul.f32 %v3310_v57, %v4607_v37 }
 0x13b   :  { %v2266_v39 = vld [vmem:[%s4457_s3 + $0x172] sm:$0xff]  ;;  %1196 = vrot.lane.b32.xlu1 %v1194_v1, %s2373_s28 }
 0x13c   :  { %v781_v32 = vadd.f32 %v780_v8, %v779_v7  ;;  %v825_v21 = vadd.f32 %v2266_v39, %v2728_v49  ;;  %v806_v2 = vadd.f32 %v804_v23, %v800_v35  ;;  %v1221_v39 = vmul.f32 %v3285_v9, %v2523_v44 }
 0x13d   :  { %v834_v35 = vmul.f32 %v2791_v63, %v4608_v22  ;;  %v842_v63 = vmul.f32 %v2844_v31, %v3015_v43 }
 0x13e   :  { %v787_v51 = vadd.f32 %v785_v38, %v781_v32  ;;  %v3404_v33 = vpop.permute.xlu2 %885  ;;  %v808_v62 = vadd.f32 %v807_v53, %v806_v2  ;;  %v827_v8 = vadd.f32 %v826_v40, %v825_v21  ;;  %v1210_v2 = vmul.f32 %v3321_v52, %v2442_v13 }
 0x13f   :  { %v820_v42 = vpop.permute.xlu1 %819  ;;  %v1229_v40 = vmul.f32 %v3278_v46, %v2453_v18 }
 0x140   :  { %1188 = vrot.lane.b32.xlu0 %v1186_v56, %s2373_s28  ;;  %2263 = vst.msk [vmem:[%s4458_s4 + $0xe2] sm:$0xff] %vm468_vm1, %v787_v51  ;;  %v833_v7 = vadd.f32 %v831_v25, %v827_v8  ;;  %v1245_v8 = vmul.f32 %v3321_v52, %v2459_v20 }
 0x142   :  { %v812_v23 = vpop.permute.xlu0 %811  ;;  %1204 = vrot.lane.b32.xlu2 %v1202_v36, %s2373_s28  ;;  %v835_v21 = vadd.f32 %v834_v35, %v833_v7  ;;  %v4629_v36 = vld [vmem:[#allocation23_spill] sm:$0xff] }
 0x143   :  { %v814_v38 = vadd.f32 %v812_v23, %v808_v62  ;;  %1223 = vrot.lane.b32.xlu1 %v1221_v39, %s2373_s28  ;;  %v1237_v23 = vmul.f32 %v3310_v57, %v4629_v36 }
 0x145   :  { %v816_v1 = vadd.f32 %v815_v11, %v814_v38  ;;  %v865_v11 = vmul.f32 %v3085_v29, %v2881_v41  ;;  %v850_v38 = vmul.f32 %v2851_v47, %v4609_v58  ;;  %v1256_v47 = vmul.f32 %v3285_v9, %v2527_v45 }
 0x146   :  { %v913_v53 = vpop.permute.xlu2 %912 }
 0x147   :  { %v822_v56 = vadd.f32 %v820_v42, %v816_v1  ;;  %v863_v32 = vld [vmem:[%s4457_s3 + $0x12] sm:$0xff]  ;;  %v847_v25 = vpop.permute.xlu1 %846 }
 0x148   :  { %1212 = vrot.lane.b32.xlu0 %v1210_v2, %s2373_s28  ;;  %v864_v42 = vadd.f32 %v863_v32, %v2622_v30  ;;  %v873_v32 = vmul.f32 %v3078_v59, %v2736_v55 }
 0x149   :  { %2265 = vst.msk [vmem:[%s4458_s4 + $0x12a] sm:$0xff] %vm468_vm1, %v822_v56 }
 0x14a   :  { %v839_v51 = vpop.permute.xlu0 %838  ;;  %1231 = vrot.lane.b32.xlu2 %v1229_v40, %s2373_s28  ;;  %v866_v2 = vadd.f32 %v865_v11, %v864_v42  ;;  %v881_v11 = vmul.f32 %v3110_v12, %v2910_v4 }
 0x14b   :  { %v841_v62 = vadd.f32 %v839_v51, %v835_v21  ;;  %1247 = vrot.lane.b32.xlu1 %v1245_v8, %s2373_s28  ;;  %v1264_v8 = vmul.f32 %v3278_v46, %v2457_v19 }
 0x14d   :  { %v843_v31 = vadd.f32 %v842_v63, %v841_v62  ;;  %v900_v63 = vmul.f32 %v3085_v29, %v2892_v48  ;;  %v1272_v62 = vmul.f32 %v3310_v57, %v2538_v50 }
 0x14e   :  { %v940_v1 = vpop.permute.xlu2 %939 }
 0x14f   :  { %v849_v39 = vadd.f32 %v847_v25, %v843_v31  ;;  %v878_v56 = vpop.permute.xlu1 %877  ;;  %v4630_v31 = vld [vmem:[#allocation28_spill] sm:$0xff] }
 0x150   :  { %v2270_v7 = vld [vmem:[%s4457_s3 + $0x5a] sm:$0xff]  ;;  %1239 = vrot.lane.b32.xlu0 %v1237_v23, %s2373_s28 }
 0x151   :  { %v851_v35 = vadd.f32 %v850_v38, %v849_v39  ;;  %v899_v25 = vadd.f32 %v2270_v7, %v2610_v16  ;;  %v908_v39 = vmul.f32 %v3078_v59, %v4630_v31 }
 0x152   :  { %v870_v21 = vpop.permute.xlu0 %869  ;;  %1258 = vrot.lane.b32.xlu2 %v1256_v47, %s2373_s28 }
 0x153   :  { %v857_v40 = vadd.f32 %v3380_v61, %v851_v35  ;;  %v872_v51 = vadd.f32 %v870_v21, %v866_v2  ;;  %v901_v23 = vadd.f32 %v900_v63, %v899_v25  ;;  %1274 = vrot.lane.b32.xlu1 %v1272_v62, %s2373_s28  ;;  %v3478_v2 = vld [vmem:[%s4456_s2 + $0x21] sm:$0xff]  ;;  %v4631_v35 = vld [vmem:[#allocation30_spill] sm:$0xff]  ;;  %v4633_v25 = vld [vmem:[#allocation15_spill] sm:$0xff] }
 0x154   :  { %v1280_v63 = vmul.f32 %v3321_v52, %v4633_v25 }
 0x155   :  { %2267 = vst.msk [vmem:[%s4458_s4 + $0x172] sm:$0xff] %vm468_vm1, %v857_v40  ;;  %v874_v42 = vadd.f32 %v873_v32, %v872_v51  ;;  %v4632_v32 = vld [vmem:[#allocation44_spill] sm:$0xff] }
 0x156   :  { %v3470_v38 = vpop.permute.xlu2 %963  ;;  %v889_v47 = vmul.f32 %v4632_v32, %v4631_v35  ;;  %v916_v35 = vmul.f32 %v3110_v12, %v2933_v26 }
 0x157   :  { %v880_v61 = vadd.f32 %v878_v56, %v874_v42  ;;  %v905_v7 = vpop.permute.xlu1 %904  ;;  %v3485_v56 = vld [vmem:[%s4456_s2 + $0x20] sm:$0xff]  ;;  %v1303_v42 = vmul.f32 %v3478_v2, %v2414_v3 }
 0x158   :  { %1266 = vrot.lane.b32.xlu0 %v1264_v8, %s2373_s28  ;;  %v907_v40 = vadd.f32 %v905_v7, %v901_v23  ;;  %v4634_v7 = vld [vmem:[#allocation38_spill] sm:$0xff] }
 0x159   :  { %v882_v21 = vadd.f32 %v881_v11, %v880_v61  ;;  %v1295_v61 = vmul.f32 %v3485_v56, %v2484_v28  ;;  %v935_v25 = vmul.f32 %v3085_v29, %v4634_v7  ;;  %v4641_v7 = vld [vmem:[#allocation25_spill] sm:$0xff] }
 0x15a   :  { %v894_v51 = vpop.permute.xlu0 %893  ;;  %v909_v11 = vadd.f32 %v908_v39, %v907_v40  ;;  %1282 = vrot.lane.b32.xlu2 %v1280_v63, %s2373_s28 }
 0x15b   :  { %v888_v8 = vadd.f32 %v3404_v33, %v882_v21  ;;  %1305 = vrot.lane.b32.xlu1 %v1303_v42, %s2373_s28  ;;  %v4639_v42 = vld [vmem:[#allocation17_spill] sm:$0xff] }
 0x15c   :  { %v2272_v62 = vld [vmem:[%s4457_s3 + $0xa2] sm:$0xff]  ;;  %v915_v52 = vadd.f32 %v913_v53, %v909_v11  ;;  %v1330_v11 = vmul.f32 %v3485_v56, %v4639_v42 }
 0x15d   :  { %v890_v31 = vadd.f32 %v889_v47, %v888_v8  ;;  %v934_v23 = vadd.f32 %v2272_v62, %v4611_v24  ;;  %v3510_v47 = vld [vmem:[%s4456_s2 + $0x60] sm:$0xff] }
 0x15e   :  { %v3504_v21 = vpop.permute.xlu2 %990  ;;  %v917_v39 = vadd.f32 %v916_v35, %v915_v52  ;;  %4635 = vst [vmem:[#allocation22_spill] sm:$0xff] %v3510_v47  ;;  %v4638_v52 = vld [vmem:[#allocation16_spill] sm:$0xff] }
 0x15f   :  { %v896_v33 = vadd.f32 %v894_v51, %v890_v31  ;;  %v936_v63 = vadd.f32 %v935_v25, %v934_v23  ;;  %v929_v53 = vpop.permute.xlu1 %928  ;;  %v4636_v31 = vld [vmem:[#allocation29_spill] sm:$0xff]  ;;  %v1311_v35 = vmul.f32 %v3510_v47, %v4638_v52  ;;  %v4646_v52 = vld [vmem:[#allocation19_spill] sm:$0xff] }
 0x160   :  { %1297 = vrot.lane.b32.xlu0 %v1295_v61, %s2373_s28  ;;  %v924_v40 = vmul.f32 %v4632_v32, %v4636_v31  ;;  %v3521_v51 = vld [vmem:[%s4456_s2 + $0x61] sm:$0xff]  ;;  %v4640_v61 = vld [vmem:[#allocation10_spill] sm:$0xff]  ;;  %v943_v31 = vmul.f32 %v3078_v59, %v4641_v7 }
 0x161   :  { %897 = vst.msk [vmem:[%s4458_s4 + $0x12] sm:$0xff] %vm468_vm1, %v896_v33  ;;  %v1319_v25 = vmul.f32 %v3521_v51, %v4640_v61  ;;  %v942_v23 = vadd.f32 %v940_v1, %v936_v63  ;;  %v4645_v61 = vld [vmem:[#allocation41_spill] sm:$0xff] }
 0x162   :  { %4637 = vst [vmem:[#allocation35_spill] sm:$0xff] %v3521_v51  ;;  %v921_v62 = vpop.permute.xlu0 %920  ;;  %1313 = vrot.lane.b32.xlu2 %v1311_v35, %s2373_s28  ;;  %v970_v42 = vmul.f32 %v3085_v29, %v4645_v61 }
 0x163   :  { %v923_v8 = vadd.f32 %v921_v62, %v917_v39  ;;  %1332 = vrot.lane.b32.xlu1 %v1330_v11, %s2373_s28  ;;  %v944_v63 = vadd.f32 %v943_v31, %v942_v23  ;;  %v959_v31 = vmul.f32 %v4632_v32, %v4622_v27  ;;  %v4647_v27 = vld [vmem:[#allocation18_spill] sm:$0xff] }
 0x165   :  { %v925_v33 = vadd.f32 %v924_v40, %v923_v8  ;;  %v4642_v40 = vld [vmem:[#allocation40_spill] sm:$0xff] }
 0x166   :  { %v1018_v26 = vpop.permute.xlu2 %1017  ;;  %v951_v35 = vmul.f32 %v3110_v12, %v4642_v40 }
 0x167   :  { %v931_v24 = vadd.f32 %v929_v53, %v925_v33  ;;  %v956_v1 = vpop.permute.xlu1 %955  ;;  %v4643_v53 = vld [vmem:[#allocation8_spill] sm:$0xff]  ;;  %v4644_v33 = vld [vmem:[#allocation27_spill] sm:$0xff] }
 0x168   :  { %1321 = vrot.lane.b32.xlu0 %v1319_v25, %s2373_s28  ;;  %v2274_v39 = vld [vmem:[%s4457_s3 + $0xea] sm:$0xff]  ;;  %v1338_v62 = vmul.f32 %v3478_v2, %v4643_v53  ;;  %v1354_v25 = vmul.f32 %v3521_v51, %v4618_v54 }
 0x169   :  { %2271 = vst.msk [vmem:[%s4458_s4 + $0x5a] sm:$0xff] %vm468_vm1, %v931_v24  ;;  %v969_v7 = vadd.f32 %v2274_v39, %v4644_v33  ;;  %v1346_v24 = vmul.f32 %v3510_v47, %v4646_v52  ;;  %v978_v52 = vmul.f32 %v3078_v59, %v4598_v15  ;;  %v4651_v15 = vld [vmem:[#allocation43_spill] sm:$0xff] }
 0x16a   :  { %v948_v8 = vpop.permute.xlu0 %947  ;;  %1340 = vrot.lane.b32.xlu2 %v1338_v62, %s2373_s28 }
 0x16b   :  { %v950_v11 = vadd.f32 %v948_v8, %v944_v63  ;;  %1356 = vrot.lane.b32.xlu1 %v1354_v25, %s2373_s28  ;;  %v971_v63 = vadd.f32 %v970_v42, %v969_v7 }
 0x16d   :  { %v952_v23 = vadd.f32 %v951_v35, %v950_v11  ;;  %v1365_v35 = vmul.f32 %v3485_v56, %v4647_v27  ;;  %v4648_v11 = vld [vmem:[#allocation42_spill] sm:$0xff] }
 0x16e   :  { %v1045_v8 = vpop.permute.xlu2 %1044  ;;  %v1005_v7 = vmul.f32 %v3085_v29, %v4648_v11 }
 0x16f   :  { %v958_v53 = vadd.f32 %v956_v1, %v952_v23  ;;  %v983_v33 = vpop.permute.xlu1 %982  ;;  %v4649_v23 = vld [vmem:[#allocation20_spill] sm:$0xff] }
 0x170   :  { %v2276_v39 = vld [vmem:[%s4457_s3 + $0x132] sm:$0xff]  ;;  %1348 = vrot.lane.b32.xlu0 %v1346_v24, %s2373_s28  ;;  %v1381_v24 = vmul.f32 %v3510_v47, %v4649_v23 }
 0x171   :  { %v960_v61 = vadd.f32 %v959_v31, %v958_v53  ;;  %v1004_v1 = vadd.f32 %v2276_v39, %v2672_v60  ;;  %v4650_v53 = vld [vmem:[#allocation11_spill] sm:$0xff]  ;;  %v986_v39 = vmul.f32 %v3110_v12, %v4651_v15 }
 0x172   :  { %v975_v62 = vpop.permute.xlu0 %974  ;;  %v1373_v31 = vmul.f32 %v3478_v2, %v4650_v53  ;;  %1367 = vrot.lane.b32.xlu2 %v1365_v35, %s2373_s28 }
 0x173   :  { %v966_v42 = vadd.f32 %v3470_v38, %v960_v61  ;;  %v977_v25 = vadd.f32 %v975_v62, %v971_v63  ;;  %v1006_v11 = vadd.f32 %v1005_v7, %v1004_v1  ;;  %1383 = vrot.lane.b32.xlu1 %v1381_v24, %s2373_s28  ;;  %v1013_v63 = vmul.f32 %v3078_v59, %v4626_v6 }
 0x174   :  { %v1408_v7 = vmul.f32 %v3478_v2, %v4604_v34 }
 0x175   :  { %2273 = vst.msk [vmem:[%s4458_s4 + $0xa2] sm:$0xff] %vm468_vm1, %v966_v42  ;;  %v979_v27 = vadd.f32 %v978_v52, %v977_v25  ;;  %v994_v52 = vmul.f32 %v4632_v32, %v4627_v0  ;;  %v4652_v42 = vld [vmem:[#allocation12_spill] sm:$0xff] }
 0x176   :  { %v3580_v61 = vpop.permute.xlu2 %1068  ;;  %v1389_v25 = vmul.f32 %v3521_v51, %v4652_v42 }
 0x177   :  { %v985_v38 = vadd.f32 %v983_v33, %v979_v27  ;;  %v1010_v62 = vpop.permute.xlu1 %1009 }
 0x178   :  { %1375 = vrot.lane.b32.xlu0 %v1373_v31, %s2373_s28  ;;  %v1012_v35 = vadd.f32 %v1010_v62, %v1006_v11  ;;  %v1400_v31 = vmul.f32 %v3485_v56, %v4605_v5  ;;  %v1040_v62 = vmul.f32 %v3085_v29, %v2992_v10  ;;  %v1029_v29 = vmul.f32 %v4632_v32, %v4606_v17 }
 0x179   :  { %v987_v53 = vadd.f32 %v986_v39, %v985_v38  ;;  %v1021_v39 = vmul.f32 %v3110_v12, %v3008_v14 }
 0x17a   :  { %v999_v1 = vpop.permute.xlu0 %998  ;;  %v1014_v24 = vadd.f32 %v1013_v63, %v1012_v35  ;;  %1391 = vrot.lane.b32.xlu2 %v1389_v25, %s2373_s28 }
 0x17b   :  { %v993_v33 = vadd.f32 %v3504_v21, %v987_v53  ;;  %1410 = vrot.lane.b32.xlu1 %v1408_v7, %s2373_s28 }
 0x17c   :  { %v2278_v27 = vld [vmem:[%s4457_s3 + $0x17a] sm:$0xff]  ;;  %v1020_v42 = vadd.f32 %v1018_v26, %v1014_v24  ;;  %v1416_v26 = vmul.f32 %v3510_v47, %v4607_v37  ;;  %v1048_v24 = vmul.f32 %v3078_v59, %v4608_v22  ;;  %v1056_v59 = vmul.f32 %v3110_v12, %v3015_v43 }
 0x17d   :  { %v995_v38 = vadd.f32 %v994_v52, %v993_v33  ;;  %v1039_v11 = vadd.f32 %v2278_v27, %v2728_v49  ;;  %v1435_v27 = vmul.f32 %v3485_v56, %v2523_v44 }
 0x17e   :  { %v3604_v53 = vpop.permute.xlu2 %1099  ;;  %v1022_v63 = vadd.f32 %v1021_v39, %v1020_v42  ;;  %v1424_v42 = vmul.f32 %v3521_v51, %v2442_v13 }
 0x17f   :  { %v1001_v21 = vadd.f32 %v999_v1, %v995_v38  ;;  %v1041_v52 = vadd.f32 %v1040_v62, %v1039_v11  ;;  %v1034_v35 = vpop.permute.xlu1 %1033  ;;  %v1443_v62 = vmul.f32 %v3478_v2, %v2453_v18 }
 0x180   :  { %1402 = vrot.lane.b32.xlu0 %v1400_v31, %s2373_s28 }
 0x181   :  { %2275 = vst.msk [vmem:[%s4458_s4 + $0xea] sm:$0xff] %vm468_vm1, %v1001_v21  ;;  %v1047_v33 = vadd.f32 %v1045_v8, %v1041_v52  ;;  %v1459_v52 = vmul.f32 %v3521_v51, %v2459_v20 }
 0x182   :  { %v1026_v25 = vpop.permute.xlu0 %1025  ;;  %1418 = vrot.lane.b32.xlu2 %v1416_v26, %s2373_s28  ;;  %v1451_v26 = vmul.f32 %v3510_v47, %v4629_v36 }
 0x183   :  { %v1028_v1 = vadd.f32 %v1026_v25, %v1022_v63  ;;  %1437 = vrot.lane.b32.xlu1 %v1435_v27, %s2373_s28  ;;  %v1049_v11 = vadd.f32 %v1048_v24, %v1047_v33  ;;  %v1064_v25 = vmul.f32 %v4632_v32, %v4609_v58  ;;  %v1470_v32 = vmul.f32 %v3485_v56, %v2527_v45 }
 0x185   :  { %v1030_v7 = vadd.f32 %v1029_v29, %v1028_v1  ;;  %v1079_v29 = vmul.f32 %v3285_v9, %v2881_v41 }
 0x186   :  { %v1127_v39 = vpop.permute.xlu2 %1126 }
 0x187   :  { %v1036_v31 = vadd.f32 %v1034_v35, %v1030_v7  ;;  %v1061_v8 = vpop.permute.xlu1 %1060 }
 0x188   :  { %1426 = vrot.lane.b32.xlu0 %v1424_v42, %s2373_s28  ;;  %v1077_v38 = vld [vmem:[%s4457_s3 + $0x1a] sm:$0xff] }
 0x189   :  { %2277 = vst.msk [vmem:[%s4458_s4 + $0x132] sm:$0xff] %vm468_vm1, %v1036_v31  ;;  %v1078_v35 = vadd.f32 %v1077_v38, %v2622_v30  ;;  %v1087_v31 = vmul.f32 %v3278_v46, %v2736_v55 }
 0x18a   :  { %v1053_v21 = vpop.permute.xlu0 %1052  ;;  %1445 = vrot.lane.b32.xlu2 %v1443_v62, %s2373_s28 }
 0x18b   :  { %v1055_v63 = vadd.f32 %v1053_v21, %v1049_v11  ;;  %1461 = vrot.lane.b32.xlu1 %v1459_v52, %s2373_s28  ;;  %v1080_v27 = vadd.f32 %v1079_v29, %v1078_v35  ;;  %v1114_v11 = vmul.f32 %v3285_v9, %v2892_v48  ;;  %v1486_v21 = vmul.f32 %v3510_v47, %v2538_v50 }
 0x18c   :  { %v1095_v35 = vmul.f32 %v3310_v57, %v2910_v4 }
 0x18d   :  { %v1057_v12 = vadd.f32 %v1056_v59, %v1055_v63  ;;  %v1478_v63 = vmul.f32 %v3478_v2, %v2457_v19 }
 0x18e   :  { %v1154_v33 = vpop.permute.xlu2 %1153 }
 0x18f   :  { %v1063_v1 = vadd.f32 %v1061_v8, %v1057_v12  ;;  %v1092_v24 = vpop.permute.xlu1 %1091 }
 0x190   :  { %v2282_v42 = vld [vmem:[%s4457_s3 + $0x62] sm:$0xff]  ;;  %1453 = vrot.lane.b32.xlu0 %v1451_v26, %s2373_s28 }
 0x191   :  { %v1065_v7 = vadd.f32 %v1064_v25, %v1063_v1  ;;  %v1113_v8 = vadd.f32 %v2282_v42, %v2610_v16  ;;  %v4653_v25 = vld [vmem:[#allocation28_spill] sm:$0xff]  ;;  %v3678_v1 = vld [vmem:[%s4456_s2 + $0x29] sm:$0xff] }
 0x192   :  { %v1084_v38 = vpop.permute.xlu0 %1083  ;;  %1472 = vrot.lane.b32.xlu2 %v1470_v32, %s2373_s28  ;;  %v1122_v12 = vmul.f32 %v3278_v46, %v4653_v25  ;;  %v4654_v42 = vld [vmem:[#allocation30_spill] sm:$0xff] }
 0x193   :  { %v1071_v59 = vadd.f32 %v3580_v61, %v1065_v7  ;;  %v1086_v62 = vadd.f32 %v1084_v38, %v1080_v27  ;;  %v1115_v29 = vadd.f32 %v1114_v11, %v1113_v8  ;;  %1488 = vrot.lane.b32.xlu1 %v1486_v21, %s2373_s28  ;;  %v4655_v7 = vld [vmem:[#allocation14_spill] sm:$0xff]  ;;  %v4656_v38 = vld [vmem:[#allocation15_spill] sm:$0xff] }
 0x194   :  { %v1494_v8 = vmul.f32 %v3521_v51, %v4656_v38  ;;  %v4658_v38 = vld [vmem:[#allocation24_spill] sm:$0xff] }
 0x195   :  { %2279 = vst.msk [vmem:[%s4458_s4 + $0x17a] sm:$0xff] %vm468_vm1, %v1071_v59  ;;  %v1088_v52 = vadd.f32 %v1087_v31, %v1086_v62  ;;  %v1103_v31 = vmul.f32 %v4655_v7, %v4654_v42 }
 0x196   :  { %v3670_v26 = vpop.permute.xlu2 %1177 }
 0x197   :  { %v1094_v61 = vadd.f32 %v1092_v24, %v1088_v52  ;;  %v1119_v27 = vpop.permute.xlu1 %1118  ;;  %v3685_v24 = vld [vmem:[%s4456_s2 + $0x28] sm:$0xff] }
 0x198   :  { %1480 = vrot.lane.b32.xlu0 %v1478_v63, %s2373_s28  ;;  %v1121_v11 = vadd.f32 %v1119_v27, %v1115_v29  ;;  %v1517_v63 = vmul.f32 %v3678_v1, %v2414_v3  ;;  %v4659_v27 = vld [vmem:[#allocation38_spill] sm:$0xff] }
 0x199   :  { %v1096_v32 = vadd.f32 %v1095_v35, %v1094_v61  ;;  %v1509_v35 = vmul.f32 %v3685_v24, %v2484_v28  ;;  %v4657_v61 = vld [vmem:[#allocation39_spill] sm:$0xff]  ;;  %v1149_v51 = vmul.f32 %v3285_v9, %v4659_v27  ;;  %v4666_v27 = vld [vmem:[#allocation25_spill] sm:$0xff] }
 0x19a   :  { %v1108_v59 = vpop.permute.xlu0 %1107  ;;  %v1123_v52 = vadd.f32 %v1122_v12, %v1121_v11  ;;  %v1130_v42 = vmul.f32 %v3310_v57, %v4657_v61  ;;  %1496 = vrot.lane.b32.xlu2 %v1494_v8, %s2373_s28 }
 0x19b   :  { %v1102_v21 = vadd.f32 %v3604_v53, %v1096_v32  ;;  %1519 = vrot.lane.b32.xlu1 %v1517_v63, %s2373_s28  ;;  %v4664_v63 = vld [vmem:[#allocation17_spill] sm:$0xff] }
 0x19c   :  { %v2284_v62 = vld [vmem:[%s4457_s3 + $0xaa] sm:$0xff]  ;;  %v1129_v47 = vadd.f32 %v1127_v39, %v1123_v52  ;;  %v1544_v52 = vmul.f32 %v3685_v24, %v4664_v63  ;;  %v4670_v63 = vld [vmem:[#allocation19_spill] sm:$0xff] }
 0x19d   :  { %v1104_v25 = vadd.f32 %v1103_v31, %v1102_v21  ;;  %v1148_v29 = vadd.f32 %v2284_v62, %v4658_v38  ;;  %v3710_v31 = vld [vmem:[%s4456_s2 + $0x68] sm:$0xff] }
 0x19e   :  { %v3704_v32 = vpop.permute.xlu2 %1204  ;;  %v1131_v12 = vadd.f32 %v1130_v42, %v1129_v47  ;;  %4660 = vst [vmem:[#allocation21_spill] sm:$0xff] %v3710_v31  ;;  %v4663_v47 = vld [vmem:[#allocation16_spill] sm:$0xff] }
 0x19f   :  { %v1110_v53 = vadd.f32 %v1108_v59, %v1104_v25  ;;  %v1150_v8 = vadd.f32 %v1149_v51, %v1148_v29  ;;  %v1143_v39 = vpop.permute.xlu1 %1142  ;;  %v4661_v25 = vld [vmem:[#allocation29_spill] sm:$0xff]  ;;  %v1525_v42 = vmul.f32 %v3710_v31, %v4663_v47 }
 0x1a0   :  { %1511 = vrot.lane.b32.xlu0 %v1509_v35, %s2373_s28  ;;  %v1138_v11 = vmul.f32 %v4655_v7, %v4661_v25  ;;  %v3721_v59 = vld [vmem:[%s4456_s2 + $0x69] sm:$0xff]  ;;  %v1157_v25 = vmul.f32 %v3278_v46, %v4666_v27 }
 0x1a1   :  { %1111 = vst.msk [vmem:[%s4458_s4 + $0x1a] sm:$0xff] %vm468_vm1, %v1110_v53  ;;  %v4665_v35 = vld [vmem:[#allocation10_spill] sm:$0xff]  ;;  %v1156_v29 = vadd.f32 %v1154_v33, %v1150_v8  ;;  %v4669_v27 = vld [vmem:[#allocation41_spill] sm:$0xff] }
 0x1a2   :  { %4662 = vst [vmem:[#allocation34_spill] sm:$0xff] %v3721_v59  ;;  %v1135_v62 = vpop.permute.xlu0 %1134  ;;  %v1533_v51 = vmul.f32 %v3721_v59, %v4665_v35  ;;  %1527 = vrot.lane.b32.xlu2 %v1525_v42, %s2373_s28  ;;  %v1184_v35 = vmul.f32 %v3285_v9, %v4669_v27 }
 0x1a3   :  { %v1137_v21 = vadd.f32 %v1135_v62, %v1131_v12  ;;  %1546 = vrot.lane.b32.xlu1 %v1544_v52, %s2373_s28  ;;  %v1158_v8 = vadd.f32 %v1157_v25, %v1156_v29  ;;  %v1568_v52 = vmul.f32 %v3721_v59, %v4618_v54  ;;  %v4671_v25 = vld [vmem:[#allocation26_spill] sm:$0xff] }
 0x1a4   :  { %v1173_v29 = vmul.f32 %v4655_v7, %v4671_v25  ;;  %v4673_v25 = vld [vmem:[#allocation18_spill] sm:$0xff] }
 0x1a5   :  { %v1139_v53 = vadd.f32 %v1138_v11, %v1137_v21  ;;  %v1165_v11 = vmul.f32 %v3310_v57, %v4642_v40 }
 0x1a6   :  { %v1232_v61 = vpop.permute.xlu2 %1231 }
 0x1a7   :  { %v1145_v38 = vadd.f32 %v1143_v39, %v1139_v53  ;;  %v1170_v33 = vpop.permute.xlu1 %1169  ;;  %v4667_v39 = vld [vmem:[#allocation8_spill] sm:$0xff] }
 0x1a8   :  { %1535 = vrot.lane.b32.xlu0 %v1533_v51, %s2373_s28  ;;  %v2286_v12 = vld [vmem:[%s4457_s3 + $0xf2] sm:$0xff]  ;;  %v1552_v42 = vmul.f32 %v3678_v1, %v4667_v39 }
 0x1a9   :  { %2283 = vst.msk [vmem:[%s4458_s4 + $0x62] sm:$0xff] %vm468_vm1, %v1145_v38  ;;  %v4668_v51 = vld [vmem:[#allocation27_spill] sm:$0xff]  ;;  %v1560_v38 = vmul.f32 %v3710_v31, %v4670_v63 }
 0x1aa   :  { %v1162_v62 = vpop.permute.xlu0 %1161  ;;  %v1183_v53 = vadd.f32 %v2286_v12, %v4668_v51  ;;  %1554 = vrot.lane.b32.xlu2 %v1552_v42, %s2373_s28  ;;  %v4672_v63 = vld [vmem:[#allocation31_spill] sm:$0xff] }
 0x1ab   :  { %v1164_v21 = vadd.f32 %v1162_v62, %v1158_v8  ;;  %1570 = vrot.lane.b32.xlu1 %v1568_v52, %s2373_s28  ;;  %v1192_v54 = vmul.f32 %v3278_v46, %v4672_v63 }
 0x1ac   :  { %v1185_v8 = vadd.f32 %v1184_v35, %v1183_v53  ;;  %v1595_v53 = vmul.f32 %v3710_v31, %v4649_v23 }
 0x1ad   :  { %v1166_v40 = vadd.f32 %v1165_v11, %v1164_v21  ;;  %v1579_v11 = vmul.f32 %v3685_v24, %v4673_v25 }
 0x1ae   :  { %v1259_v62 = vpop.permute.xlu2 %1258 }
 0x1af   :  { %v1172_v39 = vadd.f32 %v1170_v33, %v1166_v40  ;;  %v1197_v51 = vpop.permute.xlu1 %1196  ;;  %v4674_v33 = vld [vmem:[#allocation42_spill] sm:$0xff] }
 0x1b0   :  { %v2288_v12 = vld [vmem:[%s4457_s3 + $0x13a] sm:$0xff]  ;;  %1562 = vrot.lane.b32.xlu0 %v1560_v38, %s2373_s28  ;;  %v1219_v35 = vmul.f32 %v3285_v9, %v4674_v33 }
 0x1b1   :  { %v1174_v27 = vadd.f32 %v1173_v29, %v1172_v39  ;;  %v1218_v40 = vadd.f32 %v2288_v12, %v2672_v60  ;;  %v4675_v39 = vld [vmem:[#allocation11_spill] sm:$0xff]  ;;  %v1200_v12 = vmul.f32 %v3310_v57, %v4651_v15 }
 0x1b2   :  { %v1189_v42 = vpop.permute.xlu0 %1188  ;;  %v1587_v38 = vmul.f32 %v3678_v1, %v4675_v39  ;;  %1581 = vrot.lane.b32.xlu2 %v1579_v11, %s2373_s28 }
 0x1b3   :  { %v1180_v21 = vadd.f32 %v3670_v26, %v1174_v27  ;;  %v1191_v52 = vadd.f32 %v1189_v42, %v1185_v8  ;;  %v1220_v33 = vadd.f32 %v1219_v35, %v1218_v40  ;;  %1597 = vrot.lane.b32.xlu1 %v1595_v53, %s2373_s28  ;;  %v1227_v8 = vmul.f32 %v3278_v46, %v4626_v6 }
 0x1b4   :  { %v1622_v53 = vmul.f32 %v3678_v1, %v4604_v34 }
 0x1b5   :  { %2285 = vst.msk [vmem:[%s4458_s4 + $0xaa] sm:$0xff] %vm468_vm1, %v1180_v21  ;;  %v1193_v29 = vadd.f32 %v1192_v54, %v1191_v52  ;;  %v1208_v54 = vmul.f32 %v4655_v7, %v4627_v0  ;;  %v4676_v21 = vld [vmem:[#allocation12_spill] sm:$0xff] }
 0x1b6   :  { %v3780_v27 = vpop.permute.xlu2 %1282  ;;  %v1603_v52 = vmul.f32 %v3721_v59, %v4676_v21 }
 0x1b7   :  { %v1199_v26 = vadd.f32 %v1197_v51, %v1193_v29  ;;  %v1224_v42 = vpop.permute.xlu1 %1223  ;;  %v1614_v29 = vmul.f32 %v3685_v24, %v4605_v5 }
 0x1b8   :  { %1589 = vrot.lane.b32.xlu0 %v1587_v38, %s2373_s28  ;;  %v1226_v11 = vadd.f32 %v1224_v42, %v1220_v33  ;;  %v1254_v42 = vmul.f32 %v3285_v9, %v2992_v10  ;;  %v1243_v9 = vmul.f32 %v4655_v7, %v4606_v17 }
 0x1b9   :  { %v1201_v39 = vadd.f32 %v1200_v12, %v1199_v26  ;;  %v1235_v12 = vmul.f32 %v3310_v57, %v3008_v14 }
 0x1ba   :  { %v1213_v40 = vpop.permute.xlu0 %1212  ;;  %v1228_v38 = vadd.f32 %v1227_v8, %v1226_v11  ;;  %1605 = vrot.lane.b32.xlu2 %v1603_v52, %s2373_s28 }
 0x1bb   :  { %v1207_v35 = vadd.f32 %v3704_v32, %v1201_v39  ;;  %1624 = vrot.lane.b32.xlu1 %v1622_v53, %s2373_s28 }
 0x1bc   :  { %v2290_v51 = vld [vmem:[%s4457_s3 + $0x182] sm:$0xff]  ;;  %v1234_v21 = vadd.f32 %v1232_v61, %v1228_v38  ;;  %v1630_v61 = vmul.f32 %v3710_v31, %v4607_v37  ;;  %v1262_v38 = vmul.f32 %v3278_v46, %v4608_v22  ;;  %v1270_v46 = vmul.f32 %v3310_v57, %v3015_v43 }
 0x1bd   :  { %v1209_v26 = vadd.f32 %v1208_v54, %v1207_v35  ;;  %v1253_v33 = vadd.f32 %v2290_v51, %v2728_v49  ;;  %v1649_v51 = vmul.f32 %v3685_v24, %v2523_v44 }
 0x1be   :  { %v3804_v39 = vpop.permute.xlu2 %1313  ;;  %v1236_v8 = vadd.f32 %v1235_v12, %v1234_v21  ;;  %v1638_v21 = vmul.f32 %v3721_v59, %v2442_v13 }
 0x1bf   :  { %v1215_v32 = vadd.f32 %v1213_v40, %v1209_v26  ;;  %v1255_v54 = vadd.f32 %v1254_v42, %v1253_v33  ;;  %v1248_v11 = vpop.permute.xlu1 %1247  ;;  %v1657_v42 = vmul.f32 %v3678_v1, %v2453_v18 }
 0x1c0   :  { %1616 = vrot.lane.b32.xlu0 %v1614_v29, %s2373_s28 }
 0x1c1   :  { %2287 = vst.msk [vmem:[%s4458_s4 + $0xf2] sm:$0xff] %vm468_vm1, %v1215_v32  ;;  %v1261_v35 = vadd.f32 %v1259_v62, %v1255_v54  ;;  %v1673_v54 = vmul.f32 %v3721_v59, %v2459_v20 }
 0x1c2   :  { %v1240_v52 = vpop.permute.xlu0 %1239  ;;  %1632 = vrot.lane.b32.xlu2 %v1630_v61, %s2373_s28  ;;  %v1665_v61 = vmul.f32 %v3710_v31, %v4629_v36 }
 0x1c3   :  { %v1242_v40 = vadd.f32 %v1240_v52, %v1236_v8  ;;  %1651 = vrot.lane.b32.xlu1 %v1649_v51, %s2373_s28  ;;  %v1263_v33 = vadd.f32 %v1262_v38, %v1261_v35  ;;  %v1278_v52 = vmul.f32 %v4655_v7, %v4609_v58  ;;  %v1684_v7 = vmul.f32 %v3685_v24, %v2527_v45 }
 0x1c5   :  { %v1244_v53 = vadd.f32 %v1243_v9, %v1242_v40  ;;  %v1293_v9 = vmul.f32 %v3485_v56, %v2881_v41 }
 0x1c6   :  { %v1341_v12 = vpop.permute.xlu2 %1340 }
 0x1c7   :  { %v1250_v29 = vadd.f32 %v1248_v11, %v1244_v53  ;;  %v1275_v62 = vpop.permute.xlu1 %1274 }
 0x1c8   :  { %1640 = vrot.lane.b32.xlu0 %v1638_v21, %s2373_s28  ;;  %v1291_v26 = vld [vmem:[%s4457_s3 + $0x22] sm:$0xff] }
 0x1c9   :  { %2289 = vst.msk [vmem:[%s4458_s4 + $0x13a] sm:$0xff] %vm468_vm1, %v1250_v29  ;;  %v1292_v11 = vadd.f32 %v1291_v26, %v2622_v30  ;;  %v1301_v29 = vmul.f32 %v3478_v2, %v2736_v55 }
 0x1ca   :  { %v1267_v32 = vpop.permute.xlu0 %1266  ;;  %1659 = vrot.lane.b32.xlu2 %v1657_v42, %s2373_s28 }
 0x1cb   :  { %v1269_v8 = vadd.f32 %v1267_v32, %v1263_v33  ;;  %1675 = vrot.lane.b32.xlu1 %v1673_v54, %s2373_s28  ;;  %v1294_v51 = vadd.f32 %v1293_v9, %v1292_v11  ;;  %v1328_v33 = vmul.f32 %v3485_v56, %v2892_v48  ;;  %v1700_v32 = vmul.f32 %v3710_v31, %v2538_v50  ;;  %v4677_v11 = vld [vmem:[#allocation22_spill] sm:$0xff] }
 0x1cc   :  { %v1309_v9 = vmul.f32 %v4677_v11, %v2910_v4 }
 0x1cd   :  { %v1271_v57 = vadd.f32 %v1270_v46, %v1269_v8  ;;  %v1692_v8 = vmul.f32 %v3678_v1, %v2457_v19 }
 0x1ce   :  { %v1368_v35 = vpop.permute.xlu2 %1367 }
 0x1cf   :  { %v1277_v40 = vadd.f32 %v1275_v62, %v1271_v57  ;;  %v1306_v38 = vpop.permute.xlu1 %1305  ;;  %v4678_v57 = vld [vmem:[#allocation28_spill] sm:$0xff] }
 0x1d0   :  { %v2294_v21 = vld [vmem:[%s4457_s3 + $0x6a] sm:$0xff]  ;;  %1667 = vrot.lane.b32.xlu0 %v1665_v61, %s2373_s28 }
 0x1d1   :  { %v1279_v53 = vadd.f32 %v1278_v52, %v1277_v40  ;;  %v1327_v62 = vadd.f32 %v2294_v21, %v2610_v16  ;;  %v1336_v40 = vmul.f32 %v3478_v2, %v4678_v57 }
 0x1d2   :  { %v1298_v26 = vpop.permute.xlu0 %1297  ;;  %1686 = vrot.lane.b32.xlu2 %v1684_v7, %s2373_s28 }
 0x1d3   :  { %v1285_v46 = vadd.f32 %v3780_v27, %v1279_v53  ;;  %v1300_v42 = vadd.f32 %v1298_v26, %v1294_v51  ;;  %v1329_v61 = vadd.f32 %v1328_v33, %v1327_v62  ;;  %1702 = vrot.lane.b32.xlu1 %v1700_v32, %s2373_s28  ;;  %v3878_v51 = vld [vmem:[%s4456_s2 + $0x31] sm:$0xff] }
 0x1d4   :  { %v4679_v53 = vld [vmem:[#allocation30_spill] sm:$0xff]  ;;  %v4681_v62 = vld [vmem:[#allocation15_spill] sm:$0xff] }
 0x1d5   :  { %2291 = vst.msk [vmem:[%s4458_s4 + $0x182] sm:$0xff] %vm468_vm1, %v1285_v46  ;;  %v1302_v54 = vadd.f32 %v1301_v29, %v1300_v42  ;;  %v4680_v29 = vld [vmem:[#allocation35_spill] sm:$0xff]  ;;  %v1708_v33 = vmul.f32 %v3721_v59, %v4681_v62  ;;  %v4683_v62 = vld [vmem:[#allocation24_spill] sm:$0xff] }
 0x1d6   :  { %v3870_v52 = vpop.permute.xlu2 %1391  ;;  %v1317_v7 = vmul.f32 %v4680_v29, %v4679_v53  ;;  %v4682_v53 = vld [vmem:[#allocation39_spill] sm:$0xff] }
 0x1d7   :  { %v1308_v27 = vadd.f32 %v1306_v38, %v1302_v54  ;;  %v1333_v21 = vpop.permute.xlu1 %1332  ;;  %v3885_v38 = vld [vmem:[%s4456_s2 + $0x30] sm:$0xff]  ;;  %v1731_v54 = vmul.f32 %v3878_v51, %v2414_v3  ;;  %v1344_v57 = vmul.f32 %v4677_v11, %v4682_v53  ;;  %v4696_v53 = vld [vmem:[#allocation19_spill] sm:$0xff] }
 0x1d8   :  { %1694 = vrot.lane.b32.xlu0 %v1692_v8, %s2373_s28  ;;  %v1335_v46 = vadd.f32 %v1333_v21, %v1329_v61  ;;  %v4684_v21 = vld [vmem:[#allocation38_spill] sm:$0xff] }
 0x1d9   :  { %v1310_v26 = vadd.f32 %v1309_v9, %v1308_v27  ;;  %v1723_v27 = vmul.f32 %v3885_v38, %v2484_v28  ;;  %v1363_v59 = vmul.f32 %v3485_v56, %v4684_v21 }
 0x1da   :  { %v1322_v42 = vpop.permute.xlu0 %1321  ;;  %v1337_v9 = vadd.f32 %v1336_v40, %v1335_v46  ;;  %1710 = vrot.lane.b32.xlu2 %v1708_v33, %s2373_s28 }
 0x1db   :  { %v1316_v8 = vadd.f32 %v3804_v39, %v1310_v26  ;;  %1733 = vrot.lane.b32.xlu1 %v1731_v54, %s2373_s28 }
 0x1dc   :  { %v2296_v32 = vld [vmem:[%s4457_s3 + $0xb2] sm:$0xff]  ;;  %v1343_v4 = vadd.f32 %v1341_v12, %v1337_v9 }
 0x1dd   :  { %v1318_v31 = vadd.f32 %v1317_v7, %v1316_v8  ;;  %v1362_v61 = vadd.f32 %v2296_v32, %v4683_v62  ;;  %v3910_v7 = vld [vmem:[%s4456_s2 + $0x70] sm:$0xff]  ;;  %v4688_v8 = vld [vmem:[#allocation17_spill] sm:$0xff] }
 0x1de   :  { %v3904_v26 = vpop.permute.xlu2 %1418  ;;  %v1345_v40 = vadd.f32 %v1344_v57, %v1343_v4  ;;  %4685 = vst [vmem:[#allocation36_spill] sm:$0xff] %v3910_v7  ;;  %v1739_v4 = vmul.f32 %v3910_v7, %v4663_v47  ;;  %v1758_v54 = vmul.f32 %v3885_v38, %v4688_v8  ;;  %v4689_v9 = vld [vmem:[#allocation10_spill] sm:$0xff]  ;;  %v4695_v8 = vld [vmem:[#allocation41_spill] sm:$0xff] }
 0x1df   :  { %v1324_v39 = vadd.f32 %v1322_v42, %v1318_v31  ;;  %v1364_v33 = vadd.f32 %v1363_v59, %v1362_v61  ;;  %v1357_v12 = vpop.permute.xlu1 %1356  ;;  %v4686_v31 = vld [vmem:[#allocation29_spill] sm:$0xff]  ;;  %v3921_v42 = vld [vmem:[%s4456_s2 + $0x71] sm:$0xff]  ;;  %v1398_v47 = vmul.f32 %v3485_v56, %v4695_v8 }
 0x1e0   :  { %1725 = vrot.lane.b32.xlu0 %v1723_v27, %s2373_s28  ;;  %v1352_v46 = vmul.f32 %v4680_v29, %v4686_v31  ;;  %4687 = vst [vmem:[#allocation32_spill] sm:$0xff] %v3921_v42  ;;  %v1747_v59 = vmul.f32 %v3921_v42, %v4689_v9 }
 0x1e1   :  { %1325 = vst.msk [vmem:[%s4458_s4 + $0x22] sm:$0xff] %vm468_vm1, %v1324_v39  ;;  %v1370_v27 = vadd.f32 %v1368_v35, %v1364_v33  ;;  %v4690_v39 = vld [vmem:[#allocation25_spill] sm:$0xff] }
 0x1e2   :  { %v1349_v57 = vpop.permute.xlu0 %1348  ;;  %v1371_v31 = vmul.f32 %v3478_v2, %v4690_v39  ;;  %1741 = vrot.lane.b32.xlu2 %v1739_v4, %s2373_s28  ;;  %v4694_v39 = vld [vmem:[#allocation27_spill] sm:$0xff] }
 0x1e3   :  { %v1351_v32 = vadd.f32 %v1349_v57, %v1345_v40  ;;  %1760 = vrot.lane.b32.xlu1 %v1758_v54, %s2373_s28 }
 0x1e4   :  { %v1372_v33 = vadd.f32 %v1371_v31, %v1370_v27  ;;  %v4697_v31 = vld [vmem:[#allocation26_spill] sm:$0xff] }
 0x1e5   :  { %v1353_v61 = vadd.f32 %v1352_v46, %v1351_v32  ;;  %v4691_v46 = vld [vmem:[#allocation40_spill] sm:$0xff]  ;;  %v1387_v27 = vmul.f32 %v4680_v29, %v4697_v31 }
 0x1e6   :  { %v1446_v62 = vpop.permute.xlu2 %1445  ;;  %v1379_v4 = vmul.f32 %v4677_v11, %v4691_v46 }
 0x1e7   :  { %v1359_v21 = vadd.f32 %v1357_v12, %v1353_v61  ;;  %v1384_v35 = vpop.permute.xlu1 %1383  ;;  %v4692_v12 = vld [vmem:[#allocation8_spill] sm:$0xff] }
 0x1e8   :  { %1749 = vrot.lane.b32.xlu0 %v1747_v59, %s2373_s28  ;;  %v2298_v40 = vld [vmem:[%s4457_s3 + $0xfa] sm:$0xff]  ;;  %v1766_v57 = vmul.f32 %v3878_v51, %v4692_v12  ;;  %v4693_v59 = vld [vmem:[#allocation9_spill] sm:$0xff] }
 0x1e9   :  { %2295 = vst.msk [vmem:[%s4458_s4 + $0x6a] sm:$0xff] %vm468_vm1, %v1359_v21  ;;  %v1782_v61 = vmul.f32 %v3921_v42, %v4693_v59  ;;  %v1397_v9 = vadd.f32 %v2298_v40, %v4694_v39  ;;  %v1774_v21 = vmul.f32 %v3910_v7, %v4696_v53  ;;  %v1406_v53 = vmul.f32 %v3478_v2, %v4672_v63 }
 0x1ea   :  { %v1376_v32 = vpop.permute.xlu0 %1375  ;;  %1768 = vrot.lane.b32.xlu2 %v1766_v57, %s2373_s28 }
 0x1eb   :  { %v1378_v54 = vadd.f32 %v1376_v32, %v1372_v33  ;;  %1784 = vrot.lane.b32.xlu1 %v1782_v61, %s2373_s28  ;;  %v1399_v33 = vadd.f32 %v1398_v47, %v1397_v9  ;;  %v1809_v61 = vmul.f32 %v3910_v7, %v4649_v23 }
 0x1ed   :  { %v1380_v46 = vadd.f32 %v1379_v4, %v1378_v54  ;;  %v1793_v4 = vmul.f32 %v3885_v38, %v4673_v25 }
 0x1ee   :  { %v1473_v32 = vpop.permute.xlu2 %1472 }
 0x1ef   :  { %v1386_v12 = vadd.f32 %v1384_v35, %v1380_v46  ;;  %v1411_v8 = vpop.permute.xlu1 %1410  ;;  %v4698_v46 = vld [vmem:[#allocation42_spill] sm:$0xff] }
 0x1f0   :  { %v2300_v40 = vld [vmem:[%s4457_s3 + $0x142] sm:$0xff]  ;;  %1776 = vrot.lane.b32.xlu0 %v1774_v21, %s2373_s28  ;;  %v1433_v47 = vmul.f32 %v3485_v56, %v4698_v46 }
 0x1f1   :  { %v1388_v59 = vadd.f32 %v1387_v27, %v1386_v12  ;;  %v1432_v35 = vadd.f32 %v2300_v40, %v2672_v60  ;;  %v4699_v12 = vld [vmem:[#allocation11_spill] sm:$0xff]  ;;  %v1414_v40 = vmul.f32 %v4677_v11, %v4651_v15 }
 0x1f2   :  { %v1403_v57 = vpop.permute.xlu0 %1402  ;;  %v1801_v21 = vmul.f32 %v3878_v51, %v4699_v12  ;;  %1795 = vrot.lane.b32.xlu2 %v1793_v4, %s2373_s28 }
 0x1f3   :  { %v1394_v9 = vadd.f32 %v3870_v52, %v1388_v59  ;;  %v1405_v54 = vadd.f32 %v1403_v57, %v1399_v33  ;;  %v1434_v46 = vadd.f32 %v1433_v47, %v1432_v35  ;;  %1811 = vrot.lane.b32.xlu1 %v1809_v61, %s2373_s28  ;;  %v1441_v33 = vmul.f32 %v3478_v2, %v4626_v6 }
 0x1f4   :  { %v1836_v61 = vmul.f32 %v3878_v51, %v4604_v34 }
 0x1f5   :  { %2297 = vst.msk [vmem:[%s4458_s4 + $0xb2] sm:$0xff] %vm468_vm1, %v1394_v9  ;;  %v1407_v27 = vadd.f32 %v1406_v53, %v1405_v54  ;;  %v1422_v53 = vmul.f32 %v4680_v29, %v4627_v0  ;;  %v4700_v9 = vld [vmem:[#allocation12_spill] sm:$0xff] }
 0x1f6   :  { %v3980_v59 = vpop.permute.xlu2 %1496  ;;  %v1817_v54 = vmul.f32 %v3921_v42, %v4700_v9 }
 0x1f7   :  { %v1413_v52 = vadd.f32 %v1411_v8, %v1407_v27  ;;  %v1438_v57 = vpop.permute.xlu1 %1437  ;;  %v1828_v27 = vmul.f32 %v3885_v38, %v4605_v5 }
 0x1f8   :  { %1803 = vrot.lane.b32.xlu0 %v1801_v21, %s2373_s28  ;;  %v1440_v4 = vadd.f32 %v1438_v57, %v1434_v46  ;;  %v1468_v57 = vmul.f32 %v3485_v56, %v2992_v10  ;;  %v1457_v56 = vmul.f32 %v4680_v29, %v4606_v17 }
 0x1f9   :  { %v1415_v23 = vadd.f32 %v1414_v40, %v1413_v52  ;;  %v1449_v40 = vmul.f32 %v4677_v11, %v3008_v14 }
 0x1fa   :  { %v1427_v35 = vpop.permute.xlu0 %1426  ;;  %v1442_v21 = vadd.f32 %v1441_v33, %v1440_v4  ;;  %1819 = vrot.lane.b32.xlu2 %v1817_v54, %s2373_s28 }
 0x1fb   :  { %v1421_v47 = vadd.f32 %v3904_v26, %v1415_v23  ;;  %1838 = vrot.lane.b32.xlu1 %v1836_v61, %s2373_s28 }
 0x1fc   :  { %v2302_v8 = vld [vmem:[%s4457_s3 + $0x18a] sm:$0xff]  ;;  %v1448_v9 = vadd.f32 %v1446_v62, %v1442_v21  ;;  %v1844_v62 = vmul.f32 %v3910_v7, %v4607_v37  ;;  %v1476_v21 = vmul.f32 %v3478_v2, %v4608_v22  ;;  %v1484_v2 = vmul.f32 %v4677_v11, %v3015_v43 }
 0x1fd   :  { %v1423_v52 = vadd.f32 %v1422_v53, %v1421_v47  ;;  %v1467_v46 = vadd.f32 %v2302_v8, %v2728_v49  ;;  %v1863_v8 = vmul.f32 %v3885_v38, %v2523_v44 }
 0x1fe   :  { %v4004_v26 = vpop.permute.xlu2 %1527  ;;  %v1450_v33 = vadd.f32 %v1449_v40, %v1448_v9  ;;  %v1852_v9 = vmul.f32 %v3921_v42, %v2442_v13 }
 0x1ff   :  { %v1429_v23 = vadd.f32 %v1427_v35, %v1423_v52  ;;  %v1469_v53 = vadd.f32 %v1468_v57, %v1467_v46  ;;  %v1462_v4 = vpop.permute.xlu1 %1461  ;;  %v1871_v57 = vmul.f32 %v3878_v51, %v2453_v18 }
 0x200   :  { %1830 = vrot.lane.b32.xlu0 %v1828_v27, %s2373_s28 }
 0x201   :  { %2299 = vst.msk [vmem:[%s4458_s4 + $0xfa] sm:$0xff] %vm468_vm1, %v1429_v23  ;;  %v1475_v47 = vadd.f32 %v1473_v32, %v1469_v53  ;;  %v1887_v53 = vmul.f32 %v3921_v42, %v2459_v20 }
 0x202   :  { %v1454_v54 = vpop.permute.xlu0 %1453  ;;  %1846 = vrot.lane.b32.xlu2 %v1844_v62, %s2373_s28  ;;  %v1879_v62 = vmul.f32 %v3910_v7, %v4629_v36 }
 0x203   :  { %v1456_v35 = vadd.f32 %v1454_v54, %v1450_v33  ;;  %1865 = vrot.lane.b32.xlu1 %v1863_v8, %s2373_s28  ;;  %v1477_v46 = vadd.f32 %v1476_v21, %v1475_v47  ;;  %v1492_v54 = vmul.f32 %v4680_v29, %v4609_v58  ;;  %v1898_v29 = vmul.f32 %v3885_v38, %v2527_v45 }
 0x205   :  { %v1458_v61 = vadd.f32 %v1457_v56, %v1456_v35  ;;  %v1507_v56 = vmul.f32 %v3685_v24, %v2881_v41 }
 0x206   :  { %v1555_v40 = vpop.permute.xlu2 %1554 }
 0x207   :  { %v1464_v27 = vadd.f32 %v1462_v4, %v1458_v61  ;;  %v1489_v32 = vpop.permute.xlu1 %1488 }
 0x208   :  { %1854 = vrot.lane.b32.xlu0 %v1852_v9, %s2373_s28  ;;  %v1505_v52 = vld [vmem:[%s4457_s3 + $0x2a] sm:$0xff] }
 0x209   :  { %2301 = vst.msk [vmem:[%s4458_s4 + $0x142] sm:$0xff] %vm468_vm1, %v1464_v27  ;;  %v1506_v4 = vadd.f32 %v1505_v52, %v2622_v30  ;;  %v1515_v27 = vmul.f32 %v3678_v1, %v2736_v55 }
 0x20a   :  { %v1481_v23 = vpop.permute.xlu0 %1480  ;;  %1873 = vrot.lane.b32.xlu2 %v1871_v57, %s2373_s28 }
 0x20b   :  { %v1483_v33 = vadd.f32 %v1481_v23, %v1477_v46  ;;  %1889 = vrot.lane.b32.xlu1 %v1887_v53, %s2373_s28  ;;  %v1508_v8 = vadd.f32 %v1507_v56, %v1506_v4  ;;  %v1542_v46 = vmul.f32 %v3685_v24, %v2892_v48  ;;  %v1914_v23 = vmul.f32 %v3910_v7, %v2538_v50  ;;  %v4701_v4 = vld [vmem:[#allocation37_spill] sm:$0xff] }
 0x20c   :  { %v4702_v56 = vld [vmem:[#allocation21_spill] sm:$0xff] }
 0x20d   :  { %v1485_v11 = vadd.f32 %v1484_v2, %v1483_v33  ;;  %v1906_v33 = vmul.f32 %v3878_v51, %v2457_v19 }
 0x20e   :  { %v1582_v47 = vpop.permute.xlu2 %1581 }
 0x20f   :  { %v1491_v35 = vadd.f32 %v1489_v32, %v1485_v11  ;;  %v1520_v21 = vpop.permute.xlu1 %1519 }
 0x210   :  { %v2306_v9 = vld [vmem:[%s4457_s3 + $0x72] sm:$0xff]  ;;  %1881 = vrot.lane.b32.xlu0 %v1879_v62, %s2373_s28  ;;  %v1523_v62 = vmul.f32 %v4702_v56, %v4701_v4 }
 0x211   :  { %v1493_v61 = vadd.f32 %v1492_v54, %v1491_v35  ;;  %v1541_v32 = vadd.f32 %v2306_v9, %v2610_v16  ;;  %v4703_v35 = vld [vmem:[#allocation28_spill] sm:$0xff]  ;;  %v4078_v9 = vld [vmem:[%s4456_s2 + $0x39] sm:$0x7f] }
 0x212   :  { %v1512_v52 = vpop.permute.xlu0 %1511  ;;  %1900 = vrot.lane.b32.xlu2 %v1898_v29, %s2373_s28 }
 0x213   :  { %v1499_v2 = vadd.f32 %v3980_v59, %v1493_v61  ;;  %v1514_v57 = vadd.f32 %v1512_v52, %v1508_v8  ;;  %v1543_v54 = vadd.f32 %v1542_v46, %v1541_v32  ;;  %1916 = vrot.lane.b32.xlu1 %v1914_v23, %s2373_s28  ;;  %v1550_v8 = vmul.f32 %v3678_v1, %v4703_v35  ;;  %v4705_v52 = vld [vmem:[#allocation34_spill] sm:$0xff]  ;;  %v4706_v46 = vld [vmem:[#allocation15_spill] sm:$0xff] }
 0x214   :  { %v4707_v35 = vld [vmem:[#allocation39_spill] sm:$0xff] }
 0x215   :  { %2303 = vst.msk [vmem:[%s4458_s4 + $0x18a] sm:$0xff] %vm468_vm1, %v1499_v2  ;;  %v1516_v53 = vadd.f32 %v1515_v27, %v1514_v57  ;;  %v4704_v27 = vld [vmem:[#allocation30_spill] sm:$0xff]  ;;  %v1922_v2 = vmul.f32 %v3921_v42, %v4706_v46  ;;  %v1558_v7 = vmul.f32 %v4702_v56, %v4707_v35  ;;  %v4708_v46 = vld [vmem:[#allocation24_spill] sm:$0xff] }
 0x216   :  { %v4070_v11 = vpop.permute.xlu2 %1605  ;;  %v1531_v29 = vmul.f32 %v4705_v52, %v4704_v27  ;;  %v1945_v27 = vmul.f32 %v4078_v9, %v2414_v3 }
 0x217   :  { %v1522_v59 = vadd.f32 %v1520_v21, %v1516_v53  ;;  %v1547_v61 = vpop.permute.xlu1 %1546  ;;  %v4085_v21 = vld [vmem:[%s4456_s2 + $0x38] sm:$0x7f] }
 0x218   :  { %1908 = vrot.lane.b32.xlu0 %v1906_v33, %s2373_s28  ;;  %v1549_v57 = vadd.f32 %v1547_v61, %v1543_v54  ;;  %v4709_v61 = vld [vmem:[#allocation38_spill] sm:$0xff] }
 0x219   :  { %v1524_v32 = vadd.f32 %v1523_v62, %v1522_v59  ;;  %v1937_v59 = vmul.f32 %v4085_v21, %v2484_v28  ;;  %v1577_v42 = vmul.f32 %v3685_v24, %v4709_v61 }
 0x21a   :  { %v1536_v23 = vpop.permute.xlu0 %1535  ;;  %v1551_v62 = vadd.f32 %v1550_v8, %v1549_v57  ;;  %1924 = vrot.lane.b32.xlu2 %v1922_v2, %s2373_s28  ;;  %v4110_v8 = vld [vmem:[%s4456_s2 + $0x78] sm:$0x7f] }
 0x21b   :  { %v1530_v53 = vadd.f32 %v4004_v26, %v1524_v32  ;;  %1947 = vrot.lane.b32.xlu1 %v1945_v27, %s2373_s28  ;;  %v4121_v32 = vld [vmem:[%s4456_s2 + $0x79] sm:$0x7f] }
 0x21c   :  { %v2308_v33 = vld [vmem:[%s4457_s3 + $0xba] sm:$0xff]  ;;  %v1557_v13 = vadd.f32 %v1555_v40, %v1551_v62 }
 0x21d   :  { %v1532_v4 = vadd.f32 %v1531_v29, %v1530_v53  ;;  %v1576_v54 = vadd.f32 %v2308_v33, %v4708_v46  ;;  %v4713_v53 = vld [vmem:[#allocation10_spill] sm:$0xff] }
 0x21e   :  { %v4104_v3 = vpop.permute.xlu2 %1632  ;;  %v1559_v28 = vadd.f32 %v1558_v7, %v1557_v13  ;;  %v4711_v13 = vld [vmem:[#allocation16_spill] sm:$0xff] }
 0x21f   :  { %v1538_v26 = vadd.f32 %v1536_v23, %v1532_v4  ;;  %v1578_v29 = vadd.f32 %v1577_v42, %v1576_v54  ;;  %v1571_v40 = vpop.permute.xlu1 %1570  ;;  %v4710_v4 = vld [vmem:[#allocation29_spill] sm:$0xff]  ;;  %v1953_v7 = vmul.f32 %v4110_v8, %v4711_v13  ;;  %v1961_v42 = vmul.f32 %v4121_v32, %v4713_v53 }
 0x220   :  { %1939 = vrot.lane.b32.xlu0 %v1937_v59, %s2373_s28  ;;  %v1566_v27 = vmul.f32 %v4705_v52, %v4710_v4  ;;  %v4712_v23 = vld [vmem:[#allocation17_spill] sm:$0xff] }
 0x221   :  { %1539 = vst.msk [vmem:[%s4458_s4 + $0x2a] sm:$0xff] %vm468_vm1, %v1538_v26  ;;  %v1973_v33 = vmul.f32 %v4085_v21, %v4712_v23  ;;  %v1584_v62 = vadd.f32 %v1582_v47, %v1578_v29  ;;  %v4714_v54 = vld [vmem:[#allocation25_spill] sm:$0xff]  ;;  %v2008_v23 = vmul.f32 %v4085_v21, %v4673_v25 }
 0x222   :  { %v1563_v2 = vpop.permute.xlu0 %1562  ;;  %v1585_v26 = vmul.f32 %v3678_v1, %v4714_v54  ;;  %1955 = vrot.lane.b32.xlu2 %v1953_v7, %s2373_s28  ;;  %v4717_v53 = vld [vmem:[#allocation41_spill] sm:$0xff] }
 0x223   :  { %v1565_v57 = vadd.f32 %v1563_v2, %v1559_v28  ;;  %1975 = vrot.lane.b32.xlu1 %v1973_v33, %s2373_s28 }
 0x224   :  { %v1586_v29 = vadd.f32 %v1585_v26, %v1584_v62  ;;  %v1601_v62 = vmul.f32 %v4705_v52, %v4697_v31 }
 0x225   :  { %v1567_v59 = vadd.f32 %v1566_v27, %v1565_v57  ;;  %v4715_v27 = vld [vmem:[#allocation40_spill] sm:$0xff] }
 0x226   :  { %v1660_v61 = vpop.permute.xlu2 %1659  ;;  %v1593_v13 = vmul.f32 %v4702_v56, %v4715_v27 }
 0x227   :  { %v1573_v4 = vadd.f32 %v1571_v40, %v1567_v59  ;;  %v1598_v47 = vpop.permute.xlu1 %1597  ;;  %v4716_v40 = vld [vmem:[#allocation8_spill] sm:$0xff]  ;;  %v4718_v59 = vld [vmem:[#allocation19_spill] sm:$0xff] }
 0x228   :  { %1963 = vrot.lane.b32.xlu0 %v1961_v42, %s2373_s28  ;;  %v2310_v28 = vld [vmem:[%s4457_s3 + $0x102] sm:$0xff]  ;;  %v1981_v7 = vmul.f32 %v4078_v9, %v4716_v40  ;;  %v1612_v42 = vmul.f32 %v3685_v24, %v4717_v53 }
 0x229   :  { %2307 = vst.msk [vmem:[%s4458_s4 + $0x72] sm:$0xff] %vm468_vm1, %v1573_v4  ;;  %v1611_v33 = vadd.f32 %v2310_v28, %v4694_v39  ;;  %v1989_v4 = vmul.f32 %v4110_v8, %v4718_v59  ;;  %v1620_v59 = vmul.f32 %v3678_v1, %v4672_v63 }
 0x22a   :  { %v1590_v2 = vpop.permute.xlu0 %1589  ;;  %1983 = vrot.lane.b32.xlu2 %v1981_v7, %s2373_s28 }
 0x22b   :  { %v1592_v57 = vadd.f32 %v1590_v2, %v1586_v29  ;;  %2010 = vrot.lane.b32.xlu1 %v2008_v23, %s2373_s28  ;;  %v1613_v29 = vadd.f32 %v1612_v42, %v1611_v33 }
 0x22d   :  { %v1594_v26 = vadd.f32 %v1593_v13, %v1592_v57  ;;  %v2043_v13 = vmul.f32 %v4085_v21, %v4605_v5  ;;  %v4719_v57 = vld [vmem:[#allocation42_spill] sm:$0xff] }
 0x22e   :  { %v1687_v28 = vpop.permute.xlu2 %1686  ;;  %v1647_v23 = vmul.f32 %v3685_v24, %v4719_v57 }
 0x22f   :  { %v1600_v40 = vadd.f32 %v1598_v47, %v1594_v26  ;;  %v1625_v53 = vpop.permute.xlu1 %1624  ;;  %v1628_v26 = vmul.f32 %v4702_v56, %v4651_v15 }
 0x230   :  { %v2312_v25 = vld [vmem:[%s4457_s3 + $0x14a] sm:$0xff]  ;;  %1991 = vrot.lane.b32.xlu0 %v1989_v4, %s2373_s28  ;;  %v2113_v4 = vmul.f32 %v4085_v21, %v2527_v45 }
 0x231   :  { %v1602_v2 = vadd.f32 %v1601_v62, %v1600_v40  ;;  %v1646_v47 = vadd.f32 %v2312_v25, %v2672_v60  ;;  %v2078_v62 = vmul.f32 %v4085_v21, %v2523_v44  ;;  %v1655_v44 = vmul.f32 %v3678_v1, %v4626_v6 }
 0x232   :  { %v1617_v7 = vpop.permute.xlu0 %1616  ;;  %2045 = vrot.lane.b32.xlu2 %v2043_v13, %s2373_s28 }
 0x233   :  { %v1608_v33 = vadd.f32 %v4070_v11, %v1602_v2  ;;  %v1619_v42 = vadd.f32 %v1617_v7, %v1613_v29  ;;  %v1648_v40 = vadd.f32 %v1647_v23, %v1646_v47  ;;  %2115 = vrot.lane.b32.xlu1 %v2113_v4, %s2373_s28  ;;  %v1636_v2 = vmul.f32 %v4705_v52, %v4627_v0 }
 0x234   :  { %v2086_v23 = vmul.f32 %v4078_v9, %v2453_v18  ;;  %v1663_v4 = vmul.f32 %v4702_v56, %v3008_v14 }
 0x235   :  { %2309 = vst.msk [vmem:[%s4458_s4 + $0xba] sm:$0xff] %vm468_vm1, %v1608_v33  ;;  %v1621_v5 = vadd.f32 %v1620_v59, %v1619_v42  ;;  %v2016_v59 = vmul.f32 %v4078_v9, %v4699_v12  ;;  %v2051_v42 = vmul.f32 %v4078_v9, %v4604_v34 }
 0x236   :  { %v4180_v29 = vpop.permute.xlu2 %1710 }
 0x237   :  { %v1627_v11 = vadd.f32 %v1625_v53, %v1621_v5  ;;  %v1652_v45 = vpop.permute.xlu1 %1651  ;;  %v1682_v5 = vmul.f32 %v3685_v24, %v2992_v10  ;;  %v1671_v24 = vmul.f32 %v4705_v52, %v4606_v17 }
 0x238   :  { %2080 = vrot.lane.b32.xlu0 %v2078_v62, %s2373_s28  ;;  %v1654_v13 = vadd.f32 %v1652_v45, %v1648_v40 }
 0x239   :  { %v1629_v25 = vadd.f32 %v1628_v26, %v1627_v11 }
 0x23a   :  { %v1641_v7 = vpop.permute.xlu0 %1640  ;;  %v1656_v33 = vadd.f32 %v1655_v44, %v1654_v13  ;;  %2018 = vrot.lane.b32.xlu2 %v2016_v59, %s2373_s28 }
 0x23b   :  { %v1635_v47 = vadd.f32 %v4104_v3, %v1629_v25  ;;  %2088 = vrot.lane.b32.xlu1 %v2086_v23, %s2373_s28  ;;  %v2059_v25 = vmul.f32 %v4110_v8, %v4607_v37 }
 0x23c   :  { %v2314_v53 = vld [vmem:[%s4457_s3 + $0x192] sm:$0xff]  ;;  %v1662_v26 = vadd.f32 %v1660_v61, %v1656_v33  ;;  %v2121_v61 = vmul.f32 %v4078_v9, %v2457_v19  ;;  %v2094_v33 = vmul.f32 %v4110_v8, %v4629_v36 }
 0x23d   :  { %v1637_v62 = vadd.f32 %v1636_v2, %v1635_v47  ;;  %v1681_v12 = vadd.f32 %v2314_v53, %v2728_v49  ;;  %v4720_v2 = vld [vmem:[#allocation20_spill] sm:$0xff]  ;;  %v1690_v53 = vmul.f32 %v3678_v1, %v4608_v22  ;;  %v1698_v1 = vmul.f32 %v4702_v56, %v3015_v43 }
 0x23e   :  { %v4204_v18 = vpop.permute.xlu2 %1741  ;;  %v1664_v34 = vadd.f32 %v1663_v4, %v1662_v26  ;;  %v2024_v59 = vmul.f32 %v4110_v8, %v4720_v2  ;;  %v1721_v26 = vmul.f32 %v3885_v38, %v2881_v41 }
 0x23f   :  { %v1643_v3 = vadd.f32 %v1641_v7, %v1637_v62  ;;  %v1683_v40 = vadd.f32 %v1682_v5, %v1681_v12  ;;  %v1676_v11 = vpop.permute.xlu1 %1675  ;;  %v4721_v62 = vld [vmem:[#allocation9_spill] sm:$0xff] }
 0x240   :  { %2053 = vrot.lane.b32.xlu0 %v2051_v42, %s2373_s28  ;;  %v1997_v12 = vmul.f32 %v4121_v32, %v4721_v62 }
 0x241   :  { %2311 = vst.msk [vmem:[%s4458_s4 + $0x102] sm:$0xff] %vm468_vm1, %v1643_v3  ;;  %v1689_v13 = vadd.f32 %v1687_v28, %v1683_v40  ;;  %v2129_v3 = vmul.f32 %v4110_v8, %v2538_v50  ;;  %v1729_v50 = vmul.f32 %v3878_v51, %v2736_v55 }
 0x242   :  { %v1668_v44 = vpop.permute.xlu0 %1667  ;;  %2123 = vrot.lane.b32.xlu2 %v2121_v61, %s2373_s28 }
 0x243   :  { %v1670_v45 = vadd.f32 %v1668_v44, %v1664_v34  ;;  %2061 = vrot.lane.b32.xlu1 %v2059_v25, %s2373_s28  ;;  %v1691_v28 = vadd.f32 %v1690_v53, %v1689_v13  ;;  %v1706_v34 = vmul.f32 %v4705_v52, %v4609_v58  ;;  %v4722_v52 = vld [vmem:[#allocation12_spill] sm:$0xff]  ;;  %v2102_v53 = vmul.f32 %v4121_v32, %v2459_v20 }
 0x244   :  { %v4726_v20 = vld [vmem:[#allocation28_spill] sm:$0xff] }
 0x245   :  { %v1672_v7 = vadd.f32 %v1671_v24, %v1670_v45  ;;  %v2032_v45 = vmul.f32 %v4121_v32, %v4722_v52  ;;  %v1764_v62 = vmul.f32 %v3878_v51, %v4726_v20 }
 0x246   :  { %v1769_v23 = vpop.permute.xlu2 %1768 }
 0x247   :  { %v1678_v47 = vadd.f32 %v1676_v11, %v1672_v7  ;;  %v1703_v37 = vpop.permute.xlu1 %1702 }
 0x248   :  { %2026 = vrot.lane.b32.xlu0 %v2024_v59, %s2373_s28  ;;  %v1719_v19 = vld [vmem:[%s4457_s3 + $0x32] sm:$0xff]  ;;  %v1756_v59 = vmul.f32 %v3885_v38, %v2892_v48 }
 0x249   :  { %2313 = vst.msk [vmem:[%s4458_s4 + $0x14a] sm:$0xff] %vm468_vm1, %v1678_v47  ;;  %v1720_v5 = vadd.f32 %v1719_v19, %v2622_v30  ;;  %v4723_v47 = vld [vmem:[#allocation13_spill] sm:$0xff] }
 0x24a   :  { %v1695_v42 = vpop.permute.xlu0 %1694  ;;  %2096 = vrot.lane.b32.xlu2 %v2094_v33, %s2373_s28  ;;  %v2067_v19 = vmul.f32 %v4121_v32, %v4723_v47 }
 0x24b   :  { %v1697_v4 = vadd.f32 %v1695_v42, %v1691_v28  ;;  %1999 = vrot.lane.b32.xlu1 %v1997_v12, %s2373_s28  ;;  %v1722_v40 = vadd.f32 %v1721_v26, %v1720_v5  ;;  %v4724_v28 = vld [vmem:[#allocation37_spill] sm:$0xff]  ;;  %v4727_v5 = vld [vmem:[#allocation30_spill] sm:$0xff]  ;;  %v4728_v26 = vld [vmem:[#allocation32_spill] sm:$0xff] }
 0x24d   :  { %v1699_v56 = vadd.f32 %v1698_v1, %v1697_v4  ;;  %v4725_v1 = vld [vmem:[#allocation36_spill] sm:$0xff] }
 0x24e   :  { %v1796_v24 = vpop.permute.xlu2 %1795  ;;  %v1737_v33 = vmul.f32 %v4725_v1, %v4724_v28  ;;  %v1772_v52 = vmul.f32 %v4725_v1, %v4707_v35 }
 0x24f   :  { %v1705_v36 = vadd.f32 %v1703_v37, %v1699_v56  ;;  %v1734_v44 = vpop.permute.xlu1 %1733  ;;  %v4729_v56 = vld [vmem:[#allocation15_spill] sm:$0xff] }
 0x250   :  { %v2318_v11 = vld [vmem:[%s4457_s3 + $0x7a] sm:$0xff]  ;;  %2131 = vrot.lane.b32.xlu0 %v2129_v3, %s2373_s28  ;;  %v1745_v3 = vmul.f32 %v4728_v26, %v4727_v5 }
 0x251   :  { %v1707_v61 = vadd.f32 %v1706_v34, %v1705_v36  ;;  %v1755_v2 = vadd.f32 %v2318_v11, %v2610_v16  ;;  %v2137_v36 = vmul.f32 %v4121_v32, %v4729_v56 }
 0x252   :  { %v1726_v25 = vpop.permute.xlu0 %1725  ;;  %2034 = vrot.lane.b32.xlu2 %v2032_v45, %s2373_s28 }
 0x253   :  { %v1713_v13 = vadd.f32 %v4180_v29, %v1707_v61  ;;  %v1728_v7 = vadd.f32 %v1726_v25, %v1722_v40  ;;  %v1757_v42 = vadd.f32 %v1756_v59, %v1755_v2  ;;  %2104 = vrot.lane.b32.xlu1 %v2102_v53, %s2373_s28  ;;  %v4730_v2 = vld [vmem:[#allocation38_spill] sm:$0xff] }
 0x254   :  { %v1791_v59 = vmul.f32 %v3885_v38, %v4730_v2 }
 0x255   :  { %2315 = vst.msk [vmem:[%s4458_s4 + $0x192] sm:$0xff] %vm468_vm1, %v1713_v13  ;;  %v1730_v37 = vadd.f32 %v1729_v50, %v1728_v7 }
 0x256   :  { %v1820_v4 = vpop.permute.xlu2 %1819 }
 0x257   :  { %v1736_v29 = vadd.f32 %v1734_v44, %v1730_v37  ;;  %v1761_v12 = vpop.permute.xlu1 %1760  ;;  %v4731_v37 = vld [vmem:[#allocation29_spill] sm:$0xff] }
 0x258   :  { %2069 = vrot.lane.b32.xlu0 %v2067_v19, %s2373_s28  ;;  %v1763_v40 = vadd.f32 %v1761_v12, %v1757_v42 }
 0x259   :  { %v1738_v34 = vadd.f32 %v1737_v33, %v1736_v29  ;;  %v1780_v33 = vmul.f32 %v4728_v26, %v4731_v37 }
 0x25a   :  { %v1750_v11 = vpop.permute.xlu0 %1749  ;;  %v1765_v50 = vadd.f32 %v1764_v62, %v1763_v40  ;;  %2139 = vrot.lane.b32.xlu2 %v2137_v36, %s2373_s28 }
 0x25b   :  { %v1744_v44 = vadd.f32 %v4204_v18, %v1738_v34 }
 0x25c   :  { %v2320_v61 = vld [vmem:[%s4457_s3 + $0xc2] sm:$0xff]  ;;  %v1771_v13 = vadd.f32 %v1769_v23, %v1765_v50  ;;  %v1799_v23 = vmul.f32 %v3878_v51, %v4714_v54 }
 0x25d   :  { %v1746_v45 = vadd.f32 %v1745_v3, %v1744_v44  ;;  %v1790_v25 = vadd.f32 %v2320_v61, %v4708_v46  ;;  %v4732_v50 = vld [vmem:[#allocation41_spill] sm:$0xff] }
 0x25e   :  { %v1847_v53 = vpop.permute.xlu2 %1846  ;;  %v1773_v47 = vadd.f32 %v1772_v52, %v1771_v13  ;;  %v1826_v52 = vmul.f32 %v3885_v38, %v4732_v50 }
 0x25f   :  { %v1752_v7 = vadd.f32 %v1750_v11, %v1746_v45  ;;  %v1792_v18 = vadd.f32 %v1791_v59, %v1790_v25  ;;  %v1785_v19 = vpop.permute.xlu1 %1784  ;;  %v1815_v45 = vmul.f32 %v4728_v26, %v4697_v31 }
 0x261   :  { %1753 = vst.msk [vmem:[%s4458_s4 + $0x32] sm:$0xff] %vm468_vm1, %v1752_v7  ;;  %v1798_v62 = vadd.f32 %v1796_v24, %v1792_v18  ;;  %v1807_v24 = vmul.f32 %v4725_v1, %v4715_v27 }
 0x262   :  { %v1777_v42 = vpop.permute.xlu0 %1776 }
 0x263   :  { %v1779_v29 = vadd.f32 %v1777_v42, %v1773_v47  ;;  %v1800_v40 = vadd.f32 %v1799_v23, %v1798_v62  ;;  %v1861_v62 = vmul.f32 %v3885_v38, %v4719_v57 }
 0x265   :  { %v1781_v12 = vadd.f32 %v1780_v33, %v1779_v29  ;;  %v1834_v33 = vmul.f32 %v3878_v51, %v4672_v63 }
 0x266   :  { %v1874_v34 = vpop.permute.xlu2 %1873 }
 0x267   :  { %v1787_v3 = vadd.f32 %v1785_v19, %v1781_v12  ;;  %v1812_v36 = vpop.permute.xlu1 %1811 }
 0x268   :  { %v2322_v56 = vld [vmem:[%s4457_s3 + $0x10a] sm:$0xff] }
 0x269   :  { %2319 = vst.msk [vmem:[%s4458_s4 + $0x7a] sm:$0xff] %vm468_vm1, %v1787_v3  ;;  %v1825_v44 = vadd.f32 %v2322_v56, %v4694_v39  ;;  %v1842_v56 = vmul.f32 %v4725_v1, %v4651_v15 }
 0x26a   :  { %v1804_v11 = vpop.permute.xlu0 %1803 }
 0x26b   :  { %v1806_v61 = vadd.f32 %v1804_v11, %v1800_v40  ;;  %v1827_v13 = vadd.f32 %v1826_v52, %v1825_v44  ;;  %v1869_v11 = vmul.f32 %v3878_v51, %v4626_v6 }
 0x26d   :  { %v1808_v25 = vadd.f32 %v1807_v24, %v1806_v61 }
 0x26e   :  { %v1901_v47 = vpop.permute.xlu2 %1900 }
 0x26f   :  { %v1814_v59 = vadd.f32 %v1812_v36, %v1808_v25  ;;  %v1839_v19 = vpop.permute.xlu1 %1838 }
 0x270   :  { %v2324_v7 = vld [vmem:[%s4457_s3 + $0x152] sm:$0xff] }
 0x271   :  { %v1816_v18 = vadd.f32 %v1815_v45, %v1814_v59  ;;  %v1860_v29 = vadd.f32 %v2324_v7, %v2672_v60  ;;  %v1877_v7 = vmul.f32 %v4725_v1, %v3008_v14 }
 0x272   :  { %v1831_v42 = vpop.permute.xlu0 %1830 }
 0x273   :  { %v1822_v12 = vadd.f32 %v1820_v4, %v1816_v18  ;;  %v1833_v23 = vadd.f32 %v1831_v42, %v1827_v13  ;;  %v1862_v36 = vadd.f32 %v1861_v62, %v1860_v29  ;;  %v1850_v4 = vmul.f32 %v4728_v26, %v4627_v0 }
 0x275   :  { %2321 = vst.msk [vmem:[%s4458_s4 + $0xc2] sm:$0xff] %vm468_vm1, %v1822_v12  ;;  %v1835_v3 = vadd.f32 %v1834_v33, %v1833_v23  ;;  %v1896_v33 = vmul.f32 %v3885_v38, %v2992_v10  ;;  %v1904_v38 = vmul.f32 %v3878_v51, %v4608_v22 }
 0x276   :  { %v1925_v24 = vpop.permute.xlu2 %1924 }
 0x277   :  { %v1841_v40 = vadd.f32 %v1839_v19, %v1835_v3  ;;  %v1866_v61 = vpop.permute.xlu1 %1865  ;;  %v1885_v3 = vmul.f32 %v4728_v26, %v4606_v17 }
 0x278   :  { %v1868_v52 = vadd.f32 %v1866_v61, %v1862_v36 }
 0x279   :  { %v1843_v44 = vadd.f32 %v1842_v56, %v1841_v40 }
 0x27a   :  { %v1855_v45 = vpop.permute.xlu0 %1854  ;;  %v1870_v13 = vadd.f32 %v1869_v11, %v1868_v52 }
 0x27b   :  { %v1849_v59 = vadd.f32 %v1847_v53, %v1843_v44 }
 0x27c   :  { %v2326_v25 = vld [vmem:[%s4457_s3 + $0x19a] sm:$0xff]  ;;  %v1876_v42 = vadd.f32 %v1874_v34, %v1870_v13  ;;  %v1920_v13 = vmul.f32 %v4728_v26, %v4609_v58 }
 0x27d   :  { %v1851_v18 = vadd.f32 %v1850_v4, %v1849_v59  ;;  %v1895_v19 = vadd.f32 %v2326_v25, %v2728_v49  ;;  %v1935_v59 = vmul.f32 %v4085_v21, %v2881_v41  ;;  %v1951_v41 = vmul.f32 %v4110_v8, %v4724_v28 }
 0x27e   :  { %v1956_v62 = vpop.permute.xlu2 %1955  ;;  %v1878_v12 = vadd.f32 %v1877_v7, %v1876_v42 }
 0x27f   :  { %v1857_v29 = vadd.f32 %v1855_v45, %v1851_v18  ;;  %v1897_v53 = vadd.f32 %v1896_v33, %v1895_v19  ;;  %v1890_v23 = vpop.permute.xlu1 %1889 }
 0x281   :  { %2323 = vst.msk [vmem:[%s4458_s4 + $0x10a] sm:$0xff] %vm468_vm1, %v1857_v29  ;;  %v1903_v40 = vadd.f32 %v1901_v47, %v1897_v53  ;;  %v1912_v47 = vmul.f32 %v4725_v1, %v3015_v43  ;;  %v1943_v29 = vmul.f32 %v4078_v9, %v2736_v55 }
 0x282   :  { %v1882_v56 = vpop.permute.xlu0 %1881 }
 0x283   :  { %v1884_v36 = vadd.f32 %v1882_v56, %v1878_v12  ;;  %v1905_v52 = vadd.f32 %v1904_v38, %v1903_v40  ;;  %v1959_v56 = vmul.f32 %v4121_v32, %v4727_v5 }
 0x285   :  { %v1886_v11 = vadd.f32 %v1885_v3, %v1884_v36 }
 0x286   :  { %v4346_v44 = vpop.permute.xlu2 %1983 }
 0x287   :  { %v1892_v34 = vadd.f32 %v1890_v23, %v1886_v11  ;;  %v1917_v4 = vpop.permute.xlu1 %1916 }
 0x288   :  { %v1933_v61 = vld [vmem:[%s4457_s3 + $0x3a] sm:$0x7f] }
 0x289   :  { %2325 = vst.msk [vmem:[%s4458_s4 + $0x152] sm:$0xff] %vm468_vm1, %v1892_v34  ;;  %v1934_v51 = vadd.f32 %v1933_v61, %v2622_v30 }
 0x28a   :  { %v1909_v45 = vpop.permute.xlu0 %1908 }
 0x28b   :  { %v1911_v25 = vadd.f32 %v1909_v45, %v1905_v52  ;;  %v1936_v19 = vadd.f32 %v1935_v59, %v1934_v51 }
 0x28d   :  { %v1913_v7 = vadd.f32 %v1912_v47, %v1911_v25  ;;  %v2006_v47 = vmul.f32 %v4085_v21, %v4730_v2 }
 0x28e   :  { %v2046_v1 = vpop.permute.xlu2 %2045 }
 0x28f   :  { %v1919_v18 = vadd.f32 %v1917_v4, %v1913_v7  ;;  %v1948_v42 = vpop.permute.xlu1 %1947  ;;  %v1971_v4 = vmul.f32 %v4085_v21, %v2892_v48  ;;  %v1979_v48 = vmul.f32 %v4078_v9, %v4726_v20 }
 0x291   :  { %v1921_v33 = vadd.f32 %v1920_v13, %v1919_v18 }
 0x292   :  { %v1940_v12 = vpop.permute.xlu0 %1939 }
 0x293   :  { %v1927_v53 = vadd.f32 %v1925_v24, %v1921_v33  ;;  %v1942_v23 = vadd.f32 %v1940_v12, %v1936_v19  ;;  %v2014_v19 = vmul.f32 %v4078_v9, %v4714_v54  ;;  %v2076_v12 = vmul.f32 %v4085_v21, %v4719_v57 }
 0x295   :  { %2327 = vst.msk [vmem:[%s4458_s4 + $0x19a] sm:$0xff] %vm468_vm1, %v1927_v53  ;;  %v1944_v30 = vadd.f32 %v1943_v29, %v1942_v23  ;;  %v2041_v23 = vmul.f32 %v4085_v21, %v4732_v50 }
 0x296   :  { %v2019_v11 = vpop.permute.xlu2 %2018 }
 0x297   :  { %v1950_v26 = vadd.f32 %v1948_v42, %v1944_v30  ;;  %v1976_v3 = vpop.permute.xlu1 %1975  ;;  %v2111_v42 = vmul.f32 %v4085_v21, %v2992_v10  ;;  %v2022_v21 = vmul.f32 %v4110_v8, %v4715_v27 }
 0x299   :  { %v1952_v36 = vadd.f32 %v1951_v41, %v1950_v26 }
 0x29a   :  { %v1964_v55 = vpop.permute.xlu0 %1963 }
 0x29b   :  { %v1958_v40 = vadd.f32 %v1956_v62, %v1952_v36 }
 0x29c   :  { %v2330_v34 = vld [vmem:[%s4457_s3 + $0x82] sm:$0x7f] }
 0x29d   :  { %v1960_v24 = vadd.f32 %v1959_v56, %v1958_v40  ;;  %v1970_v62 = vadd.f32 %v2330_v34, %v2610_v16 }
 0x29e   :  { %v2124_v45 = vpop.permute.xlu2 %2123 }
 0x29f   :  { %v1966_v38 = vadd.f32 %v1964_v55, %v1960_v24  ;;  %v2011_v28 = vpop.permute.xlu1 %2010  ;;  %v1972_v25 = vadd.f32 %v1971_v4, %v1970_v62  ;;  %v2084_v55 = vmul.f32 %v4078_v9, %v4626_v6  ;;  %v2049_v24 = vmul.f32 %v4078_v9, %v4672_v63 }
 0x2a0   :  { %v2092_v6 = vmul.f32 %v4110_v8, %v3008_v14 }
 0x2a1   :  { %1968 = vst.msk [vmem:[%s4458_s4 + $0x3a] sm:$0x7f] %vm1967_vm2, %v1966_v38 }
 0x2a2   :  { %v1992_v61 = vpop.permute.xlu0 %1991 }
 0x2a6   :  { %v2097_v30 = vpop.permute.xlu2 %2096 }
 0x2a7   :  { %v2116_v59 = vpop.permute.xlu1 %2115 }
 0x2a8   :  { %v2332_v5 = vld [vmem:[%s4457_s3 + $0xca] sm:$0x7f]  ;;  %v2338_v13 = vld [vmem:[%s4457_s3 + $0x1a2] sm:$0x7f]  ;;  %v2336_v16 = vld [vmem:[%s4457_s3 + $0x15a] sm:$0x7f] }
 0x2a9   :  { %v2005_v52 = vadd.f32 %v2332_v5, %v4708_v46  ;;  %v1978_v46 = vadd.f32 %v1976_v3, %v1972_v25  ;;  %v2334_v2 = vld [vmem:[%s4457_s3 + $0x112] sm:$0x7f]  ;;  %v2110_v33 = vadd.f32 %v2338_v13, %v2728_v49  ;;  %v2075_v29 = vadd.f32 %v2336_v16, %v2672_v60 }
 0x2aa   :  { %v2081_v7 = vpop.permute.xlu0 %2080  ;;  %v2040_v53 = vadd.f32 %v2334_v2, %v4694_v39  ;;  %v1987_v60 = vmul.f32 %v4110_v8, %v4707_v35  ;;  %v2119_v39 = vmul.f32 %v4078_v9, %v4608_v22 }
 0x2ab   :  { %v2007_v51 = vadd.f32 %v2006_v47, %v2005_v52  ;;  %v1980_v20 = vadd.f32 %v1979_v48, %v1978_v46  ;;  %v2112_v26 = vadd.f32 %v2111_v42, %v2110_v33  ;;  %v2077_v3 = vadd.f32 %v2076_v12, %v2075_v29 }
 0x2ac   :  { %v2042_v56 = vadd.f32 %v2041_v23, %v2040_v53  ;;  %v1995_v52 = vmul.f32 %v4121_v32, %v4731_v37  ;;  %v2127_v47 = vmul.f32 %v4110_v8, %v3015_v43 }
 0x2ad   :  { %v2013_v18 = vadd.f32 %v2011_v28, %v2007_v51  ;;  %v1986_v10 = vadd.f32 %v4346_v44, %v1980_v20  ;;  %v2118_v57 = vadd.f32 %v2116_v59, %v2112_v26  ;;  %v2083_v50 = vadd.f32 %v2081_v7, %v2077_v3 }
 0x2ae   :  { %v2048_v44 = vadd.f32 %v2046_v1, %v2042_v56  ;;  %v2035_v5 = vpop.permute.xlu2 %2034 }
 0x2af   :  { %v2015_v41 = vadd.f32 %v2014_v19, %v2013_v18  ;;  %v2089_v54 = vpop.permute.xlu1 %2088  ;;  %v1988_v40 = vadd.f32 %v1987_v60, %v1986_v10  ;;  %v2120_v38 = vadd.f32 %v2119_v39, %v2118_v57  ;;  %v2085_v28 = vadd.f32 %v2084_v55, %v2083_v50 }
 0x2b0   :  { %v2050_v9 = vadd.f32 %v2049_v24, %v2048_v44  ;;  %v2065_v18 = vmul.f32 %v4121_v32, %v4627_v0 }
 0x2b1   :  { %v2021_v36 = vadd.f32 %v2019_v11, %v2015_v41  ;;  %v2030_v11 = vmul.f32 %v4121_v32, %v4697_v31  ;;  %v1994_v27 = vadd.f32 %v1992_v61, %v1988_v40  ;;  %v2091_v4 = vadd.f32 %v2089_v54, %v2085_v28 }
 0x2b2   :  { %v2054_v49 = vpop.permute.xlu0 %2053  ;;  %v2126_v63 = vadd.f32 %v2124_v45, %v2120_v38  ;;  %v2057_v31 = vmul.f32 %v4110_v8, %v4651_v15  ;;  %v2135_v45 = vmul.f32 %v4121_v32, %v4609_v58  ;;  %v2100_v8 = vmul.f32 %v4121_v32, %v4606_v17 }
 0x2b3   :  { %v2023_v35 = vadd.f32 %v2022_v21, %v2021_v36  ;;  %v2056_v25 = vadd.f32 %v2054_v49, %v2050_v9  ;;  %v2093_v59 = vadd.f32 %v2092_v6, %v2091_v4  ;;  %v1996_v61 = vadd.f32 %v1995_v52, %v1994_v27 }
 0x2b4   :  { %v2128_v37 = vadd.f32 %v2127_v47, %v2126_v63 }
 0x2b5   :  { %v2058_v43 = vadd.f32 %v2057_v31, %v2056_v25  ;;  %v2099_v48 = vadd.f32 %v2097_v30, %v2093_v59 }
 0x2b6   :  { %v2140_v15 = vpop.permute.xlu2 %2139 }
 0x2b7   :  { %v2062_v34 = vpop.permute.xlu1 %2061  ;;  %v2101_v19 = vadd.f32 %v2100_v8, %v2099_v48 }
 0x2b8   :  { %v2064_v46 = vadd.f32 %v2062_v34, %v2058_v43 }
 0x2ba   :  { %v2027_v22 = vpop.permute.xlu0 %2026  ;;  %v2066_v42 = vadd.f32 %v2065_v18, %v2064_v46 }
 0x2bb   :  { %v2029_v62 = vadd.f32 %v2027_v22, %v2023_v35 }
 0x2bd   :  { %v2031_v1 = vadd.f32 %v2030_v11, %v2029_v62 }
 0x2bf   :  { %v2037_v51 = vadd.f32 %v2035_v5, %v2031_v1  ;;  %v2000_v14 = vpop.permute.xlu1 %1999 }
 0x2c0   :  { %v2002_v13 = vadd.f32 %v2000_v14, %v1996_v61 }
 0x2c1   :  { %2333 = vst.msk [vmem:[%s4458_s4 + $0xca] sm:$0x7f] %vm1967_vm2, %v2037_v51 }
 0x2c2   :  { %v2132_v7 = vpop.permute.xlu0 %2131  ;;  %2331 = vst.msk [vmem:[%s4458_s4 + $0x82] sm:$0x7f] %vm1967_vm2, %v2002_v13 }
 0x2c3   :  { %v2134_v16 = vadd.f32 %v2132_v7, %v2128_v37 }
 0x2c5   :  { %v2136_v2 = vadd.f32 %v2135_v45, %v2134_v16 }
 0x2c7   :  { %v2142_v58 = vadd.f32 %v2140_v15, %v2136_v2  ;;  %v2105_v33 = vpop.permute.xlu1 %2104 }
 0x2c8   :  { %v2107_v29 = vadd.f32 %v2105_v33, %v2101_v19 }
 0x2c9   :  { %2339 = vst.msk [vmem:[%s4458_s4 + $0x1a2] sm:$0x7f] %vm1967_vm2, %v2142_v58 }
 0x2ca   :  { %v2070_v12 = vpop.permute.xlu0 %2069  ;;  %2337 = vst.msk [vmem:[%s4458_s4 + $0x15a] sm:$0x7f] %vm1967_vm2, %v2107_v29 }
 0x2cb   :  { %v2072_v20 = vadd.f32 %v2070_v12, %v2066_v42 }
 0x2cd   :  { %2335 = vst.msk [vmem:[%s4458_s4 + $0x112] sm:$0x7f] %vm1967_vm2, %v2072_v20 }
 0x2ce   :  { %2148 = vsyncpa [#allocation3], 1 }
 0x2cf   :  { %2149 = vsyncpa [#allocation5], 1 }

</bundles_post_ra>
